<compile_context>
chip_gen: v7x
topology: tpu7x:2x2x1
jax: 0.10.0
libtpu: 0.0.40
codegen_flags: <defaults>
</compile_context>

<pallas_src>
import functools

import jax
import jax.numpy as jnp
from jax import lax
from jax.experimental import pallas as pl
from jax.experimental.pallas import tpu as pltpu


def _round_up(x, m):
    return (x + m - 1) // m * m


def _dense_block_kernel(x_ref, w1, w2, w3, w4, w5, b1, b2, b3, b4, b5,
                        o_ref, feat_ref, *, C, gc, H, W, beta):
    """Fused DenseBlock for one batch element.

    x_ref : (1, C, Hp*Wp)      f32, spatially zero-padded + row-major flattened
    w?    : (3, 3, Cout, Cin)  bf16 (tap-major, transposed so each tap is (Cout,Cin))
    b?    : (Cout, 1)          f32
    o_ref : (1, C, H*Wp)       f32, flat layout (wrapper strips the pad columns)
    feat  : (C+4*gc, FLAT)     bf16 VMEM scratch holding the concatenated features
    """
    Hp, Wp = H + 2, W + 2
    HWp = H * Wp            # columns we compute per layer (incl. 2 junk cols/row)
    flat_in = Hp * Wp

    ws = (w1, w2, w3, w4, w5)
    bs = (b1, b2, b3, b4, b5)
    cins = (C, C + gc, C + 2 * gc, C + 3 * gc, C + 4 * gc)
    couts = (gc, gc, gc, gc, C)

    # Zero the scratch once per batch element: halo rows/cols + tail stay zero.
    feat_ref[...] = jnp.zeros_like(feat_ref)
    # Deposit the (already padded, flattened) input as channels [0:C].
    feat_ref[0:C, 0:flat_in] = x_ref[0, :, :].astype(feat_ref.dtype)

    # Column q = h*Wp + w is a real output pixel iff (q mod Wp) < W.
    col = lax.broadcasted_iota(jnp.int32, (1, HWp), 1)
    valid = (col % Wp) < W

    for li in range(5):
        cin, cout = cins[li], couts[li]
        w_ref, b_ref = ws[li], bs[li]

        acc = jnp.zeros((cout, HWp), jnp.float32)
        # 3x3 conv == 9 shifted (Cout,Cin)@(Cin,H*Wp) MXU matmuls, spatial on lanes.
        for dy in range(3):
            for dx in range(3):
                off = dy * Wp + dx
                tap = feat_ref[0:cin, off:off + HWp]          # bf16
                acc = acc + jnp.dot(w_ref[dy, dx, :, :], tap,
                                    preferred_element_type=jnp.float32)
        acc = acc + b_ref[...]                                 # bias (Cout,1) bcast

        if li < 4:
            acc = jnp.where(acc > 0, acc, 0.2 * acc)           # LeakyReLU(0.2)
            acc = jnp.where(valid, acc, 0.0)                   # keep halo zero
            ch0 = C + li * gc
            feat_ref[ch0:ch0 + cout, Wp + 1:Wp + 1 + HWp] = acc.astype(feat_ref.dtype)
        else:
            # Fused residual: out = x5*beta + x   (x read from f32 input block).
            x_valid = x_ref[0, :, Wp + 1:Wp + 1 + HWp].astype(jnp.float32)
            o_ref[0, :, :] = (beta * acc + x_valid).astype(o_ref.dtype)


def dense_block_forward(x_nchw, params, beta=0.2, *, compute_dtype=jnp.bfloat16):
    """DenseBlock.forward — input/output are NCHW like the PyTorch module."""
    N, C, H, W = x_nchw.shape
    gc = params["w1"].shape[-1]
    Hp, Wp = H + 2, W + 2
    HWp = H * Wp
    flat_in = Hp * Wp
    flat_scratch = _round_up(flat_in + 2, 128)   # +2: last tap reads 2 cols past end
    Ctot = C + 4 * gc

    # Zero-pad spatially once (tiny, input-sized) and flatten padded rows onto lanes.
    xp = jnp.pad(x_nchw, ((0, 0), (0, 0), (1, 1), (1, 1)))
    x_flat = xp.reshape(N, C, flat_in)

    # Weights: HWIO -> (3,3,Cout,Cin) bf16 for the MXU; biases stay f32.
    w_args, b_args = [], []
    for i in range(1, 6):
        w_args.append(jnp.transpose(params[f"w{i}"], (0, 1, 3, 2)).astype(compute_dtype))
        b_args.append(params[f"b{i}"].astype(jnp.float32).reshape(-1, 1))

    kernel = functools.partial(_dense_block_kernel,
                               C=C, gc=gc, H=H, W=W, beta=beta)

    w_specs = [pl.BlockSpec(w.shape, lambda n: (0, 0, 0, 0)) for w in w_args]
    b_specs = [pl.BlockSpec(b.shape, lambda n: (0, 0)) for b in b_args]

    out_flat = pl.pallas_call(
        kernel,
        out_shape=jax.ShapeDtypeStruct((N, C, HWp), jnp.float32),
        grid=(N,),
        in_specs=[pl.BlockSpec((1, C, flat_in), lambda n: (n, 0, 0))]
                 + w_specs + b_specs,
        out_specs=pl.BlockSpec((1, C, HWp), lambda n: (n, 0, 0)),
        scratch_shapes=[pltpu.VMEM((Ctot, flat_scratch), compute_dtype)],
        compiler_params=pltpu.CompilerParams(
            dimension_semantics=("parallel",)),
    )(x_flat, *w_args, *b_args)

    # Un-flatten: columns [0:W) of each padded-width row are the real pixels.
    return out_flat.reshape(N, C, H, Wp)[:, :, :, :W]


def init_dense_block_params(key, channels, growth_channels=32, dtype=jnp.float32):
    """Deterministic synthetic parameters matching the PyTorch module shapes (HWIO)."""
    cins = [channels,
            channels + growth_channels,
            channels + 2 * growth_channels,
            channels + 3 * growth_channels,
            channels + 4 * growth_channels]
    couts = [growth_channels] * 4 + [channels]
    params = {}
    for i, (cin, cout) in enumerate(zip(cins, couts), start=1):
        key, kw, kb = jax.random.split(key, 3)
        scale = (2.0 / (cin * 9)) ** 0.5
        params[f"w{i}"] = (scale * jax.random.normal(kw, (3, 3, cin, cout))).astype(dtype)
        params[f"b{i}"] = (0.01 * jax.random.normal(kb, (cout,))).astype(dtype)
    return params


# ---------- pure-JAX reference (f32, for verification only) ----------
def _conv3x3_ref(x_nchw, w_hwio, b):
    y = lax.conv_general_dilated(
        x_nchw, w_hwio, window_strides=(1, 1), padding="SAME",
        dimension_numbers=("NCHW", "HWIO", "NCHW"))
    return y + b.reshape(1, -1, 1, 1)


def dense_block_ref(x_nchw, params, beta=0.2):
    lrelu = lambda v: jnp.where(v > 0, v, 0.2 * v)
    x = x_nchw
    x1 = lrelu(_conv3x3_ref(x, params["w1"], params["b1"]))
    x2 = lrelu(_conv3x3_ref(jnp.concatenate([x, x1], 1), params["w2"], params["b2"]))
    x3 = lrelu(_conv3x3_ref(jnp.concatenate([x, x1, x2], 1), params["w3"], params["b3"]))
    x4 = lrelu(_conv3x3_ref(jnp.concatenate([x, x1, x2, x3], 1), params["w4"], params["b4"]))
    x5 = _conv3x3_ref(jnp.concatenate([x, x1, x2, x3, x4], 1), params["w5"], params["b5"])
    return x5 * beta + x


if __name__ == "__main__":
    N, C, H, W = 2, 4, 16, 16
    growth = 32

    key = jax.random.PRNGKey(0)
    key, kx = jax.random.split(key)
    x = jax.random.normal(kx, (N, C, H, W), dtype=jnp.float32)
    params = init_dense_block_params(key, C, growth)

    out = jax.block_until_ready(jax.jit(dense_block_forward)(x, params))
    ref = jax.block_until_ready(dense_block_ref(x, params))

    assert out.shape == (N, C, H, W), out.shape
    # Tolerance loosened vs a pure-f32 check because MXU operands are bf16.
    assert jnp.allclose(out, ref, rtol=3e-2, atol=3e-2), \
        float(jnp.max(jnp.abs(out - ref)))
    print("KERNEL_OK")
</pallas_src>

<mosaic_0001>
module attributes {stable_mosaic.version = 11 : i64} {
  func.func @_dense_block_kernel(%arg0: i32, %arg1: memref<1x4x324xf32, #tpu.memory_space<vmem>>, %arg2: memref<3x3x32x4xbf16, #tpu.memory_space<vmem>>, %arg3: memref<3x3x32x36xbf16, #tpu.memory_space<vmem>>, %arg4: memref<3x3x32x68xbf16, #tpu.memory_space<vmem>>, %arg5: memref<3x3x32x100xbf16, #tpu.memory_space<vmem>>, %arg6: memref<3x3x4x132xbf16, #tpu.memory_space<vmem>>, %arg7: memref<32x1xf32, #tpu.memory_space<vmem>>, %arg8: memref<32x1xf32, #tpu.memory_space<vmem>>, %arg9: memref<32x1xf32, #tpu.memory_space<vmem>>, %arg10: memref<32x1xf32, #tpu.memory_space<vmem>>, %arg11: memref<4x1xf32, #tpu.memory_space<vmem>>, %arg12: memref<1x4x288xf32, #tpu.memory_space<vmem>>, %arg13: memref<132x384xbf16, #tpu.memory_space<vmem>>) attributes {dimension_semantics = [#tpu.dimension_semantics<parallel>], iteration_bounds = array<i64: 2>, scalar_prefetch = 0 : i64, scratch_operands = 1 : i64, tpu.core_type = #tpu.core_type<tc>, window_params = [{transform_indices = @transform_0, window_bounds = array<i64: 1, 4, 324>}, {pipeline_mode = #tpu.pipeline_mode<synchronous>, transform_indices = @transform_1, window_bounds = array<i64: 3, 3, 32, 4>}, {pipeline_mode = #tpu.pipeline_mode<synchronous>, transform_indices = @transform_2, window_bounds = array<i64: 3, 3, 32, 36>}, {pipeline_mode = #tpu.pipeline_mode<synchronous>, transform_indices = @transform_3, window_bounds = array<i64: 3, 3, 32, 68>}, {pipeline_mode = #tpu.pipeline_mode<synchronous>, transform_indices = @transform_4, window_bounds = array<i64: 3, 3, 32, 100>}, {pipeline_mode = #tpu.pipeline_mode<synchronous>, transform_indices = @transform_5, window_bounds = array<i64: 3, 3, 4, 132>}, {pipeline_mode = #tpu.pipeline_mode<synchronous>, transform_indices = @transform_6, window_bounds = array<i64: 32, 1>}, {pipeline_mode = #tpu.pipeline_mode<synchronous>, transform_indices = @transform_7, window_bounds = array<i64: 32, 1>}, {pipeline_mode = #tpu.pipeline_mode<synchronous>, transform_indices = @transform_8, window_bounds = array<i64: 32, 1>}, {pipeline_mode = #tpu.pipeline_mode<synchronous>, transform_indices = @transform_9, window_bounds = array<i64: 32, 1>}, {pipeline_mode = #tpu.pipeline_mode<synchronous>, transform_indices = @transform_10, window_bounds = array<i64: 4, 1>}, {transform_indices = @transform_11, window_bounds = array<i64: 1, 4, 288>}]} {
    %cst = arith.constant 0.000000e+00 : bf16
    %0 = vector.broadcast %cst : bf16 to vector<132x384xbf16>
    %c0 = arith.constant 0 : index
    %c0_0 = arith.constant 0 : index
    %1 = vector.load %arg13[%c0, %c0_0] : memref<132x384xbf16, #tpu.memory_space<vmem>>, vector<132x384xbf16>
    tpu.vector_store %arg13[%c0, %c0_0], %0 {strides = array<i32>} : memref<132x384xbf16, #tpu.memory_space<vmem>>, vector<132x384xbf16>,
    %c0_1 = arith.constant 0 : index
    %c0_2 = arith.constant 0 : index
    %c0_3 = arith.constant 0 : index
    %2 = vector.load %arg1[%c0_1, %c0_2, %c0_3] : memref<1x4x324xf32, #tpu.memory_space<vmem>>, vector<1x4x324xf32>
    %3 = vector.shape_cast %2 : vector<1x4x324xf32> to vector<4x324xf32>
    %4 = arith.truncf %3 : vector<4x324xf32> to vector<4x324xbf16>
    %c0_4 = arith.constant 0 : index
    %c0_5 = arith.constant 0 : index
    %5 = vector.load %arg13[%c0_4, %c0_5] : memref<132x384xbf16, #tpu.memory_space<vmem>>, vector<4x324xbf16>
    tpu.vector_store %arg13[%c0_4, %c0_5], %4 {strides = array<i32>} : memref<132x384xbf16, #tpu.memory_space<vmem>>, vector<4x324xbf16>,
    %6 = tpu.iota {dimensions = array<i32: 1>} : vector<1x288xi32>
    %c18_i32 = arith.constant 18 : i32
    %c0_i32 = arith.constant 0 : i32
    %7 = arith.cmpi eq, %c18_i32, %c0_i32 : i32
    %c1_i32 = arith.constant 1 : i32
    %8 = arith.select %7, %c1_i32, %c18_i32 : i32
    %9 = vector.broadcast %8 : i32 to vector<1x288xi32>
    %10 = arith.remsi %6, %9 : vector<1x288xi32>
    %c0_i32_6 = arith.constant 0 : i32
    %11 = vector.broadcast %c0_i32_6 : i32 to vector<1x288xi32>
    %12 = arith.cmpi ne, %10, %11 : vector<1x288xi32>
    %c0_i32_7 = arith.constant 0 : i32
    %13 = vector.broadcast %c0_i32_7 : i32 to vector<1x288xi32>
    %14 = arith.cmpi slt, %10, %13 : vector<1x288xi32>
    %c0_i32_8 = arith.constant 0 : i32
    %15 = arith.cmpi slt, %8, %c0_i32_8 : i32
    %16 = vector.broadcast %15 : i1 to vector<1x288xi1>
    %17 = vector.broadcast %16 : vector<1x288xi1> to vector<1x288xi1>
    %18 = arith.xori %14, %17 : vector<1x288xi1>
    %19 = arith.andi %18, %12 : vector<1x288xi1>
    %20 = vector.broadcast %8 : i32 to vector<1x288xi32>
    %21 = arith.addi %10, %20 : vector<1x288xi32>
    %22 = arith.select %19, %21, %10 : vector<1x288xi1>, vector<1x288xi32>
    %c16_i32 = arith.constant 16 : i32
    %23 = vector.broadcast %c16_i32 : i32 to vector<1x288xi32>
    %24 = arith.cmpi slt, %22, %23 : vector<1x288xi32>
    %cst_9 = arith.constant 0.000000e+00 : f32
    %25 = vector.broadcast %cst_9 : f32 to vector<32x288xf32>
    %c0_10 = arith.constant 0 : index
    %c0_11 = arith.constant 0 : index
    %26 = vector.load %arg13[%c0_10, %c0_11] : memref<132x384xbf16, #tpu.memory_space<vmem>>, vector<4x288xbf16>
    %c0_12 = arith.constant 0 : index
    %c0_13 = arith.constant 0 : index
    %c0_14 = arith.constant 0 : index
    %c0_15 = arith.constant 0 : index
    %27 = vector.load %arg2[%c0_12, %c0_13, %c0_14, %c0_15] : memref<3x3x32x4xbf16, #tpu.memory_space<vmem>>, vector<1x1x32x4xbf16>
    %28 = vector.shape_cast %27 : vector<1x1x32x4xbf16> to vector<32x4xbf16>
    %cst_16 = arith.constant dense<0.000000e+00> : vector<32x288xf32>
    %29 = tpu.matmul %28, %26, %cst_16 {dimension_numbers = #tpu.dot_dimension_numbers<[1], [0], [0], [1], [0, 0, 1, 1], [], []>} : vector<32x4xbf16>, vector<4x288xbf16>, vector<32x288xf32> -> vector<32x288xf32>
    %30 = arith.addf %25, %29 : vector<32x288xf32>
    %c0_17 = arith.constant 0 : index
    %c1 = arith.constant 1 : index
    %31 = vector.load %arg13[%c0_17, %c1] : memref<132x384xbf16, #tpu.memory_space<vmem>>, vector<4x288xbf16>
    %c0_18 = arith.constant 0 : index
    %c1_19 = arith.constant 1 : index
    %c0_20 = arith.constant 0 : index
    %c0_21 = arith.constant 0 : index
    %32 = vector.load %arg2[%c0_18, %c1_19, %c0_20, %c0_21] : memref<3x3x32x4xbf16, #tpu.memory_space<vmem>>, vector<1x1x32x4xbf16>
    %33 = vector.shape_cast %32 : vector<1x1x32x4xbf16> to vector<32x4xbf16>
    %cst_22 = arith.constant dense<0.000000e+00> : vector<32x288xf32>
    %34 = tpu.matmul %33, %31, %cst_22 {dimension_numbers = #tpu.dot_dimension_numbers<[1], [0], [0], [1], [0, 0, 1, 1], [], []>} : vector<32x4xbf16>, vector<4x288xbf16>, vector<32x288xf32> -> vector<32x288xf32>
    %35 = arith.addf %30, %34 : vector<32x288xf32>
    %c0_23 = arith.constant 0 : index
    %c2 = arith.constant 2 : index
    %36 = vector.load %arg13[%c0_23, %c2] : memref<132x384xbf16, #tpu.memory_space<vmem>>, vector<4x288xbf16>
    %c0_24 = arith.constant 0 : index
    %c2_25 = arith.constant 2 : index
    %c0_26 = arith.constant 0 : index
    %c0_27 = arith.constant 0 : index
    %37 = vector.load %arg2[%c0_24, %c2_25, %c0_26, %c0_27] : memref<3x3x32x4xbf16, #tpu.memory_space<vmem>>, vector<1x1x32x4xbf16>
    %38 = vector.shape_cast %37 : vector<1x1x32x4xbf16> to vector<32x4xbf16>
    %cst_28 = arith.constant dense<0.000000e+00> : vector<32x288xf32>
    %39 = tpu.matmul %38, %36, %cst_28 {dimension_numbers = #tpu.dot_dimension_numbers<[1], [0], [0], [1], [0, 0, 1, 1], [], []>} : vector<32x4xbf16>, vector<4x288xbf16>, vector<32x288xf32> -> vector<32x288xf32>
    %40 = arith.addf %35, %39 : vector<32x288xf32>
    %c0_29 = arith.constant 0 : index
    %c18 = arith.constant 18 : index
    %41 = vector.load %arg13[%c0_29, %c18] : memref<132x384xbf16, #tpu.memory_space<vmem>>, vector<4x288xbf16>
    %c1_30 = arith.constant 1 : index
    %c0_31 = arith.constant 0 : index
    %c0_32 = arith.constant 0 : index
    %c0_33 = arith.constant 0 : index
    %42 = vector.load %arg2[%c1_30, %c0_31, %c0_32, %c0_33] : memref<3x3x32x4xbf16, #tpu.memory_space<vmem>>, vector<1x1x32x4xbf16>
    %43 = vector.shape_cast %42 : vector<1x1x32x4xbf16> to vector<32x4xbf16>
    %cst_34 = arith.constant dense<0.000000e+00> : vector<32x288xf32>
    %44 = tpu.matmul %43, %41, %cst_34 {dimension_numbers = #tpu.dot_dimension_numbers<[1], [0], [0], [1], [0, 0, 1, 1], [], []>} : vector<32x4xbf16>, vector<4x288xbf16>, vector<32x288xf32> -> vector<32x288xf32>
    %45 = arith.addf %40, %44 : vector<32x288xf32>
    %c0_35 = arith.constant 0 : index
    %c19 = arith.constant 19 : index
    %46 = vector.load %arg13[%c0_35, %c19] : memref<132x384xbf16, #tpu.memory_space<vmem>>, vector<4x288xbf16>
    %c1_36 = arith.constant 1 : index
    %c1_37 = arith.constant 1 : index
    %c0_38 = arith.constant 0 : index
    %c0_39 = arith.constant 0 : index
    %47 = vector.load %arg2[%c1_36, %c1_37, %c0_38, %c0_39] : memref<3x3x32x4xbf16, #tpu.memory_space<vmem>>, vector<1x1x32x4xbf16>
    %48 = vector.shape_cast %47 : vector<1x1x32x4xbf16> to vector<32x4xbf16>
    %cst_40 = arith.constant dense<0.000000e+00> : vector<32x288xf32>
    %49 = tpu.matmul %48, %46, %cst_40 {dimension_numbers = #tpu.dot_dimension_numbers<[1], [0], [0], [1], [0, 0, 1, 1], [], []>} : vector<32x4xbf16>, vector<4x288xbf16>, vector<32x288xf32> -> vector<32x288xf32>
    %50 = arith.addf %45, %49 : vector<32x288xf32>
    %c0_41 = arith.constant 0 : index
    %c20 = arith.constant 20 : index
    %51 = vector.load %arg13[%c0_41, %c20] : memref<132x384xbf16, #tpu.memory_space<vmem>>, vector<4x288xbf16>
    %c1_42 = arith.constant 1 : index
    %c2_43 = arith.constant 2 : index
    %c0_44 = arith.constant 0 : index
    %c0_45 = arith.constant 0 : index
    %52 = vector.load %arg2[%c1_42, %c2_43, %c0_44, %c0_45] : memref<3x3x32x4xbf16, #tpu.memory_space<vmem>>, vector<1x1x32x4xbf16>
    %53 = vector.shape_cast %52 : vector<1x1x32x4xbf16> to vector<32x4xbf16>
    %cst_46 = arith.constant dense<0.000000e+00> : vector<32x288xf32>
    %54 = tpu.matmul %53, %51, %cst_46 {dimension_numbers = #tpu.dot_dimension_numbers<[1], [0], [0], [1], [0, 0, 1, 1], [], []>} : vector<32x4xbf16>, vector<4x288xbf16>, vector<32x288xf32> -> vector<32x288xf32>
    %55 = arith.addf %50, %54 : vector<32x288xf32>
    %c0_47 = arith.constant 0 : index
    %c36 = arith.constant 36 : index
    %56 = vector.load %arg13[%c0_47, %c36] : memref<132x384xbf16, #tpu.memory_space<vmem>>, vector<4x288xbf16>
    %c2_48 = arith.constant 2 : index
    %c0_49 = arith.constant 0 : index
    %c0_50 = arith.constant 0 : index
    %c0_51 = arith.constant 0 : index
    %57 = vector.load %arg2[%c2_48, %c0_49, %c0_50, %c0_51] : memref<3x3x32x4xbf16, #tpu.memory_space<vmem>>, vector<1x1x32x4xbf16>
    %58 = vector.shape_cast %57 : vector<1x1x32x4xbf16> to vector<32x4xbf16>
    %cst_52 = arith.constant dense<0.000000e+00> : vector<32x288xf32>
    %59 = tpu.matmul %58, %56, %cst_52 {dimension_numbers = #tpu.dot_dimension_numbers<[1], [0], [0], [1], [0, 0, 1, 1], [], []>} : vector<32x4xbf16>, vector<4x288xbf16>, vector<32x288xf32> -> vector<32x288xf32>
    %60 = arith.addf %55, %59 : vector<32x288xf32>
    %c0_53 = arith.constant 0 : index
    %c37 = arith.constant 37 : index
    %61 = vector.load %arg13[%c0_53, %c37] : memref<132x384xbf16, #tpu.memory_space<vmem>>, vector<4x288xbf16>
    %c2_54 = arith.constant 2 : index
    %c1_55 = arith.constant 1 : index
    %c0_56 = arith.constant 0 : index
    %c0_57 = arith.constant 0 : index
    %62 = vector.load %arg2[%c2_54, %c1_55, %c0_56, %c0_57] : memref<3x3x32x4xbf16, #tpu.memory_space<vmem>>, vector<1x1x32x4xbf16>
    %63 = vector.shape_cast %62 : vector<1x1x32x4xbf16> to vector<32x4xbf16>
    %cst_58 = arith.constant dense<0.000000e+00> : vector<32x288xf32>
    %64 = tpu.matmul %63, %61, %cst_58 {dimension_numbers = #tpu.dot_dimension_numbers<[1], [0], [0], [1], [0, 0, 1, 1], [], []>} : vector<32x4xbf16>, vector<4x288xbf16>, vector<32x288xf32> -> vector<32x288xf32>
    %65 = arith.addf %60, %64 : vector<32x288xf32>
    %c0_59 = arith.constant 0 : index
    %c38 = arith.constant 38 : index
    %66 = vector.load %arg13[%c0_59, %c38] : memref<132x384xbf16, #tpu.memory_space<vmem>>, vector<4x288xbf16>
    %c2_60 = arith.constant 2 : index
    %c2_61 = arith.constant 2 : index
    %c0_62 = arith.constant 0 : index
    %c0_63 = arith.constant 0 : index
    %67 = vector.load %arg2[%c2_60, %c2_61, %c0_62, %c0_63] : memref<3x3x32x4xbf16, #tpu.memory_space<vmem>>, vector<1x1x32x4xbf16>
    %68 = vector.shape_cast %67 : vector<1x1x32x4xbf16> to vector<32x4xbf16>
    %cst_64 = arith.constant dense<0.000000e+00> : vector<32x288xf32>
    %69 = tpu.matmul %68, %66, %cst_64 {dimension_numbers = #tpu.dot_dimension_numbers<[1], [0], [0], [1], [0, 0, 1, 1], [], []>} : vector<32x4xbf16>, vector<4x288xbf16>, vector<32x288xf32> -> vector<32x288xf32>
    %70 = arith.addf %65, %69 : vector<32x288xf32>
    %c0_65 = arith.constant 0 : index
    %c0_66 = arith.constant 0 : index
    %71 = vector.load %arg7[%c0_65, %c0_66] : memref<32x1xf32, #tpu.memory_space<vmem>>, vector<32x1xf32>
    %72 = vector.broadcast %71 : vector<32x1xf32> to vector<32x288xf32>
    %73 = arith.addf %70, %72 : vector<32x288xf32>
    %cst_67 = arith.constant 0.000000e+00 : f32
    %74 = vector.broadcast %cst_67 : f32 to vector<32x288xf32>
    %75 = arith.cmpf ogt, %73, %74 : vector<32x288xf32>
    %cst_68 = arith.constant 2.000000e-01 : f32
    %76 = vector.broadcast %cst_68 : f32 to vector<32x288xf32>
    %77 = arith.mulf %76, %73 : vector<32x288xf32>
    %78 = arith.select %75, %73, %77 : vector<32x288xi1>, vector<32x288xf32>
    %cst_69 = arith.constant 0.000000e+00 : f32
    %79 = vector.shape_cast %24 : vector<1x288xi1> to vector<1x288xi1>
    %80 = vector.broadcast %79 : vector<1x288xi1> to vector<32x288xi1>
    %81 = vector.broadcast %cst_69 : f32 to vector<32x288xf32>
    %82 = arith.select %80, %78, %81 : vector<32x288xi1>, vector<32x288xf32>
    %83 = arith.truncf %82 : vector<32x288xf32> to vector<32x288xbf16>
    %c4 = arith.constant 4 : index
    %c19_70 = arith.constant 19 : index
    %84 = vector.load %arg13[%c4, %c19_70] : memref<132x384xbf16, #tpu.memory_space<vmem>>, vector<32x288xbf16>
    tpu.vector_store %arg13[%c4, %c19_70], %83 {strides = array<i32>} : memref<132x384xbf16, #tpu.memory_space<vmem>>, vector<32x288xbf16>,
    %cst_71 = arith.constant 0.000000e+00 : f32
    %85 = vector.broadcast %cst_71 : f32 to vector<32x288xf32>
    %c0_72 = arith.constant 0 : index
    %c0_73 = arith.constant 0 : index
    %86 = vector.load %arg13[%c0_72, %c0_73] : memref<132x384xbf16, #tpu.memory_space<vmem>>, vector<36x288xbf16>
    %c0_74 = arith.constant 0 : index
    %c0_75 = arith.constant 0 : index
    %c0_76 = arith.constant 0 : index
    %c0_77 = arith.constant 0 : index
    %87 = vector.load %arg3[%c0_74, %c0_75, %c0_76, %c0_77] : memref<3x3x32x36xbf16, #tpu.memory_space<vmem>>, vector<1x1x32x36xbf16>
    %88 = vector.shape_cast %87 : vector<1x1x32x36xbf16> to vector<32x36xbf16>
    %cst_78 = arith.constant dense<0.000000e+00> : vector<32x288xf32>
    %89 = tpu.matmul %88, %86, %cst_78 {dimension_numbers = #tpu.dot_dimension_numbers<[1], [0], [0], [1], [0, 0, 1, 1], [], []>} : vector<32x36xbf16>, vector<36x288xbf16>, vector<32x288xf32> -> vector<32x288xf32>
    %90 = arith.addf %85, %89 : vector<32x288xf32>
    %c0_79 = arith.constant 0 : index
    %c1_80 = arith.constant 1 : index
    %91 = vector.load %arg13[%c0_79, %c1_80] : memref<132x384xbf16, #tpu.memory_space<vmem>>, vector<36x288xbf16>
    %c0_81 = arith.constant 0 : index
    %c1_82 = arith.constant 1 : index
    %c0_83 = arith.constant 0 : index
    %c0_84 = arith.constant 0 : index
    %92 = vector.load %arg3[%c0_81, %c1_82, %c0_83, %c0_84] : memref<3x3x32x36xbf16, #tpu.memory_space<vmem>>, vector<1x1x32x36xbf16>
    %93 = vector.shape_cast %92 : vector<1x1x32x36xbf16> to vector<32x36xbf16>
    %cst_85 = arith.constant dense<0.000000e+00> : vector<32x288xf32>
    %94 = tpu.matmul %93, %91, %cst_85 {dimension_numbers = #tpu.dot_dimension_numbers<[1], [0], [0], [1], [0, 0, 1, 1], [], []>} : vector<32x36xbf16>, vector<36x288xbf16>, vector<32x288xf32> -> vector<32x288xf32>
    %95 = arith.addf %90, %94 : vector<32x288xf32>
    %c0_86 = arith.constant 0 : index
    %c2_87 = arith.constant 2 : index
    %96 = vector.load %arg13[%c0_86, %c2_87] : memref<132x384xbf16, #tpu.memory_space<vmem>>, vector<36x288xbf16>
    %c0_88 = arith.constant 0 : index
    %c2_89 = arith.constant 2 : index
    %c0_90 = arith.constant 0 : index
    %c0_91 = arith.constant 0 : index
    %97 = vector.load %arg3[%c0_88, %c2_89, %c0_90, %c0_91] : memref<3x3x32x36xbf16, #tpu.memory_space<vmem>>, vector<1x1x32x36xbf16>
    %98 = vector.shape_cast %97 : vector<1x1x32x36xbf16> to vector<32x36xbf16>
    %cst_92 = arith.constant dense<0.000000e+00> : vector<32x288xf32>
    %99 = tpu.matmul %98, %96, %cst_92 {dimension_numbers = #tpu.dot_dimension_numbers<[1], [0], [0], [1], [0, 0, 1, 1], [], []>} : vector<32x36xbf16>, vector<36x288xbf16>, vector<32x288xf32> -> vector<32x288xf32>
    %100 = arith.addf %95, %99 : vector<32x288xf32>
    %c0_93 = arith.constant 0 : index
    %c18_94 = arith.constant 18 : index
    %101 = vector.load %arg13[%c0_93, %c18_94] : memref<132x384xbf16, #tpu.memory_space<vmem>>, vector<36x288xbf16>
    %c1_95 = arith.constant 1 : index
    %c0_96 = arith.constant 0 : index
    %c0_97 = arith.constant 0 : index
    %c0_98 = arith.constant 0 : index
    %102 = vector.load %arg3[%c1_95, %c0_96, %c0_97, %c0_98] : memref<3x3x32x36xbf16, #tpu.memory_space<vmem>>, vector<1x1x32x36xbf16>
    %103 = vector.shape_cast %102 : vector<1x1x32x36xbf16> to vector<32x36xbf16>
    %cst_99 = arith.constant dense<0.000000e+00> : vector<32x288xf32>
    %104 = tpu.matmul %103, %101, %cst_99 {dimension_numbers = #tpu.dot_dimension_numbers<[1], [0], [0], [1], [0, 0, 1, 1], [], []>} : vector<32x36xbf16>, vector<36x288xbf16>, vector<32x288xf32> -> vector<32x288xf32>
    %105 = arith.addf %100, %104 : vector<32x288xf32>
    %c0_100 = arith.constant 0 : index
    %c19_101 = arith.constant 19 : index
    %106 = vector.load %arg13[%c0_100, %c19_101] : memref<132x384xbf16, #tpu.memory_space<vmem>>, vector<36x288xbf16>
    %c1_102 = arith.constant 1 : index
    %c1_103 = arith.constant 1 : index
    %c0_104 = arith.constant 0 : index
    %c0_105 = arith.constant 0 : index
    %107 = vector.load %arg3[%c1_102, %c1_103, %c0_104, %c0_105] : memref<3x3x32x36xbf16, #tpu.memory_space<vmem>>, vector<1x1x32x36xbf16>
    %108 = vector.shape_cast %107 : vector<1x1x32x36xbf16> to vector<32x36xbf16>
    %cst_106 = arith.constant dense<0.000000e+00> : vector<32x288xf32>
    %109 = tpu.matmul %108, %106, %cst_106 {dimension_numbers = #tpu.dot_dimension_numbers<[1], [0], [0], [1], [0, 0, 1, 1], [], []>} : vector<32x36xbf16>, vector<36x288xbf16>, vector<32x288xf32> -> vector<32x288xf32>
    %110 = arith.addf %105, %109 : vector<32x288xf32>
    %c0_107 = arith.constant 0 : index
    %c20_108 = arith.constant 20 : index
    %111 = vector.load %arg13[%c0_107, %c20_108] : memref<132x384xbf16, #tpu.memory_space<vmem>>, vector<36x288xbf16>
    %c1_109 = arith.constant 1 : index
    %c2_110 = arith.constant 2 : index
    %c0_111 = arith.constant 0 : index
    %c0_112 = arith.constant 0 : index
    %112 = vector.load %arg3[%c1_109, %c2_110, %c0_111, %c0_112] : memref<3x3x32x36xbf16, #tpu.memory_space<vmem>>, vector<1x1x32x36xbf16>
    %113 = vector.shape_cast %112 : vector<1x1x32x36xbf16> to vector<32x36xbf16>
    %cst_113 = arith.constant dense<0.000000e+00> : vector<32x288xf32>
    %114 = tpu.matmul %113, %111, %cst_113 {dimension_numbers = #tpu.dot_dimension_numbers<[1], [0], [0], [1], [0, 0, 1, 1], [], []>} : vector<32x36xbf16>, vector<36x288xbf16>, vector<32x288xf32> -> vector<32x288xf32>
    %115 = arith.addf %110, %114 : vector<32x288xf32>
    %c0_114 = arith.constant 0 : index
    %c36_115 = arith.constant 36 : index
    %116 = vector.load %arg13[%c0_114, %c36_115] : memref<132x384xbf16, #tpu.memory_space<vmem>>, vector<36x288xbf16>
    %c2_116 = arith.constant 2 : index
    %c0_117 = arith.constant 0 : index
    %c0_118 = arith.constant 0 : index
    %c0_119 = arith.constant 0 : index
    %117 = vector.load %arg3[%c2_116, %c0_117, %c0_118, %c0_119] : memref<3x3x32x36xbf16, #tpu.memory_space<vmem>>, vector<1x1x32x36xbf16>
    %118 = vector.shape_cast %117 : vector<1x1x32x36xbf16> to vector<32x36xbf16>
    %cst_120 = arith.constant dense<0.000000e+00> : vector<32x288xf32>
    %119 = tpu.matmul %118, %116, %cst_120 {dimension_numbers = #tpu.dot_dimension_numbers<[1], [0], [0], [1], [0, 0, 1, 1], [], []>} : vector<32x36xbf16>, vector<36x288xbf16>, vector<32x288xf32> -> vector<32x288xf32>
    %120 = arith.addf %115, %119 : vector<32x288xf32>
    %c0_121 = arith.constant 0 : index
    %c37_122 = arith.constant 37 : index
    %121 = vector.load %arg13[%c0_121, %c37_122] : memref<132x384xbf16, #tpu.memory_space<vmem>>, vector<36x288xbf16>
    %c2_123 = arith.constant 2 : index
    %c1_124 = arith.constant 1 : index
    %c0_125 = arith.constant 0 : index
    %c0_126 = arith.constant 0 : index
    %122 = vector.load %arg3[%c2_123, %c1_124, %c0_125, %c0_126] : memref<3x3x32x36xbf16, #tpu.memory_space<vmem>>, vector<1x1x32x36xbf16>
    %123 = vector.shape_cast %122 : vector<1x1x32x36xbf16> to vector<32x36xbf16>
    %cst_127 = arith.constant dense<0.000000e+00> : vector<32x288xf32>
    %124 = tpu.matmul %123, %121, %cst_127 {dimension_numbers = #tpu.dot_dimension_numbers<[1], [0], [0], [1], [0, 0, 1, 1], [], []>} : vector<32x36xbf16>, vector<36x288xbf16>, vector<32x288xf32> -> vector<32x288xf32>
    %125 = arith.addf %120, %124 : vector<32x288xf32>
    %c0_128 = arith.constant 0 : index
    %c38_129 = arith.constant 38 : index
    %126 = vector.load %arg13[%c0_128, %c38_129] : memref<132x384xbf16, #tpu.memory_space<vmem>>, vector<36x288xbf16>
    %c2_130 = arith.constant 2 : index
    %c2_131 = arith.constant 2 : index
    %c0_132 = arith.constant 0 : index
    %c0_133 = arith.constant 0 : index
    %127 = vector.load %arg3[%c2_130, %c2_131, %c0_132, %c0_133] : memref<3x3x32x36xbf16, #tpu.memory_space<vmem>>, vector<1x1x32x36xbf16>
    %128 = vector.shape_cast %127 : vector<1x1x32x36xbf16> to vector<32x36xbf16>
    %cst_134 = arith.constant dense<0.000000e+00> : vector<32x288xf32>
    %129 = tpu.matmul %128, %126, %cst_134 {dimension_numbers = #tpu.dot_dimension_numbers<[1], [0], [0], [1], [0, 0, 1, 1], [], []>} : vector<32x36xbf16>, vector<36x288xbf16>, vector<32x288xf32> -> vector<32x288xf32>
    %130 = arith.addf %125, %129 : vector<32x288xf32>
    %c0_135 = arith.constant 0 : index
    %c0_136 = arith.constant 0 : index
    %131 = vector.load %arg8[%c0_135, %c0_136] : memref<32x1xf32, #tpu.memory_space<vmem>>, vector<32x1xf32>
    %132 = vector.broadcast %131 : vector<32x1xf32> to vector<32x288xf32>
    %133 = arith.addf %130, %132 : vector<32x288xf32>
    %cst_137 = arith.constant 0.000000e+00 : f32
    %134 = vector.broadcast %cst_137 : f32 to vector<32x288xf32>
    %135 = arith.cmpf ogt, %133, %134 : vector<32x288xf32>
    %cst_138 = arith.constant 2.000000e-01 : f32
    %136 = vector.broadcast %cst_138 : f32 to vector<32x288xf32>
    %137 = arith.mulf %136, %133 : vector<32x288xf32>
    %138 = arith.select %135, %133, %137 : vector<32x288xi1>, vector<32x288xf32>
    %cst_139 = arith.constant 0.000000e+00 : f32
    %139 = vector.shape_cast %24 : vector<1x288xi1> to vector<1x288xi1>
    %140 = vector.broadcast %139 : vector<1x288xi1> to vector<32x288xi1>
    %141 = vector.broadcast %cst_139 : f32 to vector<32x288xf32>
    %142 = arith.select %140, %138, %141 : vector<32x288xi1>, vector<32x288xf32>
    %143 = arith.truncf %142 : vector<32x288xf32> to vector<32x288xbf16>
    %c36_140 = arith.constant 36 : index
    %c19_141 = arith.constant 19 : index
    %144 = vector.load %arg13[%c36_140, %c19_141] : memref<132x384xbf16, #tpu.memory_space<vmem>>, vector<32x288xbf16>
    tpu.vector_store %arg13[%c36_140, %c19_141], %143 {strides = array<i32>} : memref<132x384xbf16, #tpu.memory_space<vmem>>, vector<32x288xbf16>,
    %cst_142 = arith.constant 0.000000e+00 : f32
    %145 = vector.broadcast %cst_142 : f32 to vector<32x288xf32>
    %c0_143 = arith.constant 0 : index
    %c0_144 = arith.constant 0 : index
    %146 = vector.load %arg13[%c0_143, %c0_144] : memref<132x384xbf16, #tpu.memory_space<vmem>>, vector<68x288xbf16>
    %c0_145 = arith.constant 0 : index
    %c0_146 = arith.constant 0 : index
    %c0_147 = arith.constant 0 : index
    %c0_148 = arith.constant 0 : index
    %147 = vector.load %arg4[%c0_145, %c0_146, %c0_147, %c0_148] : memref<3x3x32x68xbf16, #tpu.memory_space<vmem>>, vector<1x1x32x68xbf16>
    %148 = vector.shape_cast %147 : vector<1x1x32x68xbf16> to vector<32x68xbf16>
    %cst_149 = arith.constant dense<0.000000e+00> : vector<32x288xf32>
    %149 = tpu.matmul %148, %146, %cst_149 {dimension_numbers = #tpu.dot_dimension_numbers<[1], [0], [0], [1], [0, 0, 1, 1], [], []>} : vector<32x68xbf16>, vector<68x288xbf16>, vector<32x288xf32> -> vector<32x288xf32>
    %150 = arith.addf %145, %149 : vector<32x288xf32>
    %c0_150 = arith.constant 0 : index
    %c1_151 = arith.constant 1 : index
    %151 = vector.load %arg13[%c0_150, %c1_151] : memref<132x384xbf16, #tpu.memory_space<vmem>>, vector<68x288xbf16>
    %c0_152 = arith.constant 0 : index
    %c1_153 = arith.constant 1 : index
    %c0_154 = arith.constant 0 : index
    %c0_155 = arith.constant 0 : index
    %152 = vector.load %arg4[%c0_152, %c1_153, %c0_154, %c0_155] : memref<3x3x32x68xbf16, #tpu.memory_space<vmem>>, vector<1x1x32x68xbf16>
    %153 = vector.shape_cast %152 : vector<1x1x32x68xbf16> to vector<32x68xbf16>
    %cst_156 = arith.constant dense<0.000000e+00> : vector<32x288xf32>
    %154 = tpu.matmul %153, %151, %cst_156 {dimension_numbers = #tpu.dot_dimension_numbers<[1], [0], [0], [1], [0, 0, 1, 1], [], []>} : vector<32x68xbf16>, vector<68x288xbf16>, vector<32x288xf32> -> vector<32x288xf32>
    %155 = arith.addf %150, %154 : vector<32x288xf32>
    %c0_157 = arith.constant 0 : index
    %c2_158 = arith.constant 2 : index
    %156 = vector.load %arg13[%c0_157, %c2_158] : memref<132x384xbf16, #tpu.memory_space<vmem>>, vector<68x288xbf16>
    %c0_159 = arith.constant 0 : index
    %c2_160 = arith.constant 2 : index
    %c0_161 = arith.constant 0 : index
    %c0_162 = arith.constant 0 : index
    %157 = vector.load %arg4[%c0_159, %c2_160, %c0_161, %c0_162] : memref<3x3x32x68xbf16, #tpu.memory_space<vmem>>, vector<1x1x32x68xbf16>
    %158 = vector.shape_cast %157 : vector<1x1x32x68xbf16> to vector<32x68xbf16>
    %cst_163 = arith.constant dense<0.000000e+00> : vector<32x288xf32>
    %159 = tpu.matmul %158, %156, %cst_163 {dimension_numbers = #tpu.dot_dimension_numbers<[1], [0], [0], [1], [0, 0, 1, 1], [], []>} : vector<32x68xbf16>, vector<68x288xbf16>, vector<32x288xf32> -> vector<32x288xf32>
    %160 = arith.addf %155, %159 : vector<32x288xf32>
    %c0_164 = arith.constant 0 : index
    %c18_165 = arith.constant 18 : index
    %161 = vector.load %arg13[%c0_164, %c18_165] : memref<132x384xbf16, #tpu.memory_space<vmem>>, vector<68x288xbf16>
    %c1_166 = arith.constant 1 : index
    %c0_167 = arith.constant 0 : index
    %c0_168 = arith.constant 0 : index
    %c0_169 = arith.constant 0 : index
    %162 = vector.load %arg4[%c1_166, %c0_167, %c0_168, %c0_169] : memref<3x3x32x68xbf16, #tpu.memory_space<vmem>>, vector<1x1x32x68xbf16>
    %163 = vector.shape_cast %162 : vector<1x1x32x68xbf16> to vector<32x68xbf16>
    %cst_170 = arith.constant dense<0.000000e+00> : vector<32x288xf32>
    %164 = tpu.matmul %163, %161, %cst_170 {dimension_numbers = #tpu.dot_dimension_numbers<[1], [0], [0], [1], [0, 0, 1, 1], [], []>} : vector<32x68xbf16>, vector<68x288xbf16>, vector<32x288xf32> -> vector<32x288xf32>
    %165 = arith.addf %160, %164 : vector<32x288xf32>
    %c0_171 = arith.constant 0 : index
    %c19_172 = arith.constant 19 : index
    %166 = vector.load %arg13[%c0_171, %c19_172] : memref<132x384xbf16, #tpu.memory_space<vmem>>, vector<68x288xbf16>
    %c1_173 = arith.constant 1 : index
    %c1_174 = arith.constant 1 : index
    %c0_175 = arith.constant 0 : index
    %c0_176 = arith.constant 0 : index
    %167 = vector.load %arg4[%c1_173, %c1_174, %c0_175, %c0_176] : memref<3x3x32x68xbf16, #tpu.memory_space<vmem>>, vector<1x1x32x68xbf16>
    %168 = vector.shape_cast %167 : vector<1x1x32x68xbf16> to vector<32x68xbf16>
    %cst_177 = arith.constant dense<0.000000e+00> : vector<32x288xf32>
    %169 = tpu.matmul %168, %166, %cst_177 {dimension_numbers = #tpu.dot_dimension_numbers<[1], [0], [0], [1], [0, 0, 1, 1], [], []>} : vector<32x68xbf16>, vector<68x288xbf16>, vector<32x288xf32> -> vector<32x288xf32>
    %170 = arith.addf %165, %169 : vector<32x288xf32>
    %c0_178 = arith.constant 0 : index
    %c20_179 = arith.constant 20 : index
    %171 = vector.load %arg13[%c0_178, %c20_179] : memref<132x384xbf16, #tpu.memory_space<vmem>>, vector<68x288xbf16>
    %c1_180 = arith.constant 1 : index
    %c2_181 = arith.constant 2 : index
    %c0_182 = arith.constant 0 : index
    %c0_183 = arith.constant 0 : index
    %172 = vector.load %arg4[%c1_180, %c2_181, %c0_182, %c0_183] : memref<3x3x32x68xbf16, #tpu.memory_space<vmem>>, vector<1x1x32x68xbf16>
    %173 = vector.shape_cast %172 : vector<1x1x32x68xbf16> to vector<32x68xbf16>
    %cst_184 = arith.constant dense<0.000000e+00> : vector<32x288xf32>
    %174 = tpu.matmul %173, %171, %cst_184 {dimension_numbers = #tpu.dot_dimension_numbers<[1], [0], [0], [1], [0, 0, 1, 1], [], []>} : vector<32x68xbf16>, vector<68x288xbf16>, vector<32x288xf32> -> vector<32x288xf32>
    %175 = arith.addf %170, %174 : vector<32x288xf32>
    %c0_185 = arith.constant 0 : index
    %c36_186 = arith.constant 36 : index
    %176 = vector.load %arg13[%c0_185, %c36_186] : memref<132x384xbf16, #tpu.memory_space<vmem>>, vector<68x288xbf16>
    %c2_187 = arith.constant 2 : index
    %c0_188 = arith.constant 0 : index
    %c0_189 = arith.constant 0 : index
    %c0_190 = arith.constant 0 : index
    %177 = vector.load %arg4[%c2_187, %c0_188, %c0_189, %c0_190] : memref<3x3x32x68xbf16, #tpu.memory_space<vmem>>, vector<1x1x32x68xbf16>
    %178 = vector.shape_cast %177 : vector<1x1x32x68xbf16> to vector<32x68xbf16>
    %cst_191 = arith.constant dense<0.000000e+00> : vector<32x288xf32>
    %179 = tpu.matmul %178, %176, %cst_191 {dimension_numbers = #tpu.dot_dimension_numbers<[1], [0], [0], [1], [0, 0, 1, 1], [], []>} : vector<32x68xbf16>, vector<68x288xbf16>, vector<32x288xf32> -> vector<32x288xf32>
    %180 = arith.addf %175, %179 : vector<32x288xf32>
    %c0_192 = arith.constant 0 : index
    %c37_193 = arith.constant 37 : index
    %181 = vector.load %arg13[%c0_192, %c37_193] : memref<132x384xbf16, #tpu.memory_space<vmem>>, vector<68x288xbf16>
    %c2_194 = arith.constant 2 : index
    %c1_195 = arith.constant 1 : index
    %c0_196 = arith.constant 0 : index
    %c0_197 = arith.constant 0 : index
    %182 = vector.load %arg4[%c2_194, %c1_195, %c0_196, %c0_197] : memref<3x3x32x68xbf16, #tpu.memory_space<vmem>>, vector<1x1x32x68xbf16>
    %183 = vector.shape_cast %182 : vector<1x1x32x68xbf16> to vector<32x68xbf16>
    %cst_198 = arith.constant dense<0.000000e+00> : vector<32x288xf32>
    %184 = tpu.matmul %183, %181, %cst_198 {dimension_numbers = #tpu.dot_dimension_numbers<[1], [0], [0], [1], [0, 0, 1, 1], [], []>} : vector<32x68xbf16>, vector<68x288xbf16>, vector<32x288xf32> -> vector<32x288xf32>
    %185 = arith.addf %180, %184 : vector<32x288xf32>
    %c0_199 = arith.constant 0 : index
    %c38_200 = arith.constant 38 : index
    %186 = vector.load %arg13[%c0_199, %c38_200] : memref<132x384xbf16, #tpu.memory_space<vmem>>, vector<68x288xbf16>
    %c2_201 = arith.constant 2 : index
    %c2_202 = arith.constant 2 : index
    %c0_203 = arith.constant 0 : index
    %c0_204 = arith.constant 0 : index
    %187 = vector.load %arg4[%c2_201, %c2_202, %c0_203, %c0_204] : memref<3x3x32x68xbf16, #tpu.memory_space<vmem>>, vector<1x1x32x68xbf16>
    %188 = vector.shape_cast %187 : vector<1x1x32x68xbf16> to vector<32x68xbf16>
    %cst_205 = arith.constant dense<0.000000e+00> : vector<32x288xf32>
    %189 = tpu.matmul %188, %186, %cst_205 {dimension_numbers = #tpu.dot_dimension_numbers<[1], [0], [0], [1], [0, 0, 1, 1], [], []>} : vector<32x68xbf16>, vector<68x288xbf16>, vector<32x288xf32> -> vector<32x288xf32>
    %190 = arith.addf %185, %189 : vector<32x288xf32>
    %c0_206 = arith.constant 0 : index
    %c0_207 = arith.constant 0 : index
    %191 = vector.load %arg9[%c0_206, %c0_207] : memref<32x1xf32, #tpu.memory_space<vmem>>, vector<32x1xf32>
    %192 = vector.broadcast %191 : vector<32x1xf32> to vector<32x288xf32>
    %193 = arith.addf %190, %192 : vector<32x288xf32>
    %cst_208 = arith.constant 0.000000e+00 : f32
    %194 = vector.broadcast %cst_208 : f32 to vector<32x288xf32>
    %195 = arith.cmpf ogt, %193, %194 : vector<32x288xf32>
    %cst_209 = arith.constant 2.000000e-01 : f32
    %196 = vector.broadcast %cst_209 : f32 to vector<32x288xf32>
    %197 = arith.mulf %196, %193 : vector<32x288xf32>
    %198 = arith.select %195, %193, %197 : vector<32x288xi1>, vector<32x288xf32>
    %cst_210 = arith.constant 0.000000e+00 : f32
    %199 = vector.shape_cast %24 : vector<1x288xi1> to vector<1x288xi1>
    %200 = vector.broadcast %199 : vector<1x288xi1> to vector<32x288xi1>
    %201 = vector.broadcast %cst_210 : f32 to vector<32x288xf32>
    %202 = arith.select %200, %198, %201 : vector<32x288xi1>, vector<32x288xf32>
    %203 = arith.truncf %202 : vector<32x288xf32> to vector<32x288xbf16>
    %c68 = arith.constant 68 : index
    %c19_211 = arith.constant 19 : index
    %204 = vector.load %arg13[%c68, %c19_211] : memref<132x384xbf16, #tpu.memory_space<vmem>>, vector<32x288xbf16>
    tpu.vector_store %arg13[%c68, %c19_211], %203 {strides = array<i32>} : memref<132x384xbf16, #tpu.memory_space<vmem>>, vector<32x288xbf16>,
    %cst_212 = arith.constant 0.000000e+00 : f32
    %205 = vector.broadcast %cst_212 : f32 to vector<32x288xf32>
    %c0_213 = arith.constant 0 : index
    %c0_214 = arith.constant 0 : index
    %206 = vector.load %arg13[%c0_213, %c0_214] : memref<132x384xbf16, #tpu.memory_space<vmem>>, vector<100x288xbf16>
    %c0_215 = arith.constant 0 : index
    %c0_216 = arith.constant 0 : index
    %c0_217 = arith.constant 0 : index
    %c0_218 = arith.constant 0 : index
    %207 = vector.load %arg5[%c0_215, %c0_216, %c0_217, %c0_218] : memref<3x3x32x100xbf16, #tpu.memory_space<vmem>>, vector<1x1x32x100xbf16>
    %208 = vector.shape_cast %207 : vector<1x1x32x100xbf16> to vector<32x100xbf16>
    %cst_219 = arith.constant dense<0.000000e+00> : vector<32x288xf32>
    %209 = tpu.matmul %208, %206, %cst_219 {dimension_numbers = #tpu.dot_dimension_numbers<[1], [0], [0], [1], [0, 0, 1, 1], [], []>} : vector<32x100xbf16>, vector<100x288xbf16>, vector<32x288xf32> -> vector<32x288xf32>
    %210 = arith.addf %205, %209 : vector<32x288xf32>
    %c0_220 = arith.constant 0 : index
    %c1_221 = arith.constant 1 : index
    %211 = vector.load %arg13[%c0_220, %c1_221] : memref<132x384xbf16, #tpu.memory_space<vmem>>, vector<100x288xbf16>
    %c0_222 = arith.constant 0 : index
    %c1_223 = arith.constant 1 : index
    %c0_224 = arith.constant 0 : index
    %c0_225 = arith.constant 0 : index
    %212 = vector.load %arg5[%c0_222, %c1_223, %c0_224, %c0_225] : memref<3x3x32x100xbf16, #tpu.memory_space<vmem>>, vector<1x1x32x100xbf16>
    %213 = vector.shape_cast %212 : vector<1x1x32x100xbf16> to vector<32x100xbf16>
    %cst_226 = arith.constant dense<0.000000e+00> : vector<32x288xf32>
    %214 = tpu.matmul %213, %211, %cst_226 {dimension_numbers = #tpu.dot_dimension_numbers<[1], [0], [0], [1], [0, 0, 1, 1], [], []>} : vector<32x100xbf16>, vector<100x288xbf16>, vector<32x288xf32> -> vector<32x288xf32>
    %215 = arith.addf %210, %214 : vector<32x288xf32>
    %c0_227 = arith.constant 0 : index
    %c2_228 = arith.constant 2 : index
    %216 = vector.load %arg13[%c0_227, %c2_228] : memref<132x384xbf16, #tpu.memory_space<vmem>>, vector<100x288xbf16>
    %c0_229 = arith.constant 0 : index
    %c2_230 = arith.constant 2 : index
    %c0_231 = arith.constant 0 : index
    %c0_232 = arith.constant 0 : index
    %217 = vector.load %arg5[%c0_229, %c2_230, %c0_231, %c0_232] : memref<3x3x32x100xbf16, #tpu.memory_space<vmem>>, vector<1x1x32x100xbf16>
    %218 = vector.shape_cast %217 : vector<1x1x32x100xbf16> to vector<32x100xbf16>
    %cst_233 = arith.constant dense<0.000000e+00> : vector<32x288xf32>
    %219 = tpu.matmul %218, %216, %cst_233 {dimension_numbers = #tpu.dot_dimension_numbers<[1], [0], [0], [1], [0, 0, 1, 1], [], []>} : vector<32x100xbf16>, vector<100x288xbf16>, vector<32x288xf32> -> vector<32x288xf32>
    %220 = arith.addf %215, %219 : vector<32x288xf32>
    %c0_234 = arith.constant 0 : index
    %c18_235 = arith.constant 18 : index
    %221 = vector.load %arg13[%c0_234, %c18_235] : memref<132x384xbf16, #tpu.memory_space<vmem>>, vector<100x288xbf16>
    %c1_236 = arith.constant 1 : index
    %c0_237 = arith.constant 0 : index
    %c0_238 = arith.constant 0 : index
    %c0_239 = arith.constant 0 : index
    %222 = vector.load %arg5[%c1_236, %c0_237, %c0_238, %c0_239] : memref<3x3x32x100xbf16, #tpu.memory_space<vmem>>, vector<1x1x32x100xbf16>
    %223 = vector.shape_cast %222 : vector<1x1x32x100xbf16> to vector<32x100xbf16>
    %cst_240 = arith.constant dense<0.000000e+00> : vector<32x288xf32>
    %224 = tpu.matmul %223, %221, %cst_240 {dimension_numbers = #tpu.dot_dimension_numbers<[1], [0], [0], [1], [0, 0, 1, 1], [], []>} : vector<32x100xbf16>, vector<100x288xbf16>, vector<32x288xf32> -> vector<32x288xf32>
    %225 = arith.addf %220, %224 : vector<32x288xf32>
    %c0_241 = arith.constant 0 : index
    %c19_242 = arith.constant 19 : index
    %226 = vector.load %arg13[%c0_241, %c19_242] : memref<132x384xbf16, #tpu.memory_space<vmem>>, vector<100x288xbf16>
    %c1_243 = arith.constant 1 : index
    %c1_244 = arith.constant 1 : index
    %c0_245 = arith.constant 0 : index
    %c0_246 = arith.constant 0 : index
    %227 = vector.load %arg5[%c1_243, %c1_244, %c0_245, %c0_246] : memref<3x3x32x100xbf16, #tpu.memory_space<vmem>>, vector<1x1x32x100xbf16>
    %228 = vector.shape_cast %227 : vector<1x1x32x100xbf16> to vector<32x100xbf16>
    %cst_247 = arith.constant dense<0.000000e+00> : vector<32x288xf32>
    %229 = tpu.matmul %228, %226, %cst_247 {dimension_numbers = #tpu.dot_dimension_numbers<[1], [0], [0], [1], [0, 0, 1, 1], [], []>} : vector<32x100xbf16>, vector<100x288xbf16>, vector<32x288xf32> -> vector<32x288xf32>
    %230 = arith.addf %225, %229 : vector<32x288xf32>
    %c0_248 = arith.constant 0 : index
    %c20_249 = arith.constant 20 : index
    %231 = vector.load %arg13[%c0_248, %c20_249] : memref<132x384xbf16, #tpu.memory_space<vmem>>, vector<100x288xbf16>
    %c1_250 = arith.constant 1 : index
    %c2_251 = arith.constant 2 : index
    %c0_252 = arith.constant 0 : index
    %c0_253 = arith.constant 0 : index
    %232 = vector.load %arg5[%c1_250, %c2_251, %c0_252, %c0_253] : memref<3x3x32x100xbf16, #tpu.memory_space<vmem>>, vector<1x1x32x100xbf16>
    %233 = vector.shape_cast %232 : vector<1x1x32x100xbf16> to vector<32x100xbf16>
    %cst_254 = arith.constant dense<0.000000e+00> : vector<32x288xf32>
    %234 = tpu.matmul %233, %231, %cst_254 {dimension_numbers = #tpu.dot_dimension_numbers<[1], [0], [0], [1], [0, 0, 1, 1], [], []>} : vector<32x100xbf16>, vector<100x288xbf16>, vector<32x288xf32> -> vector<32x288xf32>
    %235 = arith.addf %230, %234 : vector<32x288xf32>
    %c0_255 = arith.constant 0 : index
    %c36_256 = arith.constant 36 : index
    %236 = vector.load %arg13[%c0_255, %c36_256] : memref<132x384xbf16, #tpu.memory_space<vmem>>, vector<100x288xbf16>
    %c2_257 = arith.constant 2 : index
    %c0_258 = arith.constant 0 : index
    %c0_259 = arith.constant 0 : index
    %c0_260 = arith.constant 0 : index
    %237 = vector.load %arg5[%c2_257, %c0_258, %c0_259, %c0_260] : memref<3x3x32x100xbf16, #tpu.memory_space<vmem>>, vector<1x1x32x100xbf16>
    %238 = vector.shape_cast %237 : vector<1x1x32x100xbf16> to vector<32x100xbf16>
    %cst_261 = arith.constant dense<0.000000e+00> : vector<32x288xf32>
    %239 = tpu.matmul %238, %236, %cst_261 {dimension_numbers = #tpu.dot_dimension_numbers<[1], [0], [0], [1], [0, 0, 1, 1], [], []>} : vector<32x100xbf16>, vector<100x288xbf16>, vector<32x288xf32> -> vector<32x288xf32>
    %240 = arith.addf %235, %239 : vector<32x288xf32>
    %c0_262 = arith.constant 0 : index
    %c37_263 = arith.constant 37 : index
    %241 = vector.load %arg13[%c0_262, %c37_263] : memref<132x384xbf16, #tpu.memory_space<vmem>>, vector<100x288xbf16>
    %c2_264 = arith.constant 2 : index
    %c1_265 = arith.constant 1 : index
    %c0_266 = arith.constant 0 : index
    %c0_267 = arith.constant 0 : index
    %242 = vector.load %arg5[%c2_264, %c1_265, %c0_266, %c0_267] : memref<3x3x32x100xbf16, #tpu.memory_space<vmem>>, vector<1x1x32x100xbf16>
    %243 = vector.shape_cast %242 : vector<1x1x32x100xbf16> to vector<32x100xbf16>
    %cst_268 = arith.constant dense<0.000000e+00> : vector<32x288xf32>
    %244 = tpu.matmul %243, %241, %cst_268 {dimension_numbers = #tpu.dot_dimension_numbers<[1], [0], [0], [1], [0, 0, 1, 1], [], []>} : vector<32x100xbf16>, vector<100x288xbf16>, vector<32x288xf32> -> vector<32x288xf32>
    %245 = arith.addf %240, %244 : vector<32x288xf32>
    %c0_269 = arith.constant 0 : index
    %c38_270 = arith.constant 38 : index
    %246 = vector.load %arg13[%c0_269, %c38_270] : memref<132x384xbf16, #tpu.memory_space<vmem>>, vector<100x288xbf16>
    %c2_271 = arith.constant 2 : index
    %c2_272 = arith.constant 2 : index
    %c0_273 = arith.constant 0 : index
    %c0_274 = arith.constant 0 : index
    %247 = vector.load %arg5[%c2_271, %c2_272, %c0_273, %c0_274] : memref<3x3x32x100xbf16, #tpu.memory_space<vmem>>, vector<1x1x32x100xbf16>
    %248 = vector.shape_cast %247 : vector<1x1x32x100xbf16> to vector<32x100xbf16>
    %cst_275 = arith.constant dense<0.000000e+00> : vector<32x288xf32>
    %249 = tpu.matmul %248, %246, %cst_275 {dimension_numbers = #tpu.dot_dimension_numbers<[1], [0], [0], [1], [0, 0, 1, 1], [], []>} : vector<32x100xbf16>, vector<100x288xbf16>, vector<32x288xf32> -> vector<32x288xf32>
    %250 = arith.addf %245, %249 : vector<32x288xf32>
    %c0_276 = arith.constant 0 : index
    %c0_277 = arith.constant 0 : index
    %251 = vector.load %arg10[%c0_276, %c0_277] : memref<32x1xf32, #tpu.memory_space<vmem>>, vector<32x1xf32>
    %252 = vector.broadcast %251 : vector<32x1xf32> to vector<32x288xf32>
    %253 = arith.addf %250, %252 : vector<32x288xf32>
    %cst_278 = arith.constant 0.000000e+00 : f32
    %254 = vector.broadcast %cst_278 : f32 to vector<32x288xf32>
    %255 = arith.cmpf ogt, %253, %254 : vector<32x288xf32>
    %cst_279 = arith.constant 2.000000e-01 : f32
    %256 = vector.broadcast %cst_279 : f32 to vector<32x288xf32>
    %257 = arith.mulf %256, %253 : vector<32x288xf32>
    %258 = arith.select %255, %253, %257 : vector<32x288xi1>, vector<32x288xf32>
    %cst_280 = arith.constant 0.000000e+00 : f32
    %259 = vector.shape_cast %24 : vector<1x288xi1> to vector<1x288xi1>
    %260 = vector.broadcast %259 : vector<1x288xi1> to vector<32x288xi1>
    %261 = vector.broadcast %cst_280 : f32 to vector<32x288xf32>
    %262 = arith.select %260, %258, %261 : vector<32x288xi1>, vector<32x288xf32>
    %263 = arith.truncf %262 : vector<32x288xf32> to vector<32x288xbf16>
    %c100 = arith.constant 100 : index
    %c19_281 = arith.constant 19 : index
    %264 = vector.load %arg13[%c100, %c19_281] : memref<132x384xbf16, #tpu.memory_space<vmem>>, vector<32x288xbf16>
    tpu.vector_store %arg13[%c100, %c19_281], %263 {strides = array<i32>} : memref<132x384xbf16, #tpu.memory_space<vmem>>, vector<32x288xbf16>,
    %cst_282 = arith.constant 0.000000e+00 : f32
    %265 = vector.broadcast %cst_282 : f32 to vector<4x288xf32>
    %c0_283 = arith.constant 0 : index
    %c0_284 = arith.constant 0 : index
    %266 = vector.load %arg13[%c0_283, %c0_284] : memref<132x384xbf16, #tpu.memory_space<vmem>>, vector<132x288xbf16>
    %c0_285 = arith.constant 0 : index
    %c0_286 = arith.constant 0 : index
    %c0_287 = arith.constant 0 : index
    %c0_288 = arith.constant 0 : index
    %267 = vector.load %arg6[%c0_285, %c0_286, %c0_287, %c0_288] : memref<3x3x4x132xbf16, #tpu.memory_space<vmem>>, vector<1x1x4x132xbf16>
    %268 = vector.shape_cast %267 : vector<1x1x4x132xbf16> to vector<4x132xbf16>
    %cst_289 = arith.constant dense<0.000000e+00> : vector<4x288xf32>
    %269 = tpu.matmul %268, %266, %cst_289 {dimension_numbers = #tpu.dot_dimension_numbers<[1], [0], [0], [1], [0, 0, 1, 1], [], []>} : vector<4x132xbf16>, vector<132x288xbf16>, vector<4x288xf32> -> vector<4x288xf32>
    %270 = arith.addf %265, %269 : vector<4x288xf32>
    %c0_290 = arith.constant 0 : index
    %c1_291 = arith.constant 1 : index
    %271 = vector.load %arg13[%c0_290, %c1_291] : memref<132x384xbf16, #tpu.memory_space<vmem>>, vector<132x288xbf16>
    %c0_292 = arith.constant 0 : index
    %c1_293 = arith.constant 1 : index
    %c0_294 = arith.constant 0 : index
    %c0_295 = arith.constant 0 : index
    %272 = vector.load %arg6[%c0_292, %c1_293, %c0_294, %c0_295] : memref<3x3x4x132xbf16, #tpu.memory_space<vmem>>, vector<1x1x4x132xbf16>
    %273 = vector.shape_cast %272 : vector<1x1x4x132xbf16> to vector<4x132xbf16>
    %cst_296 = arith.constant dense<0.000000e+00> : vector<4x288xf32>
    %274 = tpu.matmul %273, %271, %cst_296 {dimension_numbers = #tpu.dot_dimension_numbers<[1], [0], [0], [1], [0, 0, 1, 1], [], []>} : vector<4x132xbf16>, vector<132x288xbf16>, vector<4x288xf32> -> vector<4x288xf32>
    %275 = arith.addf %270, %274 : vector<4x288xf32>
    %c0_297 = arith.constant 0 : index
    %c2_298 = arith.constant 2 : index
    %276 = vector.load %arg13[%c0_297, %c2_298] : memref<132x384xbf16, #tpu.memory_space<vmem>>, vector<132x288xbf16>
    %c0_299 = arith.constant 0 : index
    %c2_300 = arith.constant 2 : index
    %c0_301 = arith.constant 0 : index
    %c0_302 = arith.constant 0 : index
    %277 = vector.load %arg6[%c0_299, %c2_300, %c0_301, %c0_302] : memref<3x3x4x132xbf16, #tpu.memory_space<vmem>>, vector<1x1x4x132xbf16>
    %278 = vector.shape_cast %277 : vector<1x1x4x132xbf16> to vector<4x132xbf16>
    %cst_303 = arith.constant dense<0.000000e+00> : vector<4x288xf32>
    %279 = tpu.matmul %278, %276, %cst_303 {dimension_numbers = #tpu.dot_dimension_numbers<[1], [0], [0], [1], [0, 0, 1, 1], [], []>} : vector<4x132xbf16>, vector<132x288xbf16>, vector<4x288xf32> -> vector<4x288xf32>
    %280 = arith.addf %275, %279 : vector<4x288xf32>
    %c0_304 = arith.constant 0 : index
    %c18_305 = arith.constant 18 : index
    %281 = vector.load %arg13[%c0_304, %c18_305] : memref<132x384xbf16, #tpu.memory_space<vmem>>, vector<132x288xbf16>
    %c1_306 = arith.constant 1 : index
    %c0_307 = arith.constant 0 : index
    %c0_308 = arith.constant 0 : index
    %c0_309 = arith.constant 0 : index
    %282 = vector.load %arg6[%c1_306, %c0_307, %c0_308, %c0_309] : memref<3x3x4x132xbf16, #tpu.memory_space<vmem>>, vector<1x1x4x132xbf16>
    %283 = vector.shape_cast %282 : vector<1x1x4x132xbf16> to vector<4x132xbf16>
    %cst_310 = arith.constant dense<0.000000e+00> : vector<4x288xf32>
    %284 = tpu.matmul %283, %281, %cst_310 {dimension_numbers = #tpu.dot_dimension_numbers<[1], [0], [0], [1], [0, 0, 1, 1], [], []>} : vector<4x132xbf16>, vector<132x288xbf16>, vector<4x288xf32> -> vector<4x288xf32>
    %285 = arith.addf %280, %284 : vector<4x288xf32>
    %c0_311 = arith.constant 0 : index
    %c19_312 = arith.constant 19 : index
    %286 = vector.load %arg13[%c0_311, %c19_312] : memref<132x384xbf16, #tpu.memory_space<vmem>>, vector<132x288xbf16>
    %c1_313 = arith.constant 1 : index
    %c1_314 = arith.constant 1 : index
    %c0_315 = arith.constant 0 : index
    %c0_316 = arith.constant 0 : index
    %287 = vector.load %arg6[%c1_313, %c1_314, %c0_315, %c0_316] : memref<3x3x4x132xbf16, #tpu.memory_space<vmem>>, vector<1x1x4x132xbf16>
    %288 = vector.shape_cast %287 : vector<1x1x4x132xbf16> to vector<4x132xbf16>
    %cst_317 = arith.constant dense<0.000000e+00> : vector<4x288xf32>
    %289 = tpu.matmul %288, %286, %cst_317 {dimension_numbers = #tpu.dot_dimension_numbers<[1], [0], [0], [1], [0, 0, 1, 1], [], []>} : vector<4x132xbf16>, vector<132x288xbf16>, vector<4x288xf32> -> vector<4x288xf32>
    %290 = arith.addf %285, %289 : vector<4x288xf32>
    %c0_318 = arith.constant 0 : index
    %c20_319 = arith.constant 20 : index
    %291 = vector.load %arg13[%c0_318, %c20_319] : memref<132x384xbf16, #tpu.memory_space<vmem>>, vector<132x288xbf16>
    %c1_320 = arith.constant 1 : index
    %c2_321 = arith.constant 2 : index
    %c0_322 = arith.constant 0 : index
    %c0_323 = arith.constant 0 : index
    %292 = vector.load %arg6[%c1_320, %c2_321, %c0_322, %c0_323] : memref<3x3x4x132xbf16, #tpu.memory_space<vmem>>, vector<1x1x4x132xbf16>
    %293 = vector.shape_cast %292 : vector<1x1x4x132xbf16> to vector<4x132xbf16>
    %cst_324 = arith.constant dense<0.000000e+00> : vector<4x288xf32>
    %294 = tpu.matmul %293, %291, %cst_324 {dimension_numbers = #tpu.dot_dimension_numbers<[1], [0], [0], [1], [0, 0, 1, 1], [], []>} : vector<4x132xbf16>, vector<132x288xbf16>, vector<4x288xf32> -> vector<4x288xf32>
    %295 = arith.addf %290, %294 : vector<4x288xf32>
    %c0_325 = arith.constant 0 : index
    %c36_326 = arith.constant 36 : index
    %296 = vector.load %arg13[%c0_325, %c36_326] : memref<132x384xbf16, #tpu.memory_space<vmem>>, vector<132x288xbf16>
    %c2_327 = arith.constant 2 : index
    %c0_328 = arith.constant 0 : index
    %c0_329 = arith.constant 0 : index
    %c0_330 = arith.constant 0 : index
    %297 = vector.load %arg6[%c2_327, %c0_328, %c0_329, %c0_330] : memref<3x3x4x132xbf16, #tpu.memory_space<vmem>>, vector<1x1x4x132xbf16>
    %298 = vector.shape_cast %297 : vector<1x1x4x132xbf16> to vector<4x132xbf16>
    %cst_331 = arith.constant dense<0.000000e+00> : vector<4x288xf32>
    %299 = tpu.matmul %298, %296, %cst_331 {dimension_numbers = #tpu.dot_dimension_numbers<[1], [0], [0], [1], [0, 0, 1, 1], [], []>} : vector<4x132xbf16>, vector<132x288xbf16>, vector<4x288xf32> -> vector<4x288xf32>
    %300 = arith.addf %295, %299 : vector<4x288xf32>
    %c0_332 = arith.constant 0 : index
    %c37_333 = arith.constant 37 : index
    %301 = vector.load %arg13[%c0_332, %c37_333] : memref<132x384xbf16, #tpu.memory_space<vmem>>, vector<132x288xbf16>
    %c2_334 = arith.constant 2 : index
    %c1_335 = arith.constant 1 : index
    %c0_336 = arith.constant 0 : index
    %c0_337 = arith.constant 0 : index
    %302 = vector.load %arg6[%c2_334, %c1_335, %c0_336, %c0_337] : memref<3x3x4x132xbf16, #tpu.memory_space<vmem>>, vector<1x1x4x132xbf16>
    %303 = vector.shape_cast %302 : vector<1x1x4x132xbf16> to vector<4x132xbf16>
    %cst_338 = arith.constant dense<0.000000e+00> : vector<4x288xf32>
    %304 = tpu.matmul %303, %301, %cst_338 {dimension_numbers = #tpu.dot_dimension_numbers<[1], [0], [0], [1], [0, 0, 1, 1], [], []>} : vector<4x132xbf16>, vector<132x288xbf16>, vector<4x288xf32> -> vector<4x288xf32>
    %305 = arith.addf %300, %304 : vector<4x288xf32>
    %c0_339 = arith.constant 0 : index
    %c38_340 = arith.constant 38 : index
    %306 = vector.load %arg13[%c0_339, %c38_340] : memref<132x384xbf16, #tpu.memory_space<vmem>>, vector<132x288xbf16>
    %c2_341 = arith.constant 2 : index
    %c2_342 = arith.constant 2 : index
    %c0_343 = arith.constant 0 : index
    %c0_344 = arith.constant 0 : index
    %307 = vector.load %arg6[%c2_341, %c2_342, %c0_343, %c0_344] : memref<3x3x4x132xbf16, #tpu.memory_space<vmem>>, vector<1x1x4x132xbf16>
    %308 = vector.shape_cast %307 : vector<1x1x4x132xbf16> to vector<4x132xbf16>
    %cst_345 = arith.constant dense<0.000000e+00> : vector<4x288xf32>
    %309 = tpu.matmul %308, %306, %cst_345 {dimension_numbers = #tpu.dot_dimension_numbers<[1], [0], [0], [1], [0, 0, 1, 1], [], []>} : vector<4x132xbf16>, vector<132x288xbf16>, vector<4x288xf32> -> vector<4x288xf32>
    %310 = arith.addf %305, %309 : vector<4x288xf32>
    %c0_346 = arith.constant 0 : index
    %c0_347 = arith.constant 0 : index
    %311 = vector.load %arg11[%c0_346, %c0_347] : memref<4x1xf32, #tpu.memory_space<vmem>>, vector<4x1xf32>
    %312 = vector.broadcast %311 : vector<4x1xf32> to vector<4x288xf32>
    %313 = arith.addf %310, %312 : vector<4x288xf32>
    %c0_348 = arith.constant 0 : index
    %c0_349 = arith.constant 0 : index
    %c19_350 = arith.constant 19 : index
    %314 = vector.load %arg1[%c0_348, %c0_349, %c19_350] : memref<1x4x324xf32, #tpu.memory_space<vmem>>, vector<1x4x288xf32>
    %315 = vector.shape_cast %314 : vector<1x4x288xf32> to vector<4x288xf32>
    %cst_351 = arith.constant 2.000000e-01 : f32
    %316 = vector.broadcast %cst_351 : f32 to vector<4x288xf32>
    %317 = arith.mulf %316, %313 : vector<4x288xf32>
    %318 = arith.addf %317, %315 : vector<4x288xf32>
    %c0_352 = arith.constant 0 : index
    %c0_353 = arith.constant 0 : index
    %c0_354 = arith.constant 0 : index
    %319 = vector.load %arg12[%c0_352, %c0_353, %c0_354] : memref<1x4x288xf32, #tpu.memory_space<vmem>>, vector<1x4x288xf32>
    %320 = vector.shape_cast %319 : vector<1x4x288xf32> to vector<4x288xf32>
    %321 = vector.shape_cast %318 : vector<4x288xf32> to vector<1x4x288xf32>
    tpu.vector_store %arg12[%c0_352, %c0_353, %c0_354], %321 {strides = array<i32>} : memref<1x4x288xf32, #tpu.memory_space<vmem>>, vector<1x4x288xf32>,
    return
  }
  func.func @transform_0(%arg0: i32) -> (i32, i32, i32) {
    %c0_i32 = arith.constant 0 : i32
    %c0_i32_0 = arith.constant 0 : i32
    %c0_i32_1 = arith.constant 0 : i32
    return %arg0, %c0_i32, %c0_i32_0 : i32, i32, i32
  }
  func.func @transform_1(%arg0: i32) -> (i32, i32, i32, i32) {
    %c0_i32 = arith.constant 0 : i32
    %c0_i32_0 = arith.constant 0 : i32
    %c0_i32_1 = arith.constant 0 : i32
    %c0_i32_2 = arith.constant 0 : i32
    %c0_i32_3 = arith.constant 0 : i32
    return %c0_i32, %c0_i32_0, %c0_i32_1, %c0_i32_2 : i32, i32, i32, i32
  }
  func.func @transform_2(%arg0: i32) -> (i32, i32, i32, i32) {
    %c0_i32 = arith.constant 0 : i32
    %c0_i32_0 = arith.constant 0 : i32
    %c0_i32_1 = arith.constant 0 : i32
    %c0_i32_2 = arith.constant 0 : i32
    %c0_i32_3 = arith.constant 0 : i32
    return %c0_i32, %c0_i32_0, %c0_i32_1, %c0_i32_2 : i32, i32, i32, i32
  }
  func.func @transform_3(%arg0: i32) -> (i32, i32, i32, i32) {
    %c0_i32 = arith.constant 0 : i32
    %c0_i32_0 = arith.constant 0 : i32
    %c0_i32_1 = arith.constant 0 : i32
    %c0_i32_2 = arith.constant 0 : i32
    %c0_i32_3 = arith.constant 0 : i32
    return %c0_i32, %c0_i32_0, %c0_i32_1, %c0_i32_2 : i32, i32, i32, i32
  }
  func.func @transform_4(%arg0: i32) -> (i32, i32, i32, i32) {
    %c0_i32 = arith.constant 0 : i32
    %c0_i32_0 = arith.constant 0 : i32
    %c0_i32_1 = arith.constant 0 : i32
    %c0_i32_2 = arith.constant 0 : i32
    %c0_i32_3 = arith.constant 0 : i32
    return %c0_i32, %c0_i32_0, %c0_i32_1, %c0_i32_2 : i32, i32, i32, i32
  }
  func.func @transform_5(%arg0: i32) -> (i32, i32, i32, i32) {
    %c0_i32 = arith.constant 0 : i32
    %c0_i32_0 = arith.constant 0 : i32
    %c0_i32_1 = arith.constant 0 : i32
    %c0_i32_2 = arith.constant 0 : i32
    %c0_i32_3 = arith.constant 0 : i32
    return %c0_i32, %c0_i32_0, %c0_i32_1, %c0_i32_2 : i32, i32, i32, i32
  }
  func.func @transform_6(%arg0: i32) -> (i32, i32) {
    %c0_i32 = arith.constant 0 : i32
    %c0_i32_0 = arith.constant 0 : i32
    %c0_i32_1 = arith.constant 0 : i32
    return %c0_i32, %c0_i32_0 : i32, i32
  }
  func.func @transform_7(%arg0: i32) -> (i32, i32) {
    %c0_i32 = arith.constant 0 : i32
    %c0_i32_0 = arith.constant 0 : i32
    %c0_i32_1 = arith.constant 0 : i32
    return %c0_i32, %c0_i32_0 : i32, i32
  }
  func.func @transform_8(%arg0: i32) -> (i32, i32) {
    %c0_i32 = arith.constant 0 : i32
    %c0_i32_0 = arith.constant 0 : i32
    %c0_i32_1 = arith.constant 0 : i32
    return %c0_i32, %c0_i32_0 : i32, i32
  }
  func.func @transform_9(%arg0: i32) -> (i32, i32) {
    %c0_i32 = arith.constant 0 : i32
    %c0_i32_0 = arith.constant 0 : i32
    %c0_i32_1 = arith.constant 0 : i32
    return %c0_i32, %c0_i32_0 : i32, i32
  }
  func.func @transform_10(%arg0: i32) -> (i32, i32) {
    %c0_i32 = arith.constant 0 : i32
    %c0_i32_0 = arith.constant 0 : i32
    %c0_i32_1 = arith.constant 0 : i32
    return %c0_i32, %c0_i32_0 : i32, i32
  }
  func.func @transform_11(%arg0: i32) -> (i32, i32, i32) {
    %c0_i32 = arith.constant 0 : i32
    %c0_i32_0 = arith.constant 0 : i32
    %c0_i32_1 = arith.constant 0 : i32
    return %arg0, %c0_i32, %c0_i32_0 : i32, i32, i32
  }
}

</mosaic_0001>

<bundles_post_ra>
// kernel: dense_block_forward.1
= control target key start
LH: loop header
LB: loop body
LE: loop exit
PB: predicated region body
PF: predicated region fallthrough
CT: control target
= control target key end

     0   :  { %s13173_s17 = smov 0   ;;  %s17461_s0 = inlined_call_operand.vmem [shape: f32[2,4,324], index: 0, kind: input, shape index: {}]   ;;  %s17462_s1 = inlined_call_operand.vmem [shape: bf16[3,3,32,4], index: 1, kind: input, shape index: {}]   ;;  %s17463_s2 = inlined_call_operand.vmem [shape: bf16[3,3,32,36], index: 2, kind: input, shape index: {}]   ;;  %s17464_s3 = inlined_call_operand.vmem [shape: bf16[3,3,32,68], index: 3, kind: input, shape index: {}]   ;;  %s17465_s4 = inlined_call_operand.vmem [shape: bf16[3,3,32,100], index: 4, kind: input, shape index: {}]   ;;  %s17466_s5 = inlined_call_operand.vmem [shape: bf16[3,3,4,132], index: 5, kind: input, shape index: {}]   ;;  %s17467_s6 = inlined_call_operand.vmem [shape: f32[32,1], index: 6, kind: input, shape index: {}]   ;;  %s17468_s7 = inlined_call_operand.vmem [shape: f32[32,1], index: 7, kind: input, shape index: {}]   ;;  %s17469_s8 = inlined_call_operand.vmem [shape: f32[32,1], index: 8, kind: input, shape index: {}]   ;;  %s17470_s9 = inlined_call_operand.vmem [shape: f32[32,1], index: 9, kind: input, shape index: {}]   ;;  %s17471_s10 = inlined_call_operand.vmem [shape: f32[4,1], index: 10, kind: input, shape index: {}]   ;;  %s17472_s11 = inlined_call_operand.vmem [shape: f32[2,4,288], index: 11, kind: output, shape index: {}]  }
   0x1 LB: > { %s11000_s18 = sadd.s32 4294967295, %s13101_s17   ;;  %p11004_p0 = scmp.ge.s32.totalorder %s13101_s17, 1  ;;  %s13101_s17 = sphi %s13173_s17, %s21_s17  }
   0x2   : > { %p337_p1 = scmp.lt.s32.totalorder %s13101_s17, 3 }
   0x4   : > { %p338_p2 = pnand %p11004_p0, %p337_p1 }
   0x6   : > { %341 = sbr.rel (%p338_p2) target bundleno = 3982 (0xf8e), region = 64 }
   0xd   : > { %p13183_p3 = scmp.lt.s32.totalorder %s11000_s18, 1  ;;  %v13103_v0 = vmov 0   ;;  %vm441_vm0 = vcmask 549888   ;;  %vm543_vm1 = vcmask 1041408   ;;  %s13104_s24 = smov 127   ;;  %vm17474_vm2 = vcmask 31744  }
   0xe   : > { %389 = vst [vmem:[#allocation2 + $0x8] sm:$0xf] %v13103_v0  ;;  %388 = vst [vmem:[#allocation2] sm:$0xff] %v13103_v0  ;;  %712 = vmatprep.mubr.bf16.mxu0 %v13103_v0  ;;  %585 = vmatprep.mubr.bf16.mxu1 %v13103_v0  ;;  %v13251_v11 = vld [vmem:[%s17462_s1] sm:$0xff]   ;;  %s13105_s27 = smov 126   ;;  %v13263_v12 = vld [vmem:[%s17462_s1 + $0x8] sm:$0xff]  }
   0xf   : > { %390 = vst [vmem:[#allocation2 + $0xc] sm:$0xff] %v13103_v0  ;;  %391 = vst [vmem:[#allocation2 + $0x14] sm:$0xf] %v13103_v0  ;;  %s18021_s18 = smov (!%p13183_p3, %s11000_s18), 1  ;;  %12858 = vset.pattern.permute.xlu0 %v13103_v0  ;;  %12859 = vset.pattern.permute.xlu1 %v13103_v0  ;;  %s13106_s30 = smov 110   ;;  %v1853_v13 = vld [vmem:[%s17467_s6] sm:$0xff] }
  0x10   : > { %392 = vst [vmem:[#allocation2 + $0x18] sm:$0xff] %v13103_v0  ;;  %393 = vst [vmem:[#allocation2 + $0x20] sm:$0xf] %v13103_v0  ;;  %s17473_s20 = smul.u32 12, %s18021_s18  ;;  %s13107_s12 = smov 109   ;;  %v1854_v14 = vld [vmem:[%s17467_s6 + $0x8] sm:$0xff] }
  0x11   : > { %394 = vst [vmem:[#allocation2 + $0x24] sm:$0xff] %v13103_v0  ;;  %395 = vst [vmem:[#allocation2 + $0x2c] sm:$0xf] %v13103_v0  ;;  %s13108_s13 = smov 108   ;;  %s13109_s14 = smov 92   ;;  %v1855_v15 = vld [vmem:[%s17467_s6 + $0x10] sm:$0xff] }
  0x12   : > { %396 = vst [vmem:[#allocation2 + $0x30] sm:$0xff] %v13103_v0  ;;  %397 = vst [vmem:[#allocation2 + $0x38] sm:$0xf] %v13103_v0  ;;  %s13237_s23 = scalar_lea.vmem %s17461_s0, %s17473_s20  ;;  %s17481_s15 = smov 91   ;;  %v1856_v16 = vld [vmem:[%s17467_s6 + $0x18] sm:$0xff]  ;;  %vm17484_vm3 = vcmask 1039360  }
  0x13   : > { %398 = vst [vmem:[#allocation2 + $0x3c] sm:$0xff] %v13103_v0  ;;  %399 = vst [vmem:[#allocation2 + $0x44] sm:$0xf] %v13103_v0  ;;  %v423_v1 = vld [vmem:[%s13237_s23 + $0x8] sm:$0xf]  ;;  %v422_v2 = vld [vmem:[%s13237_s23] sm:$0xff] }
  0x14   : > { %400 = vst [vmem:[#allocation2 + $0x48] sm:$0xff] %v13103_v0  ;;  %401 = vst [vmem:[#allocation2 + $0x50] sm:$0xf] %v13103_v0  ;;  %v11732_v3 = vpack.c.bf16 %v423_v1, %v423_v1  ;;  %v425_v4 = vcombine.high %v422_v2, %v422_v2  ;;  %s17489_s16 = smov 90   ;;  %vm17483_vm4 = vcmask 1031168   ;;  %v12866_v25 = vld [vmem:[%s17462_s1 + $0x10] sm:$0xff]  }
  0x15   : > { %402 = vst [vmem:[#allocation2 + $0x54] sm:$0xff] %v13103_v0  ;;  %403 = vst [vmem:[#allocation2 + $0x5c] sm:$0xf] %v13103_v0  ;;  %v12867_v32 = vld [vmem:[%s17462_s1 + $0x20] sm:$0xff]   ;;  %vm17480_vm5 = vcmask 900096   ;;  %v12868_v36 = vld [vmem:[%s17462_s1 + $0x18] sm:$0xff]  }
  0x16   : > { %404 = vst [vmem:[#allocation2 + $0x60] sm:$0xff] %v13103_v0  ;;  %405 = vst [vmem:[#allocation2 + $0x68] sm:$0xf] %v13103_v0  ;;  %v11731_v5 = vpack.c.bf16 %v425_v4, %v422_v2  ;;  %v12869_v40 = vld [vmem:[%s17462_s1 + $0x28] sm:$0xff]   ;;  %vm17479_vm6 = vcmask 891904   ;;  %v12870_v47 = vld [vmem:[%s17462_s1 + $0x30] sm:$0xff]  }
  0x17   : > { %406 = vst [vmem:[#allocation2 + $0x6c] sm:$0xff] %v13103_v0  ;;  %407 = vst [vmem:[#allocation2 + $0x74] sm:$0xf] %v13103_v0  ;;  %vm17478_vm7 = vcmask 883712   ;;  %v12871_v52 = vld [vmem:[%s17462_s1 + $0x38] sm:$0xff]   ;;  %v12872_v56 = vld [vmem:[%s17462_s1 + $0x40] sm:$0xff]  }
  0x18   : > { %408 = vst [vmem:[#allocation2 + $0x78] sm:$0xff] %v13103_v0  ;;  %409 = vst [vmem:[#allocation2 + $0x80] sm:$0xf] %v13103_v0  ;;  %vm17477_vm8 = vcmask 752640   ;;  %v12873_v62 = vld [vmem:[%s17462_s1 + $0x48] sm:$0xff]   ;;  %v12874_v1 = vld [vmem:[%s17462_s1 + $0x50] sm:$0xff]  }
  0x19   : > { %410 = vst [vmem:[#allocation2 + $0x84] sm:$0xff] %v13103_v0  ;;  %411 = vst [vmem:[#allocation2 + $0x8c] sm:$0xf] %v13103_v0  ;;  %vm17476_vm9 = vcmask 744448   ;;  %vm17475_vm10 = vcmask 736256   ;;  %s13112_s19 = smov 19  }
  0x1a   : > { %412 = vst [vmem:[#allocation2 + $0x90] sm:$0xff] %v13103_v0  ;;  %413 = vst [vmem:[#allocation2 + $0x98] sm:$0xf] %v13103_v0  ;;  %s17587_s20 = smov 91   ;;  %s18019_s28 = smul.u32 12, %s18021_s18 }
  0x1b   : > { %414 = vst [vmem:[#allocation2 + $0x9c] sm:$0xff] %v13103_v0  ;;  %415 = vst [vmem:[#allocation2 + $0xa4] sm:$0xf] %v13103_v0 }
  0x1c   : > { %416 = vst [vmem:[#allocation2 + $0xa8] sm:$0xff] %v13103_v0  ;;  %417 = vst [vmem:[#allocation2 + $0xb0] sm:$0xf] %v13103_v0 }
  0x1d   : > { %418 = vst [vmem:[#allocation2 + $0xb4] sm:$0xff] %v13103_v0  ;;  %419 = vst [vmem:[#allocation2 + $0xbc] sm:$0xf] %v13103_v0 }
  0x1e   : > { %420 = vst [vmem:[#allocation2 + $0xc0] sm:$0x33] %v13103_v0  ;;  %421 = vst [vmem:[#allocation2 + $0xc8] sm:$0x3] %v13103_v0 }
  0x1f   : > { %442 = vst.msk [vmem:[#allocation2 + $0x8] sm:$0x3] %vm441_vm0, %v11732_v3  ;;  %440 = vst [vmem:[#allocation2] sm:$0x33] %v11731_v5 }
  0x26   : > { %v13241_v6 = vld [vmem:[#allocation2 + $0x8] ss:$0 sps:$4 sm:$0x33]   ;;  %v498_v7 = vld [vmem:[#allocation2] sm:$0x33] }
  0x27   : > { %531 = vrot.lane.b32.xlu1 %v13241_v6, %s13104_s24  ;;  %v11015_v8 = vcombine.low %v498_v7, %v498_v7  ;;  %v11016_v9 = vcombine.high %v498_v7, %v498_v7  ;;  %v678_v44 = vsel %vm543_vm1, %v13241_v6, 0 }
  0x29   : > { %527 = vrot.lane.b32.xlu0 %v11015_v8, %s13104_s24  ;;  %11025 = vmatprep.subr.msk.bf16.mxu0 %vm543_vm1, %v11016_v9  ;;  %v672_v10 = vsel %vm543_vm1, %v11015_v8, 0 }
  0x2a   : > { %681 = vmatpush1.bf16.msra.mxu0 %v672_v10 }
  0x2b   : > { %797 = vrot.lane.b32.xlu1 %v11015_v8, %s13105_s27 }
  0x2d   : > { %529 = vrot.lane.b32.xlu0 %v11016_v9, %s13104_s24  ;;  %11026 = vmatmul.mubr.msk.bf16.vlgmr.msra.gmra.mrb[0].mxu0 %vm17474_vm2, %v13251_v11 }
  0x2e   : > { %722 = vmatprep.mubr.bf16.mxu0 %v13103_v0 }
  0x2f   : > { %801 = vrot.lane.b32.xlu1 %v13241_v6, %s13105_s27 }
  0x31   : > { %799 = vrot.lane.b32.xlu0 %v11016_v9, %s13105_s27 }
  0x33   : > { %952 = vrot.lane.b32.xlu1 %v11016_v9, %s13106_s30 }
  0x35   : > { %950 = vrot.lane.b32.xlu0 %v11015_v8, %s13106_s30  ;;  %11027 = vmatmul.mubr.msk.bf16.gmra.mrb[4].mxu0 %vm17474_vm2, %v13263_v12 }
  0x36   : > { %853 = vmatprep.mubr.bf16.mxu0 %v13103_v0 }
  0x37   : > { %1103 = vrot.lane.b32.xlu1 %v11015_v8, %s13107_s12 }
  0x39   : > { %954 = vrot.lane.b32.xlu0 %v13241_v6, %s13106_s30 }
  0x3b   : > { %1107 = vrot.lane.b32.xlu1 %v13241_v6, %s13107_s12 }
  0x3d   : > { %1105 = vrot.lane.b32.xlu0 %v11016_v9, %s13107_s12 }
  0x3f   : > { %1258 = vrot.lane.b32.xlu1 %v11016_v9, %s13108_s13 }
  0x41   : > { %1256 = vrot.lane.b32.xlu0 %v11015_v8, %s13108_s13 }
  0x43   : > { %1409 = vrot.lane.b32.xlu1 %v11015_v8, %s13109_s14 }
  0x45   : > { %1260 = vrot.lane.b32.xlu0 %v13241_v6, %s13108_s13 }
  0x47   : > { %1413 = vrot.lane.b32.xlu1 %v13241_v6, %s13109_s14 }
  0x49   : > { %1411 = vrot.lane.b32.xlu0 %v11016_v9, %s13109_s14 }
  0x4b   : > { %1564 = vrot.lane.b32.xlu1 %v11016_v9, %s17481_s15 }
  0x4d   : > { %1562 = vrot.lane.b32.xlu0 %v11015_v8, %s17481_s15 }
  0x4f   : > { %1715 = vrot.lane.b32.xlu1 %v11015_v8, %s17489_s16  ;;  %v12875_v8 = vld [vmem:[%s17462_s1 + $0x58] sm:$0xff]  }
  0x51   : > { %1566 = vrot.lane.b32.xlu0 %v13241_v6, %s17481_s15 }
  0x53   : > { %1719 = vrot.lane.b32.xlu1 %v13241_v6, %s17489_s16 }
  0x55   : > { %1717 = vrot.lane.b32.xlu0 %v11016_v9, %s17489_s16 }
  0x57   : > { %1864 = vperm.xlu1 %12859, %v1854_v14  }
  0x59   : > { %1859 = vperm.xlu0 %12858, %v1853_v13  }
  0x5b   : > { %1869 = vperm.xlu1 %12859, %v1855_v15  }
  0x5d   : > { %1874 = vperm.xlu0 %12858, %v1856_v16  }
  0x99   : > { %v532_v17 = vpop.permute.xlu1 %531 }
  0x9a   : > { %v551_v30 = vsel %vm543_vm1, %v532_v17, 0 }
  0x9b   : > { %v528_v18 = vpop.permute.xlu0 %527 }
  0x9d   : > { %v798_v19 = vpop.permute.xlu1 %797 }
  0x9f   : > { %v530_v20 = vpop.permute.xlu0 %529 }
  0xa0   : > { %v535_v21 = vsel %vm17484_vm3, %v530_v20, %v532_v17  ;;  %v534_v22 = vsel %vm17484_vm3, %v528_v18, %v530_v20  ;;  %v12878_v20 = vld [vmem:[%s17462_s1 + $0x70] sm:$0xff]  }
  0xa1   : > { %v802_v23 = vpop.permute.xlu1 %801  ;;  %11018 = vmatprep.subr.msk.bf16.mxu1 %vm543_vm1, %v535_v21  ;;  %v545_v24 = vsel %vm543_vm1, %v534_v22, 0 }
  0xa2   : > { %554 = vmatpush1.bf16.msra.mxu1 %v545_v24  ;;  %v819_v54 = vsel %vm543_vm1, %v802_v23, 0  ;;  %v12880_v24 = vld [vmem:[%s17462_s1 + $0x80] sm:$0xff]  }
  0xa3   : > { %12797 = vmatprep.subr.msk.bf16.mxu1 %vm543_vm1, %v532_v17  ;;  %v800_v26 = vpop.permute.xlu0 %799  ;;  %v12877_v17 = vld [vmem:[%s17462_s1 + $0x68] sm:$0xff]  }
  0xa4   : > { %v804_v27 = vsel %vm17483_vm4, %v798_v19, %v800_v26  ;;  %v805_v28 = vsel %vm17483_vm4, %v800_v26, %v802_v23  ;;  %v12881_v26 = vld [vmem:[%s17462_s1 + $0x88] sm:$0xff]  }
  0xa5   : > { %v953_v29 = vpop.permute.xlu1 %952  ;;  %11019 = vmatmul.mubr.msk.bf16.vlgmr.msra.gmra.mrb[0].mxu1 %vm17474_vm2, %v12866_v25  ;;  %11036 = vmatprep.subr.msk.bf16.mxu0 %vm543_vm1, %v805_v28  ;;  %v813_v31 = vsel %vm543_vm1, %v804_v27, 0 }
  0xa6   : > { %11982 = vmatpush3.bf16.msra.mxu1 %v551_v30  ;;  %822 = vmatpush1.bf16.msra.mxu0 %v813_v31 }
  0xa7   : > { %v951_v33 = vpop.permute.xlu0 %950  ;;  %595 = vmatprep.mubr.bf16.mxu1 %v13103_v0  ;;  %12798 = vmatprep.subr.msk.bf16.mxu1 %vm543_vm1, %v13241_v6 }
  0xa8   : > { %v957_v34 = vsel %vm17480_vm5, %v951_v33, %v953_v29 }
  0xa9   : > { %v1104_v35 = vpop.permute.xlu1 %1103  ;;  %11037 = vmatmul.mubr.msk.bf16.vlgmr.msra.gmra.mrb[0].mxu0 %vm17474_vm2, %v12867_v32  ;;  %v966_v38 = vsel %vm543_vm1, %v957_v34, 0 }
  0xaa   : > { %863 = vmatprep.mubr.bf16.mxu0 %v13103_v0 }
  0xab   : > { %v955_v37 = vpop.permute.xlu0 %954 }
  0xac   : > { %v958_v39 = vsel %vm17480_vm5, %v953_v29, %v955_v37  ;;  %v972_v61 = vsel %vm543_vm1, %v955_v37, 0 }
  0xad   : > { %11020 = vmatmul.mubr.msk.bf16.gmra.mrb[4].mxu1 %vm17474_vm2, %v12868_v36  ;;  %11047 = vmatprep.subr.msk.bf16.mxu0 %vm543_vm1, %v958_v39  ;;  %v1108_v41 = vpop.permute.xlu1 %1107 }
  0xae   : > { %975 = vmatpush1.bf16.msra.mxu0 %v966_v38  ;;  %11983 = vmatprep.mubr.msk.bf16.mxu1 %vm17474_vm2, %v12866_v25  ;;  %v1125_v6 = vsel %vm543_vm1, %v1108_v41, 0 }
  0xaf   : > { %v1106_v42 = vpop.permute.xlu0 %1105 }
  0xb0   : > { %v1111_v43 = vsel %vm17479_vm6, %v1106_v42, %v1108_v41  ;;  %v1110_v46 = vsel %vm17479_vm6, %v1104_v35, %v1106_v42  ;;  %v443_v35 = vlaneseq }
  0xb1   : > { %11038 = vmatmul.mubr.msk.bf16.gmra.mrb[4].mxu0 %vm17474_vm2, %v12869_v40  ;;  %11058 = vmatprep.subr.msk.bf16.mxu0 %vm543_vm1, %v1111_v43  ;;  %v1259_v48 = vpop.permute.xlu1 %1258  ;;  %v1119_v49 = vsel %vm543_vm1, %v1110_v46, 0 }
  0xb2   : > { %1006 = vmatprep.mubr.bf16.mxu0 %v13103_v0 }
  0xb3   : > { %v1257_v45 = vpop.permute.xlu0 %1256 }
  0xb4   : > { %v1263_v55 = vsel %vm17478_vm7, %v1257_v45, %v1259_v48 }
  0xb5   : > { %11984 = vmatmul.mubr.msk.bf16.vlgmr.msra.gmra.mrb[8].mxu1 %vm17474_vm2, %v12868_v36  ;;  %v1410_v53 = vpop.permute.xlu1 %1409  ;;  %v1272_v59 = vsel %vm543_vm1, %v1263_v55, 0  ;;  %v444_v36 = vand.u32 127, %v443_v35 }
  0xb6   : > { %11988 = vmatpush3.bf16.msra.mxu1 %v678_v44  ;;  %11989 = vmatprep.mubr.msk.bf16.mxu1 %vm17474_vm2, %v13251_v11 }
  0xb7   : > { %12799 = vmatprep.subr.msk.bf16.mxu1 %vm543_vm1, %v802_v23  ;;  %v1261_v50 = vpop.permute.xlu0 %1260  ;;  %v12879_v23 = vld [vmem:[%s17462_s1 + $0x78] sm:$0xff]   ;;  %v13465_v38 = vmul.u32.u64.low 3817748708, %v444_v36  ;;  %v13466_v39 = vmul.u32.u64.high 3817748708, %v444_v36, %v13465_v38 }
  0xb8   : > { %v1264_v51 = vsel %vm17478_vm7, %v1259_v48, %v1261_v50  ;;  %v1278_v11 = vsel %vm543_vm1, %v1261_v50, 0 }
  0xb9   : > { %11048 = vmatmul.mubr.msk.bf16.vlgmr.msra.gmra.mrb[0].mxu0 %vm17474_vm2, %v12870_v47  ;;  %v1414_v57 = vpop.permute.xlu1 %1413  ;;  %v453_v44 = vshrl.u32 %v13466_v39, 4 }
  0xba   : > { %1016 = vmatprep.mubr.bf16.mxu0 %v13103_v0  ;;  %1128 = vmatpush1.bf16.msra.mxu0 %v1119_v49  ;;  %v1431_v18 = vsel %vm543_vm1, %v1414_v57, 0 }
  0xbb   : > { %11069 = vmatprep.subr.msk.bf16.mxu0 %vm543_vm1, %v1264_v51  ;;  %v1412_v58 = vpop.permute.xlu0 %1411  ;;  %v454_v46 = vmul.u32 18, %v453_v44 }
  0xbc   : > { %v1417_v60 = vsel %vm17477_vm8, %v1412_v58, %v1414_v57  ;;  %v1416_v2 = vsel %vm17477_vm8, %v1410_v53, %v1412_v58 }
  0xbd   : > { %v1565_v3 = vpop.permute.xlu1 %1564  ;;  %v1425_v5 = vsel %vm543_vm1, %v1416_v2, 0  ;;  %v455_v49 = vsub.s32 %v444_v36, %v454_v46 }
  0xbf   : > { %v1563_v63 = vpop.permute.xlu0 %1562  ;;  %vm480_vm11 = vcmp.ne.s32.totalorder %v455_v49, 0  ;;  %vm483_vm12 = vcmp.lt.s32.totalorder %v455_v49, 0  ;;  %v489_v53 = vadd.s32 18, %v455_v49 }
  0xc0   : > { %v1569_v10 = vsel %vm17476_vm9, %v1563_v63, %v1565_v3  ;;  %vm13477_vm15 = vmand %vm483_vm12, %vm480_vm11 }
  0xc1   : > { %11990 = vmatmul.mubr.msk.bf16.vlgmr.msra.gmra.mrb[8].mxu1 %vm17474_vm2, %v13263_v12  ;;  %11049 = vmatmul.mubr.msk.bf16.gmra.mrb[4].mxu0 %vm17474_vm2, %v12871_v52  ;;  %v1716_v9 = vpop.permute.xlu1 %1715  ;;  %v12876_v12 = vld [vmem:[%s17462_s1 + $0x60] sm:$0xff]   ;;  %v1578_v15 = vsel %vm543_vm1, %v1569_v10, 0 }
  0xc2   : > { %11994 = vmatpush3.bf16.msra.mxu1 %v819_v54  ;;  %1159 = vmatprep.mubr.bf16.mxu0 %v13103_v0 }
  0xc3   : > { %12800 = vmatprep.subr.msk.bf16.mxu1 %vm543_vm1, %v955_v37  ;;  %11995 = vmatprep.mubr.msk.bf16.mxu1 %vm17474_vm2, %v12867_v32  ;;  %v1567_v4 = vpop.permute.xlu0 %1566  ;;  %v445_v37 = vadd.s32 128, %v444_v36 }
  0xc4   : > { %v1570_v7 = vsel %vm17476_vm9, %v1565_v3, %v1567_v4  ;;  %v1584_v22 = vsel %vm543_vm1, %v1567_v4, 0 }
  0xc5   : > { %v1720_v13 = vpop.permute.xlu1 %1719 }
  0xc6   : > { %v1737_v25 = vsel %vm543_vm1, %v1720_v13, 0 }
  0xc7   : > { %v1718_v14 = vpop.permute.xlu0 %1717 }
  0xc8   : > { %v1723_v16 = vsel %vm17475_vm10, %v1718_v14, %v1720_v13  ;;  %v1722_v19 = vsel %vm17475_vm10, %v1716_v9, %v1718_v14 }
  0xc9   : > { %11059 = vmatmul.mubr.msk.bf16.vlgmr.msra.gmra.mrb[0].mxu0 %vm17474_vm2, %v12872_v56  ;;  %v1731_v21 = vsel %vm543_vm1, %v1722_v19, 0 }
  0xca   : > { %1169 = vmatprep.mubr.bf16.mxu0 %v13103_v0  ;;  %1281 = vmatpush1.bf16.msra.mxu0 %v1272_v59 }
  0xcb   : > { %11080 = vmatprep.subr.msk.bf16.mxu0 %vm543_vm1, %v1417_v60 }
  0xcd   : > { %11996 = vmatmul.mubr.msk.bf16.vlgmr.msra.gmra.mrb[8].mxu1 %vm17474_vm2, %v12869_v40  ;;  %v446_v40 = vadd.s32 256, %v444_v36 }
  0xce   : > { %12000 = vmatpush3.bf16.msra.mxu1 %v972_v61  ;;  %12001 = vmatprep.mubr.msk.bf16.mxu1 %vm17474_vm2, %v12870_v47 }
  0xcf   : > { %12801 = vmatprep.subr.msk.bf16.mxu1 %vm543_vm1, %v1108_v41  ;;  %v13471_v42 = vmul.u32.u64.low 3817748708, %v446_v40  ;;  %v13472_v43 = vmul.u32.u64.high 3817748708, %v446_v40, %v13471_v42 }
  0xd1   : > { %11060 = vmatmul.mubr.msk.bf16.gmra.mrb[4].mxu0 %vm17474_vm2, %v12873_v62  ;;  %v475_v47 = vshrl.u32 %v13472_v43, 4 }
  0xd2   : > { %1312 = vmatprep.mubr.bf16.mxu0 %v13103_v0 }
  0xd6   : > { %v13487_v63 = vpop.permute.xlu1 %1864 }
  0xd9   : > { %12002 = vmatmul.mubr.msk.bf16.vlgmr.msra.gmra.mrb[8].mxu1 %vm17474_vm2, %v12871_v52  ;;  %11070 = vmatmul.mubr.msk.bf16.vlgmr.msra.gmra.mrb[0].mxu0 %vm17474_vm2, %v12874_v1 }
  0xda   : > { %12006 = vmatpush3.bf16.msra.mxu1 %v1125_v6  ;;  %1322 = vmatprep.mubr.bf16.mxu0 %v13103_v0 }
  0xdb   : > { %12802 = vmatprep.subr.msk.bf16.mxu1 %vm543_vm1, %v1261_v50  ;;  %1434 = vmatpush1.bf16.msra.mxu0 %v1425_v5  ;;  %v476_v50 = vmul.u32 18, %v475_v47 }
  0xdc   : > { %12007 = vmatprep.mubr.msk.bf16.mxu1 %vm17474_vm2, %v12872_v56  ;;  %11091 = vmatprep.subr.msk.bf16.mxu0 %vm543_vm1, %v1570_v7 }
  0xdd   : > { %v477_v52 = vsub.s32 %v446_v40, %v476_v50 }
  0xdf   : > { %vm485_vm10 = vcmp.lt.s32.totalorder %v477_v52, 0  ;;  %v491_v5 = vadd.s32 18, %v477_v52 }
  0xe1   : > { %11071 = vmatmul.mubr.msk.bf16.gmra.mrb[4].mxu0 %vm17474_vm2, %v12875_v8 }
  0xe2   : > { %1465 = vmatprep.mubr.bf16.mxu0 %v13103_v0 }
  0xe5   : > { %12008 = vmatmul.mubr.msk.bf16.vlgmr.msra.gmra.mrb[8].mxu1 %vm17474_vm2, %v12873_v62 }
  0xe6   : > { %12012 = vmatpush3.bf16.msra.mxu1 %v1278_v11  ;;  %12013 = vmatprep.mubr.msk.bf16.mxu1 %vm17474_vm2, %v12874_v1  ;;  %v492_v1 = vsel %vm13477_vm15, %v489_v53, %v455_v49 }
  0xe7   : > { %12803 = vmatprep.subr.msk.bf16.mxu1 %vm543_vm1, %v1414_v57  ;;  %v13481_v57 = vpop.permute.xlu0 %1859  ;;  %vm13500_vm12 = vcmp.lt.s32.totalorder %v492_v1, 16 }
  0xe9   : > { %11081 = vmatmul.mubr.msk.bf16.vlgmr.msra.gmra.mrb[0].mxu0 %vm17474_vm2, %v12876_v12 }
  0xea   : > { %1475 = vmatprep.mubr.bf16.mxu0 %v13103_v0  ;;  %1587 = vmatpush1.bf16.msra.mxu0 %v1578_v15 }
  0xeb   : > { %11102 = vmatprep.subr.msk.bf16.mxu0 %vm543_vm1, %v1723_v16  ;;  %v1875_v42 = vpop.permute.xlu0 %1874 }
  0xf1   : > { %12014 = vmatmul.mubr.msk.bf16.vlgmr.msra.gmra.mrb[8].mxu1 %vm17474_vm2, %v12875_v8  ;;  %11082 = vmatmul.mubr.msk.bf16.gmra.mrb[4].mxu0 %vm17474_vm2, %v12877_v17 }
  0xf2   : > { %12018 = vmatpush3.bf16.msra.mxu1 %v1431_v18  ;;  %1618 = vmatprep.mubr.bf16.mxu0 %v13103_v0 }
  0xf3   : > { %12804 = vmatprep.subr.msk.bf16.mxu1 %vm543_vm1, %v1567_v4  ;;  %12019 = vmatprep.mubr.msk.bf16.mxu1 %vm17474_vm2, %v12876_v12 }
  0xf9   : > { %11092 = vmatmul.mubr.msk.bf16.vlgmr.msra.gmra.mrb[0].mxu0 %vm17474_vm2, %v12878_v20 }
  0xfa   : > { %1628 = vmatprep.mubr.bf16.mxu0 %v13103_v0  ;;  %1740 = vmatpush1.bf16.msra.mxu0 %v1731_v21 }
  0xfd   : > { %12020 = vmatmul.mubr.msk.bf16.vlgmr.msra.gmra.mrb[8].mxu1 %vm17474_vm2, %v12877_v17 }
  0xfe   : > { %12024 = vmatpush3.bf16.msra.mxu1 %v1584_v22  ;;  %12025 = vmatprep.mubr.msk.bf16.mxu1 %vm17474_vm2, %v12878_v20 }
  0xff   : > { %12805 = vmatprep.subr.msk.bf16.mxu1 %vm543_vm1, %v1720_v13 }
 0x101   : > { %11093 = vmatmul.mubr.msk.bf16.gmra.mrb[4].mxu0 %vm17474_vm2, %v12879_v23 }
 0x102   : > { %1771 = vmatprep.mubr.bf16.mxu0 %v13103_v0 }
 0x109   : > { %12026 = vmatmul.mubr.msk.bf16.vlgmr.msra.gmra.mrb[8].mxu1 %vm17474_vm2, %v12879_v23  ;;  %11103 = vmatmul.mubr.msk.bf16.vlgmr.msra.gmra.mrb[0].mxu0 %vm17474_vm2, %v12880_v24 }
 0x10a   : > { %12030 = vmatpush3.bf16.msra.mxu1 %v1737_v25  ;;  %1781 = vmatprep.mubr.bf16.mxu0 %v13103_v0 }
 0x10b   : > { %12031 = vmatprep.mubr.msk.bf16.mxu1 %vm17474_vm2, %v12880_v24 }
 0x111   : > { %11104 = vmatmul.mubr.msk.bf16.gmra.mrb[4].mxu0 %vm17474_vm2, %v12881_v26 }
 0x112   : > { %4020 = vmatprep.mubr.bf16.mxu0 %v13103_v0 }
 0x115   : > { %12032 = vmatmul.mubr.msk.bf16.vlgmr.msra.gmra.mrb[8].mxu1 %vm17474_vm2, %v12881_v26  ;;  %vm482_vm2 = vcmp.ne.s32.totalorder %v477_v52, 0 }
 0x116   : > { %2209 = vmatprep.mubr.bf16.mxu1 %v13103_v0  ;;  %v13468_v0 = vmul.u32.u64.low 3817748708, %v445_v37  ;;  %v13469_v41 = vmul.u32.u64.high 3817748708, %v445_v37, %v13468_v0  ;;  %vm13495_vm11 = vmand %vm485_vm10, %vm482_vm2 }
 0x117   : > { %v494_v17 = vsel %vm13495_vm11, %v491_v5, %v477_v52 }
 0x118   : > { %v464_v45 = vshrl.u32 %v13469_v41, 4  ;;  %vm13520_vm11 = vcmp.lt.s32.totalorder %v494_v17, 16 }
 0x11a   : > { %v465_v48 = vmul.u32 18, %v464_v45 }
 0x11c   : > { %v466_v51 = vsub.s32 %v445_v37, %v465_v48 }
 0x11e   : > { %vm481_vm13 = vcmp.ne.s32.totalorder %v466_v51, 0  ;;  %vm484_vm14 = vcmp.lt.s32.totalorder %v466_v51, 0  ;;  %v490_v55 = vadd.s32 18, %v466_v51 }
 0x11f   : > { %vm13483_vm0 = vmand %vm484_vm14, %vm481_vm13 }
 0x120   : > { %v493_v6 = vsel %vm13483_vm0, %v490_v55, %v466_v51  ;;  %vm1976_vm0 = vcmask 1045508  }
 0x121   : > { %vm13505_vm14 = vcmp.lt.s32.totalorder %v493_v6, 16  ;;  %vm13531_vm7 = vmor %vm543_vm1, %vm1976_vm0 }
 0x178   : > { %v587_v27 = vpop.f32.mrb[0].mxu1 }
 0x179   : > { %v589_v28 = vpop.f32.mrb[1].mxu1 }
 0x17a   : > { %v591_v29 = vpop.f32.mrb[2].mxu1 }
 0x17b   : > { %v593_v30 = vpop.f32.mrb[3].mxu1 }
 0x180   : > { %v13457_v31 = vpop.f32.mrb[4].mxu1 }
 0x181   : > { %v13459_v32 = vpop.f32.mrb[5].mxu1 }
 0x182   : > { %v13461_v33 = vpop.f32.mrb[6].mxu1 }
 0x183   : > { %v13463_v34 = vpop.f32.mrb[7].mxu1 }
 0x1dc   : > { %v1773_v56 = vpop.f32.mrb[0].mxu0 }
 0x1dd   : > { %v12413_v59 = vadd.f32 %v1773_v56, %v587_v27  ;;  %v1775_v60 = vpop.f32.mrb[1].mxu0 }
 0x1de   : > { %v12414_v61 = vadd.f32 %v1775_v60, %v589_v28  ;;  %v1777_v62 = vpop.f32.mrb[2].mxu0  ;;  %v1870_v28 = vpop.permute.xlu1 %1869 }
 0x1df   : > { %v1877_v2 = vadd.f32 %v12413_v59, %v13481_v57  ;;  %v12415_v3 = vadd.f32 %v1777_v62, %v591_v29  ;;  %v1779_v4 = vpop.f32.mrb[3].mxu0 }
 0x1e0   : > { %v1878_v7 = vadd.f32 %v12414_v61, %v13481_v57  ;;  %v12416_v8 = vadd.f32 %v1779_v4, %v593_v30 }
 0x1e1   : > { %v1901_v10 = vmul.f32 0.2, %v1877_v2  ;;  %v1880_v11 = vadd.f32 %v12415_v3, %v13487_v63  ;;  %vm1889_vm13 = vcmp.gt.f32.partialorder %v1877_v2, 0.0 }
 0x1e2   : > { %v1902_v13 = vmul.f32 0.2, %v1878_v7  ;;  %v1881_v14 = vadd.f32 %v12416_v8, %v13487_v63  ;;  %vm1890_vm15 = vcmp.gt.f32.partialorder %v1878_v7, 0.0 }
 0x1e3   : > { %vm1892_vm2 = vcmp.gt.f32.partialorder %v1880_v11, 0.0  ;;  %v1904_v16 = vmul.f32 0.2, %v1880_v11  ;;  %v1913_v18 = vsel %vm1889_vm13, %v1877_v2, %v1901_v10 }
 0x1e4   : > { %vm1893_vm10 = vcmp.gt.f32.partialorder %v1881_v14, 0.0  ;;  %v1905_v19 = vmul.f32 0.2, %v1881_v14  ;;  %v1783_v20 = vpop.f32.mrb[4].mxu0  ;;  %v1914_v21 = vsel %vm1890_vm15, %v1878_v7, %v1902_v13  ;;  %v1931_v22 = vsel %vm13500_vm12, %v1913_v18, 0.0 }
 0x1e5   : > { %v12417_v23 = vadd.f32 %v1783_v20, %v13457_v31  ;;  %v1785_v24 = vpop.f32.mrb[5].mxu0  ;;  %v1932_v25 = vsel %vm13505_vm14, %v1914_v21, 0.0  ;;  %v1916_v26 = vsel %vm1892_vm2, %v1880_v11, %v1904_v16 }
 0x1e6   : > { %v12418_v27 = vadd.f32 %v1785_v24, %v13459_v32  ;;  %v1787_v29 = vpop.f32.mrb[6].mxu0  ;;  %v11733_v30 = vpack.c.bf16 %v1932_v25, %v1931_v22  ;;  %v1917_v35 = vsel %vm1893_vm10, %v1881_v14, %v1905_v19  ;;  %v1934_v36 = vsel %vm13500_vm12, %v1916_v26, 0.0 }
 0x1e7   : > { %v1883_v37 = vadd.f32 %v12417_v23, %v1870_v28  ;;  %v12419_v38 = vadd.f32 %v1787_v29, %v13461_v33  ;;  %v1789_v39 = vpop.f32.mrb[7].mxu0  ;;  %v1935_v40 = vsel %vm13505_vm14, %v1917_v35, 0.0 }
 0x1e8   : > { %v1884_v0 = vadd.f32 %v12418_v27, %v1870_v28  ;;  %v12420_v32 = vadd.f32 %v1789_v39, %v13463_v34  ;;  %v12033_v41 = vpop.f32.mrb[8].mxu1  ;;  %v1978_v43 = vrot.slane %v11733_v30, 6  ;;  %v11735_v44 = vpack.c.bf16 %v1935_v40, %v1934_v36 }
 0x1e9   : > { %vm1895_vm13 = vcmp.gt.f32.partialorder %v1883_v37, 0.0  ;;  %v1907_v45 = vmul.f32 0.2, %v1883_v37  ;;  %v1885_v46 = vadd.f32 %v12033_v41, %v1870_v28  ;;  %v1886_v47 = vadd.f32 %v12419_v38, %v1875_v42  ;;  %v1826_v33 = vpop.f32.mrb[9].mxu1 }
 0x1ea   : > { %vm1896_vm15 = vcmp.gt.f32.partialorder %v1884_v0, 0.0  ;;  %v1908_v48 = vmul.f32 0.2, %v1884_v0  ;;  %v1887_v49 = vadd.f32 %v12420_v32, %v1875_v42  ;;  %v1879_v50 = vadd.f32 %v13481_v57, %v1826_v33  ;;  %v12034_v51 = vpop.f32.mrb[10].mxu1  ;;  %2000 = vrot.lane.b32.xlu1 %v1978_v43, %s13112_s19 }
 0x1eb   : > { %vm1897_vm2 = vcmp.gt.f32.partialorder %v1885_v46, 0.0  ;;  %v1909_v34 = vmul.f32 0.2, %v1885_v46  ;;  %vm1898_vm10 = vcmp.gt.f32.partialorder %v1886_v47, 0.0  ;;  %v1910_v52 = vmul.f32 0.2, %v1886_v47 }
 0x1ec   : > { %vm1899_vm9 = vcmp.gt.f32.partialorder %v1887_v49, 0.0  ;;  %v1911_v53 = vmul.f32 0.2, %v1887_v49  ;;  %vm1891_vm8 = vcmp.gt.f32.partialorder %v1879_v50, 0.0  ;;  %v1903_v54 = vmul.f32 0.2, %v1879_v50 }
 0x1ed   : > { %v1921_v56 = vsel %vm1897_vm2, %v1885_v46, %v1909_v34  ;;  %v1888_v57 = vadd.f32 %v12034_v51, %v1875_v42  ;;  %v1980_v58 = vrot.slane %v1978_v43, 4  ;;  %v1829_v59 = vpop.f32.mrb[11].mxu1  ;;  %v1981_v60 = vrot.slane %v11735_v44, 6 }
 0x1ee   : > { %v1939_v61 = vsel %vm13520_vm11, %v1921_v56, 0.0  ;;  %v1915_v62 = vsel %vm1891_vm8, %v1879_v50, %v1903_v54  ;;  %v1882_v1 = vadd.f32 %v13487_v63, %v1829_v59  ;;  %v1919_v2 = vsel %vm1895_vm13, %v1883_v37, %v1907_v45 }
 0x1ef   : > { %v11738_v3 = vpack.c.bf16 %v1939_v61, %v1939_v61  ;;  %vm1900_vm6 = vcmp.gt.f32.partialorder %v1888_v57, 0.0  ;;  %v1912_v4 = vmul.f32 0.2, %v1888_v57  ;;  %v1982_v5 = vsel %vm13531_vm7, %v1980_v58, %v1981_v60 }
 0x1f0   : > { %vm1894_vm5 = vcmp.gt.f32.partialorder %v1882_v1, 0.0  ;;  %v1906_v6 = vmul.f32 0.2, %v1882_v1  ;;  %2004 = vrot.lane.b32.xlu0 %v1982_v5, %s13112_s19  ;;  %v1920_v7 = vsel %vm1896_vm15, %v1884_v0, %v1908_v48  ;;  %v1937_v8 = vsel %vm13500_vm12, %v1919_v2, 0.0 }
 0x1f1   : > { %v1924_v9 = vsel %vm1900_vm6, %v1888_v57, %v1912_v4  ;;  %v1938_v63 = vsel %vm13505_vm14, %v1920_v7, 0.0  ;;  %v1986_v10 = vrot.slane %v1981_v60, 4  ;;  %v1922_v11 = vsel %vm1898_vm10, %v1886_v47, %v1910_v52 }
 0x1f2   : > { %v1942_v13 = vsel %vm13520_vm11, %v1924_v9, 0.0  ;;  %v1918_v14 = vsel %vm1894_vm5, %v1882_v1, %v1906_v6  ;;  %v11737_v16 = vpack.c.bf16 %v1938_v63, %v1937_v8  ;;  %v1923_v17 = vsel %vm1899_vm9, %v1887_v49, %v1911_v53 }
 0x1f3   : > { %v11740_v18 = vpack.c.bf16 %v1942_v13, %v1942_v13  ;;  %v1936_v19 = vsel %vm13520_vm11, %v1918_v14, 0.0  ;;  %v1940_v20 = vsel %vm13500_vm12, %v1922_v11, 0.0  ;;  %v1941_v21 = vsel %vm13505_vm14, %v1923_v17, 0.0 }
 0x1f4   : > { %v11736_v22 = vpack.c.bf16 %v1936_v19, %v1936_v19  ;;  %v1987_v23 = vrot.slane %v11737_v16, 6  ;;  %v11739_v24 = vpack.c.bf16 %v1941_v21, %v1940_v20  ;;  %v1933_v25 = vsel %vm13520_vm11, %v1915_v62, 0.0 }
 0x1f5   : > { %v11734_v26 = vpack.c.bf16 %v1933_v25, %v1933_v25  ;;  %v1990_v27 = vrot.slane %v11738_v3, 6  ;;  %v1996_v28 = vrot.slane %v11740_v18, 6  ;;  %vm2046_vm5 = vcmask 1043610  }
 0x1f6   : > { %v1988_v29 = vsel %vm13531_vm7, %v1986_v10, %v1987_v23  ;;  %v1992_v30 = vrot.slane %v1987_v23, 4  ;;  %v1993_v35 = vrot.slane %v11739_v24, 6  ;;  %v1984_v36 = vrot.slane %v11736_v22, 6 }
 0x1f7   : > { %2008 = vrot.lane.b32.xlu1 %v1988_v29, %s13112_s19  ;;  %v1979_v37 = vrot.slane %v11734_v26, 6  ;;  %v1995_v38 = vrot.slane %v1990_v27, 4  ;;  %v1999_v44 = vrot.slane %v1996_v28, 4  ;;  %vm2047_vm6 = vcmask 1047558  }
 0x1f8   : > { %v1994_v39 = vsel %vm13531_vm7, %v1992_v30, %v1993_v35  ;;  %v1989_v40 = vrot.slane %v1984_v36, 4  ;;  %v1998_v43 = vrot.slane %v1993_v35, 4  ;;  %vm17488_vm8 = vcmask 154624   ;;  %vm13577_vm9 = vmor %vm2047_vm6, %vm2046_vm5 }
 0x1f9   : > { %2012 = vrot.lane.b32.xlu0 %v1994_v39, %s13112_s19  ;;  %v1983_v0 = vrot.slane %v1979_v37, 4  ;;  %v1997_v32 = vsel %vm13531_vm7, %v1995_v38, %v1996_v28  ;;  %vm2052_vm13 = vcmask 1043608   ;;  %vm2053_vm15 = vcmask 1047556  }
 0x1fa   : > { %v1991_v41 = vsel %vm13531_vm7, %v1989_v40, %v1990_v27  ;;  %vm13584_vm2 = vmor %vm2053_vm15, %vm2052_vm13  ;;  %vm17487_vm10 = vcmask 412674   ;;  %vm17486_vm5 = vcmask 412672   ;;  %vm2062_vm6 = vcmask 1041560  }
 0x1fb   : > { %2002 = vrot.lane.b32.xlu1 %v1979_v37, %s13112_s19  ;;  %v1985_v42 = vsel %vm13531_vm7, %v1983_v0, %v1984_v36  ;;  %vm13614_vm13 = vmor %vm1976_vm0, %vm2062_vm6  ;;  %vm17485_vm15 = vcmask 410624   ;;  %vm2161_vm0 = vcmask 293888   ;;  %vm17538_vm6 = vcmask 900096  }
 0x1fd   : > { %2006 = vrot.lane.b32.xlu0 %v1985_v42, %s13112_s19 }
 0x1ff   : > { %2010 = vrot.lane.b32.xlu1 %v1991_v41, %s13112_s19 }
 0x201   : > { %2014 = vrot.lane.b32.xlu0 %v1997_v32, %s13112_s19 }
 0x203   : > { %2016 = vrot.lane.b32.xlu1 %v1998_v43, %s13112_s19 }
 0x205   : > { %2018 = vrot.lane.b32.xlu0 %v1999_v44, %s13112_s19 }
 0x25c   : > { %v2001_v45 = vpop.permute.xlu1 %2000 }
 0x25d   : > { %v2020_v47 = vrot.slane %v2001_v45, 4 }
 0x25f   : > { %v2026_v33 = vsel %vm17488_vm8, %v2020_v47, %v2001_v45 }
 0x260   : > { %2049 = vst.msk [vmem:[#allocation2] sm:$0xcc] %vm13577_vm9, %v2026_v33  ;;  %v12885_v33 = vld [vmem:[%s17463_s2 + $0x10] sm:$0xff]  }
 0x262   : > { %v2005_v48 = vpop.permute.xlu0 %2004 }
 0x263   : > { %v2021_v50 = vrot.slane %v2005_v48, 4 }
 0x265   : > { %v2028_v51 = vsel %vm17488_vm8, %v2021_v50, %v2005_v48  ;;  %v13785_v48 = vld [vmem:[#allocation2 + $0x3c] sm:$0xff] }
 0x266   : > { %2055 = vst.msk [vmem:[#allocation2 + $0xc] sm:$0xff] %vm13584_vm2, %v2028_v51  ;;  %v12886_v51 = vld [vmem:[%s17463_s2 + $0x18] sm:$0xff]  }
 0x267   : > { %v2068_v57 = vld [vmem:[#allocation2] sm:$0xff] }
 0x269   : > { %v2009_v34 = vpop.permute.xlu1 %2008 }
 0x26a   : > { %v2022_v52 = vrot.slane %v2009_v34, 4 }
 0x26b   : > { %v2013_v53 = vpop.permute.xlu0 %2012 }
 0x26c   : > { %v2030_v54 = vsel %vm17488_vm8, %v2022_v52, %v2009_v34  ;;  %v2023_v56 = vrot.slane %v2013_v53, 4  ;;  %v3630_v34 = vld [vmem:[%s17468_s7] sm:$0xff] }
 0x26d   : > { %v2070_v58 = vld [vmem:[#allocation2 + $0xc] sm:$0xff]  ;;  %2058 = vst.msk [vmem:[#allocation2 + $0x18] sm:$0xff] %vm13584_vm2, %v2030_v54  ;;  %v2003_v59 = vpop.permute.xlu1 %2002 }
 0x26e   : > { %v13594_v60 = vcombine.high %v2068_v57, %v2070_v58  ;;  %v2032_v61 = vsel %vm17488_vm8, %v2023_v56, %v2013_v53  ;;  %v2027_v62 = vsel %vm17488_vm8, %v2020_v47, %v2003_v59  ;;  %v13605_v4 = vcombine.low %v2068_v57, %v2070_v58  ;;  %v3632_v54 = vld [vmem:[%s17468_s7 + $0x10] sm:$0xff]  ;;  %v12887_v58 = vld [vmem:[%s17463_s2] sm:$0xff]  }
 0x26f   : > { %2060 = vst.msk [vmem:[#allocation2 + $0x24] sm:$0xff] %vm13584_vm2, %v2032_v61  ;;  %v2007_v1 = vpop.permute.xlu0 %2006  ;;  %v15950_v55 = vld [vmem:[#allocation2] ss:$12 sps:$4 sm:$0xff]  }
 0x270   : > { %2051 = vst.msk [vmem:[#allocation2 + $0x8] sm:$0xc] %vm17487_vm10, %v2027_v62  ;;  %v2029_v2 = vsel %vm17488_vm8, %v2021_v50, %v2007_v1  ;;  %2133 = vrot.lane.b32.xlu1 %v13594_v60, %s13104_s24  ;;  %v3631_v50 = vld [vmem:[%s17468_s7 + $0x8] sm:$0xff] }
 0x271   : > { %2057 = vst.msk [vmem:[#allocation2 + $0x14] sm:$0xf] %vm17486_vm5, %v2029_v2  ;;  %v2011_v3 = vpop.permute.xlu1 %2010  ;;  %v12888_v1 = vld [vmem:[%s17463_s2 + $0x8] sm:$0xff]  }
 0x272   : > { %v2031_v5 = vsel %vm17488_vm8, %v2022_v52, %v2011_v3  ;;  %v3633_v52 = vld [vmem:[%s17468_s7 + $0x18] sm:$0xff] }
 0x273   : > { %2059 = vst.msk [vmem:[#allocation2 + $0x20] sm:$0xf] %vm17486_vm5, %v2031_v5  ;;  %v2015_v6 = vpop.permute.xlu0 %2014 }
 0x274   : > { %v2033_v7 = vsel %vm17488_vm8, %v2023_v56, %v2015_v6  ;;  %2131 = vrot.lane.b32.xlu1 %v13605_v4, %s13104_s24  ;;  %v2072_v9 = vld [vmem:[#allocation2 + $0x18] sm:$0xff] }
 0x275   : > { %2061 = vst.msk [vmem:[#allocation2 + $0x2c] sm:$0xf] %vm17486_vm5, %v2033_v7  ;;  %v2017_v8 = vpop.permute.xlu1 %2016 }
 0x276   : > { %v2074_v63 = vld [vmem:[#allocation2 + $0x24] sm:$0xff]  ;;  %v2024_v11 = vrot.slane %v2017_v8, 4 }
 0x277   : > { %v13618_v13 = vcombine.high %v2072_v9, %v2074_v63  ;;  %v2019_v14 = vpop.permute.xlu0 %2018  ;;  %v2069_v19 = vld [vmem:[#allocation2 + $0x8] sm:$0xf]  ;;  %v13631_v21 = vcombine.low %v2072_v9, %v2074_v63 }
 0x278   : > { %v2071_v16 = vld [vmem:[#allocation2 + $0x14] sm:$0xf]  ;;  %v2034_v17 = vsel %vm17488_vm8, %v2024_v11, %v2017_v8  ;;  %v2035_v18 = vsel %vm17488_vm8, %v2024_v11, %v2019_v14 }
 0x279   : > { %2065 = vst.msk [vmem:[#allocation2 + $0x30] sm:$0x33] %vm13614_vm13, %v2034_v17  ;;  %2139 = vrot.lane.b32.xlu0 %v13618_v13, %s13104_s24  ;;  %v13627_v20 = vcombine.low %v2069_v19, %v2071_v16 }
 0x27a   : > { %2067 = vst.msk [vmem:[#allocation2 + $0x38] sm:$0x3] %vm17485_vm15, %v2035_v18  ;;  %v2073_v26 = vld [vmem:[#allocation2 + $0x20] sm:$0xf] }
 0x27c   : > { %v2075_v24 = vld [vmem:[#allocation2 + $0x2c] sm:$0xf] }
 0x27d   : > { %2135 = vrot.lane.b32.xlu0 %v13627_v20, %s13104_s24  ;;  %v13641_v27 = vcombine.low %v2073_v26, %v2075_v24  ;;  %v12890_v24 = vld [vmem:[%s17463_s2 + $0x28] sm:$0xff]  }
 0x280   : > { %v2076_v22 = vld [vmem:[#allocation2 + $0x30] sm:$0x33] }
 0x281   : > { %v13633_v23 = vcombine.low %v2076_v22, %v2076_v22  ;;  %2137 = vrot.lane.b32.xlu0 %v13631_v21, %s13104_s24  ;;  %v13637_v25 = vcombine.high %v2076_v22, %v2076_v22  ;;  %v13647_v28 = vld [vmem:[#allocation2 + $0x38] ss:$0 sps:$4 sm:$0x33]  }
 0x282   : > { %v2308_v3 = vsel %vm543_vm1, %v13647_v28, 0 }
 0x283   : > { %2143 = vrot.lane.b32.xlu1 %v13633_v23, %s13104_s24  ;;  %v2302_v57 = vsel %vm543_vm1, %v13633_v23, 0 }
 0x285   : > { %2145 = vrot.lane.b32.xlu0 %v13637_v25, %s13104_s24 }
 0x287   : > { %2141 = vrot.lane.b32.xlu1 %v13641_v27, %s13104_s24 }
 0x289   : > { %2429 = vrot.lane.b32.xlu0 %v13594_v60, %s13105_s27 }
 0x28b   : > { %2147 = vrot.lane.b32.xlu1 %v13647_v28, %s13104_s24 }
 0x28d   : > { %2427 = vrot.lane.b32.xlu0 %v13605_v4, %s13105_s27 }
 0x28f   : > { %2431 = vrot.lane.b32.xlu1 %v13627_v20, %s13105_s27 }
 0x291   : > { %2439 = vrot.lane.b32.xlu0 %v13633_v23, %s13105_s27 }
 0x293   : > { %2435 = vrot.lane.b32.xlu1 %v13618_v13, %s13105_s27 }
 0x295   : > { %2437 = vrot.lane.b32.xlu0 %v13641_v27, %s13105_s27 }
 0x297   : > { %2433 = vrot.lane.b32.xlu1 %v13631_v21, %s13105_s27 }
 0x299   : > { %2443 = vrot.lane.b32.xlu0 %v13647_v28, %s13105_s27 }
 0x29b   : > { %2441 = vrot.lane.b32.xlu1 %v13637_v25, %s13105_s27 }
 0x29d   : > { %2605 = vrot.lane.b32.xlu0 %v13627_v20, %s13106_s30 }
 0x29f   : > { %2603 = vrot.lane.b32.xlu1 %v13594_v60, %s13106_s30 }
 0x2a1   : > { %2609 = vrot.lane.b32.xlu0 %v13618_v13, %s13106_s30 }
 0x2a3   : > { %2601 = vrot.lane.b32.xlu1 %v13605_v4, %s13106_s30 }
 0x2a5   : > { %2607 = vrot.lane.b32.xlu0 %v13631_v21, %s13106_s30 }
 0x2a7   : > { %2613 = vrot.lane.b32.xlu1 %v13633_v23, %s13106_s30 }
 0x2a9   : > { %2615 = vrot.lane.b32.xlu0 %v13637_v25, %s13106_s30 }
 0x2ab   : > { %2611 = vrot.lane.b32.xlu1 %v13641_v27, %s13106_s30 }
 0x2ad   : > { %2777 = vrot.lane.b32.xlu0 %v13594_v60, %s13107_s12 }
 0x2af   : > { %2617 = vrot.lane.b32.xlu1 %v13647_v28, %s13106_s30 }
 0x2b1   : > { %2775 = vrot.lane.b32.xlu0 %v13605_v4, %s13107_s12 }
 0x2b3   : > { %2779 = vrot.lane.b32.xlu1 %v13627_v20, %s13107_s12 }
 0x2b5   : > { %2787 = vrot.lane.b32.xlu0 %v13633_v23, %s13107_s12 }
 0x2b7   : > { %2783 = vrot.lane.b32.xlu1 %v13618_v13, %s13107_s12 }
 0x2b9   : > { %2785 = vrot.lane.b32.xlu0 %v13641_v27, %s13107_s12 }
 0x2bb   : > { %2781 = vrot.lane.b32.xlu1 %v13631_v21, %s13107_s12 }
 0x2bd   : > { %2791 = vrot.lane.b32.xlu0 %v13647_v28, %s13107_s12 }
 0x2bf   : > { %2789 = vrot.lane.b32.xlu1 %v13637_v25, %s13107_s12 }
 0x2c1   : > { %2953 = vrot.lane.b32.xlu0 %v13627_v20, %s13108_s13 }
 0x2c3   : > { %2951 = vrot.lane.b32.xlu1 %v13594_v60, %s13108_s13 }
 0x2c5   : > { %2957 = vrot.lane.b32.xlu0 %v13618_v13, %s13108_s13 }
 0x2c7   : > { %2949 = vrot.lane.b32.xlu1 %v13605_v4, %s13108_s13 }
 0x2c9   : > { %2955 = vrot.lane.b32.xlu0 %v13631_v21, %s13108_s13 }
 0x2cb   : > { %2961 = vrot.lane.b32.xlu1 %v13633_v23, %s13108_s13 }
 0x2cd   : > { %2963 = vrot.lane.b32.xlu0 %v13637_v25, %s13108_s13 }
 0x2cf   : > { %2959 = vrot.lane.b32.xlu1 %v13641_v27, %s13108_s13 }
 0x2d1   : > { %3125 = vrot.lane.b32.xlu0 %v13594_v60, %s13109_s14 }
 0x2d3   : > { %2965 = vrot.lane.b32.xlu1 %v13647_v28, %s13108_s13 }
 0x2d5   : > { %3123 = vrot.lane.b32.xlu0 %v13605_v4, %s13109_s14 }
 0x2d7   : > { %3127 = vrot.lane.b32.xlu1 %v13627_v20, %s13109_s14 }
 0x2d9   : > { %3135 = vrot.lane.b32.xlu0 %v13633_v23, %s13109_s14 }
 0x2db   : > { %3131 = vrot.lane.b32.xlu1 %v13618_v13, %s13109_s14 }
 0x2dd   : > { %3133 = vrot.lane.b32.xlu0 %v13641_v27, %s13109_s14 }
 0x2df   : > { %3129 = vrot.lane.b32.xlu1 %v13631_v21, %s13109_s14 }
 0x2e1   : > { %3139 = vrot.lane.b32.xlu0 %v13647_v28, %s13109_s14 }
 0x2e2   : > { %v2134_v29 = vpop.permute.xlu1 %2133 }
 0x2e3   : > { %3137 = vrot.lane.b32.xlu1 %v13637_v25, %s13109_s14 }
 0x2e5   : > { %3301 = vrot.lane.b32.xlu0 %v13627_v20, %s17481_s15 }
 0x2e6   : > { %v2132_v35 = vpop.permute.xlu1 %2131 }
 0x2e7   : > { %3299 = vrot.lane.b32.xlu1 %v13594_v60, %s17481_s15  ;;  %v2149_v38 = vsel %vm17484_vm3, %v2132_v35, %v2134_v29 }
 0x2e9   : > { %3305 = vrot.lane.b32.xlu0 %v13618_v13, %s17481_s15 }
 0x2eb   : > { %3297 = vrot.lane.b32.xlu1 %v13605_v4, %s17481_s15  ;;  %v2140_v30 = vpop.permute.xlu0 %2139 }
 0x2ed   : > { %3303 = vrot.lane.b32.xlu0 %v13631_v21, %s17481_s15 }
 0x2ef   : > { %3309 = vrot.lane.b32.xlu1 %v13633_v23, %s17481_s15  ;;  %v2136_v36 = vpop.permute.xlu0 %2135 }
 0x2f0   : > { %v2150_v37 = vsel %vm17484_vm3, %v2134_v29, %v2136_v36 }
 0x2f1   : > { %3311 = vrot.lane.b32.xlu0 %v13637_v25, %s17481_s15  ;;  %2177 = vmatprep.subr.bf16.mxu1 %v2150_v37 }
 0x2f2   : > { %2178 = vmatpush1.bf16.msra.mxu1 %v2149_v38 }
 0x2f3   : > { %3307 = vrot.lane.b32.xlu1 %v13641_v27, %s17481_s15  ;;  %v2138_v39 = vpop.permute.xlu0 %2137 }
 0x2f4   : > { %v2151_v42 = vsel %vm17484_vm3, %v2138_v39, %v2140_v30 }
 0x2f5   : > { %v2144_v40 = vpop.permute.xlu1 %2143  ;;  %3473 = vrot.lane.b32.xlu0 %v13594_v60, %s17489_s16 }
 0x2f7   : > { %3313 = vrot.lane.b32.xlu1 %v13647_v28, %s17481_s15  ;;  %v2146_v0 = vpop.permute.xlu0 %2145 }
 0x2f8   : > { %v2153_v43 = vsel %vm17484_vm3, %v2144_v40, %v2146_v0 }
 0x2f9   : > { %v2142_v32 = vpop.permute.xlu1 %2141  ;;  %3471 = vrot.lane.b32.xlu0 %v13605_v4, %s17489_s16  ;;  %v2169_v47 = vsel %vm543_vm1, %v2153_v43, 0 }
 0x2fa   : > { %v2152_v41 = vsel %vm17484_vm3, %v2140_v30, %v2142_v32 }
 0x2fb   : > { %3475 = vrot.lane.b32.xlu1 %v13627_v20, %s17489_s16  ;;  %2179 = vmatprep.subr.bf16.mxu1 %v2152_v41  ;;  %v2430_v56 = vpop.permute.xlu0 %2429 }
 0x2fc   : > { %2180 = vmatpush1.bf16.msra.mxu1 %v2151_v42  ;;  %v12891_v42 = vld [vmem:[%s17463_s2 + $0x30] sm:$0xff]  }
 0x2fd   : > { %3483 = vrot.lane.b32.xlu0 %v13633_v23, %s17489_s16  ;;  %v2148_v44 = vpop.permute.xlu1 %2147 }
 0x2fe   : > { %v2154_v45 = vsel %vm17484_vm3, %v2146_v0, %v2148_v44  ;;  %v2175_v53 = vsel %vm543_vm1, %v2148_v44, 0 }
 0x2ff   : > { %3479 = vrot.lane.b32.xlu1 %v13618_v13, %s17489_s16  ;;  %11130 = vmatprep.subr.msk.bf16.mxu1 %vm543_vm1, %v2154_v45  ;;  %v2428_v61 = vpop.permute.xlu0 %2427 }
 0x300   : > { %2182 = vmatpush1.bf16.msra.mxu1 %v2169_v47  ;;  %v2445_v8 = vsel %vm17483_vm4, %v2428_v61, %v2430_v56  ;;  %v12892_v47 = vld [vmem:[%s17463_s2 + $0x38] sm:$0xff]  }
 0x301   : > { %3481 = vrot.lane.b32.xlu0 %v13641_v27, %s17489_s16  ;;  %12035 = vmatprep.subr.bf16.mxu1 %v2136_v36  ;;  %v2432_v59 = vpop.permute.xlu1 %2431 }
 0x302   : > { %v2446_v5 = vsel %vm17483_vm4, %v2430_v56, %v2432_v59 }
 0x303   : > { %3477 = vrot.lane.b32.xlu1 %v13631_v21, %s17489_s16  ;;  %11131 = vmatmul.mubr.msk.bf16.vlgmr.msra.gmra.mrb[12].mxu1 %vm2161_vm0, %v12885_v33  ;;  %v2440_v2 = vpop.permute.xlu0 %2439 }
 0x304   : > { %12036 = vmatpush3.bf16.msra.mxu1 %v2136_v36  ;;  %2219 = vmatprep.mubr.bf16.mxu1 %v13785_v48 }
 0x305   : > { %3487 = vrot.lane.b32.xlu0 %v13647_v28, %s17489_s16  ;;  %12037 = vmatprep.subr.bf16.mxu1 %v2142_v32  ;;  %v2436_v62 = vpop.permute.xlu1 %2435 }
 0x307   : > { %3485 = vrot.lane.b32.xlu1 %v13637_v25, %s17489_s16  ;;  %v2438_v7 = vpop.permute.xlu0 %2437 }
 0x308   : > { %12038 = vmatpush3.bf16.msra.mxu1 %v2142_v32  ;;  %v2448_v63 = vsel %vm17483_vm4, %v2436_v62, %v2438_v7 }
 0x309   : > { %3641 = vperm.xlu0 %12858, %v3631_v50   ;;  %12806 = vmatprep.subr.msk.bf16.mxu1 %vm543_vm1, %v2148_v44  ;;  %v2434_v6 = vpop.permute.xlu1 %2433 }
 0x30a   : > { %v2447_v11 = vsel %vm17483_vm4, %v2434_v6, %v2436_v62  ;;  %v12894_v6 = vld [vmem:[%s17463_s2 + $0x48] sm:$0xff]  }
 0x30b   : > { %3636 = vperm.xlu1 %12859, %v3630_v34   ;;  %11132 = vmatmul.mubr.msk.bf16.gmra.mrb[16].mxu1 %vm2161_vm0, %v12886_v51  ;;  %v2444_v14 = vpop.permute.xlu0 %2443 }
 0x30c   : > { %12040 = vmatpush3.bf16.msra.mxu1 %v2175_v53  ;;  %12041 = vmatprep.mubr.msk.bf16.mxu1 %vm2161_vm0, %v12885_v33 }
 0x30d   : > { %3651 = vperm.xlu0 %12858, %v3633_v52   ;;  %2310 = vmatprep.subr.bf16.mxu1 %v13594_v60  ;;  %v2442_v9 = vpop.permute.xlu1 %2441 }
 0x30e   : > { %v2449_v16 = vsel %vm17483_vm4, %v2440_v2, %v2442_v9  ;;  %v2450_v17 = vsel %vm17483_vm4, %v2442_v9, %v2444_v14  ;;  %vm17539_vm4 = vmmov %vm17538_vm6  ;;  %v12893_v2 = vld [vmem:[%s17463_s2 + $0x40] sm:$0xff]  }
 0x30f   : > { %3646 = vperm.xlu1 %12859, %v3632_v54   ;;  %v2464_v19 = vsel %vm543_vm1, %v2449_v16, 0  ;;  %v2606_v22 = vpop.permute.xlu0 %2605  ;;  %vm17540_vm3 = vmmov %vm17539_vm4 }
 0x310   : > { %vm17541_vm15 = vmmov %vm17540_vm3 }
 0x311   : > { %v2604_v18 = vpop.permute.xlu1 %2603  ;;  %vm17543_vm5 = vmmov %vm17540_vm3 }
 0x313   : > { %12042 = vmatmul.mubr.msk.bf16.vlgmr.msra.gmra.mrb[20].mxu1 %vm2161_vm0, %v12886_v51 }
 0x314   : > { %2311 = vmatpush1.bf16.msra.mxu1 %v13605_v4  ;;  %2342 = vmatprep.mubr.bf16.mxu1 %v13785_v48 }
 0x315   : > { %2312 = vmatprep.subr.bf16.mxu1 %v13618_v13  ;;  %v2602_v23 = vpop.permute.xlu1 %2601 }
 0x316   : > { %v2619_v35 = vsel %vm17539_vm4, %v2602_v23, %v2604_v18 }
 0x318   : > { %2313 = vmatpush1.bf16.msra.mxu1 %v13631_v21 }
 0x319   : > { %11137 = vmatprep.subr.msk.bf16.mxu1 %vm543_vm1, %v13637_v25  ;;  %v2610_v25 = vpop.permute.xlu0 %2609  ;;  %v2614_v26 = vpop.permute.xlu1 %2613 }
 0x31c   : > { %2315 = vmatpush1.bf16.msra.mxu1 %v2302_v57 }
 0x31d   : > { %12045 = vmatprep.subr.bf16.mxu1 %v13627_v20  ;;  %v2608_v29 = vpop.permute.xlu0 %2607  ;;  %v2612_v30 = vpop.permute.xlu1 %2611 }
 0x31e   : > { %v2622_v36 = vsel %vm17540_vm3, %v2610_v25, %v2612_v30  ;;  %v2621_v39 = vsel %vm17541_vm15, %v2608_v29, %v2610_v25 }
 0x31f   : > { %11138 = vmatmul.mubr.msk.bf16.vlgmr.msra.gmra.mrb[12].mxu1 %vm2161_vm0, %v12887_v58 }
 0x320   : > { %12046 = vmatpush3.bf16.msra.mxu1 %v13627_v20  ;;  %2352 = vmatprep.mubr.bf16.mxu1 %v13785_v48  ;;  %v12889_v20 = vld [vmem:[%s17463_s2 + $0x20] sm:$0xff]  }
 0x321   : > { %12047 = vmatprep.subr.bf16.mxu1 %v13641_v27  ;;  %v2616_v37 = vpop.permute.xlu0 %2615  ;;  %v2618_v38 = vpop.permute.xlu1 %2617 }
 0x322   : > { %v2624_v0 = vsel %vm17543_vm5, %v2616_v37, %v2618_v38  ;;  %v2644_v50 = vsel %vm543_vm1, %v2618_v38, 0 }
 0x324   : > { %12048 = vmatpush3.bf16.msra.mxu1 %v13641_v27  ;;  %v2470_v27 = vsel %vm543_vm1, %v2444_v14, 0 }
 0x325   : > { %12807 = vmatprep.subr.msk.bf16.mxu1 %vm543_vm1, %v13647_v28  ;;  %v2620_v28 = vsel %vm17538_vm6, %v2604_v18, %v2606_v22  ;;  %vm17542_vm6 = vmmov %vm17540_vm3  ;;  %v2778_v32 = vpop.permute.xlu0 %2777  ;;  %v2780_v43 = vpop.permute.xlu1 %2779  ;;  %vm17544_vm3 = vcmask 891904  }
 0x326   : > { %v2623_v40 = vsel %vm17542_vm6, %v2614_v26, %v2616_v37  ;;  %v2794_v51 = vsel %vm17544_vm3, %v2778_v32, %v2780_v43  ;;  %vm17545_vm4 = vmmov %vm17544_vm3  ;;  %v12895_v26 = vld [vmem:[%s17463_s2 + $0x50] sm:$0xff]  }
 0x327   : > { %11139 = vmatmul.mubr.msk.bf16.gmra.mrb[16].mxu1 %vm2161_vm0, %v12888_v1  ;;  %v2638_v41 = vsel %vm543_vm1, %v2623_v40, 0  ;;  %vm17546_vm5 = vmmov %vm17544_vm3 }
 0x328   : > { %12050 = vmatpush3.bf16.msra.mxu1 %v2308_v3  ;;  %12051 = vmatprep.mubr.msk.bf16.mxu1 %vm2161_vm0, %v12887_v58  ;;  %vm17547_vm15 = vmmov %vm17544_vm3 }
 0x329   : > { %2472 = vmatprep.subr.bf16.mxu1 %v2446_v5  ;;  %v2776_v44 = vpop.permute.xlu0 %2775  ;;  %v2784_v45 = vpop.permute.xlu1 %2783  ;;  %vm17548_vm6 = vmmov %vm17544_vm3 }
 0x32a   : > { %v2793_v53 = vsel %vm17545_vm4, %v2776_v44, %v2778_v32  ;;  %vm17549_vm4 = vcmask 883712  }
 0x32d   : > { %v2788_v33 = vpop.permute.xlu0 %2787  ;;  %v2782_v34 = vpop.permute.xlu1 %2781 }
 0x32e   : > { %v2795_v57 = vsel %vm17547_vm15, %v2782_v34, %v2784_v45  ;;  %vm17551_vm15 = vmmov %vm17549_vm4  ;;  %v12898_v34 = vld [vmem:[%s17463_s2 + $0x68] sm:$0xff]  }
 0x32f   : > { %12052 = vmatmul.mubr.msk.bf16.vlgmr.msra.gmra.mrb[20].mxu1 %vm2161_vm0, %v12888_v1 }
 0x330   : > { %2473 = vmatpush1.bf16.msra.mxu1 %v2445_v8  ;;  %2504 = vmatprep.mubr.bf16.mxu1 %v13785_v48 }
 0x331   : > { %2474 = vmatprep.subr.bf16.mxu1 %v2448_v63  ;;  %v2786_v52 = vpop.permute.xlu0 %2785  ;;  %v2790_v54 = vpop.permute.xlu1 %2789 }
 0x332   : > { %v2796_v56 = vsel %vm17546_vm5, %v2784_v45, %v2786_v52  ;;  %vm17550_vm5 = vmmov %vm17549_vm4 }
 0x334   : > { %2475 = vmatpush1.bf16.msra.mxu1 %v2447_v11 }
 0x335   : > { %11148 = vmatprep.subr.msk.bf16.mxu1 %vm543_vm1, %v2450_v17  ;;  %v2792_v58 = vpop.permute.xlu0 %2791  ;;  %v2952_v62 = vpop.permute.xlu1 %2951 }
 0x336   : > { %v2798_v61 = vsel %vm17544_vm3, %v2790_v54, %v2792_v58  ;;  %v2818_v9 = vsel %vm543_vm1, %v2792_v58, 0  ;;  %vm17553_vm3 = vmmov %vm17549_vm4 }
 0x338   : > { %2477 = vmatpush1.bf16.msra.mxu1 %v2464_v19 }
 0x339   : > { %12055 = vmatprep.subr.bf16.mxu1 %v2432_v59  ;;  %v2954_v3 = vpop.permute.xlu0 %2953  ;;  %v2950_v5 = vpop.permute.xlu1 %2949 }
 0x33a   : > { %v2968_v63 = vsel %vm17549_vm4, %v2952_v62, %v2954_v3  ;;  %v2967_v16 = vsel %vm17550_vm5, %v2950_v5, %v2952_v62  ;;  %vm17555_vm5 = vcmask 752640  }
 0x33b   : > { %11149 = vmatmul.mubr.msk.bf16.vlgmr.msra.gmra.mrb[12].mxu1 %vm2161_vm0, %v12889_v20 }
 0x33c   : > { %12056 = vmatpush3.bf16.msra.mxu1 %v2432_v59  ;;  %2514 = vmatprep.mubr.bf16.mxu1 %v13785_v48  ;;  %v2797_v59 = vsel %vm17548_vm6, %v2788_v33, %v2790_v54  ;;  %vm17552_vm6 = vmmov %vm17549_vm4  ;;  %v12897_v33 = vld [vmem:[%s17463_s2 + $0x60] sm:$0xff]  }
 0x33d   : > { %12057 = vmatprep.subr.bf16.mxu1 %v2438_v7  ;;  %v2812_v1 = vsel %vm543_vm1, %v2797_v59, 0  ;;  %v2962_v8 = vpop.permute.xlu1 %2961  ;;  %vm17554_vm4 = vmmov %vm17553_vm3 }
 0x340   : > { %12058 = vmatpush3.bf16.msra.mxu1 %v2438_v7  ;;  %v2958_v7 = vpop.permute.xlu0 %2957 }
 0x341   : > { %12808 = vmatprep.subr.msk.bf16.mxu1 %vm543_vm1, %v2444_v14  ;;  %v2960_v14 = vpop.permute.xlu1 %2959 }
 0x342   : > { %v2970_v17 = vsel %vm17551_vm15, %v2958_v7, %v2960_v14  ;;  %vm17556_vm15 = vmmov %vm17555_vm5 }
 0x343   : > { %11150 = vmatmul.mubr.msk.bf16.gmra.mrb[16].mxu1 %vm2161_vm0, %v12890_v24 }
 0x344   : > { %12060 = vmatpush3.bf16.msra.mxu1 %v2470_v27  ;;  %12061 = vmatprep.mubr.msk.bf16.mxu1 %vm2161_vm0, %v12889_v20  ;;  %v2956_v11 = vpop.permute.xlu0 %2955 }
 0x345   : > { %2646 = vmatprep.subr.bf16.mxu1 %v2620_v28  ;;  %v2966_v19 = vpop.permute.xlu1 %2965  ;;  %v2969_v20 = vsel %vm17552_vm6, %v2956_v11, %v2958_v7  ;;  %vm17557_vm6 = vmmov %vm17555_vm5  ;;  %v12900_v11 = vld [vmem:[%s17463_s2 + $0x78] sm:$0xff]  }
 0x348   : > { %v2964_v18 = vpop.permute.xlu0 %2963 }
 0x349   : > { %v2972_v23 = vsel %vm17554_vm4, %v2964_v18, %v2966_v19  ;;  %v3128_v27 = vpop.permute.xlu1 %3127 }
 0x34b   : > { %12062 = vmatmul.mubr.msk.bf16.vlgmr.msra.gmra.mrb[20].mxu1 %vm2161_vm0, %v12890_v24 }
 0x34c   : > { %2647 = vmatpush1.bf16.msra.mxu1 %v2619_v35  ;;  %2678 = vmatprep.mubr.bf16.mxu1 %v13785_v48  ;;  %v3126_v24 = vpop.permute.xlu0 %3125 }
 0x34d   : > { %2648 = vmatprep.subr.bf16.mxu1 %v2622_v36  ;;  %v3132_v29 = vpop.permute.xlu1 %3131  ;;  %v2992_v36 = vsel %vm543_vm1, %v2966_v19, 0  ;;  %v3142_v37 = vsel %vm17555_vm5, %v3126_v24, %v3128_v27 }
 0x350   : > { %2649 = vmatpush1.bf16.msra.mxu1 %v2621_v39  ;;  %v3124_v28 = vpop.permute.xlu0 %3123 }
 0x351   : > { %11159 = vmatprep.subr.msk.bf16.mxu1 %vm543_vm1, %v2624_v0  ;;  %v3141_v40 = vsel %vm17556_vm15, %v3124_v28, %v3126_v24  ;;  %vm17561_vm15 = vcmask 744448  }
 0x354   : > { %2651 = vmatpush1.bf16.msra.mxu1 %v2638_v41  ;;  %v3136_v35 = vpop.permute.xlu0 %3135 }
 0x355   : > { %12065 = vmatprep.subr.bf16.mxu1 %v2606_v22 }
 0x357   : > { %11160 = vmatmul.mubr.msk.bf16.vlgmr.msra.gmra.mrb[12].mxu1 %vm2161_vm0, %v12891_v42 }
 0x358   : > { %12066 = vmatpush3.bf16.msra.mxu1 %v2606_v22  ;;  %2688 = vmatprep.mubr.bf16.mxu1 %v13785_v48  ;;  %v2971_v22 = vsel %vm17553_vm3, %v2962_v8, %v2964_v18  ;;  %v3134_v39 = vpop.permute.xlu0 %3133  ;;  %vm17558_vm3 = vmmov %vm17555_vm5  ;;  %v12899_v8 = vld [vmem:[%s17463_s2 + $0x70] sm:$0xff]  }
 0x359   : > { %12067 = vmatprep.subr.bf16.mxu1 %v2612_v30  ;;  %v2986_v25 = vsel %vm543_vm1, %v2971_v22, 0  ;;  %v3144_v32 = vsel %vm17557_vm6, %v3132_v29, %v3134_v39  ;;  %vm17559_vm4 = vmmov %vm17558_vm3 }
 0x35a   : > { %vm17560_vm5 = vmmov %vm17558_vm3 }
 0x35b   : > { %vm17562_vm6 = vmmov %vm17561_vm15 }
 0x35c   : > { %12068 = vmatpush3.bf16.msra.mxu1 %v2612_v30  ;;  %v12896_v30 = vld [vmem:[%s17463_s2 + $0x58] sm:$0xff]  }
 0x35d   : > { %12809 = vmatprep.subr.msk.bf16.mxu1 %vm543_vm1, %v2618_v38  ;;  %v3130_v38 = vpop.permute.xlu1 %3129 }
 0x35e   : > { %v3143_v41 = vsel %vm17558_vm3, %v3130_v38, %v3132_v29  ;;  %vm17563_vm3 = vmmov %vm17562_vm6 }
 0x35f   : > { %11161 = vmatmul.mubr.msk.bf16.gmra.mrb[16].mxu1 %vm2161_vm0, %v12892_v47 }
 0x360   : > { %12070 = vmatpush3.bf16.msra.mxu1 %v2644_v50  ;;  %12071 = vmatprep.mubr.msk.bf16.mxu1 %vm2161_vm0, %v12891_v42  ;;  %v3140_v42 = vpop.permute.xlu0 %3139 }
 0x361   : > { %2820 = vmatprep.subr.bf16.mxu1 %v2794_v51  ;;  %v3138_v0 = vpop.permute.xlu1 %3137  ;;  %v3166_v54 = vsel %vm543_vm1, %v3140_v42, 0 }
 0x362   : > { %v3146_v44 = vsel %vm17560_vm5, %v3138_v0, %v3140_v42  ;;  %vm17565_vm5 = vmmov %vm17563_vm3 }
 0x364   : > { %v3302_v50 = vpop.permute.xlu0 %3301 }
 0x365   : > { %v3300_v45 = vpop.permute.xlu1 %3299 }
 0x367   : > { %12072 = vmatmul.mubr.msk.bf16.vlgmr.msra.gmra.mrb[20].mxu1 %vm2161_vm0, %v12892_v47 }
 0x368   : > { %2821 = vmatpush1.bf16.msra.mxu1 %v2793_v53  ;;  %2852 = vmatprep.mubr.bf16.mxu1 %v13785_v48 }
 0x369   : > { %2822 = vmatprep.subr.bf16.mxu1 %v2796_v56  ;;  %v3298_v51 = vpop.permute.xlu1 %3297  ;;  %v3316_v56 = vsel %vm17561_vm15, %v3300_v45, %v3302_v50  ;;  %vm17566_vm15 = vmmov %vm17563_vm3 }
 0x36a   : > { %v3315_v59 = vsel %vm17562_vm6, %v3298_v51, %v3300_v45  ;;  %vm17567_vm6 = vcmask 736256  }
 0x36c   : > { %2823 = vmatpush1.bf16.msra.mxu1 %v2795_v57 }
 0x36d   : > { %11170 = vmatprep.subr.msk.bf16.mxu1 %vm543_vm1, %v2798_v61  ;;  %v3310_v53 = vpop.permute.xlu1 %3309 }
 0x370   : > { %2825 = vmatpush1.bf16.msra.mxu1 %v2812_v1 }
 0x371   : > { %12075 = vmatprep.subr.bf16.mxu1 %v2780_v43 }
 0x373   : > { %11171 = vmatmul.mubr.msk.bf16.vlgmr.msra.gmra.mrb[12].mxu1 %vm2161_vm0, %v12893_v2 }
 0x374   : > { %12076 = vmatpush3.bf16.msra.mxu1 %v2780_v43  ;;  %2862 = vmatprep.mubr.bf16.mxu1 %v13785_v48  ;;  %v3145_v43 = vsel %vm17559_vm4, %v3136_v35, %v3138_v0  ;;  %vm17564_vm4 = vmmov %vm17563_vm3  ;;  %v12902_v35 = vld [vmem:[%s17463_s2 + $0x88] sm:$0xff]  }
 0x375   : > { %12077 = vmatprep.subr.bf16.mxu1 %v2786_v52  ;;  %v3160_v47 = vsel %vm543_vm1, %v3145_v43, 0 }
 0x378   : > { %12078 = vmatpush3.bf16.msra.mxu1 %v2786_v52  ;;  %v3306_v52 = vpop.permute.xlu0 %3305 }
 0x379   : > { %12810 = vmatprep.subr.msk.bf16.mxu1 %vm543_vm1, %v2792_v58  ;;  %v3308_v58 = vpop.permute.xlu1 %3307 }
 0x37a   : > { %v3318_v61 = vsel %vm17563_vm3, %v3306_v52, %v3308_v58  ;;  %vm17568_vm3 = vmmov %vm17567_vm6 }
 0x37b   : > { %11172 = vmatmul.mubr.msk.bf16.gmra.mrb[16].mxu1 %vm2161_vm0, %v12894_v6 }
 0x37c   : > { %12080 = vmatpush3.bf16.msra.mxu1 %v2818_v9  ;;  %12081 = vmatprep.mubr.msk.bf16.mxu1 %vm2161_vm0, %v12893_v2  ;;  %v3304_v57 = vpop.permute.xlu0 %3303 }
 0x37d   : > { %2994 = vmatprep.subr.bf16.mxu1 %v2968_v63  ;;  %v3314_v1 = vpop.permute.xlu1 %3313  ;;  %v3317_v2 = vsel %vm17564_vm4, %v3304_v57, %v3306_v52  ;;  %vm17569_vm4 = vmmov %vm17568_vm3 }
 0x380   : > { %v3312_v62 = vpop.permute.xlu0 %3311 }
 0x381   : > { %v3320_v5 = vsel %vm17566_vm15, %v3312_v62, %v3314_v1  ;;  %v3476_v9 = vpop.permute.xlu1 %3475  ;;  %vm17571_vm15 = vmmov %vm17568_vm3 }
 0x383   : > { %12082 = vmatmul.mubr.msk.bf16.vlgmr.msra.gmra.mrb[20].mxu1 %vm2161_vm0, %v12894_v6 }
 0x384   : > { %2995 = vmatpush1.bf16.msra.mxu1 %v2967_v16  ;;  %3026 = vmatprep.mubr.bf16.mxu1 %v13785_v48  ;;  %v3474_v6 = vpop.permute.xlu0 %3473 }
 0x385   : > { %2996 = vmatprep.subr.bf16.mxu1 %v2970_v17  ;;  %v3340_v17 = vsel %vm543_vm1, %v3314_v1, 0  ;;  %v3490_v18 = vsel %vm17567_vm6, %v3474_v6, %v3476_v9  ;;  %vm17572_vm6 = vmmov %vm17568_vm3 }
 0x388   : > { %2997 = vmatpush1.bf16.msra.mxu1 %v2969_v20  ;;  %v3472_v63 = vpop.permute.xlu0 %3471 }
 0x389   : > { %11181 = vmatprep.subr.msk.bf16.mxu1 %vm543_vm1, %v2972_v23  ;;  %v3489_v22 = vsel %vm17568_vm3, %v3472_v63, %v3474_v6 }
 0x38c   : > { %2999 = vmatpush1.bf16.msra.mxu1 %v2986_v25  ;;  %v3484_v16 = vpop.permute.xlu0 %3483 }
 0x38d   : > { %12085 = vmatprep.subr.bf16.mxu1 %v2954_v3 }
 0x38f   : > { %11182 = vmatmul.mubr.msk.bf16.vlgmr.msra.gmra.mrb[12].mxu1 %vm2161_vm0, %v12895_v26 }
 0x390   : > { %12086 = vmatpush3.bf16.msra.mxu1 %v2954_v3  ;;  %3036 = vmatprep.mubr.bf16.mxu1 %v13785_v48  ;;  %v3319_v3 = vsel %vm17565_vm5, %v3310_v53, %v3312_v62  ;;  %v3482_v20 = vpop.permute.xlu0 %3481  ;;  %vm17570_vm5 = vmmov %vm17568_vm3 }
 0x391   : > { %12087 = vmatprep.subr.bf16.mxu1 %v2960_v14  ;;  %v3334_v7 = vsel %vm543_vm1, %v3319_v3, 0 }
 0x394   : > { %12088 = vmatpush3.bf16.msra.mxu1 %v2960_v14  ;;  %v3480_v14 = vpop.permute.xlu1 %3479 }
 0x395   : > { %12811 = vmatprep.subr.msk.bf16.mxu1 %vm543_vm1, %v2966_v19  ;;  %v3492_v23 = vsel %vm17569_vm4, %v3480_v14, %v3482_v20 }
 0x397   : > { %11183 = vmatmul.mubr.msk.bf16.gmra.mrb[16].mxu1 %vm2161_vm0, %v12896_v30 }
 0x398   : > { %12090 = vmatpush3.bf16.msra.mxu1 %v2992_v36  ;;  %12091 = vmatprep.mubr.msk.bf16.mxu1 %vm2161_vm0, %v12895_v26  ;;  %v3478_v19 = vpop.permute.xlu1 %3477  ;;  %v3488_v26 = vpop.permute.xlu0 %3487 }
 0x399   : > { %3168 = vmatprep.subr.bf16.mxu1 %v3142_v37  ;;  %v3491_v25 = vsel %vm17570_vm5, %v3478_v19, %v3480_v14  ;;  %v3514_v36 = vsel %vm543_vm1, %v3488_v26, 0 }
 0x39c   : > { %v3486_v24 = vpop.permute.xlu1 %3485  ;;  %v13998_v0 = vpop.permute.xlu0 %3641 }
 0x39d   : > { %v3494_v28 = vsel %vm17572_vm6, %v3486_v24, %v3488_v26 }
 0x39f   : > { %12092 = vmatmul.mubr.msk.bf16.vlgmr.msra.gmra.mrb[20].mxu1 %vm2161_vm0, %v12896_v30  ;;  %v12901_v30 = vld [vmem:[%s17463_s2 + $0x80] sm:$0xff]  }
 0x3a0   : > { %3169 = vmatpush1.bf16.msra.mxu1 %v3141_v40  ;;  %3200 = vmatprep.mubr.bf16.mxu1 %v13785_v48  ;;  %v13995_v37 = vpop.permute.xlu1 %3636 }
 0x3a1   : > { %3170 = vmatprep.subr.bf16.mxu1 %v3144_v32 }
 0x3a4   : > { %3171 = vmatpush1.bf16.msra.mxu1 %v3143_v41 }
 0x3a5   : > { %11192 = vmatprep.subr.msk.bf16.mxu1 %vm543_vm1, %v3146_v44 }
 0x3a8   : > { %3173 = vmatpush1.bf16.msra.mxu1 %v3160_v47 }
 0x3a9   : > { %12095 = vmatprep.subr.bf16.mxu1 %v3128_v27 }
 0x3ab   : > { %11193 = vmatmul.mubr.msk.bf16.vlgmr.msra.gmra.mrb[12].mxu1 %vm2161_vm0, %v12897_v33 }
 0x3ac   : > { %12096 = vmatpush3.bf16.msra.mxu1 %v3128_v27  ;;  %3210 = vmatprep.mubr.bf16.mxu1 %v13785_v48  ;;  %v3493_v27 = vsel %vm17571_vm15, %v3484_v16, %v3486_v24 }
 0x3ad   : > { %12097 = vmatprep.subr.bf16.mxu1 %v3134_v39  ;;  %v3508_v29 = vsel %vm543_vm1, %v3493_v27, 0 }
 0x3b0   : > { %12098 = vmatpush3.bf16.msra.mxu1 %v3134_v39 }
 0x3b1   : > { %12812 = vmatprep.subr.msk.bf16.mxu1 %vm543_vm1, %v3140_v42 }
 0x3b3   : > { %11194 = vmatmul.mubr.msk.bf16.gmra.mrb[16].mxu1 %vm2161_vm0, %v12898_v34 }
 0x3b4   : > { %12100 = vmatpush3.bf16.msra.mxu1 %v3166_v54  ;;  %12101 = vmatprep.mubr.msk.bf16.mxu1 %vm2161_vm0, %v12897_v33  ;;  %v3647_v54 = vpop.permute.xlu1 %3646 }
 0x3b5   : > { %3342 = vmatprep.subr.bf16.mxu1 %v3316_v56 }
 0x3bb   : > { %12102 = vmatmul.mubr.msk.bf16.vlgmr.msra.gmra.mrb[20].mxu1 %vm2161_vm0, %v12898_v34 }
 0x3bc   : > { %3343 = vmatpush1.bf16.msra.mxu1 %v3315_v59  ;;  %3374 = vmatprep.mubr.bf16.mxu1 %v13785_v48 }
 0x3bd   : > { %3344 = vmatprep.subr.bf16.mxu1 %v3318_v61 }
 0x3c0   : > { %3345 = vmatpush1.bf16.msra.mxu1 %v3317_v2  ;;  %v3652_v2 = vpop.permute.xlu0 %3651 }
 0x3c1   : > { %11203 = vmatprep.subr.msk.bf16.mxu1 %vm543_vm1, %v3320_v5 }
 0x3c4   : > { %3347 = vmatpush1.bf16.msra.mxu1 %v3334_v7 }
 0x3c5   : > { %12105 = vmatprep.subr.bf16.mxu1 %v3302_v50 }
 0x3c7   : > { %11204 = vmatmul.mubr.msk.bf16.vlgmr.msra.gmra.mrb[12].mxu1 %vm2161_vm0, %v12899_v8 }
 0x3c8   : > { %12106 = vmatpush3.bf16.msra.mxu1 %v3302_v50  ;;  %3384 = vmatprep.mubr.bf16.mxu1 %v13785_v48 }
 0x3c9   : > { %12107 = vmatprep.subr.bf16.mxu1 %v3308_v58 }
 0x3cc   : > { %12108 = vmatpush3.bf16.msra.mxu1 %v3308_v58 }
 0x3cd   : > { %12813 = vmatprep.subr.msk.bf16.mxu1 %vm543_vm1, %v3314_v1 }
 0x3cf   : > { %11205 = vmatmul.mubr.msk.bf16.gmra.mrb[16].mxu1 %vm2161_vm0, %v12900_v11 }
 0x3d0   : > { %12110 = vmatpush3.bf16.msra.mxu1 %v3340_v17  ;;  %12111 = vmatprep.mubr.msk.bf16.mxu1 %vm2161_vm0, %v12899_v8 }
 0x3d1   : > { %3516 = vmatprep.subr.bf16.mxu1 %v3490_v18 }
 0x3d7   : > { %12112 = vmatmul.mubr.msk.bf16.vlgmr.msra.gmra.mrb[20].mxu1 %vm2161_vm0, %v12900_v11 }
 0x3d8   : > { %3517 = vmatpush1.bf16.msra.mxu1 %v3489_v22  ;;  %3548 = vmatprep.mubr.bf16.mxu1 %v13785_v48 }
 0x3d9   : > { %3518 = vmatprep.subr.bf16.mxu1 %v3492_v23 }
 0x3dc   : > { %3519 = vmatpush1.bf16.msra.mxu1 %v3491_v25 }
 0x3dd   : > { %11214 = vmatprep.subr.msk.bf16.mxu1 %vm543_vm1, %v3494_v28 }
 0x3e0   : > { %3521 = vmatpush1.bf16.msra.mxu1 %v3508_v29 }
 0x3e1   : > { %12115 = vmatprep.subr.bf16.mxu1 %v3476_v9 }
 0x3e3   : > { %11215 = vmatmul.mubr.msk.bf16.vlgmr.msra.gmra.mrb[12].mxu1 %vm2161_vm0, %v12901_v30 }
 0x3e4   : > { %12116 = vmatpush3.bf16.msra.mxu1 %v3476_v9  ;;  %3558 = vmatprep.mubr.bf16.mxu1 %v13785_v48 }
 0x3e5   : > { %12117 = vmatprep.subr.bf16.mxu1 %v3482_v20 }
 0x3e8   : > { %12118 = vmatpush3.bf16.msra.mxu1 %v3482_v20 }
 0x3e9   : > { %12814 = vmatprep.subr.msk.bf16.mxu1 %vm543_vm1, %v3488_v26 }
 0x3eb   : > { %11216 = vmatmul.mubr.msk.bf16.gmra.mrb[16].mxu1 %vm2161_vm0, %v12902_v35 }
 0x3ec   : > { %12120 = vmatpush3.bf16.msra.mxu1 %v3514_v36  ;;  %12121 = vmatprep.mubr.msk.bf16.mxu1 %vm2161_vm0, %v12901_v30 }
 0x3f3   : > { %12122 = vmatmul.mubr.msk.bf16.vlgmr.msra.gmra.mrb[20].mxu1 %vm2161_vm0, %v12902_v35 }
 0x3f4   : > { %6047 = vmatprep.mubr.bf16.mxu1 %v13785_v48 }
 0x4b6   : > { %v3550_v38 = vpop.f32.mrb[12].mxu1 }
 0x4b7   : > { %v3654_v39 = vadd.f32 %v13995_v37, %v3550_v38  ;;  %v3552_v40 = vpop.f32.mrb[13].mxu1 }
 0x4b8   : > { %v3655_v32 = vadd.f32 %v13995_v37, %v3552_v40  ;;  %v3554_v41 = vpop.f32.mrb[14].mxu1 }
 0x4b9   : > { %vm3666_vm3 = vcmp.gt.f32.partialorder %v3654_v39, 0.0  ;;  %v3678_v42 = vmul.f32 0.2, %v3654_v39  ;;  %v3657_v43 = vadd.f32 %v13998_v0, %v3554_v41  ;;  %v3556_v44 = vpop.f32.mrb[15].mxu1 }
 0x4ba   : > { %vm3667_vm4 = vcmp.gt.f32.partialorder %v3655_v32, 0.0  ;;  %v3679_v45 = vmul.f32 0.2, %v3655_v32  ;;  %v3658_v48 = vadd.f32 %v13998_v0, %v3556_v44 }
 0x4bb   : > { %v3690_v47 = vsel %vm3666_vm3, %v3654_v39, %v3678_v42  ;;  %vm3669_vm0 = vcmp.gt.f32.partialorder %v3657_v43, 0.0  ;;  %v3681_v33 = vmul.f32 0.2, %v3657_v43 }
 0x4bc   : > { %v3702_v50 = vsel %vm13500_vm12, %v3690_v47, 0.0  ;;  %v3691_v51 = vsel %vm3667_vm4, %v3655_v32, %v3679_v45  ;;  %vm3670_vm5 = vcmp.gt.f32.partialorder %v3658_v48, 0.0  ;;  %v3682_v34 = vmul.f32 0.2, %v3658_v48 }
 0x4bd   : > { %v3703_v52 = vsel %vm13505_vm14, %v3691_v51, 0.0  ;;  %v3693_v53 = vsel %vm3669_vm0, %v3657_v43, %v3681_v33 }
 0x4be   : > { %v11741_v56 = vpack.c.bf16 %v3703_v52, %v3702_v50  ;;  %v3705_v57 = vsel %vm13500_vm12, %v3693_v53, 0.0  ;;  %v3694_v58 = vsel %vm3670_vm5, %v3658_v48, %v3682_v34  ;;  %v3560_v59 = vpop.f32.mrb[16].mxu1 }
 0x4bf   : > { %v3706_v61 = vsel %vm13505_vm14, %v3694_v58, 0.0  ;;  %v3660_v62 = vadd.f32 %v3647_v54, %v3560_v59  ;;  %v3562_v1 = vpop.f32.mrb[17].mxu1 }
 0x4c0   : > { %v11743_v3 = vpack.c.bf16 %v3706_v61, %v3705_v57  ;;  %v3661_v5 = vadd.f32 %v3647_v54, %v3562_v1  ;;  %v3564_v6 = vpop.f32.mrb[18].mxu1  ;;  %v3746_v7 = vrot.slane %v11741_v56, 6 }
 0x4c1   : > { %vm3672_vm15 = vcmp.gt.f32.partialorder %v3660_v62, 0.0  ;;  %v3684_v8 = vmul.f32 0.2, %v3660_v62  ;;  %v3663_v9 = vadd.f32 %v3652_v2, %v3564_v6  ;;  %v3566_v63 = vpop.f32.mrb[19].mxu1 }
 0x4c2   : > { %v3749_v11 = vrot.slane %v11743_v3, 6  ;;  %vm3673_vm6 = vcmp.gt.f32.partialorder %v3661_v5, 0.0  ;;  %v3685_v14 = vmul.f32 0.2, %v3661_v5  ;;  %v3664_v16 = vadd.f32 %v3652_v2, %v3566_v63  ;;  %3768 = vrot.lane.b32.xlu1 %v3746_v7, %s13112_s19 }
 0x4c3   : > { %v3696_v17 = vsel %vm3672_vm15, %v3660_v62, %v3684_v8  ;;  %vm3675_vm3 = vcmp.gt.f32.partialorder %v3663_v9, 0.0  ;;  %v3687_v18 = vmul.f32 0.2, %v3663_v9  ;;  %v3748_v19 = vrot.slane %v3746_v7, 4 }
 0x4c4   : > { %v3708_v20 = vsel %vm13500_vm12, %v3696_v17, 0.0  ;;  %v3697_v22 = vsel %vm3673_vm6, %v3661_v5, %v3685_v14  ;;  %vm3676_vm4 = vcmp.gt.f32.partialorder %v3664_v16, 0.0  ;;  %v3688_v23 = vmul.f32 0.2, %v3664_v16 }
 0x4c5   : > { %v3709_v24 = vsel %vm13505_vm14, %v3697_v22, 0.0  ;;  %v3699_v25 = vsel %vm3675_vm3, %v3663_v9, %v3687_v18  ;;  %v3750_v26 = vsel %vm13531_vm7, %v3748_v19, %v3749_v11  ;;  %v3754_v45 = vrot.slane %v3749_v11, 4  ;;  %v3824_v22 = vld [vmem:[#allocation2 + $0x8] sm:$0xf] }
 0x4c6   : > { %v11745_v27 = vpack.c.bf16 %v3709_v24, %v3708_v20  ;;  %v3711_v28 = vsel %vm13500_vm12, %v3699_v25, 0.0  ;;  %v3700_v29 = vsel %vm3676_vm4, %v3664_v16, %v3688_v23  ;;  %3772 = vrot.lane.b32.xlu0 %v3750_v26, %s13112_s19  ;;  %v12123_v30 = vpop.f32.mrb[20].mxu1  ;;  %v3826_v20 = vld [vmem:[#allocation2 + $0x14] sm:$0xf]  ;;  %v3830_v24 = vld [vmem:[#allocation2 + $0x2c] sm:$0xf] }
 0x4c7   : > { %v3712_v35 = vsel %vm13505_vm14, %v3700_v29, 0.0  ;;  %v3662_v36 = vadd.f32 %v12123_v30, %v3647_v54  ;;  %v3603_v38 = vpop.f32.mrb[21].mxu1  ;;  %v14051_v23 = vcombine.low %v3824_v22, %v3826_v20  ;;  %v3828_v25 = vld [vmem:[#allocation2 + $0x20] sm:$0xf]  ;;  %vm17573_vm3 = vcmask 412672  }
 0x4c8   : > { %v3755_v39 = vrot.slane %v11745_v27, 6  ;;  %v11747_v40 = vpack.c.bf16 %v3712_v35, %v3711_v28  ;;  %v3656_v32 = vadd.f32 %v13995_v37, %v3603_v38  ;;  %v12124_v41 = vpop.f32.mrb[22].mxu1  ;;  %v14059_v26 = vcombine.low %v3828_v25, %v3830_v24  ;;  %vm17574_vm4 = vmmov %vm17573_vm3 }
 0x4c9   : > { %vm3674_vm0 = vcmp.gt.f32.partialorder %v3662_v36, 0.0  ;;  %v3686_v42 = vmul.f32 0.2, %v3662_v36  ;;  %v3665_v43 = vadd.f32 %v12124_v41, %v3652_v2  ;;  %v3606_v44 = vpop.f32.mrb[23].mxu1 }
 0x4ca   : > { %v3761_v48 = vrot.slane %v11747_v40, 6  ;;  %vm3668_vm5 = vcmp.gt.f32.partialorder %v3656_v32, 0.0  ;;  %v3680_v47 = vmul.f32 0.2, %v3656_v32  ;;  %v3659_v33 = vadd.f32 %v13998_v0, %v3606_v44 }
 0x4cb   : > { %v3698_v50 = vsel %vm3674_vm0, %v3662_v36, %v3686_v42  ;;  %vm3677_vm15 = vcmp.gt.f32.partialorder %v3665_v43, 0.0  ;;  %v3689_v51 = vmul.f32 0.2, %v3665_v43  ;;  %v3756_v34 = vsel %vm13531_vm7, %v3754_v45, %v3755_v39  ;;  %vm17575_vm0 = vmmov %vm17573_vm3 }
 0x4cc   : > { %v3710_v37 = vsel %vm13520_vm11, %v3698_v50, 0.0  ;;  %v3692_v52 = vsel %vm3668_vm5, %v3656_v32, %v3680_v47  ;;  %vm3671_vm6 = vcmp.gt.f32.partialorder %v3659_v33, 0.0  ;;  %v3683_v53 = vmul.f32 0.2, %v3659_v33  ;;  %3776 = vrot.lane.b32.xlu1 %v3756_v34, %s13112_s19 }
 0x4cd   : > { %v11746_v54 = vpack.c.bf16 %v3710_v37, %v3710_v37  ;;  %v3704_v56 = vsel %vm13520_vm11, %v3692_v52, 0.0  ;;  %v3701_v57 = vsel %vm3677_vm15, %v3665_v43, %v3689_v51  ;;  %v3760_v0 = vrot.slane %v3755_v39, 4 }
 0x4ce   : > { %v11742_v58 = vpack.c.bf16 %v3704_v56, %v3704_v56  ;;  %v3713_v59 = vsel %vm13520_vm11, %v3701_v57, 0.0  ;;  %v3695_v61 = vsel %vm3671_vm6, %v3659_v33, %v3683_v53  ;;  %v3766_v18 = vrot.slane %v3761_v48, 4 }
 0x4cf   : > { %v3758_v62 = vrot.slane %v11746_v54, 6  ;;  %v11748_v1 = vpack.c.bf16 %v3713_v59, %v3713_v59  ;;  %v3707_v2 = vsel %vm13520_vm11, %v3695_v61, 0.0  ;;  %v3762_v3 = vsel %vm13531_vm7, %v3760_v0, %v3761_v48 }
 0x4d0   : > { %v3747_v5 = vrot.slane %v11742_v58, 6  ;;  %v11744_v6 = vpack.c.bf16 %v3707_v2, %v3707_v2  ;;  %3780 = vrot.lane.b32.xlu0 %v3762_v3, %s13112_s19  ;;  %vm17576_vm5 = vcmask 410624   ;;  %vm17577_vm15 = vcmask 1039360  }
 0x4d1   : > { %v3764_v7 = vrot.slane %v11748_v1, 6  ;;  %v3763_v8 = vrot.slane %v3758_v62, 4  ;;  %vm17578_vm6 = vmmov %vm17577_vm15 }
 0x4d2   : > { %v3752_v9 = vrot.slane %v11744_v6, 6  ;;  %3770 = vrot.lane.b32.xlu1 %v3747_v5, %s13112_s19  ;;  %v3751_v63 = vrot.slane %v3747_v5, 4 }
 0x4d3   : > { %v3765_v11 = vsel %vm13531_vm7, %v3763_v8, %v3764_v7  ;;  %v3767_v19 = vrot.slane %v3764_v7, 4 }
 0x4d4   : > { %v3753_v14 = vsel %vm13531_vm7, %v3751_v63, %v3752_v9  ;;  %v3757_v16 = vrot.slane %v3752_v9, 4 }
 0x4d5   : > { %3774 = vrot.lane.b32.xlu0 %v3753_v14, %s13112_s19 }
 0x4d6   : > { %v3759_v17 = vsel %vm13531_vm7, %v3757_v16, %v3758_v62 }
 0x4d7   : > { %3778 = vrot.lane.b32.xlu1 %v3759_v17, %s13112_s19 }
 0x4d9   : > { %3782 = vrot.lane.b32.xlu0 %v3765_v11, %s13112_s19 }
 0x4db   : > { %3784 = vrot.lane.b32.xlu1 %v3766_v18, %s13112_s19 }
 0x4dd   : > { %3786 = vrot.lane.b32.xlu0 %v3767_v19, %s13112_s19 }
 0x4df   : > { %3922 = vrot.lane.b32.xlu1 %v13594_v60, %s13104_s24 }
 0x4e1   : > { %3924 = vrot.lane.b32.xlu0 %v14051_v23, %s13104_s24 }
 0x4e3   : > { %3920 = vrot.lane.b32.xlu1 %v13605_v4, %s13104_s24 }
 0x4e5   : > { %3928 = vrot.lane.b32.xlu0 %v13618_v13, %s13104_s24 }
 0x4e7   : > { %3930 = vrot.lane.b32.xlu1 %v14059_v26, %s13104_s24 }
 0x4e9   : > { %3926 = vrot.lane.b32.xlu0 %v13631_v21, %s13104_s24 }
 0x534   : > { %v3769_v27 = vpop.permute.xlu1 %3768 }
 0x535   : > { %v3788_v28 = vrot.slane %v3769_v27, 4 }
 0x537   : > { %v3793_v29 = vsel %vm17488_vm8, %v3788_v28, %v3769_v27 }
 0x538   : > { %3813 = vst.msk [vmem:[#allocation2 + $0x30] sm:$0xcc] %vm13577_vm9, %v3793_v29  ;;  %v3773_v30 = vpop.permute.xlu0 %3772 }
 0x539   : > { %v3789_v35 = vrot.slane %v3773_v30, 4 }
 0x53b   : > { %v3795_v36 = vsel %vm17488_vm8, %v3789_v35, %v3773_v30 }
 0x53c   : > { %3815 = vst.msk [vmem:[#allocation2 + $0x3c] sm:$0xff] %vm13584_vm2, %v3795_v36 }
 0x53e   : > { %v3777_v38 = vpop.permute.xlu1 %3776 }
 0x53f   : > { %v3790_v39 = vrot.slane %v3777_v38, 4  ;;  %v3831_v41 = vld [vmem:[#allocation2 + $0x30] sm:$0xff] }
 0x541   : > { %v3797_v40 = vsel %vm17488_vm8, %v3790_v39, %v3777_v38 }
 0x542   : > { %3817 = vst.msk [vmem:[#allocation2 + $0x48] sm:$0xff] %vm13584_vm2, %v3797_v40  ;;  %v3781_v32 = vpop.permute.xlu0 %3780 }
 0x543   : > { %v3833_v42 = vld [vmem:[#allocation2 + $0x3c] sm:$0xff]  ;;  %v3791_v43 = vrot.slane %v3781_v32, 4 }
 0x544   : > { %v14076_v44 = vcombine.high %v3831_v41, %v3833_v42  ;;  %v3771_v45 = vpop.permute.xlu1 %3770  ;;  %v14085_v50 = vcombine.low %v3831_v41, %v3833_v42 }
 0x545   : > { %v3799_v48 = vsel %vm17488_vm8, %v3791_v43, %v3781_v32  ;;  %v3794_v47 = vsel %vm17488_vm8, %v3788_v28, %v3771_v45 }
 0x546   : > { %3819 = vst.msk [vmem:[#allocation2 + $0x54] sm:$0xff] %vm13584_vm2, %v3799_v48  ;;  %3934 = vrot.lane.b32.xlu1 %v14076_v44, %s13104_s24 }
 0x547   : > { %3814 = vst.msk [vmem:[#allocation2 + $0x38] sm:$0xc] %vm17487_vm10, %v3794_v47  ;;  %v3775_v33 = vpop.permute.xlu0 %3774 }
 0x548   : > { %v3796_v51 = vsel %vm17488_vm8, %v3789_v35, %v3775_v33 }
 0x549   : > { %3816 = vst.msk [vmem:[#allocation2 + $0x44] sm:$0xf] %vm17573_vm3, %v3796_v51  ;;  %v3779_v34 = vpop.permute.xlu1 %3778  ;;  %v3835_v54 = vld [vmem:[#allocation2 + $0x48] sm:$0xff]  ;;  %vm17579_vm3 = vmmov %vm17578_vm6 }
 0x54a   : > { %v3798_v37 = vsel %vm17488_vm8, %v3790_v39, %v3779_v34  ;;  %3932 = vrot.lane.b32.xlu1 %v14085_v50, %s13104_s24  ;;  %v12906_v34 = vld [vmem:[%s17464_s3 + $0x10] sm:$0xff]  }
 0x54b   : > { %3818 = vst.msk [vmem:[#allocation2 + $0x50] sm:$0xf] %vm17574_vm4, %v3798_v37  ;;  %v3783_v52 = vpop.permute.xlu0 %3782  ;;  %vm17580_vm4 = vmmov %vm17579_vm3 }
 0x54c   : > { %v3800_v53 = vsel %vm17488_vm8, %v3791_v43, %v3783_v52  ;;  %v14279_v52 = vld [vmem:[#allocation2 + $0x6c] sm:$0xff] }
 0x54d   : > { %v3837_v56 = vld [vmem:[#allocation2 + $0x54] sm:$0xff]  ;;  %3820 = vst.msk [vmem:[#allocation2 + $0x5c] sm:$0xf] %vm17575_vm0, %v3800_v53  ;;  %v3785_v57 = vpop.permute.xlu1 %3784  ;;  %vm17581_vm0 = vmmov %vm17579_vm3 }
 0x54e   : > { %v14095_v0 = vcombine.high %v3835_v54, %v3837_v56  ;;  %v3792_v58 = vrot.slane %v3785_v57, 4  ;;  %v3832_v61 = vld [vmem:[#allocation2 + $0x38] sm:$0xf]  ;;  %v14112_v9 = vcombine.low %v3835_v54, %v3837_v56 }
 0x54f   : > { %v3787_v59 = vpop.permute.xlu0 %3786  ;;  %v12907_v54 = vld [vmem:[%s17464_s3 + $0x18] sm:$0xff]  }
 0x550   : > { %v3834_v62 = vld [vmem:[#allocation2 + $0x44] sm:$0xf]  ;;  %v3801_v1 = vsel %vm17488_vm8, %v3792_v58, %v3785_v57  ;;  %3940 = vrot.lane.b32.xlu0 %v14095_v0, %s13104_s24  ;;  %v3802_v2 = vsel %vm17488_vm8, %v3792_v58, %v3787_v59 }
 0x551   : > { %v14101_v3 = vcombine.low %v3832_v61, %v3834_v62  ;;  %3821 = vst.msk [vmem:[#allocation2 + $0x60] sm:$0x33] %vm13614_vm13, %v3801_v1  ;;  %v3923_v5 = vpop.permute.xlu1 %3922 }
 0x552   : > { %3822 = vst.msk [vmem:[#allocation2 + $0x68] sm:$0x3] %vm17576_vm5, %v3802_v2  ;;  %v3836_v24 = vld [vmem:[#allocation2 + $0x50] sm:$0xf]  ;;  %vm17582_vm5 = vmmov %vm17581_vm0 }
 0x553   : > { %v14106_v6 = vpop.permute.xlu0 %3924 }
 0x554   : > { %3936 = vrot.lane.b32.xlu0 %v14101_v3, %s13104_s24  ;;  %v3951_v7 = vsel %vm17577_vm15, %v3923_v5, %v14106_v6  ;;  %v3838_v19 = vld [vmem:[#allocation2 + $0x5c] sm:$0xf]  ;;  %vm17583_vm15 = vmmov %vm17581_vm0 }
 0x555   : > { %v3921_v8 = vpop.permute.xlu1 %3920  ;;  %3988 = vmatprep.subr.bf16.mxu0 %v3951_v7  ;;  %v14130_v27 = vcombine.low %v3836_v24, %v3838_v19  ;;  %v12909_v19 = vld [vmem:[%s17464_s3 + $0x8] sm:$0xff]  }
 0x556   : > { %v3950_v63 = vsel %vm17578_vm6, %v3921_v8, %v3923_v5  ;;  %vm17584_vm6 = vmmov %vm17581_vm0 }
 0x557   : > { %3989 = vmatpush1.bf16.msra.mxu0 %v3950_v63  ;;  %v3929_v11 = vpop.permute.xlu0 %3928 }
 0x558   : > { %v3839_v14 = vld [vmem:[#allocation2 + $0x60] sm:$0x33]  ;;  %3938 = vrot.lane.b32.xlu0 %v14112_v9, %s13104_s24 }
 0x559   : > { %v14117_v16 = vcombine.low %v3839_v14, %v3839_v14  ;;  %v14119_v17 = vcombine.high %v3839_v14, %v3839_v14  ;;  %v14121_v18 = vpop.permute.xlu1 %3930  ;;  %v14132_v28 = vld [vmem:[#allocation2 + $0x68] ss:$0 sps:$4 sm:$0x33]  }
 0x55a   : > { %v3953_v20 = vsel %vm17579_vm3, %v3929_v11, %v14121_v18  ;;  %vm17585_vm3 = vmmov %vm17581_vm0 }
 0x55b   : > { %3944 = vrot.lane.b32.xlu1 %v14117_v16, %s13104_s24  ;;  %3990 = vmatprep.subr.bf16.mxu0 %v3953_v20  ;;  %v3927_v22 = vpop.permute.xlu0 %3926  ;;  %v4119_v63 = vsel %vm543_vm1, %v14117_v16, 0 }
 0x55c   : > { %3946 = vrot.lane.b32.xlu0 %v14119_v17, %s13104_s24  ;;  %v3952_v25 = vsel %vm17580_vm4, %v3927_v22, %v3929_v11  ;;  %vm17586_vm4 = vmmov %vm17581_vm0  ;;  %v12908_v11 = vld [vmem:[%s17464_s3] sm:$0xff]  }
 0x55d   : > { %3991 = vmatpush1.bf16.msra.mxu0 %v3952_v25 }
 0x55f   : > { %3942 = vrot.lane.b32.xlu1 %v14130_v27, %s13104_s24 }
 0x560   : > { %4246 = vrot.lane.b32.xlu0 %v13594_v60, %s13105_s27 }
 0x563   : > { %3948 = vrot.lane.b32.xlu1 %v14132_v28, %s13104_s24 }
 0x564   : > { %4244 = vrot.lane.b32.xlu0 %v13605_v4, %s13105_s27 }
 0x567   : > { %4248 = vrot.lane.b32.xlu1 %v14051_v23, %s13105_s27 }
 0x568   : > { %4254 = vrot.lane.b32.xlu0 %v14059_v26, %s13105_s27 }
 0x56b   : > { %4252 = vrot.lane.b32.xlu1 %v13618_v13, %s13105_s27 }
 0x56c   : > { %4258 = vrot.lane.b32.xlu0 %v14076_v44, %s13105_s27 }
 0x56f   : > { %4250 = vrot.lane.b32.xlu1 %v13631_v21, %s13105_s27 }
 0x570   : > { %4256 = vrot.lane.b32.xlu0 %v14085_v50, %s13105_s27 }
 0x573   : > { %4260 = vrot.lane.b32.xlu1 %v14101_v3, %s13105_s27 }
 0x574   : > { %4268 = vrot.lane.b32.xlu0 %v14117_v16, %s13105_s27 }
 0x577   : > { %4264 = vrot.lane.b32.xlu1 %v14095_v0, %s13105_s27 }
 0x578   : > { %4266 = vrot.lane.b32.xlu0 %v14130_v27, %s13105_s27 }
 0x57b   : > { %4262 = vrot.lane.b32.xlu1 %v14112_v9, %s13105_s27 }
 0x57c   : > { %4272 = vrot.lane.b32.xlu0 %v14132_v28, %s13105_s27 }
 0x57f   : > { %4270 = vrot.lane.b32.xlu1 %v14119_v17, %s13105_s27 }
 0x580   : > { %4444 = vrot.lane.b32.xlu0 %v14051_v23, %s13106_s30 }
 0x583   : > { %4442 = vrot.lane.b32.xlu1 %v13594_v60, %s13106_s30 }
 0x584   : > { %4448 = vrot.lane.b32.xlu0 %v13618_v13, %s13106_s30 }
 0x587   : > { %4440 = vrot.lane.b32.xlu1 %v13605_v4, %s13106_s30 }
 0x588   : > { %4446 = vrot.lane.b32.xlu0 %v13631_v21, %s13106_s30 }
 0x58b   : > { %4450 = vrot.lane.b32.xlu1 %v14059_v26, %s13106_s30 }
 0x58c   : > { %4456 = vrot.lane.b32.xlu0 %v14101_v3, %s13106_s30 }
 0x58f   : > { %4454 = vrot.lane.b32.xlu1 %v14076_v44, %s13106_s30 }
 0x590   : > { %4460 = vrot.lane.b32.xlu0 %v14095_v0, %s13106_s30 }
 0x593   : > { %4452 = vrot.lane.b32.xlu1 %v14085_v50, %s13106_s30 }
 0x594   : > { %4458 = vrot.lane.b32.xlu0 %v14112_v9, %s13106_s30 }
 0x597   : > { %4464 = vrot.lane.b32.xlu1 %v14117_v16, %s13106_s30 }
 0x598   : > { %4466 = vrot.lane.b32.xlu0 %v14119_v17, %s13106_s30 }
 0x59b   : > { %4462 = vrot.lane.b32.xlu1 %v14130_v27, %s13106_s30 }
 0x59c   : > { %4638 = vrot.lane.b32.xlu0 %v13594_v60, %s13107_s12 }
 0x59f   : > { %4468 = vrot.lane.b32.xlu1 %v14132_v28, %s13106_s30 }
 0x5a0   : > { %4636 = vrot.lane.b32.xlu0 %v13605_v4, %s13107_s12 }
 0x5a3   : > { %4640 = vrot.lane.b32.xlu1 %v14051_v23, %s13107_s12 }
 0x5a4   : > { %4646 = vrot.lane.b32.xlu0 %v14059_v26, %s13107_s12 }
 0x5a7   : > { %4644 = vrot.lane.b32.xlu1 %v13618_v13, %s13107_s12 }
 0x5a8   : > { %4650 = vrot.lane.b32.xlu0 %v14076_v44, %s13107_s12 }
 0x5ab   : > { %4642 = vrot.lane.b32.xlu1 %v13631_v21, %s13107_s12 }
 0x5ac   : > { %4648 = vrot.lane.b32.xlu0 %v14085_v50, %s13107_s12 }
 0x5af   : > { %4652 = vrot.lane.b32.xlu1 %v14101_v3, %s13107_s12 }
 0x5b0   : > { %4660 = vrot.lane.b32.xlu0 %v14117_v16, %s13107_s12 }
 0x5b3   : > { %4656 = vrot.lane.b32.xlu1 %v14095_v0, %s13107_s12 }
 0x5b4   : > { %4658 = vrot.lane.b32.xlu0 %v14130_v27, %s13107_s12 }
 0x5b7   : > { %4654 = vrot.lane.b32.xlu1 %v14112_v9, %s13107_s12 }
 0x5b8   : > { %4664 = vrot.lane.b32.xlu0 %v14132_v28, %s13107_s12  ;;  %v3935_v29 = vpop.permute.xlu1 %3934 }
 0x5bb   : > { %4662 = vrot.lane.b32.xlu1 %v14119_v17, %s13107_s12 }
 0x5bc   : > { %4836 = vrot.lane.b32.xlu0 %v14051_v23, %s13108_s13  ;;  %v3933_v35 = vpop.permute.xlu1 %3932 }
 0x5bd   : > { %v3954_v39 = vsel %vm17582_vm5, %v3933_v35, %v3935_v29  ;;  %vm17588_vm5 = vcmask 1031168  }
 0x5bf   : > { %4834 = vrot.lane.b32.xlu1 %v13594_v60, %s13108_s13 }
 0x5c0   : > { %4840 = vrot.lane.b32.xlu0 %v13618_v13, %s13108_s13 }
 0x5c2   : > { %v3941_v30 = vpop.permute.xlu0 %3940 }
 0x5c3   : > { %4832 = vrot.lane.b32.xlu1 %v13605_v4, %s13108_s13 }
 0x5c4   : > { %4838 = vrot.lane.b32.xlu0 %v13631_v21, %s13108_s13 }
 0x5c6   : > { %v3937_v36 = vpop.permute.xlu0 %3936 }
 0x5c7   : > { %4842 = vrot.lane.b32.xlu1 %v14059_v26, %s13108_s13  ;;  %v3955_v38 = vsel %vm17581_vm0, %v3935_v29, %v3937_v36  ;;  %vm3972_vm0 = vcmask 556032   ;;  %v4125_v29 = vsel %vm543_vm1, %v14132_v28, 0 }
 0x5c8   : > { %4848 = vrot.lane.b32.xlu0 %v14101_v3, %s13108_s13  ;;  %3992 = vmatprep.subr.bf16.mxu0 %v3955_v38 }
 0x5c9   : > { %3993 = vmatpush1.bf16.msra.mxu0 %v3954_v39 }
 0x5ca   : > { %v3939_v40 = vpop.permute.xlu0 %3938 }
 0x5cb   : > { %4846 = vrot.lane.b32.xlu1 %v14076_v44, %s13108_s13  ;;  %v3956_v45 = vsel %vm17584_vm6, %v3939_v40, %v3941_v30  ;;  %vm17590_vm6 = vmmov %vm17588_vm5 }
 0x5cc   : > { %4852 = vrot.lane.b32.xlu0 %v14095_v0, %s13108_s13 }
 0x5cd   : > { %v3945_v32 = vpop.permute.xlu1 %3944 }
 0x5ce   : > { %v3947_v41 = vpop.permute.xlu0 %3946 }
 0x5cf   : > { %4844 = vrot.lane.b32.xlu1 %v14085_v50, %s13108_s13  ;;  %v3958_v48 = vsel %vm17585_vm3, %v3945_v32, %v3947_v41  ;;  %vm17591_vm3 = vmmov %vm17588_vm5 }
 0x5d0   : > { %4850 = vrot.lane.b32.xlu0 %v14112_v9, %s13108_s13  ;;  %v3980_v51 = vsel %vm543_vm1, %v3958_v48, 0 }
 0x5d1   : > { %v3943_v42 = vpop.permute.xlu1 %3942 }
 0x5d2   : > { %v3957_v43 = vsel %vm17583_vm15, %v3941_v30, %v3943_v42  ;;  %v14270_v37 = vpop.permute.xlu0 %4246  ;;  %vm17589_vm15 = vmmov %vm17588_vm5 }
 0x5d3   : > { %4856 = vrot.lane.b32.xlu1 %v14117_v16, %s13108_s13  ;;  %3994 = vmatprep.subr.bf16.mxu0 %v3957_v43 }
 0x5d4   : > { %4858 = vrot.lane.b32.xlu0 %v14119_v17, %s13108_s13  ;;  %3995 = vmatpush1.bf16.msra.mxu0 %v3956_v45 }
 0x5d5   : > { %v3949_v47 = vpop.permute.xlu1 %3948 }
 0x5d6   : > { %v3959_v33 = vsel %vm17586_vm4, %v3947_v41, %v3949_v47  ;;  %v14292_v56 = vpop.permute.xlu0 %4244  ;;  %v3986_v61 = vsel %vm543_vm1, %v3949_v47, 0  ;;  %vm17592_vm4 = vmmov %vm17591_vm3 }
 0x5d7   : > { %4854 = vrot.lane.b32.xlu1 %v14130_v27, %s13108_s13  ;;  %11248 = vmatprep.subr.msk.bf16.mxu0 %vm543_vm1, %v3959_v33 }
 0x5d8   : > { %5030 = vrot.lane.b32.xlu0 %v13594_v60, %s13109_s14  ;;  %3997 = vmatpush1.bf16.msra.mxu0 %v3980_v51 }
 0x5d9   : > { %12125 = vmatprep.subr.bf16.mxu0 %v14106_v6  ;;  %v14282_v53 = vpop.permute.xlu1 %4248 }
 0x5da   : > { %v14302_v58 = vpop.permute.xlu0 %4254  ;;  %v4275_v30 = vsel %vm17588_vm5, %v14270_v37, %v14282_v53  ;;  %vm17593_vm5 = vmmov %vm17591_vm3 }
 0x5db   : > { %4860 = vrot.lane.b32.xlu1 %v14132_v28, %s13108_s13  ;;  %11249 = vmatmul.mubr.msk.bf16.vlgmr.msra.gmra.mrb[8].mxu0 %vm3972_vm0, %v12906_v34 }
 0x5dc   : > { %5028 = vrot.lane.b32.xlu0 %v13605_v4, %s13109_s14  ;;  %12126 = vmatpush3.bf16.msra.mxu0 %v14106_v6 }
 0x5dd   : > { %12127 = vmatprep.subr.bf16.mxu0 %v14121_v18  ;;  %4030 = vmatprep.mubr.bf16.mxu0 %v14279_v52  ;;  %v14299_v57 = vpop.permute.xlu1 %4252 }
 0x5de   : > { %v14316_v62 = vpop.permute.xlu0 %4258  ;;  %v4277_v39 = vsel %vm17590_vm6, %v14299_v57, %v14302_v58  ;;  %vm17595_vm6 = vmmov %vm17591_vm3 }
 0x5df   : > { %5032 = vrot.lane.b32.xlu1 %v14051_v23, %s13109_s14 }
 0x5e0   : > { %5038 = vrot.lane.b32.xlu0 %v14059_v26, %s13109_s14  ;;  %12128 = vmatpush3.bf16.msra.mxu0 %v14121_v18 }
 0x5e1   : > { %12129 = vmatprep.subr.bf16.mxu0 %v3937_v36  ;;  %v14309_v59 = vpop.permute.xlu1 %4250 }
 0x5e2   : > { %v14329_v2 = vpop.permute.xlu0 %4256  ;;  %v4276_v40 = vsel %vm17591_vm3, %v14309_v59, %v14299_v57 }
 0x5e3   : > { %5036 = vrot.lane.b32.xlu1 %v13618_v13, %s13109_s14  ;;  %11250 = vmatmul.mubr.msk.bf16.gmra.mrb[12].mxu0 %vm3972_vm0, %v12907_v54  ;;  %v4278_v43 = vsel %vm17593_vm5, %v14329_v2, %v14316_v62  ;;  %vm17597_vm5 = vcmask 900096  }
 0x5e4   : > { %5042 = vrot.lane.b32.xlu0 %v14076_v44, %s13109_s14  ;;  %12130 = vmatpush3.bf16.msra.mxu0 %v3937_v36  ;;  %v4274_v36 = vsel %vm17589_vm15, %v14292_v56, %v14270_v37  ;;  %vm17594_vm15 = vmmov %vm17591_vm3  ;;  %v12910_v37 = vld [vmem:[%s17464_s3 + $0x20] sm:$0xff]   ;;  %v12911_v56 = vld [vmem:[%s17464_s3 + $0x28] sm:$0xff]  }
 0x5e5   : > { %12131 = vmatprep.subr.bf16.mxu0 %v3943_v42  ;;  %12135 = vmatprep.mubr.msk.bf16.mxu0 %vm3972_vm0, %v12906_v34  ;;  %v14325_v1 = vpop.permute.xlu1 %4260 }
 0x5e6   : > { %v14344_v6 = vpop.permute.xlu0 %4268  ;;  %v4279_v41 = vsel %vm17592_vm4, %v14316_v62, %v14325_v1  ;;  %vm17596_vm4 = vmmov %vm17591_vm3 }
 0x5e7   : > { %5034 = vrot.lane.b32.xlu1 %v13631_v21, %s13109_s14 }
 0x5e8   : > { %5040 = vrot.lane.b32.xlu0 %v14085_v50, %s13109_s14  ;;  %12132 = vmatpush3.bf16.msra.mxu0 %v3943_v42 }
 0x5e9   : > { %12815 = vmatprep.subr.msk.bf16.mxu0 %vm543_vm1, %v3949_v47  ;;  %v14337_v5 = vpop.permute.xlu1 %4264 }
 0x5ea   : > { %v14356_v8 = vpop.permute.xlu0 %4266 }
 0x5eb   : > { %5044 = vrot.lane.b32.xlu1 %v14101_v3, %s13109_s14 }
 0x5ec   : > { %5052 = vrot.lane.b32.xlu0 %v14117_v16, %s13109_s14  ;;  %12134 = vmatpush3.bf16.msra.mxu0 %v3986_v61 }
 0x5ed   : > { %4127 = vmatprep.subr.bf16.mxu0 %v13594_v60  ;;  %v14352_v7 = vpop.permute.xlu1 %4262 }
 0x5ee   : > { %v14376_v18 = vpop.permute.xlu0 %4272  ;;  %v4280_v45 = vsel %vm17595_vm6, %v14352_v7, %v14337_v5  ;;  %vm17599_vm6 = vmmov %vm17597_vm5 }
 0x5ef   : > { %5048 = vrot.lane.b32.xlu1 %v14095_v0, %s13109_s14  ;;  %12136 = vmatmul.mubr.msk.bf16.vlgmr.msra.gmra.mrb[16].mxu0 %vm3972_vm0, %v12907_v54  ;;  %v4309_v62 = vsel %vm543_vm1, %v14376_v18, 0 }
 0x5f0   : > { %5050 = vrot.lane.b32.xlu0 %v14130_v27, %s13109_s14  ;;  %4128 = vmatpush1.bf16.msra.mxu0 %v13605_v4 }
 0x5f1   : > { %4129 = vmatprep.subr.bf16.mxu0 %v13618_v13  ;;  %4159 = vmatprep.mubr.bf16.mxu0 %v14279_v52  ;;  %v14368_v14 = vpop.permute.xlu1 %4270 }
 0x5f2   : > { %v14391_v22 = vpop.permute.xlu0 %4444  ;;  %v4282_v47 = vsel %vm17591_vm3, %v14344_v6, %v14368_v14  ;;  %v4283_v33 = vsel %vm17596_vm4, %v14368_v14, %v14376_v18  ;;  %vm17600_vm3 = vmmov %vm17597_vm5 }
 0x5f3   : > { %5046 = vrot.lane.b32.xlu1 %v14112_v9, %s13109_s14  ;;  %v4303_v34 = vsel %vm543_vm1, %v4282_v47, 0  ;;  %vm17601_vm4 = vmmov %vm17600_vm3 }
 0x5f4   : > { %5056 = vrot.lane.b32.xlu0 %v14132_v28, %s13109_s14  ;;  %4130 = vmatpush1.bf16.msra.mxu0 %v13631_v21 }
 0x5f5   : > { %4131 = vmatprep.subr.bf16.mxu0 %v14076_v44  ;;  %v14388_v20 = vpop.permute.xlu1 %4442 }
 0x5f6   : > { %v14408_v25 = vpop.permute.xlu0 %4448 }
 0x5f7   : > { %5054 = vrot.lane.b32.xlu1 %v14119_v17, %s13109_s14 }
 0x5f8   : > { %5228 = vrot.lane.b32.xlu0 %v14051_v23, %s17587_s20  ;;  %4132 = vmatpush1.bf16.msra.mxu0 %v14085_v50 }
 0x5f9   : > { %4133 = vmatprep.subr.bf16.mxu0 %v14095_v0  ;;  %v14401_v24 = vpop.permute.xlu1 %4440 }
 0x5fa   : > { %v14426_v38 = vpop.permute.xlu0 %4446 }
 0x5fb   : > { %5226 = vrot.lane.b32.xlu1 %v13594_v60, %s17587_s20 }
 0x5fc   : > { %5232 = vrot.lane.b32.xlu0 %v13618_v13, %s17587_s20  ;;  %4134 = vmatpush1.bf16.msra.mxu0 %v14112_v9 }
 0x5fd   : > { %11255 = vmatprep.subr.msk.bf16.mxu0 %vm543_vm1, %v14119_v17  ;;  %v14421_v35 = vpop.permute.xlu1 %4450 }
 0x5fe   : > { %v14449_v42 = vpop.permute.xlu0 %4456  ;;  %v4473_v6 = vsel %vm17599_vm6, %v14408_v25, %v14421_v35  ;;  %vm17604_vm6 = vmmov %vm17600_vm3 }
 0x5ff   : > { %5224 = vrot.lane.b32.xlu1 %v13605_v4, %s17587_s20 }
 0x600   : > { %5230 = vrot.lane.b32.xlu0 %v13631_v21, %s17587_s20  ;;  %4136 = vmatpush1.bf16.msra.mxu0 %v4119_v63 }
 0x601   : > { %12139 = vmatprep.subr.bf16.mxu0 %v14051_v23  ;;  %v14440_v32 = vpop.permute.xlu1 %4454 }
 0x602   : > { %v14466_v48 = vpop.permute.xlu0 %4460  ;;  %v4475_v63 = vsel %vm17601_vm4, %v14440_v32, %v14449_v42  ;;  %vm17605_vm4 = vmmov %vm17600_vm3 }
 0x603   : > { %5234 = vrot.lane.b32.xlu1 %v14059_v26, %s17587_s20  ;;  %11256 = vmatmul.mubr.msk.bf16.vlgmr.msra.gmra.mrb[8].mxu0 %vm3972_vm0, %v12908_v11 }
 0x604   : > { %5240 = vrot.lane.b32.xlu0 %v14101_v3, %s17587_s20  ;;  %12140 = vmatpush3.bf16.msra.mxu0 %v14051_v23 }
 0x605   : > { %12141 = vmatprep.subr.bf16.mxu0 %v14059_v26  ;;  %4169 = vmatprep.mubr.bf16.mxu0 %v14279_v52 }
 0x606   : > { %v4459_v54 = vpop.permute.xlu0 %4458 }
 0x607   : > { %5238 = vrot.lane.b32.xlu1 %v14076_v44, %s17587_s20 }
 0x608   : > { %5244 = vrot.lane.b32.xlu0 %v14095_v0, %s17587_s20  ;;  %12142 = vmatpush3.bf16.msra.mxu0 %v14059_v26 }
 0x609   : > { %12143 = vmatprep.subr.bf16.mxu0 %v14101_v3 }
 0x60b   : > { %5236 = vrot.lane.b32.xlu1 %v14085_v50, %s17587_s20  ;;  %11257 = vmatmul.mubr.msk.bf16.gmra.mrb[12].mxu0 %vm3972_vm0, %v12909_v19 }
 0x60c   : > { %5242 = vrot.lane.b32.xlu0 %v14112_v9, %s17587_s20  ;;  %12144 = vmatpush3.bf16.msra.mxu0 %v14101_v3 }
 0x60d   : > { %12145 = vmatprep.subr.bf16.mxu0 %v14130_v27  ;;  %12149 = vmatprep.mubr.msk.bf16.mxu0 %vm3972_vm0, %v12908_v11 }
 0x60f   : > { %5248 = vrot.lane.b32.xlu1 %v14117_v16, %s17587_s20 }
 0x610   : > { %5250 = vrot.lane.b32.xlu0 %v14119_v17, %s17587_s20  ;;  %12146 = vmatpush3.bf16.msra.mxu0 %v14130_v27 }
 0x611   : > { %12816 = vmatprep.subr.msk.bf16.mxu0 %vm543_vm1, %v14132_v28 }
 0x613   : > { %5246 = vrot.lane.b32.xlu1 %v14130_v27, %s17587_s20 }
 0x614   : > { %5422 = vrot.lane.b32.xlu0 %v13594_v60, %s17489_s16  ;;  %12148 = vmatpush3.bf16.msra.mxu0 %v4125_v29 }
 0x615   : > { %4311 = vmatprep.subr.bf16.mxu0 %v4275_v30 }
 0x617   : > { %5252 = vrot.lane.b32.xlu1 %v14132_v28, %s17587_s20  ;;  %12150 = vmatmul.mubr.msk.bf16.vlgmr.msra.gmra.mrb[16].mxu0 %vm3972_vm0, %v12909_v19 }
 0x618   : > { %5420 = vrot.lane.b32.xlu0 %v13605_v4, %s17489_s16  ;;  %4312 = vmatpush1.bf16.msra.mxu0 %v4274_v36 }
 0x619   : > { %4313 = vmatprep.subr.bf16.mxu0 %v4277_v39  ;;  %4343 = vmatprep.mubr.bf16.mxu0 %v14279_v52 }
 0x61b   : > { %5424 = vrot.lane.b32.xlu1 %v14051_v23, %s17489_s16  ;;  %v4281_v23 = vsel %vm17594_vm15, %v14337_v5, %v14356_v8  ;;  %vm17598_vm15 = vmmov %vm17597_vm5 }
 0x61c   : > { %5430 = vrot.lane.b32.xlu0 %v14059_v26, %s17489_s16  ;;  %4314 = vmatpush1.bf16.msra.mxu0 %v4276_v40  ;;  %v14461_v26 = vpop.permute.xlu1 %4452  ;;  %v4470_v2 = vsel %vm17598_vm15, %v14401_v24, %v14388_v20  ;;  %vm17603_vm15 = vmmov %vm17600_vm3 }
 0x61d   : > { %4315 = vmatprep.subr.bf16.mxu0 %v4279_v41  ;;  %v12913_v41 = vld [vmem:[%s17464_s3 + $0x38] sm:$0xff]  }
 0x61f   : > { %5428 = vrot.lane.b32.xlu1 %v13618_v13, %s17489_s16 }
 0x620   : > { %5434 = vrot.lane.b32.xlu0 %v14076_v44, %s17489_s16  ;;  %4316 = vmatpush1.bf16.msra.mxu0 %v4278_v43  ;;  %v14479_v51 = vpop.permute.xlu1 %4464 }
 0x621   : > { %4317 = vmatprep.subr.bf16.mxu0 %v4281_v23 }
 0x623   : > { %5426 = vrot.lane.b32.xlu1 %v13631_v21, %s17489_s16 }
 0x624   : > { %5432 = vrot.lane.b32.xlu0 %v14085_v50, %s17489_s16  ;;  %4318 = vmatpush1.bf16.msra.mxu0 %v4280_v45 }
 0x625   : > { %11266 = vmatprep.subr.msk.bf16.mxu0 %vm543_vm1, %v4283_v33 }
 0x627   : > { %5436 = vrot.lane.b32.xlu1 %v14101_v3, %s17489_s16  ;;  %v14496_v3 = vpop.permute.xlu1 %4462 }
 0x628   : > { %5444 = vrot.lane.b32.xlu0 %v14117_v16, %s17489_s16  ;;  %4320 = vmatpush1.bf16.msra.mxu0 %v4303_v34  ;;  %v4467_v16 = vpop.permute.xlu0 %4466  ;;  %v4477_v19 = vsel %vm17603_vm15, %v14466_v48, %v14496_v3 }
 0x629   : > { %12153 = vmatprep.subr.bf16.mxu0 %v14282_v53 }
 0x62b   : > { %5440 = vrot.lane.b32.xlu1 %v14095_v0, %s17489_s16  ;;  %11267 = vmatmul.mubr.msk.bf16.vlgmr.msra.gmra.mrb[8].mxu0 %vm3972_vm0, %v12910_v37 }
 0x62c   : > { %5442 = vrot.lane.b32.xlu0 %v14130_v27, %s17489_s16  ;;  %12154 = vmatpush3.bf16.msra.mxu0 %v14282_v53  ;;  %v5602_v27 = vld [vmem:[%s17469_s8 + $0x8] sm:$0xff]  ;;  %v14512_v53 = vpop.permute.xlu1 %4468  ;;  %v14521_v57 = vpop.permute.xlu0 %4638 }
 0x62d   : > { %12155 = vmatprep.subr.bf16.mxu0 %v14302_v58  ;;  %4353 = vmatprep.mubr.bf16.mxu0 %v14279_v52  ;;  %v4479_v29 = vsel %vm17605_vm4, %v4467_v16, %v14512_v53 }
 0x62f   : > { %5438 = vrot.lane.b32.xlu1 %v14112_v9, %s17489_s16 }
 0x630   : > { %5448 = vrot.lane.b32.xlu0 %v14132_v28, %s17489_s16  ;;  %12156 = vmatpush3.bf16.msra.mxu0 %v14302_v58  ;;  %v5601_v28 = vld [vmem:[%s17469_s8] sm:$0xff]  ;;  %v5604_v58 = vld [vmem:[%s17469_s8 + $0x18] sm:$0xff]  ;;  %v14532_v59 = vpop.permute.xlu1 %4640  ;;  %v4637_v61 = vpop.permute.xlu0 %4636 }
 0x631   : > { %12157 = vmatprep.subr.bf16.mxu0 %v14325_v1 }
 0x633   : > { %5446 = vrot.lane.b32.xlu1 %v14119_v17, %s17489_s16  ;;  %11268 = vmatmul.mubr.msk.bf16.gmra.mrb[12].mxu0 %vm3972_vm0, %v12911_v56  ;;  %v5603_v17 = vld [vmem:[%s17469_s8 + $0x10] sm:$0xff] }
 0x634   : > { %5612 = vperm.xlu0 %12858, %v5602_v27   ;;  %12158 = vmatpush3.bf16.msra.mxu0 %v14325_v1  ;;  %v4471_v1 = vsel %vm17597_vm5, %v14388_v20, %v14391_v22  ;;  %v4645_v5 = vpop.permute.xlu1 %4644  ;;  %v14549_v7 = vpop.permute.xlu0 %4646  ;;  %vm17602_vm5 = vmmov %vm17600_vm3  ;;  %v4476_v20 = vsel %vm17604_vm6, %v4459_v54, %v14466_v48 }
 0x635   : > { %12159 = vmatprep.subr.bf16.mxu0 %v14356_v8  ;;  %12163 = vmatprep.mubr.msk.bf16.mxu0 %vm3972_vm0, %v12910_v37  ;;  %v4474_v14 = vsel %vm17602_vm5, %v14461_v26, %v14440_v32  ;;  %vm17606_vm5 = vcmask 891904  }
 0x636   : > { %vm17607_vm15 = vmmov %vm17606_vm5 }
 0x637   : > { %5607 = vperm.xlu1 %12859, %v5601_v28   ;;  %v4666_v48 = vsel %vm17607_vm15, %v4637_v61, %v14521_v57  ;;  %vm17608_vm6 = vmmov %vm17606_vm5  ;;  %v12914_v61 = vld [vmem:[%s17464_s3 + $0x40] sm:$0xff]  }
 0x638   : > { %5622 = vperm.xlu0 %12858, %v5604_v58   ;;  %12160 = vmatpush3.bf16.msra.mxu0 %v14356_v8  ;;  %v4472_v8 = vsel %vm17600_vm3, %v14426_v38, %v14408_v25  ;;  %v4643_v11 = vpop.permute.xlu1 %4642  ;;  %v4478_v25 = vsel %vm17600_vm3, %v14479_v51, %v4467_v16  ;;  %v12912_v38 = vld [vmem:[%s17464_s3 + $0x30] sm:$0xff]   ;;  %v4669_v47 = vsel %vm17608_vm6, %v4645_v5, %v14549_v7  ;;  %vm17609_vm3 = vmmov %vm17606_vm5 }
 0x639   : > { %12817 = vmatprep.subr.msk.bf16.mxu0 %vm543_vm1, %v14376_v18  ;;  %v4651_v18 = vpop.permute.xlu0 %4650  ;;  %v4499_v36 = vsel %vm543_vm1, %v4478_v25, 0  ;;  %v4668_v51 = vsel %vm17609_vm3, %v4643_v11, %v4645_v5  ;;  %vm17610_vm4 = vmmov %vm17609_vm3 }
 0x63a   : > { %vm17612_vm15 = vmmov %vm17609_vm3 }
 0x63b   : > { %5617 = vperm.xlu1 %12859, %v5603_v17   ;;  %vm17613_vm6 = vmmov %vm17609_vm3 }
 0x63c   : > { %12162 = vmatpush3.bf16.msra.mxu0 %v4309_v62  ;;  %v14565_v24 = vpop.permute.xlu1 %4652  ;;  %vm17614_vm10 = vmmov %vm17609_vm3 }
 0x63d   : > { %4507 = vmatprep.subr.bf16.mxu0 %v4471_v1  ;;  %v4649_v30 = vpop.permute.xlu0 %4648  ;;  %v4671_v37 = vsel %vm17610_vm4, %v4651_v18, %v14565_v24 }
 0x63f   : > { %12164 = vmatmul.mubr.msk.bf16.vlgmr.msra.gmra.mrb[16].mxu0 %vm3972_vm0, %v12911_v56 }
 0x640   : > { %4508 = vmatpush1.bf16.msra.mxu0 %v4470_v2  ;;  %4539 = vmatprep.mubr.bf16.mxu0 %v14279_v52  ;;  %v4657_v39 = vpop.permute.xlu1 %4656  ;;  %v12915_v2 = vld [vmem:[%s17464_s3 + $0x48] sm:$0xff]  }
 0x641   : > { %4509 = vmatprep.subr.bf16.mxu0 %v4473_v6  ;;  %v4661_v40 = vpop.permute.xlu0 %4660 }
 0x644   : > { %4510 = vmatpush1.bf16.msra.mxu0 %v4472_v8  ;;  %v4655_v32 = vpop.permute.xlu1 %4654 }
 0x645   : > { %4511 = vmatprep.subr.bf16.mxu0 %v4475_v63  ;;  %v4659_v43 = vpop.permute.xlu0 %4658  ;;  %v4672_v27 = vsel %vm17613_vm6, %v4655_v32, %v4657_v39 }
 0x646   : > { %v4673_v16 = vsel %vm17612_vm15, %v4657_v39, %v4659_v43 }
 0x648   : > { %4512 = vmatpush1.bf16.msra.mxu0 %v4474_v14 }
 0x649   : > { %4513 = vmatprep.subr.bf16.mxu0 %v4477_v19  ;;  %v4665_v23 = vpop.permute.xlu0 %4664 }
 0x64a   : > { %v4701_v63 = vsel %vm543_vm1, %v4665_v23, 0 }
 0x64c   : > { %4514 = vmatpush1.bf16.msra.mxu0 %v4476_v20 }
 0x64d   : > { %11277 = vmatprep.subr.msk.bf16.mxu0 %vm543_vm1, %v4479_v29  ;;  %v14598_v45 = vpop.permute.xlu0 %4836 }
 0x650   : > { %4516 = vmatpush1.bf16.msra.mxu0 %v4499_v36 }
 0x651   : > { %12167 = vmatprep.subr.bf16.mxu0 %v14391_v22  ;;  %v4841_v34 = vpop.permute.xlu0 %4840 }
 0x653   : > { %11278 = vmatmul.mubr.msk.bf16.vlgmr.msra.gmra.mrb[8].mxu0 %vm3972_vm0, %v12912_v38 }
 0x654   : > { %12168 = vmatpush3.bf16.msra.mxu0 %v14391_v22  ;;  %4549 = vmatprep.mubr.bf16.mxu0 %v14279_v52  ;;  %v4663_v22 = vpop.permute.xlu1 %4662 }
 0x655   : > { %12169 = vmatprep.subr.bf16.mxu0 %v14421_v35  ;;  %v4839_v56 = vpop.permute.xlu0 %4838  ;;  %v4675_v28 = vsel %vm17609_vm3, %v4663_v22, %v4665_v23 }
 0x658   : > { %12170 = vmatpush3.bf16.msra.mxu0 %v14421_v35  ;;  %v4835_v26 = vpop.permute.xlu1 %4834  ;;  %v4505_v35 = vsel %vm543_vm1, %v14512_v53, 0 }
 0x659   : > { %12171 = vmatprep.subr.bf16.mxu0 %v14449_v42  ;;  %v14617_v58 = vpop.permute.xlu0 %4848 }
 0x65b   : > { %11279 = vmatmul.mubr.msk.bf16.gmra.mrb[12].mxu0 %vm3972_vm0, %v12913_v41 }
 0x65c   : > { %12172 = vmatpush3.bf16.msra.mxu0 %v14449_v42  ;;  %12177 = vmatprep.mubr.msk.bf16.mxu0 %vm3972_vm0, %v12912_v38  ;;  %v4667_v42 = vsel %vm17606_vm5, %v14521_v57, %v14532_v59  ;;  %v4833_v33 = vpop.permute.xlu1 %4832  ;;  %vm17611_vm5 = vmmov %vm17609_vm3 }
 0x65d   : > { %12173 = vmatprep.subr.bf16.mxu0 %v14496_v3  ;;  %v4670_v54 = vsel %vm17611_vm5, %v4649_v30, %v4651_v18  ;;  %v4853_v1 = vpop.permute.xlu0 %4852 }
 0x660   : > { %12174 = vmatpush3.bf16.msra.mxu0 %v14496_v3  ;;  %v14610_v3 = vpop.permute.xlu1 %4842 }
 0x661   : > { %12818 = vmatprep.subr.msk.bf16.mxu0 %vm543_vm1, %v14512_v53  ;;  %v4674_v53 = vsel %vm17614_vm10, %v4661_v40, %v4663_v22  ;;  %v4851_v6 = vpop.permute.xlu0 %4850  ;;  %vm17615_vm10 = vcmask 883712  }
 0x662   : > { %v4695_v17 = vsel %vm543_vm1, %v4674_v53, 0  ;;  %vm17616_vm4 = vmmov %vm17615_vm10 }
 0x663   : > { %v4862_v14 = vsel %vm17616_vm4, %v4833_v33, %v4835_v26  ;;  %vm17617_vm5 = vmmov %vm17616_vm4 }
 0x664   : > { %12176 = vmatpush3.bf16.msra.mxu0 %v4505_v35  ;;  %v4847_v57 = vpop.permute.xlu1 %4846  ;;  %v4865_v19 = vsel %vm17617_vm5, %v4841_v34, %v14610_v3  ;;  %vm17618_vm15 = vmmov %vm17616_vm4 }
 0x665   : > { %4703 = vmatprep.subr.bf16.mxu0 %v4667_v42  ;;  %v4859_v8 = vpop.permute.xlu0 %4858  ;;  %v4864_v20 = vsel %vm17618_vm15, %v4839_v56, %v4841_v34  ;;  %vm17619_vm6 = vmmov %vm17616_vm4 }
 0x666   : > { %v4867_v25 = vsel %vm17619_vm6, %v4847_v57, %v14617_v58  ;;  %vm17620_vm3 = vmmov %vm17616_vm4  ;;  %vm17625_vm6 = vcmask 752640  }
 0x667   : > { %12178 = vmatmul.mubr.msk.bf16.vlgmr.msra.gmra.mrb[16].mxu0 %vm3972_vm0, %v12913_v41  ;;  %vm17622_vm4 = vmmov %vm17620_vm3 }
 0x668   : > { %4704 = vmatpush1.bf16.msra.mxu0 %v4666_v48  ;;  %4735 = vmatprep.mubr.bf16.mxu0 %v14279_v52  ;;  %v4845_v62 = vpop.permute.xlu1 %4844  ;;  %v4868_v39 = vsel %vm17622_vm4, %v4851_v6, %v4853_v1  ;;  %vm17623_vm5 = vmmov %vm17620_vm3  ;;  %v12917_v48 = vld [vmem:[%s17464_s3 + $0x58] sm:$0xff]  }
 0x669   : > { %4705 = vmatprep.subr.bf16.mxu0 %v4669_v47  ;;  %v5031_v18 = vpop.permute.xlu0 %5030  ;;  %v4866_v30 = vsel %vm17620_vm3, %v4845_v62, %v4847_v57  ;;  %vm17624_vm15 = vmmov %vm17620_vm3 }
 0x66c   : > { %4706 = vmatpush1.bf16.msra.mxu0 %v4668_v51  ;;  %v4857_v5 = vpop.permute.xlu1 %4856 }
 0x66d   : > { %4707 = vmatprep.subr.bf16.mxu0 %v4671_v37  ;;  %v5029_v29 = vpop.permute.xlu0 %5028  ;;  %v4870_v32 = vsel %vm17623_vm5, %v4857_v5, %v4859_v8 }
 0x66e   : > { %v4891_v22 = vsel %vm543_vm1, %v4870_v32, 0 }
 0x670   : > { %4708 = vmatpush1.bf16.msra.mxu0 %v4670_v54 }
 0x671   : > { %4709 = vmatprep.subr.bf16.mxu0 %v4673_v16  ;;  %v14653_v40 = vpop.permute.xlu0 %5038 }
 0x674   : > { %4710 = vmatpush1.bf16.msra.mxu0 %v4672_v27 }
 0x675   : > { %11288 = vmatprep.subr.msk.bf16.mxu0 %vm543_vm1, %v4675_v28 }
 0x678   : > { %4712 = vmatpush1.bf16.msra.mxu0 %v4695_v17 }
 0x679   : > { %12181 = vmatprep.subr.bf16.mxu0 %v14532_v59 }
 0x67b   : > { %11289 = vmatmul.mubr.msk.bf16.vlgmr.msra.gmra.mrb[8].mxu0 %vm3972_vm0, %v12914_v61 }
 0x67c   : > { %12182 = vmatpush3.bf16.msra.mxu0 %v14532_v59  ;;  %4745 = vmatprep.mubr.bf16.mxu0 %v14279_v52  ;;  %v4855_v59 = vpop.permute.xlu1 %4854 }
 0x67d   : > { %12183 = vmatprep.subr.bf16.mxu0 %v14549_v7 }
 0x680   : > { %12184 = vmatpush3.bf16.msra.mxu0 %v14549_v7  ;;  %v4863_v7 = vsel %vm17615_vm10, %v4835_v26, %v14598_v45  ;;  %v4861_v11 = vpop.permute.xlu1 %4860  ;;  %vm17621_vm10 = vmmov %vm17620_vm3  ;;  %v5043_v26 = vpop.permute.xlu0 %5042 }
 0x681   : > { %12185 = vmatprep.subr.bf16.mxu0 %v14565_v24  ;;  %v4869_v36 = vsel %vm17621_vm10, %v4853_v1, %v4855_v59  ;;  %v4871_v41 = vsel %vm17624_vm15, %v4859_v8, %v4861_v11  ;;  %v4897_v34 = vsel %vm543_vm1, %v4861_v11, 0  ;;  %vm17626_vm3 = vmmov %vm17625_vm6 }
 0x682   : > { %v5058_v54 = vsel %vm17626_vm3, %v5029_v29, %v5031_v18  ;;  %vm17627_vm10 = vmmov %vm17626_vm3 }
 0x683   : > { %11290 = vmatmul.mubr.msk.bf16.gmra.mrb[12].mxu0 %vm3972_vm0, %v12915_v2  ;;  %vm17628_vm4 = vmmov %vm17626_vm3 }
 0x684   : > { %12186 = vmatpush3.bf16.msra.mxu0 %v14565_v24  ;;  %12191 = vmatprep.mubr.msk.bf16.mxu0 %vm3972_vm0, %v12914_v61  ;;  %v14646_v24 = vpop.permute.xlu1 %5032  ;;  %v5041_v42 = vpop.permute.xlu0 %5040  ;;  %vm17629_vm5 = vmmov %vm17626_vm3 }
 0x685   : > { %12187 = vmatprep.subr.bf16.mxu0 %v4659_v43  ;;  %v5059_v37 = vsel %vm17625_vm6, %v5031_v18, %v14646_v24  ;;  %vm17630_vm15 = vmmov %vm17626_vm3 }
 0x686   : > { %v5062_v57 = vsel %vm17630_vm15, %v5041_v42, %v5043_v26  ;;  %vm17631_vm6 = vmmov %vm17626_vm3 }
 0x688   : > { %12188 = vmatpush3.bf16.msra.mxu0 %v4659_v43  ;;  %v5037_v38 = vpop.permute.xlu1 %5036 }
 0x689   : > { %12819 = vmatprep.subr.msk.bf16.mxu0 %vm543_vm1, %v4665_v23  ;;  %v12916_v23 = vld [vmem:[%s17464_s3 + $0x50] sm:$0xff]   ;;  %v5061_v16 = vsel %vm17627_vm10, %v5037_v38, %v14653_v40  ;;  %vm17632_vm10 = vmmov %vm17626_vm3 }
 0x68c   : > { %12190 = vmatpush3.bf16.msra.mxu0 %v4701_v63  ;;  %v5035_v43 = vpop.permute.xlu1 %5034 }
 0x68d   : > { %4899 = vmatprep.subr.bf16.mxu0 %v4863_v7  ;;  %v5060_v27 = vsel %vm17628_vm4, %v5035_v43, %v5037_v38  ;;  %vm17633_vm4 = vmmov %vm17626_vm3 }
 0x68f   : > { %12192 = vmatmul.mubr.msk.bf16.vlgmr.msra.gmra.mrb[16].mxu0 %vm3972_vm0, %v12915_v2 }
 0x690   : > { %4900 = vmatpush1.bf16.msra.mxu0 %v4862_v14  ;;  %4931 = vmatprep.mubr.bf16.mxu0 %v14279_v52  ;;  %v5045_v35 = vpop.permute.xlu1 %5044 }
 0x691   : > { %4901 = vmatprep.subr.bf16.mxu0 %v4865_v19  ;;  %v5063_v53 = vsel %vm17629_vm5, %v5043_v26, %v5045_v35  ;;  %vm17634_vm5 = vcmask 744448  }
 0x692   : > { %vm17635_vm15 = vmmov %vm17634_vm5 }
 0x694   : > { %4902 = vmatpush1.bf16.msra.mxu0 %v4864_v20  ;;  %v5049_v47 = vpop.permute.xlu1 %5048 }
 0x695   : > { %4903 = vmatprep.subr.bf16.mxu0 %v4867_v25 }
 0x698   : > { %4904 = vmatpush1.bf16.msra.mxu0 %v4866_v30  ;;  %v5047_v33 = vpop.permute.xlu1 %5046 }
 0x699   : > { %4905 = vmatprep.subr.bf16.mxu0 %v4869_v36  ;;  %v5064_v61 = vsel %vm17626_vm3, %v5047_v33, %v5049_v47  ;;  %vm17637_vm3 = vmmov %vm17634_vm5  ;;  %v12920_v33 = vld [vmem:[%s17464_s3 + $0x70] sm:$0xff]  }
 0x69a   : > { %vm17643_vm8 = vmmov %vm17637_vm3 }
 0x69c   : > { %4906 = vmatpush1.bf16.msra.mxu0 %v4868_v39 }
 0x69d   : > { %11299 = vmatprep.subr.msk.bf16.mxu0 %vm543_vm1, %v4871_v41 }
 0x6a0   : > { %4908 = vmatpush1.bf16.msra.mxu0 %v4891_v22 }
 0x6a1   : > { %12195 = vmatprep.subr.bf16.mxu0 %v14598_v45 }
 0x6a3   : > { %11300 = vmatmul.mubr.msk.bf16.vlgmr.msra.gmra.mrb[8].mxu0 %vm3972_vm0, %v12916_v23 }
 0x6a4   : > { %12196 = vmatpush3.bf16.msra.mxu0 %v14598_v45  ;;  %4941 = vmatprep.mubr.bf16.mxu0 %v14279_v52  ;;  %v5053_v45 = vpop.permute.xlu0 %5052 }
 0x6a5   : > { %12197 = vmatprep.subr.bf16.mxu0 %v14610_v3 }
 0x6a8   : > { %12198 = vmatpush3.bf16.msra.mxu0 %v14610_v3  ;;  %v5051_v51 = vpop.permute.xlu0 %5050  ;;  %v5055_v3 = vpop.permute.xlu1 %5054 }
 0x6a9   : > { %12199 = vmatprep.subr.bf16.mxu0 %v14617_v58  ;;  %v5065_v17 = vsel %vm17631_vm6, %v5049_v47, %v5051_v51  ;;  %v5066_v1 = vsel %vm17632_vm10, %v5053_v45, %v5055_v3  ;;  %vm17636_vm6 = vmmov %vm17634_vm5 }
 0x6aa   : > { %v5087_v6 = vsel %vm543_vm1, %v5066_v1, 0  ;;  %vm17638_vm10 = vmmov %vm17637_vm3 }
 0x6ab   : > { %11301 = vmatmul.mubr.msk.bf16.gmra.mrb[12].mxu0 %vm3972_vm0, %v12917_v48 }
 0x6ac   : > { %12200 = vmatpush3.bf16.msra.mxu0 %v14617_v58  ;;  %12205 = vmatprep.mubr.msk.bf16.mxu0 %vm3972_vm0, %v12916_v23  ;;  %v5057_v56 = vpop.permute.xlu0 %5056  ;;  %v5227_v28 = vpop.permute.xlu1 %5226 }
 0x6ad   : > { %12201 = vmatprep.subr.bf16.mxu0 %v4855_v59  ;;  %v5067_v2 = vsel %vm17633_vm4, %v5055_v3, %v5057_v56  ;;  %vm17639_vm4 = vmmov %vm17637_vm3 }
 0x6b0   : > { %12202 = vmatpush3.bf16.msra.mxu0 %v4855_v59  ;;  %v14687_v58 = vpop.permute.xlu0 %5228  ;;  %v5225_v62 = vpop.permute.xlu1 %5224  ;;  %v12918_v59 = vld [vmem:[%s17464_s3 + $0x60] sm:$0xff]  }
 0x6b1   : > { %12820 = vmatprep.subr.msk.bf16.mxu0 %vm543_vm1, %v4861_v11  ;;  %v12919_v11 = vld [vmem:[%s17464_s3 + $0x68] sm:$0xff]   ;;  %v5255_v25 = vsel %vm17634_vm5, %v5227_v28, %v14687_v58  ;;  %v5254_v30 = vsel %vm17635_vm15, %v5225_v62, %v5227_v28  ;;  %vm17640_vm5 = vmmov %vm17637_vm3 }
 0x6b2   : > { %vm17641_vm15 = vmmov %vm17637_vm3 }
 0x6b4   : > { %12204 = vmatpush3.bf16.msra.mxu0 %v4897_v34  ;;  %v5233_v5 = vpop.permute.xlu0 %5232  ;;  %v5235_v8 = vpop.permute.xlu1 %5234 }
 0x6b5   : > { %5095 = vmatprep.subr.bf16.mxu0 %v5059_v37  ;;  %v5257_v36 = vsel %vm17636_vm6, %v5233_v5, %v5235_v8  ;;  %vm17642_vm6 = vmmov %vm17637_vm3  ;;  %v12921_v37 = vld [vmem:[%s17464_s3 + $0x78] sm:$0xff]  }
 0x6b7   : > { %12206 = vmatmul.mubr.msk.bf16.vlgmr.msra.gmra.mrb[16].mxu0 %vm3972_vm0, %v12917_v48 }
 0x6b8   : > { %5096 = vmatpush1.bf16.msra.mxu0 %v5058_v54  ;;  %5127 = vmatprep.mubr.bf16.mxu0 %v14279_v52  ;;  %v5231_v63 = vpop.permute.xlu0 %5230  ;;  %v5239_v7 = vpop.permute.xlu1 %5238 }
 0x6b9   : > { %5097 = vmatprep.subr.bf16.mxu0 %v5061_v16  ;;  %v5256_v39 = vsel %vm17637_vm3, %v5231_v63, %v5233_v5 }
 0x6bc   : > { %5098 = vmatpush1.bf16.msra.mxu0 %v5060_v27  ;;  %v5241_v14 = vpop.permute.xlu0 %5240  ;;  %v5237_v18 = vpop.permute.xlu1 %5236 }
 0x6bd   : > { %5099 = vmatprep.subr.bf16.mxu0 %v5063_v53  ;;  %v5259_v32 = vsel %vm17638_vm10, %v5239_v7, %v5241_v14  ;;  %v5258_v41 = vsel %vm17639_vm4, %v5237_v18, %v5239_v7  ;;  %v12922_v18 = vld [vmem:[%s17464_s3 + $0x80] sm:$0xff]  }
 0x6c0   : > { %5100 = vmatpush1.bf16.msra.mxu0 %v5062_v57  ;;  %v5245_v19 = vpop.permute.xlu0 %5244  ;;  %v5249_v20 = vpop.permute.xlu1 %5248 }
 0x6c1   : > { %5101 = vmatprep.subr.bf16.mxu0 %v5065_v17 }
 0x6c4   : > { %5102 = vmatpush1.bf16.msra.mxu0 %v5064_v61  ;;  %v5243_v29 = vpop.permute.xlu0 %5242  ;;  %v5247_v38 = vpop.permute.xlu1 %5246 }
 0x6c5   : > { %11310 = vmatprep.subr.msk.bf16.mxu0 %vm543_vm1, %v5067_v2  ;;  %v5261_v22 = vsel %vm17640_vm5, %v5245_v19, %v5247_v38  ;;  %v5260_v26 = vsel %vm17641_vm15, %v5243_v29, %v5245_v19  ;;  %v12923_v19 = vld [vmem:[%s17464_s3 + $0x88] sm:$0xff]  }
 0x6c8   : > { %5104 = vmatpush1.bf16.msra.mxu0 %v5087_v6  ;;  %v5253_v43 = vpop.permute.xlu1 %5252 }
 0x6c9   : > { %12209 = vmatprep.subr.bf16.mxu0 %v14646_v24  ;;  %v5289_v27 = vsel %vm543_vm1, %v5253_v43, 0 }
 0x6cb   : > { %11311 = vmatmul.mubr.msk.bf16.vlgmr.msra.gmra.mrb[8].mxu0 %vm3972_vm0, %v12918_v59 }
 0x6cc   : > { %12210 = vmatpush3.bf16.msra.mxu0 %v14646_v24  ;;  %5137 = vmatprep.mubr.bf16.mxu0 %v14279_v52  ;;  %v5093_v24 = vsel %vm543_vm1, %v5057_v56, 0  ;;  %v5425_v48 = vpop.permute.xlu1 %5424 }
 0x6cd   : > { %12211 = vmatprep.subr.bf16.mxu0 %v14653_v40 }
 0x6d0   : > { %12212 = vmatpush3.bf16.msra.mxu0 %v14653_v40  ;;  %v5251_v40 = vpop.permute.xlu0 %5250 }
 0x6d1   : > { %12213 = vmatprep.subr.bf16.mxu0 %v5045_v35  ;;  %v5263_v42 = vsel %vm17643_vm8, %v5251_v40, %v5253_v43  ;;  %vm17644_vm8 = vcmask 736256  }
 0x6d2   : > { %vm17645_vm3 = vmmov %vm17644_vm8 }
 0x6d3   : > { %11312 = vmatmul.mubr.msk.bf16.gmra.mrb[12].mxu0 %vm3972_vm0, %v12919_v11  ;;  %vm17646_vm10 = vmmov %vm17645_vm3 }
 0x6d4   : > { %12214 = vmatpush3.bf16.msra.mxu0 %v5045_v35  ;;  %12219 = vmatprep.mubr.msk.bf16.mxu0 %vm3972_vm0, %v12918_v59  ;;  %v5423_v23 = vpop.permute.xlu0 %5422  ;;  %v5262_v35 = vsel %vm17642_vm6, %v5249_v20, %v5251_v40  ;;  %vm17647_vm4 = vmmov %vm17645_vm3 }
 0x6d5   : > { %12215 = vmatprep.subr.bf16.mxu0 %v5051_v51  ;;  %v5283_v45 = vsel %vm543_vm1, %v5262_v35, 0  ;;  %v5451_v53 = vsel %vm17644_vm8, %v5423_v23, %v5425_v48  ;;  %vm17648_vm5 = vmmov %vm17645_vm3 }
 0x6d6   : > { %vm17649_vm15 = vmmov %vm17645_vm3 }
 0x6d7   : > { %vm17650_vm6 = vmmov %vm17645_vm3 }
 0x6d8   : > { %12216 = vmatpush3.bf16.msra.mxu0 %v5051_v51  ;;  %v5421_v47 = vpop.permute.xlu0 %5420  ;;  %v5429_v51 = vpop.permute.xlu1 %5428  ;;  %vm17651_vm8 = vmmov %vm17645_vm3 }
 0x6d9   : > { %12821 = vmatprep.subr.msk.bf16.mxu0 %vm543_vm1, %v5057_v56  ;;  %v5450_v57 = vsel %vm17645_vm3, %v5421_v47, %v5423_v23 }
 0x6dc   : > { %12218 = vmatpush3.bf16.msra.mxu0 %v5093_v24  ;;  %v5431_v34 = vpop.permute.xlu0 %5430  ;;  %v5427_v54 = vpop.permute.xlu1 %5426 }
 0x6dd   : > { %5291 = vmatprep.subr.bf16.mxu0 %v5255_v25  ;;  %v5453_v17 = vsel %vm17646_vm10, %v5429_v51, %v5431_v34  ;;  %v5452_v61 = vsel %vm17647_vm4, %v5427_v54, %v5429_v51  ;;  %vm17652_vm10 = vmmov %vm17645_vm3 }
 0x6df   : > { %12220 = vmatmul.mubr.msk.bf16.vlgmr.msra.gmra.mrb[16].mxu0 %vm3972_vm0, %v12919_v11 }
 0x6e0   : > { %5292 = vmatpush1.bf16.msra.mxu0 %v5254_v30  ;;  %5323 = vmatprep.mubr.bf16.mxu0 %v14279_v52  ;;  %v5435_v3 = vpop.permute.xlu0 %5434  ;;  %v5437_v16 = vpop.permute.xlu1 %5436 }
 0x6e1   : > { %5293 = vmatprep.subr.bf16.mxu0 %v5257_v36  ;;  %v5455_v1 = vsel %vm17648_vm5, %v5435_v3, %v5437_v16 }
 0x6e4   : > { %5294 = vmatpush1.bf16.msra.mxu0 %v5256_v39  ;;  %v5433_v56 = vpop.permute.xlu0 %5432  ;;  %v5441_v28 = vpop.permute.xlu1 %5440 }
 0x6e5   : > { %5295 = vmatprep.subr.bf16.mxu0 %v5259_v32  ;;  %v5454_v5 = vsel %vm17649_vm15, %v5433_v56, %v5435_v3 }
 0x6e8   : > { %5296 = vmatpush1.bf16.msra.mxu0 %v5258_v41  ;;  %v5439_v62 = vpop.permute.xlu1 %5438 }
 0x6e9   : > { %5297 = vmatprep.subr.bf16.mxu0 %v5261_v22 }
 0x6ec   : > { %5298 = vmatpush1.bf16.msra.mxu0 %v5260_v26  ;;  %v5447_v59 = vpop.permute.xlu1 %5446 }
 0x6ed   : > { %11321 = vmatprep.subr.msk.bf16.mxu0 %vm543_vm1, %v5263_v42 }
 0x6f0   : > { %5300 = vmatpush1.bf16.msra.mxu0 %v5283_v45 }
 0x6f1   : > { %12223 = vmatprep.subr.bf16.mxu0 %v14687_v58 }
 0x6f3   : > { %11322 = vmatmul.mubr.msk.bf16.vlgmr.msra.gmra.mrb[8].mxu0 %vm3972_vm0, %v12920_v33 }
 0x6f4   : > { %12224 = vmatpush3.bf16.msra.mxu0 %v14687_v58  ;;  %5333 = vmatprep.mubr.bf16.mxu0 %v14279_v52  ;;  %v5445_v58 = vpop.permute.xlu0 %5444 }
 0x6f5   : > { %12225 = vmatprep.subr.bf16.mxu0 %v5235_v8  ;;  %v5458_v7 = vsel %vm17645_vm3, %v5445_v58, %v5447_v59 }
 0x6f8   : > { %12226 = vmatpush3.bf16.msra.mxu0 %v5235_v8  ;;  %v5443_v2 = vpop.permute.xlu0 %5442  ;;  %v5456_v8 = vsel %vm17651_vm8, %v5439_v62, %v5441_v28 }
 0x6f9   : > { %12227 = vmatprep.subr.bf16.mxu0 %v5241_v14  ;;  %v5457_v6 = vsel %vm17650_vm6, %v5441_v28, %v5443_v2 }
 0x6fb   : > { %11323 = vmatmul.mubr.msk.bf16.gmra.mrb[12].mxu0 %vm3972_vm0, %v12921_v37 }
 0x6fc   : > { %12228 = vmatpush3.bf16.msra.mxu0 %v5241_v14  ;;  %12233 = vmatprep.mubr.msk.bf16.mxu0 %vm3972_vm0, %v12920_v33  ;;  %v5449_v63 = vpop.permute.xlu0 %5448  ;;  %v5479_v14 = vsel %vm543_vm1, %v5458_v7, 0 }
 0x6fd   : > { %12229 = vmatprep.subr.bf16.mxu0 %v5247_v38  ;;  %v5459_v11 = vsel %vm17652_vm10, %v5447_v59, %v5449_v63  ;;  %v5485_v20 = vsel %vm543_vm1, %v5449_v63, 0 }
 0x700   : > { %12230 = vmatpush3.bf16.msra.mxu0 %v5247_v38  ;;  %v14770_v30 = vpop.permute.xlu0 %5612 }
 0x701   : > { %12822 = vmatprep.subr.msk.bf16.mxu0 %vm543_vm1, %v5253_v43 }
 0x704   : > { %12232 = vmatpush3.bf16.msra.mxu0 %v5289_v27  ;;  %v5623_v56 = vpop.permute.xlu0 %5622 }
 0x705   : > { %5487 = vmatprep.subr.bf16.mxu0 %v5451_v53 }
 0x707   : > { %12234 = vmatmul.mubr.msk.bf16.vlgmr.msra.gmra.mrb[16].mxu0 %vm3972_vm0, %v12921_v37 }
 0x708   : > { %5488 = vmatpush1.bf16.msra.mxu0 %v5450_v57  ;;  %5519 = vmatprep.mubr.bf16.mxu0 %v14279_v52 }
 0x709   : > { %5489 = vmatprep.subr.bf16.mxu0 %v5453_v17 }
 0x70c   : > { %5490 = vmatpush1.bf16.msra.mxu0 %v5452_v61 }
 0x70d   : > { %5491 = vmatprep.subr.bf16.mxu0 %v5455_v1 }
 0x710   : > { %5492 = vmatpush1.bf16.msra.mxu0 %v5454_v5 }
 0x711   : > { %5493 = vmatprep.subr.bf16.mxu0 %v5457_v6 }
 0x714   : > { %5494 = vmatpush1.bf16.msra.mxu0 %v5456_v8 }
 0x715   : > { %11332 = vmatprep.subr.msk.bf16.mxu0 %vm543_vm1, %v5459_v11 }
 0x718   : > { %5496 = vmatpush1.bf16.msra.mxu0 %v5479_v14 }
 0x719   : > { %12237 = vmatprep.subr.bf16.mxu0 %v5425_v48 }
 0x71b   : > { %11333 = vmatmul.mubr.msk.bf16.vlgmr.msra.gmra.mrb[8].mxu0 %vm3972_vm0, %v12922_v18 }
 0x71c   : > { %12238 = vmatpush3.bf16.msra.mxu0 %v5425_v48  ;;  %5529 = vmatprep.mubr.bf16.mxu0 %v14279_v52  ;;  %v14767_v52 = vpop.permute.xlu1 %5607 }
 0x71d   : > { %12239 = vmatprep.subr.bf16.mxu0 %v5431_v34 }
 0x720   : > { %12240 = vmatpush3.bf16.msra.mxu0 %v5431_v34  ;;  %v5618_v45 = vpop.permute.xlu1 %5617 }
 0x721   : > { %12241 = vmatprep.subr.bf16.mxu0 %v5437_v16 }
 0x723   : > { %11334 = vmatmul.mubr.msk.bf16.gmra.mrb[12].mxu0 %vm3972_vm0, %v12923_v19 }
 0x724   : > { %12242 = vmatpush3.bf16.msra.mxu0 %v5437_v16  ;;  %12247 = vmatprep.mubr.msk.bf16.mxu0 %vm3972_vm0, %v12922_v18 }
 0x725   : > { %12243 = vmatprep.subr.bf16.mxu0 %v5443_v2 }
 0x728   : > { %12244 = vmatpush3.bf16.msra.mxu0 %v5443_v2 }
 0x729   : > { %12823 = vmatprep.subr.msk.bf16.mxu0 %vm543_vm1, %v5449_v63 }
 0x72c   : > { %12246 = vmatpush3.bf16.msra.mxu0 %v5485_v20 }
 0x72f   : > { %12248 = vmatmul.mubr.msk.bf16.vlgmr.msra.gmra.mrb[16].mxu0 %vm3972_vm0, %v12923_v19 }
 0x7ee   : > { %v5521_v24 = vpop.f32.mrb[8].mxu0 }
 0x7ef   : > { %v5625_v25 = vadd.f32 %v14767_v52, %v5521_v24  ;;  %v5523_v29 = vpop.f32.mrb[9].mxu0 }
 0x7f0   : > { %v5626_v36 = vadd.f32 %v14767_v52, %v5523_v29  ;;  %v5525_v38 = vpop.f32.mrb[10].mxu0 }
 0x7f1   : > { %vm5637_vm4 = vcmp.gt.f32.partialorder %v5625_v25, 0.0  ;;  %v5649_v39 = vmul.f32 0.2, %v5625_v25  ;;  %v5628_v40 = vadd.f32 %v14770_v30, %v5525_v38  ;;  %v5527_v32 = vpop.f32.mrb[11].mxu0 }
 0x7f2   : > { %vm5638_vm5 = vcmp.gt.f32.partialorder %v5626_v36, 0.0  ;;  %v5650_v41 = vmul.f32 0.2, %v5626_v36  ;;  %v5629_v43 = vadd.f32 %v14770_v30, %v5527_v32 }
 0x7f3   : > { %v5661_v22 = vsel %vm5637_vm4, %v5625_v25, %v5649_v39  ;;  %vm5640_vm0 = vcmp.gt.f32.partialorder %v5628_v40, 0.0  ;;  %v5652_v23 = vmul.f32 0.2, %v5628_v40 }
 0x7f4   : > { %v5673_v26 = vsel %vm13500_vm12, %v5661_v22, 0.0  ;;  %v5662_v35 = vsel %vm5638_vm5, %v5626_v36, %v5650_v41  ;;  %vm5641_vm15 = vcmp.gt.f32.partialorder %v5629_v43, 0.0  ;;  %v5653_v42 = vmul.f32 0.2, %v5629_v43 }
 0x7f5   : > { %v5674_v48 = vsel %vm13505_vm14, %v5662_v35, 0.0  ;;  %v5664_v47 = vsel %vm5640_vm0, %v5628_v40, %v5652_v23 }
 0x7f6   : > { %v11749_v33 = vpack.c.bf16 %v5674_v48, %v5673_v26  ;;  %v5676_v51 = vsel %vm13500_vm12, %v5664_v47, 0.0  ;;  %v5665_v34 = vsel %vm5641_vm15, %v5629_v43, %v5653_v42  ;;  %v5531_v37 = vpop.f32.mrb[12].mxu0 }
 0x7f7   : > { %v5677_v54 = vsel %vm13505_vm14, %v5665_v34, 0.0  ;;  %v5631_v3 = vadd.f32 %v5618_v45, %v5531_v37  ;;  %v5533_v16 = vpop.f32.mrb[13].mxu0 }
 0x7f8   : > { %v11751_v27 = vpack.c.bf16 %v5677_v54, %v5676_v51  ;;  %v5632_v53 = vadd.f32 %v5618_v45, %v5533_v16  ;;  %v5535_v28 = vpop.f32.mrb[14].mxu0  ;;  %v5717_v57 = vrot.slane %v11749_v33, 6 }
 0x7f9   : > { %vm5643_vm6 = vcmp.gt.f32.partialorder %v5631_v3, 0.0  ;;  %v5655_v58 = vmul.f32 0.2, %v5631_v3  ;;  %v5634_v17 = vadd.f32 %v5623_v56, %v5535_v28  ;;  %v5537_v61 = vpop.f32.mrb[15].mxu0 }
 0x7fa   : > { %v5720_v62 = vrot.slane %v11751_v27, 6  ;;  %vm5644_vm8 = vcmp.gt.f32.partialorder %v5632_v53, 0.0  ;;  %v5656_v1 = vmul.f32 0.2, %v5632_v53  ;;  %v5635_v2 = vadd.f32 %v5623_v56, %v5537_v61  ;;  %5739 = vrot.lane.b32.xlu1 %v5717_v57, %s13112_s19 }
 0x7fb   : > { %v5667_v5 = vsel %vm5643_vm6, %v5631_v3, %v5655_v58  ;;  %vm5646_vm3 = vcmp.gt.f32.partialorder %v5634_v17, 0.0  ;;  %v5658_v6 = vmul.f32 0.2, %v5634_v17  ;;  %v5719_v59 = vrot.slane %v5717_v57, 4 }
 0x7fc   : > { %v5679_v8 = vsel %vm13500_vm12, %v5667_v5, 0.0  ;;  %v5668_v63 = vsel %vm5644_vm8, %v5632_v53, %v5656_v1  ;;  %vm5647_vm10 = vcmp.gt.f32.partialorder %v5635_v2, 0.0  ;;  %v5659_v7 = vmul.f32 0.2, %v5635_v2 }
 0x7fd   : > { %v5680_v11 = vsel %vm13505_vm14, %v5668_v63, 0.0  ;;  %v5670_v14 = vsel %vm5646_vm3, %v5634_v17, %v5658_v6  ;;  %v5721_v18 = vsel %vm13531_vm7, %v5719_v59, %v5720_v62  ;;  %v5725_v38 = vrot.slane %v5720_v62, 4 }
 0x7fe   : > { %v11753_v19 = vpack.c.bf16 %v5680_v11, %v5679_v8  ;;  %v5682_v20 = vsel %vm13500_vm12, %v5670_v14, 0.0  ;;  %v5671_v24 = vsel %vm5647_vm10, %v5635_v2, %v5659_v7  ;;  %5743 = vrot.lane.b32.xlu0 %v5721_v18, %s13112_s19  ;;  %v5797_v14 = vld [vmem:[#allocation2 + $0x14] sm:$0xf]  ;;  %v5795_v18 = vld [vmem:[#allocation2 + $0x8] sm:$0xf]  ;;  %vm17653_vm6 = vcmask 154624  }
 0x7ff   : > { %v5683_v25 = vsel %vm13505_vm14, %v5671_v24, 0.0  ;;  %v5799_v24 = vld [vmem:[#allocation2 + $0x20] sm:$0xf]  ;;  %vm17654_vm8 = vmmov %vm17653_vm6 }
 0x800   : > { %v5726_v29 = vrot.slane %v11753_v19, 6  ;;  %v11755_v36 = vpack.c.bf16 %v5683_v25, %v5682_v20  ;;  %v14823_v19 = vcombine.low %v5795_v18, %v5797_v14  ;;  %v5801_v20 = vld [vmem:[#allocation2 + $0x2c] sm:$0xf]  ;;  %vm17655_vm3 = vmmov %vm17653_vm6 }
 0x801   : > { %v14831_v25 = vcombine.low %v5799_v24, %v5801_v20  ;;  %vm17656_vm10 = vmmov %vm17655_vm3 }
 0x802   : > { %v5732_v39 = vrot.slane %v11755_v36, 6  ;;  %v12249_v40 = vpop.f32.mrb[16].mxu0  ;;  %v5727_v32 = vsel %vm13531_vm7, %v5725_v38, %v5726_v29  ;;  %v5731_v41 = vrot.slane %v5726_v29, 4  ;;  %v5805_v29 = vld [vmem:[#allocation2 + $0x44] sm:$0xf] }
 0x803   : > { %v5633_v43 = vadd.f32 %v12249_v40, %v5618_v45  ;;  %v5574_v22 = vpop.f32.mrb[17].mxu0  ;;  %5747 = vrot.lane.b32.xlu1 %v5727_v32, %s13112_s19  ;;  %v5803_v36 = vld [vmem:[#allocation2 + $0x38] sm:$0xf]  ;;  %v5807_v40 = vld [vmem:[#allocation2 + $0x50] sm:$0xf] }
 0x804   : > { %v5627_v23 = vadd.f32 %v14767_v52, %v5574_v22  ;;  %v12250_v26 = vpop.f32.mrb[18].mxu0  ;;  %v5733_v35 = vsel %vm13531_vm7, %v5731_v41, %v5732_v39  ;;  %v5737_v7 = vrot.slane %v5732_v39, 4  ;;  %v14839_v38 = vcombine.low %v5803_v36, %v5805_v29  ;;  %v5809_v39 = vld [vmem:[#allocation2 + $0x5c] sm:$0xf] }
 0x805   : > { %vm5645_vm4 = vcmp.gt.f32.partialorder %v5633_v43, 0.0  ;;  %v5657_v42 = vmul.f32 0.2, %v5633_v43  ;;  %v5636_v48 = vadd.f32 %v12250_v26, %v5623_v56  ;;  %v5577_v47 = vpop.f32.mrb[19].mxu0  ;;  %5751 = vrot.lane.b32.xlu0 %v5733_v35, %s13112_s19  ;;  %v14847_v32 = vcombine.low %v5807_v40, %v5809_v39 }
 0x806   : > { %vm5639_vm5 = vcmp.gt.f32.partialorder %v5627_v23, 0.0  ;;  %v5651_v33 = vmul.f32 0.2, %v5627_v23  ;;  %v5630_v51 = vadd.f32 %v14770_v30, %v5577_v47 }
 0x807   : > { %v5669_v45 = vsel %vm5645_vm4, %v5633_v43, %v5657_v42  ;;  %vm5648_vm0 = vcmp.gt.f32.partialorder %v5636_v48, 0.0  ;;  %v5660_v34 = vmul.f32 0.2, %v5636_v48  ;;  %vm17657_vm4 = vmmov %vm17655_vm3 }
 0x808   : > { %v5681_v52 = vsel %vm13520_vm11, %v5669_v45, 0.0  ;;  %v5663_v37 = vsel %vm5639_vm5, %v5627_v23, %v5651_v33  ;;  %vm5642_vm15 = vcmp.gt.f32.partialorder %v5630_v51, 0.0  ;;  %v5654_v54 = vmul.f32 0.2, %v5630_v51 }
 0x809   : > { %v11754_v3 = vpack.c.bf16 %v5681_v52, %v5681_v52  ;;  %v5675_v16 = vsel %vm13520_vm11, %v5663_v37, 0.0  ;;  %v5672_v56 = vsel %vm5648_vm0, %v5636_v48, %v5660_v34  ;;  %vm17658_vm5 = vcmask 412674   ;;  %vm17659_vm0 = vmmov %vm17655_vm3 }
 0x80a   : > { %v11750_v27 = vpack.c.bf16 %v5675_v16, %v5675_v16  ;;  %v5684_v53 = vsel %vm13520_vm11, %v5672_v56, 0.0  ;;  %v5666_v28 = vsel %vm5642_vm15, %v5630_v51, %v5654_v54  ;;  %vm17660_vm15 = vcmask 412672  }
 0x80b   : > { %v5729_v30 = vrot.slane %v11754_v3, 6  ;;  %v11756_v57 = vpack.c.bf16 %v5684_v53, %v5684_v53  ;;  %v5678_v58 = vsel %vm13520_vm11, %v5666_v28, 0.0 }
 0x80c   : > { %v5718_v17 = vrot.slane %v11750_v27, 6  ;;  %v11752_v61 = vpack.c.bf16 %v5678_v58, %v5678_v58 }
 0x80d   : > { %v5735_v62 = vrot.slane %v11756_v57, 6  ;;  %v5734_v1 = vrot.slane %v5729_v30, 4 }
 0x80e   : > { %v5723_v2 = vrot.slane %v11752_v61, 6  ;;  %5741 = vrot.lane.b32.xlu1 %v5718_v17, %s13112_s19  ;;  %v5722_v5 = vrot.slane %v5718_v17, 4 }
 0x80f   : > { %v5736_v6 = vsel %vm13531_vm7, %v5734_v1, %v5735_v62  ;;  %v5738_v11 = vrot.slane %v5735_v62, 4 }
 0x810   : > { %v5724_v59 = vsel %vm13531_vm7, %v5722_v5, %v5723_v2  ;;  %v5728_v8 = vrot.slane %v5723_v2, 4 }
 0x811   : > { %5745 = vrot.lane.b32.xlu0 %v5724_v59, %s13112_s19 }
 0x812   : > { %v5730_v63 = vsel %vm13531_vm7, %v5728_v8, %v5729_v30 }
 0x813   : > { %5749 = vrot.lane.b32.xlu1 %v5730_v63, %s13112_s19 }
 0x815   : > { %5753 = vrot.lane.b32.xlu0 %v5736_v6, %s13112_s19 }
 0x817   : > { %5755 = vrot.lane.b32.xlu1 %v5737_v7, %s13112_s19 }
 0x819   : > { %5757 = vrot.lane.b32.xlu0 %v5738_v11, %s13112_s19 }
 0x81b   : > { %5927 = vrot.lane.b32.xlu1 %v13594_v60, %s13104_s24 }
 0x81d   : > { %5929 = vrot.lane.b32.xlu0 %v14823_v19, %s13104_s24 }
 0x81f   : > { %5925 = vrot.lane.b32.xlu1 %v13605_v4, %s13104_s24 }
 0x821   : > { %5933 = vrot.lane.b32.xlu0 %v13618_v13, %s13104_s24 }
 0x823   : > { %5935 = vrot.lane.b32.xlu1 %v14831_v25, %s13104_s24 }
 0x825   : > { %5931 = vrot.lane.b32.xlu0 %v13631_v21, %s13104_s24 }
 0x827   : > { %5939 = vrot.lane.b32.xlu1 %v14076_v44, %s13104_s24 }
 0x829   : > { %5941 = vrot.lane.b32.xlu0 %v14839_v38, %s13104_s24 }
 0x82b   : > { %5937 = vrot.lane.b32.xlu1 %v14085_v50, %s13104_s24 }
 0x82d   : > { %5945 = vrot.lane.b32.xlu0 %v14095_v0, %s13104_s24 }
 0x82f   : > { %5947 = vrot.lane.b32.xlu1 %v14847_v32, %s13104_s24 }
 0x831   : > { %5943 = vrot.lane.b32.xlu0 %v14112_v9, %s13104_s24 }
 0x86c   : > { %v5740_v41 = vpop.permute.xlu1 %5739 }
 0x86d   : > { %v5759_v43 = vrot.slane %v5740_v41, 4 }
 0x86f   : > { %v5764_v22 = vsel %vm17653_vm6, %v5759_v43, %v5740_v41  ;;  %vm17661_vm6 = vmmov %vm17659_vm0 }
 0x870   : > { %5784 = vst.msk [vmem:[#allocation2 + $0x60] sm:$0xcc] %vm13577_vm9, %v5764_v22  ;;  %v5744_v23 = vpop.permute.xlu0 %5743 }
 0x871   : > { %v5760_v26 = vrot.slane %v5744_v23, 4 }
 0x873   : > { %v5766_v35 = vsel %vm17654_vm8, %v5760_v26, %v5744_v23  ;;  %vm17662_vm8 = vmmov %vm17660_vm15 }
 0x874   : > { %5786 = vst.msk [vmem:[#allocation2 + $0x6c] sm:$0xff] %vm13584_vm2, %v5766_v35 }
 0x875   : > { %v5748_v42 = vpop.permute.xlu1 %5747 }
 0x876   : > { %v5761_v48 = vrot.slane %v5748_v42, 4 }
 0x877   : > { %v5752_v47 = vpop.permute.xlu0 %5751  ;;  %v5810_v34 = vld [vmem:[#allocation2 + $0x60] sm:$0xff] }
 0x878   : > { %v5768_v33 = vsel %vm17655_vm3, %v5761_v48, %v5748_v42  ;;  %v5762_v51 = vrot.slane %v5752_v47, 4  ;;  %vm17663_vm3 = vmmov %vm17659_vm0 }
 0x879   : > { %5788 = vst.msk [vmem:[#allocation2 + $0x78] sm:$0xff] %vm13584_vm2, %v5768_v33 }
 0x87a   : > { %v5770_v45 = vsel %vm17656_vm10, %v5762_v51, %v5752_v47  ;;  %vm17664_vm10 = vmmov %vm17662_vm8 }
 0x87b   : > { %v5812_v52 = vld [vmem:[#allocation2 + $0x6c] sm:$0xff]  ;;  %5790 = vst.msk [vmem:[#allocation2 + $0x84] sm:$0xff] %vm13584_vm2, %v5770_v45 }
 0x87c   : > { %v14867_v37 = vcombine.high %v5810_v34, %v5812_v52  ;;  %v14871_v54 = vcombine.low %v5810_v34, %v5812_v52 }
 0x87e   : > { %5951 = vrot.lane.b32.xlu1 %v14867_v37, %s13104_s24 }
 0x880   : > { %v5742_v3 = vpop.permute.xlu1 %5741  ;;  %v5814_v56 = vld [vmem:[#allocation2 + $0x78] sm:$0xff] }
 0x881   : > { %v5765_v16 = vsel %vm17657_vm4, %v5759_v43, %v5742_v3  ;;  %vm17665_vm4 = vmmov %vm17659_vm0 }
 0x882   : > { %v5816_v27 = vld [vmem:[#allocation2 + $0x84] sm:$0xff]  ;;  %5785 = vst.msk [vmem:[#allocation2 + $0x68] sm:$0xc] %vm17658_vm5, %v5765_v16  ;;  %5949 = vrot.lane.b32.xlu1 %v14871_v54, %s13104_s24  ;;  %vm17666_vm5 = vmmov %vm17659_vm0 }
 0x883   : > { %v14877_v53 = vcombine.high %v5814_v56, %v5816_v27  ;;  %v5746_v28 = vpop.permute.xlu0 %5745  ;;  %v14900_v18 = vcombine.low %v5814_v56, %v5816_v27 }
 0x884   : > { %v5767_v30 = vsel %vm17659_vm0, %v5760_v26, %v5746_v28  ;;  %vm17667_vm0 = vcmask 410624  }
 0x885   : > { %5787 = vst.msk [vmem:[#allocation2 + $0x74] sm:$0xf] %vm17660_vm15, %v5767_v30  ;;  %v5750_v57 = vpop.permute.xlu1 %5749  ;;  %5957 = vrot.lane.b32.xlu0 %v14877_v53, %s13104_s24  ;;  %vm17668_vm15 = vcmask 1039360  }
 0x886   : > { %v5769_v58 = vsel %vm17661_vm6, %v5761_v48, %v5750_v57  ;;  %vm17669_vm6 = vmmov %vm17668_vm15 }
 0x887   : > { %5789 = vst.msk [vmem:[#allocation2 + $0x80] sm:$0xf] %vm17662_vm8, %v5769_v58  ;;  %v5754_v17 = vpop.permute.xlu0 %5753  ;;  %vm17670_vm8 = vmmov %vm17669_vm6 }
 0x888   : > { %v5771_v61 = vsel %vm17663_vm3, %v5762_v51, %v5754_v17  ;;  %vm17671_vm3 = vmmov %vm17669_vm6 }
 0x889   : > { %5791 = vst.msk [vmem:[#allocation2 + $0x8c] sm:$0xf] %vm17664_vm10, %v5771_v61  ;;  %v5756_v62 = vpop.permute.xlu1 %5755  ;;  %v5811_v5 = vld [vmem:[#allocation2 + $0x68] sm:$0xf]  ;;  %vm17672_vm10 = vmmov %vm17671_vm3 }
 0x88a   : > { %v5763_v1 = vrot.slane %v5756_v62, 4 }
 0x88b   : > { %v5758_v2 = vpop.permute.xlu0 %5757 }
 0x88c   : > { %v5813_v6 = vld [vmem:[#allocation2 + $0x74] sm:$0xf]  ;;  %v5772_v59 = vsel %vm17665_vm4, %v5763_v1, %v5756_v62  ;;  %v5773_v8 = vsel %vm17666_vm5, %v5763_v1, %v5758_v2  ;;  %vm17673_vm4 = vmmov %vm17671_vm3 }
 0x88d   : > { %v14889_v63 = vcombine.low %v5811_v5, %v5813_v6  ;;  %5792 = vst.msk [vmem:[#allocation2 + $0x90] sm:$0x33] %vm13614_vm13, %v5772_v59  ;;  %v5928_v7 = vpop.permute.xlu1 %5927  ;;  %vm17674_vm5 = vmmov %vm17671_vm3 }
 0x88e   : > { %5793 = vst.msk [vmem:[#allocation2 + $0x98] sm:$0x3] %vm17667_vm0, %v5773_v8  ;;  %v5815_v26 = vld [vmem:[#allocation2 + $0x80] sm:$0xf]  ;;  %vm17675_vm0 = vmmov %vm17671_vm3 }
 0x88f   : > { %5953 = vrot.lane.b32.xlu0 %v14889_v63, %s13104_s24  ;;  %v14896_v11 = vpop.permute.xlu0 %5929 }
 0x890   : > { %v5968_v14 = vsel %vm17668_vm15, %v5928_v7, %v14896_v11  ;;  %v5817_v43 = vld [vmem:[#allocation2 + $0x8c] sm:$0xf]  ;;  %vm17676_vm15 = vmmov %vm17675_vm0 }
 0x891   : > { %v5926_v20 = vpop.permute.xlu1 %5925  ;;  %6015 = vmatprep.subr.bf16.mxu1 %v5968_v14  ;;  %v14918_v42 = vcombine.low %v5815_v26, %v5817_v43  ;;  %v12928_v43 = vld [vmem:[%s17465_s4 + $0x18] sm:$0xff]  }
 0x892   : > { %v5967_v24 = vsel %vm17669_vm6, %v5926_v20, %v5928_v7  ;;  %vm17677_vm6 = vmmov %vm17675_vm0 }
 0x893   : > { %5955 = vrot.lane.b32.xlu0 %v14900_v18, %s13104_s24  ;;  %6016 = vmatpush1.bf16.msra.mxu1 %v5967_v24  ;;  %v5934_v29 = vpop.permute.xlu0 %5933  ;;  %v12927_v24 = vld [vmem:[%s17465_s4 + $0x10] sm:$0xff]  }
 0x894   : > { %v5818_v36 = vld [vmem:[#allocation2 + $0x90] sm:$0x33] }
 0x895   : > { %v14905_v39 = vcombine.low %v5818_v36, %v5818_v36  ;;  %v14907_v40 = vcombine.high %v5818_v36, %v5818_v36  ;;  %v14909_v41 = vpop.permute.xlu1 %5935  ;;  %v14928_v51 = vld [vmem:[#allocation2 + $0x98] ss:$0 sps:$4 sm:$0x33]  }
 0x896   : > { %v5970_v22 = vsel %vm17670_vm8, %v5934_v29, %v14909_v41  ;;  %vm17678_vm8 = vmmov %vm17675_vm0 }
 0x897   : > { %5961 = vrot.lane.b32.xlu1 %v14905_v39, %s13104_s24  ;;  %5963 = vrot.lane.b32.xlu0 %v14907_v40, %s13104_s24  ;;  %v5932_v23 = vpop.permute.xlu0 %5931 }
 0x898   : > { %6017 = vmatprep.subr.bf16.mxu1 %v5970_v22  ;;  %v5969_v35 = vsel %vm17671_vm3, %v5932_v23, %v5934_v29  ;;  %vm17679_vm3 = vmmov %vm17675_vm0  ;;  %v15074_v29 = vld [vmem:[#allocation2 + $0x9c] sm:$0xff] }
 0x899   : > { %v5940_v48 = vpop.permute.xlu1 %5939  ;;  %6018 = vmatpush1.bf16.msra.mxu1 %v5969_v35 }
 0x89b   : > { %6279 = vrot.lane.b32.xlu0 %v13594_v60, %s13105_s27  ;;  %5959 = vrot.lane.b32.xlu1 %v14918_v42, %s13104_s24  ;;  %v14924_v47 = vpop.permute.xlu0 %5941 }
 0x89c   : > { %v5972_v33 = vsel %vm17672_vm10, %v5940_v48, %v14924_v47  ;;  %vm17680_vm10 = vmmov %vm17675_vm0 }
 0x89d   : > { %v5938_v45 = vpop.permute.xlu1 %5937  ;;  %6019 = vmatprep.subr.bf16.mxu1 %v5972_v33 }
 0x89e   : > { %v5971_v34 = vsel %vm17673_vm4, %v5938_v45, %v5940_v48  ;;  %vm17681_vm4 = vmmov %vm17675_vm0 }
 0x89f   : > { %6277 = vrot.lane.b32.xlu0 %v13605_v4, %s13105_s27  ;;  %5965 = vrot.lane.b32.xlu1 %v14928_v51, %s13104_s24  ;;  %v5946_v52 = vpop.permute.xlu0 %5945 }
 0x8a0   : > { %6020 = vmatpush1.bf16.msra.mxu1 %v5971_v34 }
 0x8a1   : > { %v14935_v3 = vpop.permute.xlu1 %5947 }
 0x8a2   : > { %v5974_v16 = vsel %vm17674_vm5, %v5946_v52, %v14935_v3  ;;  %vm5999_vm5 = vcmask 818176  }
 0x8a3   : > { %6287 = vrot.lane.b32.xlu0 %v14831_v25, %s13105_s27  ;;  %6281 = vrot.lane.b32.xlu1 %v14823_v19, %s13105_s27  ;;  %v5944_v56 = vpop.permute.xlu0 %5943 }
 0x8a4   : > { %6021 = vmatprep.subr.bf16.mxu1 %v5974_v16  ;;  %v5973_v27 = vsel %vm17675_vm0, %v5944_v56, %v5946_v52  ;;  %vm17682_vm0 = vcmask 1031168  }
 0x8a5   : > { %6022 = vmatpush1.bf16.msra.mxu1 %v5973_v27 }
 0x8a7   : > { %6291 = vrot.lane.b32.xlu0 %v14076_v44, %s13105_s27  ;;  %6285 = vrot.lane.b32.xlu1 %v13618_v13, %s13105_s27 }
 0x8ab   : > { %6289 = vrot.lane.b32.xlu0 %v14085_v50, %s13105_s27  ;;  %6283 = vrot.lane.b32.xlu1 %v13631_v21, %s13105_s27 }
 0x8af   : > { %6299 = vrot.lane.b32.xlu0 %v14847_v32, %s13105_s27  ;;  %6293 = vrot.lane.b32.xlu1 %v14839_v38, %s13105_s27 }
 0x8b3   : > { %6303 = vrot.lane.b32.xlu0 %v14867_v37, %s13105_s27  ;;  %6297 = vrot.lane.b32.xlu1 %v14095_v0, %s13105_s27 }
 0x8b7   : > { %6301 = vrot.lane.b32.xlu0 %v14871_v54, %s13105_s27  ;;  %6295 = vrot.lane.b32.xlu1 %v14112_v9, %s13105_s27 }
 0x8bb   : > { %6313 = vrot.lane.b32.xlu0 %v14905_v39, %s13105_s27  ;;  %6305 = vrot.lane.b32.xlu1 %v14889_v63, %s13105_s27 }
 0x8bf   : > { %6311 = vrot.lane.b32.xlu0 %v14918_v42, %s13105_s27  ;;  %6309 = vrot.lane.b32.xlu1 %v14877_v53, %s13105_s27 }
 0x8c3   : > { %6317 = vrot.lane.b32.xlu0 %v14928_v51, %s13105_s27  ;;  %6307 = vrot.lane.b32.xlu1 %v14900_v18, %s13105_s27 }
 0x8c7   : > { %6499 = vrot.lane.b32.xlu0 %v14823_v19, %s13106_s30  ;;  %6315 = vrot.lane.b32.xlu1 %v14907_v40, %s13105_s27 }
 0x8cb   : > { %6503 = vrot.lane.b32.xlu0 %v13618_v13, %s13106_s30  ;;  %6497 = vrot.lane.b32.xlu1 %v13594_v60, %s13106_s30 }
 0x8cf   : > { %6501 = vrot.lane.b32.xlu0 %v13631_v21, %s13106_s30  ;;  %6495 = vrot.lane.b32.xlu1 %v13605_v4, %s13106_s30 }
 0x8d3   : > { %6511 = vrot.lane.b32.xlu0 %v14839_v38, %s13106_s30  ;;  %6505 = vrot.lane.b32.xlu1 %v14831_v25, %s13106_s30 }
 0x8d7   : > { %6515 = vrot.lane.b32.xlu0 %v14095_v0, %s13106_s30  ;;  %6509 = vrot.lane.b32.xlu1 %v14076_v44, %s13106_s30 }
 0x8db   : > { %6513 = vrot.lane.b32.xlu0 %v14112_v9, %s13106_s30  ;;  %6507 = vrot.lane.b32.xlu1 %v14085_v50, %s13106_s30 }
 0x8df   : > { %6523 = vrot.lane.b32.xlu0 %v14889_v63, %s13106_s30  ;;  %6517 = vrot.lane.b32.xlu1 %v14847_v32, %s13106_s30 }
 0x8e3   : > { %6527 = vrot.lane.b32.xlu0 %v14877_v53, %s13106_s30  ;;  %6521 = vrot.lane.b32.xlu1 %v14867_v37, %s13106_s30 }
 0x8e7   : > { %6525 = vrot.lane.b32.xlu0 %v14900_v18, %s13106_s30  ;;  %6519 = vrot.lane.b32.xlu1 %v14871_v54, %s13106_s30 }
 0x8eb   : > { %6533 = vrot.lane.b32.xlu0 %v14907_v40, %s13106_s30  ;;  %6531 = vrot.lane.b32.xlu1 %v14905_v39, %s13106_s30 }
 0x8ef   : > { %6715 = vrot.lane.b32.xlu0 %v13594_v60, %s13107_s12  ;;  %6529 = vrot.lane.b32.xlu1 %v14918_v42, %s13106_s30 }
 0x8f0   : > { %v5952_v28 = vpop.permute.xlu1 %5951 }
 0x8f3   : > { %6713 = vrot.lane.b32.xlu0 %v13605_v4, %s13107_s12  ;;  %6535 = vrot.lane.b32.xlu1 %v14928_v51, %s13106_s30 }
 0x8f4   : > { %v5950_v57 = vpop.permute.xlu1 %5949 }
 0x8f5   : > { %v5975_v61 = vsel %vm17677_vm6, %v5950_v57, %v5952_v28  ;;  %v12929_v57 = vld [vmem:[%s17465_s4] sm:$0xff]   ;;  %vm17684_vm6 = vmmov %vm17682_vm0 }
 0x8f7   : > { %6723 = vrot.lane.b32.xlu0 %v14831_v25, %s13107_s12  ;;  %6717 = vrot.lane.b32.xlu1 %v14823_v19, %s13107_s12  ;;  %v5958_v30 = vpop.permute.xlu0 %5957 }
 0x8fb   : > { %6727 = vrot.lane.b32.xlu0 %v14076_v44, %s13107_s12  ;;  %6721 = vrot.lane.b32.xlu1 %v13618_v13, %s13107_s12 }
 0x8ff   : > { %6725 = vrot.lane.b32.xlu0 %v14085_v50, %s13107_s12  ;;  %6719 = vrot.lane.b32.xlu1 %v13631_v21, %s13107_s12 }
 0x901   : > { %v5954_v58 = vpop.permute.xlu0 %5953 }
 0x902   : > { %v5976_v17 = vsel %vm17676_vm15, %v5952_v28, %v5954_v58  ;;  %vm17683_vm15 = vmmov %vm17682_vm0 }
 0x903   : > { %6735 = vrot.lane.b32.xlu0 %v14847_v32, %s13107_s12  ;;  %6729 = vrot.lane.b32.xlu1 %v14839_v38, %s13107_s12 }
 0x904   : > { %6023 = vmatprep.subr.bf16.mxu1 %v5976_v17 }
 0x905   : > { %6024 = vmatpush1.bf16.msra.mxu1 %v5975_v61  ;;  %v5956_v62 = vpop.permute.xlu0 %5955 }
 0x906   : > { %v5977_v59 = vsel %vm17679_vm3, %v5956_v62, %v5958_v30  ;;  %v12930_v62 = vld [vmem:[%s17465_s4 + $0x8] sm:$0xff]   ;;  %vm17686_vm3 = vmmov %vm17682_vm0 }
 0x907   : > { %6739 = vrot.lane.b32.xlu0 %v14867_v37, %s13107_s12  ;;  %6733 = vrot.lane.b32.xlu1 %v14095_v0, %s13107_s12 }
 0x909   : > { %v5962_v1 = vpop.permute.xlu1 %5961  ;;  %v5964_v5 = vpop.permute.xlu0 %5963 }
 0x90a   : > { %v5979_v8 = vsel %vm17680_vm10, %v5962_v1, %v5964_v5  ;;  %vm17687_vm10 = vmmov %vm17682_vm0 }
 0x90b   : > { %6737 = vrot.lane.b32.xlu0 %v14871_v54, %s13107_s12  ;;  %6731 = vrot.lane.b32.xlu1 %v14112_v9, %s13107_s12  ;;  %v6007_v20 = vsel %vm543_vm1, %v5979_v8, 0 }
 0x90d   : > { %v5960_v2 = vpop.permute.xlu1 %5959  ;;  %v15077_v36 = vpop.permute.xlu0 %6279 }
 0x90e   : > { %v5978_v6 = vsel %vm17678_vm8, %v5958_v30, %v5960_v2  ;;  %v6152_v30 = vsel %vm543_vm1, %v14905_v39, 0  ;;  %vm17685_vm8 = vmmov %vm17682_vm0 }
 0x90f   : > { %6749 = vrot.lane.b32.xlu0 %v14905_v39, %s13107_s12  ;;  %6741 = vrot.lane.b32.xlu1 %v14889_v63, %s13107_s12 }
 0x910   : > { %6025 = vmatprep.subr.bf16.mxu1 %v5978_v6 }
 0x911   : > { %6026 = vmatpush1.bf16.msra.mxu1 %v5977_v59  ;;  %v5966_v7 = vpop.permute.xlu1 %5965  ;;  %v15095_v22 = vpop.permute.xlu0 %6277 }
 0x912   : > { %v5980_v14 = vsel %vm17681_vm4, %v5964_v5, %v5966_v7  ;;  %vm17688_vm4 = vmmov %vm17682_vm0 }
 0x913   : > { %6747 = vrot.lane.b32.xlu0 %v14918_v42, %s13107_s12  ;;  %6745 = vrot.lane.b32.xlu1 %v14877_v53, %s13107_s12 }
 0x914   : > { %11372 = vmatprep.subr.msk.bf16.mxu1 %vm543_vm1, %v5980_v14  ;;  %v6158_v14 = vsel %vm543_vm1, %v14928_v51, 0 }
 0x915   : > { %6028 = vmatpush1.bf16.msra.mxu1 %v6007_v20  ;;  %v15108_v23 = vpop.permute.xlu0 %6287 }
 0x916   : > { %12251 = vmatprep.subr.bf16.mxu1 %v14896_v11 }
 0x917   : > { %6753 = vrot.lane.b32.xlu0 %v14928_v51, %s13107_s12  ;;  %6743 = vrot.lane.b32.xlu1 %v14900_v18, %s13107_s12 }
 0x918   : > { %11373 = vmatmul.mubr.msk.bf16.vlgmr.msra.gmra.mrb[24].mxu1 %vm5999_vm5, %v12927_v24 }
 0x919   : > { %12252 = vmatpush3.bf16.msra.mxu1 %v14896_v11  ;;  %6057 = vmatprep.mubr.bf16.mxu1 %v15074_v29  ;;  %v15088_v11 = vpop.permute.xlu1 %6281  ;;  %v15120_v35 = vpop.permute.xlu0 %6291 }
 0x91a   : > { %12253 = vmatprep.subr.bf16.mxu1 %v14909_v41  ;;  %v6320_v20 = vsel %vm17682_vm0, %v15077_v36, %v15088_v11 }
 0x91b   : > { %6935 = vrot.lane.b32.xlu0 %v14823_v19, %s13108_s13  ;;  %6751 = vrot.lane.b32.xlu1 %v14907_v40, %s13107_s12 }
 0x91d   : > { %12254 = vmatpush3.bf16.msra.mxu1 %v14909_v41  ;;  %v15105_v41 = vpop.permute.xlu1 %6285  ;;  %v15130_v33 = vpop.permute.xlu0 %6289 }
 0x91e   : > { %12255 = vmatprep.subr.bf16.mxu1 %v14924_v47 }
 0x91f   : > { %6939 = vrot.lane.b32.xlu0 %v13618_v13, %s13108_s13  ;;  %6933 = vrot.lane.b32.xlu1 %v13594_v60, %s13108_s13 }
 0x920   : > { %11374 = vmatmul.mubr.msk.bf16.gmra.mrb[28].mxu1 %vm5999_vm5, %v12928_v43 }
 0x921   : > { %12256 = vmatpush3.bf16.msra.mxu1 %v14924_v47  ;;  %12265 = vmatprep.mubr.msk.bf16.mxu1 %vm5999_vm5, %v12927_v24  ;;  %v15114_v26 = vpop.permute.xlu1 %6283  ;;  %v6013_v47 = vsel %vm543_vm1, %v5966_v7, 0  ;;  %v15147_v34 = vpop.permute.xlu0 %6299  ;;  %v6319_v24 = vsel %vm17683_vm15, %v15095_v22, %v15077_v36  ;;  %vm17689_vm15 = vmmov %vm17682_vm0 }
 0x922   : > { %12257 = vmatprep.subr.bf16.mxu1 %v14935_v3  ;;  %v6321_v36 = vsel %vm17685_vm8, %v15114_v26, %v15105_v41  ;;  %vm17691_vm8 = vmmov %vm17682_vm0 }
 0x923   : > { %6937 = vrot.lane.b32.xlu0 %v13631_v21, %s13108_s13  ;;  %6931 = vrot.lane.b32.xlu1 %v13605_v4, %s13108_s13 }
 0x925   : > { %12258 = vmatpush3.bf16.msra.mxu1 %v14935_v3  ;;  %v15127_v48 = vpop.permute.xlu1 %6293  ;;  %v15158_v3 = vpop.permute.xlu0 %6303 }
 0x926   : > { %12259 = vmatprep.subr.bf16.mxu1 %v5954_v58  ;;  %v6324_v22 = vsel %vm17686_vm3, %v15120_v35, %v15127_v48  ;;  %vm17692_vm3 = vmmov %vm17682_vm0 }
 0x927   : > { %6947 = vrot.lane.b32.xlu0 %v14839_v38, %s13108_s13  ;;  %6941 = vrot.lane.b32.xlu1 %v14831_v25, %s13108_s13 }
 0x929   : > { %12260 = vmatpush3.bf16.msra.mxu1 %v5954_v58  ;;  %v15140_v45 = vpop.permute.xlu1 %6297  ;;  %v15173_v56 = vpop.permute.xlu0 %6301 }
 0x92a   : > { %12261 = vmatprep.subr.bf16.mxu1 %v5960_v2 }
 0x92b   : > { %6951 = vrot.lane.b32.xlu0 %v14095_v0, %s13108_s13  ;;  %6945 = vrot.lane.b32.xlu1 %v14076_v44, %s13108_s13 }
 0x92d   : > { %12262 = vmatpush3.bf16.msra.mxu1 %v5960_v2  ;;  %v15155_v52 = vpop.permute.xlu1 %6295  ;;  %v15184_v28 = vpop.permute.xlu0 %6313 }
 0x92e   : > { %12824 = vmatprep.subr.msk.bf16.mxu1 %vm543_vm1, %v5966_v7  ;;  %v6325_v26 = vsel %vm17682_vm0, %v15155_v52, %v15140_v45 }
 0x92f   : > { %6949 = vrot.lane.b32.xlu0 %v14112_v9, %s13108_s13  ;;  %6943 = vrot.lane.b32.xlu1 %v14085_v50, %s13108_s13 }
 0x931   : > { %12264 = vmatpush3.bf16.msra.mxu1 %v6013_v47  ;;  %v15166_v16 = vpop.permute.xlu1 %6305  ;;  %v15204_v17 = vpop.permute.xlu0 %6311  ;;  %v6322_v47 = vsel %vm17684_vm6, %v15105_v41, %v15108_v23  ;;  %v6326_v41 = vsel %vm17688_vm4, %v15140_v45, %v15147_v34  ;;  %vm17690_vm6 = vmmov %vm17682_vm0 }
 0x932   : > { %6160 = vmatprep.subr.bf16.mxu1 %v13594_v60  ;;  %v6327_v45 = vsel %vm17690_vm6, %v15173_v56, %v15158_v3  ;;  %vm17694_vm4 = vmmov %vm17682_vm0 }
 0x933   : > { %6959 = vrot.lane.b32.xlu0 %v14889_v63, %s13108_s13  ;;  %6953 = vrot.lane.b32.xlu1 %v14847_v32, %s13108_s13 }
 0x934   : > { %12266 = vmatmul.mubr.msk.bf16.vlgmr.msra.gmra.mrb[32].mxu1 %vm5999_vm5, %v12928_v43 }
 0x935   : > { %6161 = vmatpush1.bf16.msra.mxu1 %v13605_v4  ;;  %6192 = vmatprep.mubr.bf16.mxu1 %v15074_v29  ;;  %v15181_v27 = vpop.permute.xlu1 %6309  ;;  %v15220_v1 = vpop.permute.xlu0 %6317 }
 0x936   : > { %6162 = vmatprep.subr.bf16.mxu1 %v13618_v13  ;;  %v6330_v52 = vsel %vm17691_vm8, %v15181_v27, %v15204_v17 }
 0x937   : > { %6957 = vrot.lane.b32.xlu1 %v14867_v37, %s13108_s13  ;;  %6963 = vrot.lane.b32.xlu0 %v14877_v53, %s13108_s13 }
 0x939   : > { %6163 = vmatpush1.bf16.msra.mxu1 %v13631_v21  ;;  %v15197_v58 = vpop.permute.xlu1 %6307  ;;  %v15237_v5 = vpop.permute.xlu0 %6499 }
 0x93a   : > { %6164 = vmatprep.subr.bf16.mxu1 %v14076_v44 }
 0x93b   : > { %6955 = vrot.lane.b32.xlu1 %v14871_v54, %s13108_s13  ;;  %6961 = vrot.lane.b32.xlu0 %v14900_v18, %s13108_s13 }
 0x93d   : > { %6165 = vmatpush1.bf16.msra.mxu1 %v14085_v50  ;;  %v15214_v61 = vpop.permute.xlu1 %6315  ;;  %v15248_v59 = vpop.permute.xlu0 %6503 }
 0x93e   : > { %6166 = vmatprep.subr.bf16.mxu1 %v14095_v0  ;;  %v6332_v56 = vsel %vm17694_vm4, %v15214_v61, %v15220_v1 }
 0x93f   : > { %6967 = vrot.lane.b32.xlu1 %v14905_v39, %s13108_s13  ;;  %6969 = vrot.lane.b32.xlu0 %v14907_v40, %s13108_s13 }
 0x941   : > { %6167 = vmatpush1.bf16.msra.mxu1 %v14112_v9  ;;  %v15230_v2 = vpop.permute.xlu1 %6497  ;;  %v15264_v7 = vpop.permute.xlu0 %6501 }
 0x942   : > { %6168 = vmatprep.subr.bf16.mxu1 %v14867_v37 }
 0x943   : > { %6965 = vrot.lane.b32.xlu1 %v14918_v42, %s13108_s13  ;;  %7151 = vrot.lane.b32.xlu0 %v13594_v60, %s13109_s14 }
 0x945   : > { %6169 = vmatpush1.bf16.msra.mxu1 %v14871_v54  ;;  %v15245_v6 = vpop.permute.xlu1 %6495 }
 0x946   : > { %6170 = vmatprep.subr.bf16.mxu1 %v14877_v53 }
 0x947   : > { %6971 = vrot.lane.b32.xlu1 %v14928_v51, %s13108_s13  ;;  %7149 = vrot.lane.b32.xlu0 %v13605_v4, %s13109_s14 }
 0x949   : > { %6171 = vmatpush1.bf16.msra.mxu1 %v14900_v18  ;;  %v15256_v8 = vpop.permute.xlu1 %6505 }
 0x94a   : > { %11379 = vmatprep.subr.msk.bf16.mxu1 %vm543_vm1, %v14907_v40 }
 0x94b   : > { %7153 = vrot.lane.b32.xlu1 %v14823_v19, %s13109_s14  ;;  %7159 = vrot.lane.b32.xlu0 %v14831_v25, %s13109_s14 }
 0x94d   : > { %6173 = vmatpush1.bf16.msra.mxu1 %v6152_v30  ;;  %v15278_v43 = vpop.permute.xlu1 %6509  ;;  %v15285_v30 = vpop.permute.xlu0 %6511 }
 0x94e   : > { %12269 = vmatprep.subr.bf16.mxu1 %v14823_v19 }
 0x94f   : > { %7157 = vrot.lane.b32.xlu1 %v13618_v13, %s13109_s14  ;;  %7163 = vrot.lane.b32.xlu0 %v14076_v44, %s13109_s14 }
 0x950   : > { %11380 = vmatmul.mubr.msk.bf16.vlgmr.msra.gmra.mrb[24].mxu1 %vm5999_vm5, %v12929_v57 }
 0x951   : > { %12270 = vmatpush3.bf16.msra.mxu1 %v14823_v19  ;;  %6202 = vmatprep.mubr.bf16.mxu1 %v15074_v29 }
 0x952   : > { %12271 = vmatprep.subr.bf16.mxu1 %v14831_v25 }
 0x953   : > { %7155 = vrot.lane.b32.xlu1 %v13631_v21, %s13109_s14  ;;  %7161 = vrot.lane.b32.xlu0 %v14085_v50, %s13109_s14 }
 0x955   : > { %12272 = vmatpush3.bf16.msra.mxu1 %v14831_v25 }
 0x956   : > { %12273 = vmatprep.subr.bf16.mxu1 %v14839_v38 }
 0x957   : > { %7165 = vrot.lane.b32.xlu1 %v14839_v38, %s13109_s14  ;;  %7171 = vrot.lane.b32.xlu0 %v14847_v32, %s13109_s14 }
 0x958   : > { %11381 = vmatmul.mubr.msk.bf16.gmra.mrb[28].mxu1 %vm5999_vm5, %v12930_v62 }
 0x959   : > { %12274 = vmatpush3.bf16.msra.mxu1 %v14839_v38  ;;  %12283 = vmatprep.mubr.msk.bf16.mxu1 %vm5999_vm5, %v12929_v57  ;;  %v15297_v57 = vpop.permute.xlu1 %6507 }
 0x95a   : > { %12275 = vmatprep.subr.bf16.mxu1 %v14847_v32 }
 0x95b   : > { %7169 = vrot.lane.b32.xlu1 %v14095_v0, %s13109_s14  ;;  %7175 = vrot.lane.b32.xlu0 %v14867_v37, %s13109_s14 }
 0x95d   : > { %12276 = vmatpush3.bf16.msra.mxu1 %v14847_v32 }
 0x95e   : > { %12277 = vmatprep.subr.bf16.mxu1 %v14889_v63 }
 0x95f   : > { %7167 = vrot.lane.b32.xlu1 %v14112_v9, %s13109_s14  ;;  %7173 = vrot.lane.b32.xlu0 %v14871_v54, %s13109_s14 }
 0x961   : > { %12278 = vmatpush3.bf16.msra.mxu1 %v14889_v63 }
 0x962   : > { %12279 = vmatprep.subr.bf16.mxu1 %v14918_v42 }
 0x963   : > { %7177 = vrot.lane.b32.xlu1 %v14889_v63, %s13109_s14  ;;  %7185 = vrot.lane.b32.xlu0 %v14905_v39, %s13109_s14 }
 0x965   : > { %12280 = vmatpush3.bf16.msra.mxu1 %v14918_v42 }
 0x966   : > { %12825 = vmatprep.subr.msk.bf16.mxu1 %vm543_vm1, %v14928_v51 }
 0x967   : > { %7181 = vrot.lane.b32.xlu1 %v14877_v53, %s13109_s14  ;;  %7183 = vrot.lane.b32.xlu0 %v14918_v42, %s13109_s14 }
 0x969   : > { %12282 = vmatpush3.bf16.msra.mxu1 %v6158_v14  ;;  %v15306_v14 = vpop.permute.xlu0 %6515 }
 0x96a   : > { %6366 = vmatprep.subr.bf16.mxu1 %v6320_v20  ;;  %v15318_v20 = vpop.permute.xlu1 %6517 }
 0x96b   : > { %7179 = vrot.lane.b32.xlu1 %v14900_v18, %s13109_s14  ;;  %7189 = vrot.lane.b32.xlu0 %v14928_v51, %s13109_s14 }
 0x96c   : > { %12284 = vmatmul.mubr.msk.bf16.vlgmr.msra.gmra.mrb[32].mxu1 %vm5999_vm5, %v12930_v62  ;;  %v6323_v62 = vsel %vm17687_vm10, %v15130_v33, %v15120_v35  ;;  %v6328_v35 = vsel %vm17689_vm15, %v15158_v3, %v15166_v16  ;;  %vm17693_vm10 = vmmov %vm17682_vm0  ;;  %vm17695_vm0 = vcmask 900096  }
 0x96d   : > { %6367 = vmatpush1.bf16.msra.mxu1 %v6319_v24  ;;  %6398 = vmatprep.mubr.bf16.mxu1 %v15074_v29  ;;  %v15323_v33 = vpop.permute.xlu0 %6513  ;;  %v6331_v3 = vsel %vm17693_vm10, %v15184_v28, %v15214_v61  ;;  %v12931_v28 = vld [vmem:[%s17465_s4 + $0x20] sm:$0xff]   ;;  %vm17696_vm15 = vmmov %vm17695_vm0 }
 0x96e   : > { %6368 = vmatprep.subr.bf16.mxu1 %v6322_v47  ;;  %v15335_v24 = vpop.permute.xlu1 %6521  ;;  %v6329_v47 = vsel %vm17692_vm3, %v15197_v58, %v15181_v27  ;;  %v6358_v58 = vsel %vm543_vm1, %v6331_v3, 0  ;;  %vm17697_vm6 = vmmov %vm17695_vm0 }
 0x96f   : > { %7187 = vrot.lane.b32.xlu1 %v14907_v40, %s13109_s14  ;;  %7371 = vrot.lane.b32.xlu0 %v14823_v19, %s17587_s20  ;;  %vm17698_vm8 = vmmov %vm17695_vm0 }
 0x970   : > { %vm17699_vm3 = vmmov %vm17695_vm0 }
 0x971   : > { %6369 = vmatpush1.bf16.msra.mxu1 %v6321_v36  ;;  %v15344_v36 = vpop.permute.xlu0 %6523  ;;  %vm17700_vm10 = vmmov %vm17695_vm0 }
 0x972   : > { %6370 = vmatprep.subr.bf16.mxu1 %v6324_v22  ;;  %v15357_v27 = vpop.permute.xlu1 %6519  ;;  %vm17701_vm4 = vmmov %vm17695_vm0 }
 0x973   : > { %7369 = vrot.lane.b32.xlu1 %v13594_v60, %s17587_s20  ;;  %7375 = vrot.lane.b32.xlu0 %v13618_v13, %s17587_s20 }
 0x975   : > { %6371 = vmatpush1.bf16.msra.mxu1 %v6323_v62  ;;  %v15363_v22 = vpop.permute.xlu0 %6527 }
 0x976   : > { %6372 = vmatprep.subr.bf16.mxu1 %v6326_v41  ;;  %v15373_v61 = vpop.permute.xlu1 %6531  ;;  %v12932_v41 = vld [vmem:[%s17465_s4 + $0x28] sm:$0xff]  }
 0x977   : > { %7367 = vrot.lane.b32.xlu1 %v13605_v4, %s17587_s20  ;;  %7373 = vrot.lane.b32.xlu0 %v13631_v21, %s17587_s20 }
 0x979   : > { %6373 = vmatpush1.bf16.msra.mxu1 %v6325_v26  ;;  %v15380_v62 = vpop.permute.xlu0 %6525 }
 0x97a   : > { %6374 = vmatprep.subr.bf16.mxu1 %v6328_v35 }
 0x97b   : > { %7377 = vrot.lane.b32.xlu1 %v14831_v25, %s17587_s20  ;;  %7383 = vrot.lane.b32.xlu0 %v14839_v38, %s17587_s20 }
 0x97d   : > { %6375 = vmatpush1.bf16.msra.mxu1 %v6327_v45  ;;  %v15396_v26 = vpop.permute.xlu0 %6533 }
 0x97e   : > { %6376 = vmatprep.subr.bf16.mxu1 %v6330_v52 }
 0x97f   : > { %7381 = vrot.lane.b32.xlu1 %v14076_v44, %s17587_s20  ;;  %7387 = vrot.lane.b32.xlu0 %v14095_v0, %s17587_s20 }
 0x981   : > { %6377 = vmatpush1.bf16.msra.mxu1 %v6329_v47 }
 0x982   : > { %11390 = vmatprep.subr.msk.bf16.mxu1 %vm543_vm1, %v6332_v56 }
 0x983   : > { %7379 = vrot.lane.b32.xlu1 %v14085_v50, %s17587_s20  ;;  %7385 = vrot.lane.b32.xlu0 %v14112_v9, %s17587_s20 }
 0x985   : > { %6379 = vmatpush1.bf16.msra.mxu1 %v6358_v58 }
 0x986   : > { %12287 = vmatprep.subr.bf16.mxu1 %v15088_v11 }
 0x987   : > { %7389 = vrot.lane.b32.xlu1 %v14847_v32, %s17587_s20  ;;  %7395 = vrot.lane.b32.xlu0 %v14889_v63, %s17587_s20 }
 0x988   : > { %11391 = vmatmul.mubr.msk.bf16.vlgmr.msra.gmra.mrb[24].mxu1 %vm5999_vm5, %v12931_v28 }
 0x989   : > { %12288 = vmatpush3.bf16.msra.mxu1 %v15088_v11  ;;  %6408 = vmatprep.mubr.bf16.mxu1 %v15074_v29  ;;  %v15391_v11 = vpop.permute.xlu1 %6529 }
 0x98a   : > { %12289 = vmatprep.subr.bf16.mxu1 %v15108_v23 }
 0x98b   : > { %7393 = vrot.lane.b32.xlu1 %v14867_v37, %s17587_s20  ;;  %7399 = vrot.lane.b32.xlu0 %v14877_v53, %s17587_s20 }
 0x98d   : > { %12290 = vmatpush3.bf16.msra.mxu1 %v15108_v23  ;;  %v15404_v23 = vpop.permute.xlu1 %6535 }
 0x98e   : > { %12291 = vmatprep.subr.bf16.mxu1 %v15127_v48 }
 0x98f   : > { %7391 = vrot.lane.b32.xlu1 %v14871_v54, %s17587_s20  ;;  %7397 = vrot.lane.b32.xlu0 %v14900_v18, %s17587_s20 }
 0x990   : > { %11392 = vmatmul.mubr.msk.bf16.gmra.mrb[28].mxu1 %vm5999_vm5, %v12932_v41 }
 0x991   : > { %12292 = vmatpush3.bf16.msra.mxu1 %v15127_v48  ;;  %12301 = vmatprep.mubr.msk.bf16.mxu1 %vm5999_vm5, %v12931_v28  ;;  %v15411_v48 = vpop.permute.xlu0 %6715 }
 0x992   : > { %12293 = vmatprep.subr.bf16.mxu1 %v15147_v34 }
 0x993   : > { %7403 = vrot.lane.b32.xlu1 %v14905_v39, %s17587_s20  ;;  %7405 = vrot.lane.b32.xlu0 %v14907_v40, %s17587_s20 }
 0x995   : > { %12294 = vmatpush3.bf16.msra.mxu1 %v15147_v34  ;;  %v15419_v34 = vpop.permute.xlu1 %6717  ;;  %v15422_v35 = vpop.permute.xlu0 %6713 }
 0x996   : > { %12295 = vmatprep.subr.bf16.mxu1 %v15166_v16 }
 0x997   : > { %7401 = vrot.lane.b32.xlu1 %v14918_v42, %s17587_s20  ;;  %7587 = vrot.lane.b32.xlu0 %v13594_v60, %s17489_s16  ;;  %v6364_v60 = vsel %vm543_vm1, %v15220_v1, 0 }
 0x999   : > { %12296 = vmatpush3.bf16.msra.mxu1 %v15166_v16  ;;  %v15435_v16 = vpop.permute.xlu1 %6721 }
 0x99a   : > { %12297 = vmatprep.subr.bf16.mxu1 %v15204_v17 }
 0x99b   : > { %7407 = vrot.lane.b32.xlu1 %v14928_v51, %s17587_s20  ;;  %7585 = vrot.lane.b32.xlu0 %v13605_v4, %s17489_s16  ;;  %v6538_v4 = vsel %vm17695_vm0, %v15230_v2, %v15237_v5 }
 0x99d   : > { %12298 = vmatpush3.bf16.msra.mxu1 %v15204_v17  ;;  %v6540_v17 = vsel %vm17697_vm6, %v15248_v59, %v15256_v8  ;;  %vm17703_vm6 = vmmov %vm17695_vm0 }
 0x99e   : > { %12826 = vmatprep.subr.msk.bf16.mxu1 %vm543_vm1, %v15220_v1  ;;  %v6542_v1 = vsel %vm17699_vm3, %v15278_v43, %v15285_v30  ;;  %vm17705_vm3 = vmmov %vm17695_vm0 }
 0x99f   : > { %7589 = vrot.lane.b32.xlu1 %v14823_v19, %s17489_s16  ;;  %7595 = vrot.lane.b32.xlu0 %v14831_v25, %s17489_s16  ;;  %v6537_v19 = vsel %vm17696_vm15, %v15245_v6, %v15230_v2  ;;  %v15444_v25 = vpop.permute.xlu0 %6723  ;;  %vm17702_vm15 = vmmov %vm17695_vm0 }
 0x9a1   : > { %12300 = vmatpush3.bf16.msra.mxu1 %v6364_v60 }
 0x9a2   : > { %6584 = vmatprep.subr.bf16.mxu1 %v6538_v4 }
 0x9a3   : > { %7593 = vrot.lane.b32.xlu1 %v13618_v13, %s17489_s16  ;;  %7599 = vrot.lane.b32.xlu0 %v14076_v44, %s17489_s16  ;;  %v6539_v13 = vsel %vm17698_vm8, %v15264_v7, %v15248_v59  ;;  %v15458_v44 = vpop.permute.xlu1 %6719  ;;  %v15463_v2 = vpop.permute.xlu0 %6727  ;;  %v6546_v59 = vsel %vm17702_vm15, %v15335_v24, %v15344_v36  ;;  %vm17704_vm8 = vmmov %vm17695_vm0 }
 0x9a4   : > { %12302 = vmatmul.mubr.msk.bf16.vlgmr.msra.gmra.mrb[32].mxu1 %vm5999_vm5, %v12932_v41  ;;  %v6548_v7 = vsel %vm17704_vm8, %v15363_v22, %v15391_v11 }
 0x9a5   : > { %6585 = vmatpush1.bf16.msra.mxu1 %v6537_v19  ;;  %6616 = vmatprep.mubr.bf16.mxu1 %v15074_v29 }
 0x9a6   : > { %6586 = vmatprep.subr.bf16.mxu1 %v6540_v17 }
 0x9a7   : > { %7591 = vrot.lane.b32.xlu1 %v13631_v21, %s17489_s16  ;;  %7597 = vrot.lane.b32.xlu0 %v14085_v50, %s17489_s16  ;;  %v6541_v21 = vsel %vm17700_vm10, %v15297_v57, %v15278_v43  ;;  %v6544_v50 = vsel %vm17701_vm4, %v15306_v14, %v15318_v20  ;;  %v15475_v6 = vpop.permute.xlu1 %6729  ;;  %vm17706_vm10 = vmmov %vm17695_vm0 }
 0x9a8   : > { %vm17707_vm4 = vmmov %vm17695_vm0 }
 0x9a9   : > { %6587 = vmatpush1.bf16.msra.mxu1 %v6539_v13  ;;  %v6550_v57 = vsel %vm17707_vm4, %v15396_v26, %v15404_v23 }
 0x9aa   : > { %6588 = vmatprep.subr.bf16.mxu1 %v6542_v1 }
 0x9ab   : > { %7601 = vrot.lane.b32.xlu1 %v14839_v38, %s17489_s16  ;;  %7607 = vrot.lane.b32.xlu0 %v14847_v32, %s17489_s16  ;;  %v6543_v38 = vsel %vm17695_vm0, %v15323_v33, %v15306_v14  ;;  %v15484_v32 = vpop.permute.xlu0 %6725  ;;  %v12933_v33 = vld [vmem:[%s17465_s4 + $0x30] sm:$0xff]   ;;  %vm17708_vm0 = vcmask 891904  }
 0x9ac   : > { %vm17709_vm15 = vmmov %vm17708_vm0 }
 0x9ad   : > { %6589 = vmatpush1.bf16.msra.mxu1 %v6541_v21  ;;  %v6755_v58 = vsel %vm17709_vm15, %v15422_v35, %v15411_v48  ;;  %vm17711_vm8 = vmmov %vm17708_vm0 }
 0x9ae   : > { %6590 = vmatprep.subr.bf16.mxu1 %v6544_v50  ;;  %vm17714_vm4 = vmmov %vm17708_vm0 }
 0x9af   : > { %7605 = vrot.lane.b32.xlu1 %v14095_v0, %s17489_s16  ;;  %7611 = vrot.lane.b32.xlu0 %v14867_v37, %s17489_s16  ;;  %v6545_v0 = vsel %vm17703_vm6, %v15357_v27, %v15335_v24  ;;  %v15496_v37 = vpop.permute.xlu1 %6733  ;;  %v15501_v43 = vpop.permute.xlu0 %6735  ;;  %v7790_v24 = vld [vmem:[%s17470_s9 + $0x10] sm:$0xff]  ;;  %vm17710_vm6 = vmmov %vm17708_vm0 }
 0x9b0   : > { %v6758_v28 = vsel %vm17710_vm6, %v15435_v16, %v15444_v25  ;;  %vm17715_vm15 = vmmov %vm17708_vm0 }
 0x9b1   : > { %6591 = vmatpush1.bf16.msra.mxu1 %v6543_v38  ;;  %vm17716_vm6 = vmmov %vm17708_vm0  ;;  %v12935_v38 = vld [vmem:[%s17465_s4 + $0x40] sm:$0xff]  }
 0x9b2   : > { %6592 = vmatprep.subr.bf16.mxu1 %v6546_v59 }
 0x9b3   : > { %7603 = vrot.lane.b32.xlu1 %v14112_v9, %s17489_s16  ;;  %7609 = vrot.lane.b32.xlu0 %v14871_v54, %s17489_s16  ;;  %v6547_v9 = vsel %vm17705_vm3, %v15380_v62, %v15363_v22  ;;  %v6549_v54 = vsel %vm17706_vm10, %v15373_v61, %v15396_v26  ;;  %v15516_v14 = vpop.permute.xlu1 %6731  ;;  %v6757_v61 = vsel %vm17711_vm8, %v15458_v44, %v15435_v16  ;;  %vm17712_vm3 = vmmov %vm17708_vm0 }
 0x9b4   : > { %v6760_v41 = vsel %vm17712_vm3, %v15463_v2, %v15475_v6  ;;  %vm17713_vm10 = vmmov %vm17708_vm0  ;;  %v6761_v35 = vsel %vm17708_vm0, %v15516_v14, %v15496_v37 }
 0x9b5   : > { %6593 = vmatpush1.bf16.msra.mxu1 %v6545_v0  ;;  %vm17717_vm8 = vmmov %vm17708_vm0 }
 0x9b6   : > { %6594 = vmatprep.subr.bf16.mxu1 %v6548_v7  ;;  %vm17718_vm3 = vmmov %vm17708_vm0 }
 0x9b7   : > { %7613 = vrot.lane.b32.xlu1 %v14889_v63, %s17489_s16  ;;  %7621 = vrot.lane.b32.xlu0 %v14905_v39, %s17489_s16  ;;  %v15523_v63 = vpop.permute.xlu0 %6739  ;;  %v6576_v39 = vsel %vm543_vm1, %v6549_v54, 0 }
 0x9b9   : > { %6595 = vmatpush1.bf16.msra.mxu1 %v6547_v9 }
 0x9ba   : > { %11401 = vmatprep.subr.msk.bf16.mxu1 %vm543_vm1, %v6550_v57 }
 0x9bb   : > { %7617 = vrot.lane.b32.xlu1 %v14877_v53, %s17489_s16  ;;  %7619 = vrot.lane.b32.xlu0 %v14918_v42, %s17489_s16  ;;  %v15534_v53 = vpop.permute.xlu1 %6741  ;;  %v7789_v42 = vld [vmem:[%s17470_s9 + $0x8] sm:$0xff]  ;;  %v6738_v45 = vpop.permute.xlu0 %6737 }
 0x9bc   : > { %v6764_v60 = vsel %vm17715_vm15, %v15523_v63, %v15534_v53  ;;  %v6763_v16 = vsel %vm17716_vm6, %v6738_v45, %v15523_v63 }
 0x9bd   : > { %6597 = vmatpush1.bf16.msra.mxu1 %v6576_v39 }
 0x9be   : > { %12305 = vmatprep.subr.bf16.mxu1 %v15237_v5 }
 0x9bf   : > { %7615 = vrot.lane.b32.xlu1 %v14900_v18, %s17489_s16  ;;  %7625 = vrot.lane.b32.xlu0 %v14928_v51, %s17489_s16  ;;  %v7788_v18 = vld [vmem:[%s17470_s9] sm:$0xff]  ;;  %v7791_v51 = vld [vmem:[%s17470_s9 + $0x18] sm:$0xff]  ;;  %v6746_v52 = vpop.permute.xlu1 %6745 }
 0x9c0   : > { %11402 = vmatmul.mubr.msk.bf16.vlgmr.msra.gmra.mrb[24].mxu1 %vm5999_vm5, %v12933_v33 }
 0x9c1   : > { %12306 = vmatpush3.bf16.msra.mxu1 %v15237_v5  ;;  %6626 = vmatprep.mubr.bf16.mxu1 %v15074_v29  ;;  %v12934_v5 = vld [vmem:[%s17465_s4 + $0x38] sm:$0xff]  }
 0x9c2   : > { %12307 = vmatprep.subr.bf16.mxu1 %v15256_v8 }
 0x9c3   : > { %7623 = vrot.lane.b32.xlu1 %v14907_v40, %s17489_s16  ;;  %7799 = vperm.xlu0 %12858, %v7789_v42   ;;  %v6750_v40 = vpop.permute.xlu0 %6749  ;;  %s386_s16 = scalar_lea.vmem %s17472_s11, %s18019_s28 }
 0x9c5   : > { %12308 = vmatpush3.bf16.msra.mxu1 %v15256_v8  ;;  %v6744_v8 = vpop.permute.xlu1 %6743 }
 0x9c6   : > { %12309 = vmatprep.subr.bf16.mxu1 %v15285_v30  ;;  %v6765_v13 = vsel %vm17718_vm3, %v6744_v8, %v6746_v52 }
 0x9c7   : > { %7794 = vperm.xlu1 %12859, %v7788_v18   ;;  %7809 = vperm.xlu0 %12858, %v7791_v51   ;;  %v15564_v47 = vpop.permute.xlu0 %6747 }
 0x9c8   : > { %11403 = vmatmul.mubr.msk.bf16.gmra.mrb[28].mxu1 %vm5999_vm5, %v12934_v5  ;;  %v6766_v17 = vsel %vm17717_vm8, %v6746_v52, %v15564_v47 }
 0x9c9   : > { %12310 = vmatpush3.bf16.msra.mxu1 %v15285_v30  ;;  %12319 = vmatprep.mubr.msk.bf16.mxu1 %vm5999_vm5, %v12933_v33  ;;  %v6752_v3 = vpop.permute.xlu1 %6751 }
 0x9ca   : > { %12311 = vmatprep.subr.bf16.mxu1 %v15318_v20 }
 0x9cb   : > { %7804 = vperm.xlu1 %12859, %v7790_v24   ;;  %v15569_v56 = vpop.permute.xlu0 %6753 }
 0x9cc   : > { %v6800_v14 = vsel %vm543_vm1, %v15569_v56, 0 }
 0x9cd   : > { %12312 = vmatpush3.bf16.msra.mxu1 %v15318_v20  ;;  %v15574_v30 = vpop.permute.xlu1 %6933  ;;  %v6582_v20 = vsel %vm543_vm1, %v15404_v23, 0 }
 0x9ce   : > { %12313 = vmatprep.subr.bf16.mxu1 %v15344_v36 }
 0x9cf   : > { %v15581_v27 = vpop.permute.xlu0 %6935 }
 0x9d1   : > { %12314 = vmatpush3.bf16.msra.mxu1 %v15344_v36  ;;  %v6756_v36 = vsel %vm17708_vm0, %v15411_v48, %v15419_v34  ;;  %v15591_v22 = vpop.permute.xlu1 %6931 }
 0x9d2   : > { %12315 = vmatprep.subr.bf16.mxu1 %v15391_v11 }
 0x9d3   : > { %v15596_v62 = vpop.permute.xlu0 %6939 }
 0x9d5   : > { %12316 = vmatpush3.bf16.msra.mxu1 %v15391_v11  ;;  %v6759_v11 = vsel %vm17713_vm10, %v15484_v32, %v15463_v2  ;;  %v15604_v26 = vpop.permute.xlu1 %6941  ;;  %vm17719_vm10 = vmmov %vm17708_vm0 }
 0x9d6   : > { %12827 = vmatprep.subr.msk.bf16.mxu1 %vm543_vm1, %v15404_v23  ;;  %v6762_v23 = vsel %vm17714_vm4, %v15496_v37, %v15501_v43  ;;  %v6767_v1 = vsel %vm17719_vm10, %v6750_v40, %v6752_v3  ;;  %vm17720_vm4 = vmmov %vm17708_vm0  ;;  %v12936_v37 = vld [vmem:[%s17465_s4 + $0x48] sm:$0xff]   ;;  %vm17721_vm0 = vcmask 883712  }
 0x9d7   : > { %v15609_v48 = vpop.permute.xlu0 %6937  ;;  %v6768_v2 = vsel %vm17720_vm4, %v6752_v3, %v15569_v56  ;;  %v6794_v50 = vsel %vm543_vm1, %v6767_v1, 0  ;;  %vm17722_vm15 = vmmov %vm17721_vm0 }
 0x9d8   : > { %v6973_v63 = vsel %vm17722_vm15, %v15591_v22, %v15574_v30  ;;  %vm17723_vm6 = vmmov %vm17721_vm0 }
 0x9d9   : > { %12318 = vmatpush3.bf16.msra.mxu1 %v6582_v20  ;;  %v15617_v4 = vpop.permute.xlu1 %6945  ;;  %v6976_v33 = vsel %vm17723_vm6, %v15596_v62, %v15604_v26  ;;  %vm17724_vm8 = vmmov %vm17721_vm0 }
 0x9da   : > { %6802 = vmatprep.subr.bf16.mxu1 %v6756_v36  ;;  %v6975_v42 = vsel %vm17724_vm8, %v15609_v48, %v15596_v62  ;;  %vm17725_vm3 = vmmov %vm17721_vm0  ;;  %v12937_v62 = vld [vmem:[%s17465_s4 + $0x50] sm:$0xff]   ;;  %v12938_v48 = vld [vmem:[%s17465_s4 + $0x58] sm:$0xff]  }
 0x9db   : > { %v15621_v19 = vpop.permute.xlu0 %6947  ;;  %vm17726_vm10 = vmmov %vm17721_vm0 }
 0x9dc   : > { %12320 = vmatmul.mubr.msk.bf16.vlgmr.msra.gmra.mrb[32].mxu1 %vm5999_vm5, %v12934_v5  ;;  %v6978_v45 = vsel %vm17725_vm3, %v15617_v4, %v15621_v19  ;;  %vm17727_vm4 = vmmov %vm17721_vm0 }
 0x9dd   : > { %6803 = vmatpush1.bf16.msra.mxu1 %v6755_v58  ;;  %6834 = vmatprep.mubr.bf16.mxu1 %v15074_v29  ;;  %v6944_v44 = vpop.permute.xlu1 %6943  ;;  %vm17728_vm15 = vmmov %vm17721_vm0 }
 0x9de   : > { %6804 = vmatprep.subr.bf16.mxu1 %v6758_v28  ;;  %v6977_v51 = vsel %vm17726_vm10, %v6944_v44, %v15617_v4  ;;  %vm17729_vm6 = vmmov %vm17721_vm0 }
 0x9df   : > { %v6952_v21 = vpop.permute.xlu0 %6951  ;;  %vm17730_vm8 = vmmov %vm17721_vm0 }
 0x9e0   : > { %vm17731_vm3 = vmmov %vm17721_vm0 }
 0x9e1   : > { %6805 = vmatpush1.bf16.msra.mxu1 %v6757_v61  ;;  %v15634_v32 = vpop.permute.xlu1 %6953  ;;  %vm17732_vm10 = vmmov %vm17721_vm0 }
 0x9e2   : > { %6806 = vmatprep.subr.bf16.mxu1 %v6760_v41  ;;  %v6980_v52 = vsel %vm17727_vm4, %v6952_v21, %v15634_v32  ;;  %vm17733_vm4 = vmmov %vm17721_vm0 }
 0x9e3   : > { %v6950_v59 = vpop.permute.xlu0 %6949 }
 0x9e4   : > { %v6979_v40 = vsel %vm17721_vm0, %v6950_v59, %v6952_v21 }
 0x9e5   : > { %6807 = vmatpush1.bf16.msra.mxu1 %v6759_v11  ;;  %v6958_v0 = vpop.permute.xlu1 %6957 }
 0x9e6   : > { %6808 = vmatprep.subr.bf16.mxu1 %v6762_v23 }
 0x9e7   : > { %v15645_v7 = vpop.permute.xlu0 %6959 }
 0x9e8   : > { %v6982_v8 = vsel %vm17728_vm15, %v6958_v0, %v15645_v7 }
 0x9e9   : > { %6809 = vmatpush1.bf16.msra.mxu1 %v6761_v35 }
 0x9ea   : > { %6810 = vmatprep.subr.bf16.mxu1 %v6764_v60 }
 0x9eb   : > { %v6964_v9 = vpop.permute.xlu0 %6963 }
 0x9ed   : > { %6811 = vmatpush1.bf16.msra.mxu1 %v6763_v16 }
 0x9ee   : > { %6812 = vmatprep.subr.bf16.mxu1 %v6766_v17 }
 0x9f1   : > { %6813 = vmatpush1.bf16.msra.mxu1 %v6765_v13 }
 0x9f2   : > { %11412 = vmatprep.subr.msk.bf16.mxu1 %vm543_vm1, %v6768_v2 }
 0x9f5   : > { %6815 = vmatpush1.bf16.msra.mxu1 %v6794_v50 }
 0x9f6   : > { %12323 = vmatprep.subr.bf16.mxu1 %v15419_v34 }
 0x9f8   : > { %11413 = vmatmul.mubr.msk.bf16.vlgmr.msra.gmra.mrb[24].mxu1 %vm5999_vm5, %v12935_v38 }
 0x9f9   : > { %12324 = vmatpush3.bf16.msra.mxu1 %v15419_v34  ;;  %6844 = vmatprep.mubr.bf16.mxu1 %v15074_v29  ;;  %v6956_v34 = vpop.permute.xlu1 %6955 }
 0x9fa   : > { %12325 = vmatprep.subr.bf16.mxu1 %v15444_v25  ;;  %v6981_v3 = vsel %vm17729_vm6, %v6956_v34, %v6958_v0 }
 0x9fd   : > { %12326 = vmatpush3.bf16.msra.mxu1 %v15444_v25  ;;  %v6968_v54 = vpop.permute.xlu1 %6967  ;;  %v6962_v25 = vpop.permute.xlu0 %6961 }
 0x9fe   : > { %12327 = vmatprep.subr.bf16.mxu1 %v15475_v6  ;;  %v6983_v20 = vsel %vm17731_vm3, %v6962_v25, %v6964_v9 }
 0xa00   : > { %11414 = vmatmul.mubr.msk.bf16.gmra.mrb[28].mxu1 %vm5999_vm5, %v12936_v37 }
 0xa01   : > { %12328 = vmatpush3.bf16.msra.mxu1 %v15475_v6  ;;  %12337 = vmatprep.mubr.msk.bf16.mxu1 %vm5999_vm5, %v12935_v38  ;;  %v15657_v57 = vpop.permute.xlu1 %6965  ;;  %v6970_v6 = vpop.permute.xlu0 %6969 }
 0xa02   : > { %12329 = vmatprep.subr.bf16.mxu1 %v15501_v43  ;;  %v6985_v58 = vsel %vm17732_vm10, %v6968_v54, %v6970_v6 }
 0xa03   : > { %v7012_v61 = vsel %vm543_vm1, %v6985_v58, 0  ;;  %v15799_v58 = vld [vmem:[#allocation2 + $0x9c] sm:$0xff] }
 0xa05   : > { %12330 = vmatpush3.bf16.msra.mxu1 %v15501_v43  ;;  %v6974_v43 = vsel %vm17721_vm0, %v15574_v30, %v15581_v27  ;;  %v15669_v39 = vpop.permute.xlu1 %6971  ;;  %vm17734_vm0 = vcmask 752640  }
 0xa06   : > { %12331 = vmatprep.subr.bf16.mxu1 %v15534_v53  ;;  %v6986_v28 = vsel %vm17733_vm4, %v6970_v6, %v15669_v39  ;;  %vm17735_vm15 = vmmov %vm17734_vm0 }
 0xa07   : > { %vm17736_vm6 = vmmov %vm17734_vm0 }
 0xa08   : > { %vm17738_vm3 = vmmov %vm17734_vm0 }
 0xa09   : > { %12332 = vmatpush3.bf16.msra.mxu1 %v15534_v53  ;;  %v15676_v53 = vpop.permute.xlu0 %7151  ;;  %v15684_v18 = vpop.permute.xlu1 %7153  ;;  %vm17739_vm10 = vmmov %vm17734_vm0 }
 0xa0a   : > { %12333 = vmatprep.subr.bf16.mxu1 %v15564_v47  ;;  %v7192_v17 = vsel %vm17734_vm0, %v15676_v53, %v15684_v18  ;;  %vm17740_vm4 = vmmov %vm17734_vm0 }
 0xa0d   : > { %12334 = vmatpush3.bf16.msra.mxu1 %v15564_v47  ;;  %v7150_v5 = vpop.permute.xlu0 %7149  ;;  %v7158_v24 = vpop.permute.xlu1 %7157 }
 0xa0e   : > { %12828 = vmatprep.subr.msk.bf16.mxu1 %vm543_vm1, %v15569_v56  ;;  %v6984_v56 = vsel %vm17730_vm8, %v6964_v9, %v15657_v57  ;;  %v7191_v44 = vsel %vm17735_vm15, %v7150_v5, %v15676_v53  ;;  %vm17737_vm8 = vmmov %vm17734_vm0  ;;  %v12940_v5 = vld [vmem:[%s17465_s4 + $0x68] sm:$0xff]  }
 0xa0f   : > { %vm17741_vm15 = vmmov %vm17734_vm0 }
 0xa11   : > { %12336 = vmatpush3.bf16.msra.mxu1 %v6800_v14  ;;  %v15693_v47 = vpop.permute.xlu0 %7159  ;;  %v7156_v30 = vpop.permute.xlu1 %7155 }
 0xa12   : > { %7020 = vmatprep.subr.bf16.mxu1 %v6974_v43  ;;  %v7194_v2 = vsel %vm17736_vm6, %v7158_v24, %v15693_v47  ;;  %v7193_v21 = vsel %vm17737_vm8, %v7156_v30, %v7158_v24  ;;  %vm17742_vm6 = vmmov %vm17734_vm0 }
 0xa13   : > { %vm17743_vm8 = vmmov %vm17734_vm0 }
 0xa14   : > { %12338 = vmatmul.mubr.msk.bf16.vlgmr.msra.gmra.mrb[32].mxu1 %vm5999_vm5, %v12936_v37 }
 0xa15   : > { %7021 = vmatpush1.bf16.msra.mxu1 %v6973_v63  ;;  %7052 = vmatprep.mubr.bf16.mxu1 %v15074_v29  ;;  %v7164_v36 = vpop.permute.xlu0 %7163  ;;  %v15703_v22 = vpop.permute.xlu1 %7165 }
 0xa16   : > { %7022 = vmatprep.subr.bf16.mxu1 %v6976_v33  ;;  %v7196_v38 = vsel %vm17738_vm3, %v7164_v36, %v15703_v22  ;;  %vm17744_vm3 = vmmov %vm17734_vm0 }
 0xa19   : > { %7023 = vmatpush1.bf16.msra.mxu1 %v6975_v42  ;;  %v7162_v41 = vpop.permute.xlu0 %7161  ;;  %v7170_v11 = vpop.permute.xlu1 %7169  ;;  %v12939_v42 = vld [vmem:[%s17465_s4 + $0x60] sm:$0xff]  }
 0xa1a   : > { %7024 = vmatprep.subr.bf16.mxu1 %v6978_v45  ;;  %v7195_v59 = vsel %vm17739_vm10, %v7162_v41, %v7164_v36  ;;  %vm17745_vm10 = vmmov %vm17734_vm0 }
 0xa1d   : > { %7025 = vmatpush1.bf16.msra.mxu1 %v6977_v51  ;;  %v15714_v23 = vpop.permute.xlu0 %7171  ;;  %v7168_v35 = vpop.permute.xlu1 %7167 }
 0xa1e   : > { %7026 = vmatprep.subr.bf16.mxu1 %v6980_v52  ;;  %v7198_v0 = vsel %vm17740_vm4, %v7170_v11, %v15714_v23  ;;  %vm17746_vm4 = vmmov %vm17734_vm0 }
 0xa21   : > { %7027 = vmatpush1.bf16.msra.mxu1 %v6979_v40  ;;  %v15726_v60 = vpop.permute.xlu1 %7177 }
 0xa22   : > { %7028 = vmatprep.subr.bf16.mxu1 %v6982_v8 }
 0xa25   : > { %7029 = vmatpush1.bf16.msra.mxu1 %v6981_v3 }
 0xa26   : > { %7030 = vmatprep.subr.bf16.mxu1 %v6984_v56 }
 0xa29   : > { %7031 = vmatpush1.bf16.msra.mxu1 %v6983_v20 }
 0xa2a   : > { %11423 = vmatprep.subr.msk.bf16.mxu1 %vm543_vm1, %v6986_v28 }
 0xa2d   : > { %7033 = vmatpush1.bf16.msra.mxu1 %v7012_v61 }
 0xa2e   : > { %12341 = vmatprep.subr.bf16.mxu1 %v15581_v27 }
 0xa30   : > { %11424 = vmatmul.mubr.msk.bf16.vlgmr.msra.gmra.mrb[24].mxu1 %vm5999_vm5, %v12937_v62 }
 0xa31   : > { %12342 = vmatpush3.bf16.msra.mxu1 %v15581_v27  ;;  %7062 = vmatprep.mubr.bf16.mxu1 %v15074_v29  ;;  %v7176_v27 = vpop.permute.xlu0 %7175 }
 0xa32   : > { %12343 = vmatprep.subr.bf16.mxu1 %v15604_v26  ;;  %v7200_v9 = vsel %vm17741_vm15, %v7176_v27, %v15726_v60 }
 0xa35   : > { %12344 = vmatpush3.bf16.msra.mxu1 %v15604_v26  ;;  %v7174_v4 = vpop.permute.xlu0 %7173  ;;  %v7182_v26 = vpop.permute.xlu1 %7181 }
 0xa36   : > { %12345 = vmatprep.subr.bf16.mxu1 %v15621_v19  ;;  %v7199_v54 = vsel %vm17742_vm6, %v7174_v4, %v7176_v27 }
 0xa38   : > { %11425 = vmatmul.mubr.msk.bf16.gmra.mrb[28].mxu1 %vm5999_vm5, %v12938_v48 }
 0xa39   : > { %12346 = vmatpush3.bf16.msra.mxu1 %v15621_v19  ;;  %12355 = vmatprep.mubr.msk.bf16.mxu1 %vm5999_vm5, %v12937_v62  ;;  %v7186_v16 = vpop.permute.xlu0 %7185  ;;  %v7018_v19 = vsel %vm543_vm1, %v15669_v39, 0  ;;  %v7180_v13 = vpop.permute.xlu1 %7179 }
 0xa3a   : > { %12347 = vmatprep.subr.bf16.mxu1 %v15634_v32  ;;  %v7201_v14 = vsel %vm17744_vm3, %v7180_v13, %v7182_v26 }
 0xa3d   : > { %12348 = vmatpush3.bf16.msra.mxu1 %v15634_v32  ;;  %v7184_v1 = vpop.permute.xlu0 %7183  ;;  %v7188_v50 = vpop.permute.xlu1 %7187 }
 0xa3e   : > { %12349 = vmatprep.subr.bf16.mxu1 %v15645_v7  ;;  %v7203_v43 = vsel %vm17745_vm10, %v7186_v16, %v7188_v50 }
 0xa3f   : > { %v7230_v53 = vsel %vm543_vm1, %v7203_v43, 0 }
 0xa41   : > { %12350 = vmatpush3.bf16.msra.mxu1 %v15645_v7  ;;  %v7190_v32 = vpop.permute.xlu0 %7189  ;;  %v7370_v37 = vpop.permute.xlu1 %7369  ;;  %v7197_v7 = vsel %vm17734_vm0, %v7168_v35, %v7170_v11  ;;  %vm17747_vm0 = vcmask 744448  }
 0xa42   : > { %12351 = vmatprep.subr.bf16.mxu1 %v15657_v57  ;;  %v7204_v63 = vsel %vm17746_vm4, %v7188_v50, %v7190_v32  ;;  %v7236_v3 = vsel %vm543_vm1, %v7190_v32, 0  ;;  %vm17748_vm15 = vmmov %vm17747_vm0 }
 0xa43   : > { %vm17749_vm6 = vmmov %vm17747_vm0 }
 0xa44   : > { %vm17751_vm3 = vmmov %vm17747_vm0 }
 0xa45   : > { %12352 = vmatpush3.bf16.msra.mxu1 %v15657_v57  ;;  %v15752_v34 = vpop.permute.xlu0 %7371  ;;  %v7368_v25 = vpop.permute.xlu1 %7367  ;;  %v7202_v57 = vsel %vm17743_vm8, %v7182_v26, %v7184_v1  ;;  %vm17750_vm8 = vmmov %vm17747_vm0 }
 0xa46   : > { %12829 = vmatprep.subr.msk.bf16.mxu1 %vm543_vm1, %v15669_v39  ;;  %v7410_v56 = vsel %vm17747_vm0, %v7370_v37, %v15752_v34  ;;  %v7409_v20 = vsel %vm17748_vm15, %v7368_v25, %v7370_v37  ;;  %vm17752_vm10 = vmmov %vm17747_vm0 }
 0xa47   : > { %vm17753_vm4 = vmmov %vm17747_vm0 }
 0xa48   : > { %vm17754_vm15 = vmmov %vm17747_vm0 }
 0xa49   : > { %12354 = vmatpush3.bf16.msra.mxu1 %v7018_v19  ;;  %v7376_v6 = vpop.permute.xlu0 %7375  ;;  %v15761_v39 = vpop.permute.xlu1 %7377 }
 0xa4a   : > { %7238 = vmatprep.subr.bf16.mxu1 %v7192_v17  ;;  %v7412_v36 = vsel %vm17749_vm6, %v7376_v6, %v15761_v39  ;;  %vm17755_vm6 = vmmov %vm17747_vm0 }
 0xa4c   : > { %12356 = vmatmul.mubr.msk.bf16.vlgmr.msra.gmra.mrb[32].mxu1 %vm5999_vm5, %v12938_v48 }
 0xa4d   : > { %7239 = vmatpush1.bf16.msra.mxu1 %v7191_v44  ;;  %7270 = vmatprep.mubr.bf16.mxu1 %v15074_v29  ;;  %v7374_v33 = vpop.permute.xlu0 %7373  ;;  %v7382_v45 = vpop.permute.xlu1 %7381 }
 0xa4e   : > { %7240 = vmatprep.subr.bf16.mxu1 %v7194_v2 }
 0xa51   : > { %7241 = vmatpush1.bf16.msra.mxu1 %v7193_v21  ;;  %v15772_v51 = vpop.permute.xlu0 %7383  ;;  %v7380_v52 = vpop.permute.xlu1 %7379  ;;  %v12941_v21 = vld [vmem:[%s17465_s4 + $0x70] sm:$0xff]  }
 0xa52   : > { %7242 = vmatprep.subr.bf16.mxu1 %v7196_v38  ;;  %v7414_v62 = vsel %vm17751_vm3, %v7382_v45, %v15772_v51  ;;  %v7413_v41 = vsel %vm17752_vm10, %v7380_v52, %v7382_v45  ;;  %vm17757_vm3 = vmmov %vm17747_vm0 }
 0xa53   : > { %vm17758_vm10 = vmmov %vm17747_vm0 }
 0xa55   : > { %7243 = vmatpush1.bf16.msra.mxu1 %v7195_v59  ;;  %v7388_v40 = vpop.permute.xlu0 %7387  ;;  %v12942_v59 = vld [vmem:[%s17465_s4 + $0x78] sm:$0xff]  }
 0xa56   : > { %7244 = vmatprep.subr.bf16.mxu1 %v7198_v0 }
 0xa59   : > { %7245 = vmatpush1.bf16.msra.mxu1 %v7197_v7 }
 0xa5a   : > { %7246 = vmatprep.subr.bf16.mxu1 %v7200_v9 }
 0xa5d   : > { %7247 = vmatpush1.bf16.msra.mxu1 %v7199_v54 }
 0xa5e   : > { %7248 = vmatprep.subr.bf16.mxu1 %v7202_v57 }
 0xa61   : > { %7249 = vmatpush1.bf16.msra.mxu1 %v7201_v14 }
 0xa62   : > { %11434 = vmatprep.subr.msk.bf16.mxu1 %vm543_vm1, %v7204_v63 }
 0xa65   : > { %7251 = vmatpush1.bf16.msra.mxu1 %v7230_v53 }
 0xa66   : > { %12359 = vmatprep.subr.bf16.mxu1 %v15684_v18 }
 0xa68   : > { %11435 = vmatmul.mubr.msk.bf16.vlgmr.msra.gmra.mrb[24].mxu1 %vm5999_vm5, %v12939_v42 }
 0xa69   : > { %12360 = vmatpush3.bf16.msra.mxu1 %v15684_v18  ;;  %7280 = vmatprep.mubr.bf16.mxu1 %v15074_v29  ;;  %v15784_v29 = vpop.permute.xlu1 %7389  ;;  %v7386_v18 = vpop.permute.xlu0 %7385 }
 0xa6a   : > { %12361 = vmatprep.subr.bf16.mxu1 %v15693_v47  ;;  %v7415_v35 = vsel %vm17747_vm0, %v7386_v18, %v7388_v40 }
 0xa6d   : > { %12362 = vmatpush3.bf16.msra.mxu1 %v15693_v47  ;;  %v7394_v24 = vpop.permute.xlu1 %7393  ;;  %v15789_v8 = vpop.permute.xlu0 %7395 }
 0xa6e   : > { %12363 = vmatprep.subr.bf16.mxu1 %v15703_v22  ;;  %v7418_v27 = vsel %vm17754_vm15, %v7394_v24, %v15789_v8 }
 0xa70   : > { %11436 = vmatmul.mubr.msk.bf16.gmra.mrb[28].mxu1 %vm5999_vm5, %v12940_v5 }
 0xa71   : > { %12364 = vmatpush3.bf16.msra.mxu1 %v15703_v22  ;;  %12373 = vmatprep.mubr.msk.bf16.mxu1 %vm5999_vm5, %v12939_v42  ;;  %v7392_v47 = vpop.permute.xlu1 %7391  ;;  %v7400_v30 = vpop.permute.xlu0 %7399  ;;  %v7411_v22 = vsel %vm17750_vm8, %v7374_v33, %v7376_v6  ;;  %vm17756_vm8 = vmmov %vm17747_vm0 }
 0xa72   : > { %12365 = vmatprep.subr.bf16.mxu1 %v15714_v23  ;;  %v7417_v4 = vsel %vm17755_vm6, %v7392_v47, %v7394_v24 }
 0xa75   : > { %12366 = vmatpush3.bf16.msra.mxu1 %v15714_v23  ;;  %v7404_v28 = vpop.permute.xlu1 %7403  ;;  %v7398_v61 = vpop.permute.xlu0 %7397  ;;  %v7416_v23 = vsel %vm17753_vm4, %v7388_v40, %v15784_v29  ;;  %vm17759_vm4 = vmmov %vm17747_vm0  ;;  %vm17760_vm0 = vcmask 736256  }
 0xa76   : > { %12367 = vmatprep.subr.bf16.mxu1 %v15726_v60  ;;  %v7419_v19 = vsel %vm17757_vm3, %v7398_v61, %v7400_v30  ;;  %vm17761_vm15 = vmmov %vm17760_vm0 }
 0xa77   : > { %vm17762_vm6 = vmmov %vm17760_vm0 }
 0xa78   : > { %vm17764_vm3 = vmmov %vm17760_vm0 }
 0xa79   : > { %12368 = vmatpush3.bf16.msra.mxu1 %v15726_v60  ;;  %v7402_v11 = vpop.permute.xlu1 %7401  ;;  %v7406_v48 = vpop.permute.xlu0 %7405 }
 0xa7a   : > { %12369 = vmatprep.subr.bf16.mxu1 %v7184_v1  ;;  %v7420_v16 = vsel %vm17756_vm8, %v7400_v30, %v7402_v11  ;;  %v7421_v13 = vsel %vm17758_vm10, %v7404_v28, %v7406_v48  ;;  %vm17763_vm8 = vmmov %vm17760_vm0  ;;  %v12943_v28 = vld [vmem:[%s17465_s4 + $0x80] sm:$0xff]  }
 0xa7b   : > { %v7448_v2 = vsel %vm543_vm1, %v7421_v13, 0  ;;  %vm17765_vm10 = vmmov %vm17760_vm0 }
 0xa7d   : > { %12370 = vmatpush3.bf16.msra.mxu1 %v7184_v1  ;;  %v7408_v60 = vpop.permute.xlu1 %7407  ;;  %v7588_v26 = vpop.permute.xlu0 %7587 }
 0xa7e   : > { %12830 = vmatprep.subr.msk.bf16.mxu1 %vm543_vm1, %v7190_v32  ;;  %v7422_v44 = vsel %vm17759_vm4, %v7406_v48, %v7408_v60  ;;  %v7454_v57 = vsel %vm543_vm1, %v7408_v60, 0  ;;  %vm17766_vm4 = vmmov %vm17760_vm0 }
 0xa81   : > { %12372 = vmatpush3.bf16.msra.mxu1 %v7236_v3  ;;  %v15814_v17 = vpop.permute.xlu1 %7589  ;;  %v7586_v1 = vpop.permute.xlu0 %7585 }
 0xa82   : > { %7456 = vmatprep.subr.bf16.mxu1 %v7410_v56  ;;  %v7628_v6 = vsel %vm17760_vm0, %v7588_v26, %v15814_v17  ;;  %v7627_v14 = vsel %vm17761_vm15, %v7586_v1, %v7588_v26  ;;  %vm17767_vm15 = vmmov %vm17760_vm0 }
 0xa84   : > { %12374 = vmatmul.mubr.msk.bf16.vlgmr.msra.gmra.mrb[32].mxu1 %vm5999_vm5, %v12940_v5 }
 0xa85   : > { %7457 = vmatpush1.bf16.msra.mxu1 %v7409_v20  ;;  %7488 = vmatprep.mubr.bf16.mxu1 %v15799_v58  ;;  %v7594_v50 = vpop.permute.xlu1 %7593  ;;  %v15824_v38 = vpop.permute.xlu0 %7595 }
 0xa86   : > { %7458 = vmatprep.subr.bf16.mxu1 %v7412_v36  ;;  %v7630_v63 = vsel %vm17762_vm6, %v7594_v50, %v15824_v38  ;;  %vm17768_vm6 = vmmov %vm17760_vm0 }
 0xa89   : > { %7459 = vmatpush1.bf16.msra.mxu1 %v7411_v22  ;;  %v7592_v32 = vpop.permute.xlu1 %7591  ;;  %v7600_v0 = vpop.permute.xlu0 %7599  ;;  %v12944_v22 = vld [vmem:[%s17465_s4 + $0x88] sm:$0xff]  }
 0xa8a   : > { %7460 = vmatprep.subr.bf16.mxu1 %v7414_v62  ;;  %v7629_v33 = vsel %vm17763_vm8, %v7592_v32, %v7594_v50  ;;  %vm17769_vm8 = vmmov %vm17760_vm0 }
 0xa8d   : > { %7461 = vmatpush1.bf16.msra.mxu1 %v7413_v41  ;;  %v15838_v37 = vpop.permute.xlu1 %7601  ;;  %v7598_v7 = vpop.permute.xlu0 %7597 }
 0xa8e   : > { %7462 = vmatprep.subr.bf16.mxu1 %v7416_v23  ;;  %v7632_v53 = vsel %vm17764_vm3, %v7600_v0, %v15838_v37  ;;  %v7631_v45 = vsel %vm17765_vm10, %v7598_v7, %v7600_v0  ;;  %vm17770_vm3 = vmmov %vm17760_vm0 }
 0xa8f   : > { %vm17771_vm10 = vmmov %vm17760_vm0 }
 0xa91   : > { %7463 = vmatpush1.bf16.msra.mxu1 %v7415_v35  ;;  %v7608_v9 = vpop.permute.xlu0 %7607 }
 0xa92   : > { %7464 = vmatprep.subr.bf16.mxu1 %v7418_v27 }
 0xa95   : > { %7465 = vmatpush1.bf16.msra.mxu1 %v7417_v4  ;;  %v7612_v25 = vpop.permute.xlu0 %7611 }
 0xa96   : > { %7466 = vmatprep.subr.bf16.mxu1 %v7420_v16 }
 0xa99   : > { %7467 = vmatpush1.bf16.msra.mxu1 %v7419_v19 }
 0xa9a   : > { %11445 = vmatprep.subr.msk.bf16.mxu1 %vm543_vm1, %v7422_v44 }
 0xa9d   : > { %7469 = vmatpush1.bf16.msra.mxu1 %v7448_v2 }
 0xa9e   : > { %12377 = vmatprep.subr.bf16.mxu1 %v15752_v34 }
 0xaa0   : > { %11446 = vmatmul.mubr.msk.bf16.vlgmr.msra.gmra.mrb[24].mxu1 %vm5999_vm5, %v12941_v21 }
 0xaa1   : > { %12378 = vmatpush3.bf16.msra.mxu1 %v15752_v34  ;;  %7498 = vmatprep.mubr.bf16.mxu1 %v15799_v58  ;;  %v7606_v34 = vpop.permute.xlu1 %7605 }
 0xaa2   : > { %12379 = vmatprep.subr.bf16.mxu1 %v15761_v39  ;;  %v7634_v5 = vsel %vm17766_vm4, %v7606_v34, %v7608_v9  ;;  %vm17772_vm4 = vmmov %vm17760_vm0 }
 0xaa5   : > { %12380 = vmatpush3.bf16.msra.mxu1 %v15761_v39  ;;  %v7604_v54 = vpop.permute.xlu1 %7603  ;;  %v7610_v39 = vpop.permute.xlu0 %7609 }
 0xaa6   : > { %12381 = vmatprep.subr.bf16.mxu1 %v15772_v51  ;;  %v7633_v52 = vsel %vm17760_vm0, %v7604_v54, %v7606_v34  ;;  %v7635_v24 = vsel %vm17768_vm6, %v7610_v39, %v7612_v25 }
 0xaa8   : > { %11447 = vmatmul.mubr.msk.bf16.gmra.mrb[28].mxu1 %vm5999_vm5, %v12942_v59 }
 0xaa9   : > { %12382 = vmatpush3.bf16.msra.mxu1 %v15772_v51  ;;  %12391 = vmatprep.mubr.msk.bf16.mxu1 %vm5999_vm5, %v12941_v21  ;;  %v7614_v43 = vpop.permute.xlu1 %7613  ;;  %v7622_v51 = vpop.permute.xlu0 %7621 }
 0xaaa   : > { %12383 = vmatprep.subr.bf16.mxu1 %v15784_v29 }
 0xaad   : > { %12384 = vmatpush3.bf16.msra.mxu1 %v15784_v29  ;;  %v7618_v42 = vpop.permute.xlu1 %7617  ;;  %v7636_v29 = vsel %vm17767_vm15, %v7612_v25, %v7614_v43  ;;  %v7620_v18 = vpop.permute.xlu0 %7619 }
 0xaae   : > { %12385 = vmatprep.subr.bf16.mxu1 %v15789_v8 }
 0xab1   : > { %12386 = vmatpush3.bf16.msra.mxu1 %v15789_v8  ;;  %v7616_v40 = vpop.permute.xlu1 %7615  ;;  %v7638_v8 = vsel %vm17769_vm8, %v7618_v42, %v7620_v18  ;;  %v7626_v56 = vpop.permute.xlu0 %7625 }
 0xab2   : > { %12387 = vmatprep.subr.bf16.mxu1 %v7402_v11  ;;  %v7637_v3 = vsel %vm17770_vm3, %v7616_v40, %v7618_v42  ;;  %v7672_v61 = vsel %vm543_vm1, %v7626_v56, 0 }
 0xab5   : > { %12388 = vmatpush3.bf16.msra.mxu1 %v7402_v11  ;;  %v7624_v47 = vpop.permute.xlu1 %7623  ;;  %v15889_v48 = vpop.permute.xlu0 %7799 }
 0xab6   : > { %12831 = vmatprep.subr.msk.bf16.mxu1 %vm543_vm1, %v7408_v60  ;;  %v7639_v30 = vsel %vm17771_vm10, %v7622_v51, %v7624_v47  ;;  %v7640_v20 = vsel %vm17772_vm4, %v7624_v47, %v7626_v56 }
 0xab7   : > { %v7666_v36 = vsel %vm543_vm1, %v7639_v30, 0 }
 0xab9   : > { %12390 = vmatpush3.bf16.msra.mxu1 %v7454_v57  ;;  %v15886_v62 = vpop.permute.xlu1 %7794  ;;  %v7810_v54 = vpop.permute.xlu0 %7809 }
 0xaba   : > { %7674 = vmatprep.subr.bf16.mxu1 %v7628_v6 }
 0xabc   : > { %12392 = vmatmul.mubr.msk.bf16.vlgmr.msra.gmra.mrb[32].mxu1 %vm5999_vm5, %v12942_v59 }
 0xabd   : > { %7675 = vmatpush1.bf16.msra.mxu1 %v7627_v14  ;;  %7706 = vmatprep.mubr.bf16.mxu1 %v15799_v58 }
 0xabe   : > { %7676 = vmatprep.subr.bf16.mxu1 %v7630_v63 }
 0xac1   : > { %7677 = vmatpush1.bf16.msra.mxu1 %v7629_v33 }
 0xac2   : > { %7678 = vmatprep.subr.bf16.mxu1 %v7632_v53 }
 0xac5   : > { %7679 = vmatpush1.bf16.msra.mxu1 %v7631_v45 }
 0xac6   : > { %7680 = vmatprep.subr.bf16.mxu1 %v7634_v5 }
 0xac9   : > { %7681 = vmatpush1.bf16.msra.mxu1 %v7633_v52 }
 0xaca   : > { %7682 = vmatprep.subr.bf16.mxu1 %v7636_v29 }
 0xacd   : > { %7683 = vmatpush1.bf16.msra.mxu1 %v7635_v24 }
 0xace   : > { %7684 = vmatprep.subr.bf16.mxu1 %v7638_v8 }
 0xad1   : > { %7685 = vmatpush1.bf16.msra.mxu1 %v7637_v3 }
 0xad2   : > { %11456 = vmatprep.subr.msk.bf16.mxu1 %vm543_vm1, %v7640_v20 }
 0xad5   : > { %7687 = vmatpush1.bf16.msra.mxu1 %v7666_v36 }
 0xad6   : > { %12395 = vmatprep.subr.bf16.mxu1 %v15814_v17 }
 0xad8   : > { %11457 = vmatmul.mubr.msk.bf16.vlgmr.msra.gmra.mrb[24].mxu1 %vm5999_vm5, %v12943_v28 }
 0xad9   : > { %12396 = vmatpush3.bf16.msra.mxu1 %v15814_v17  ;;  %7716 = vmatprep.mubr.bf16.mxu1 %v15799_v58 }
 0xada   : > { %12397 = vmatprep.subr.bf16.mxu1 %v15824_v38 }
 0xadd   : > { %12398 = vmatpush3.bf16.msra.mxu1 %v15824_v38  ;;  %v7805_v38 = vpop.permute.xlu1 %7804 }
 0xade   : > { %12399 = vmatprep.subr.bf16.mxu1 %v15838_v37 }
 0xae0   : > { %11458 = vmatmul.mubr.msk.bf16.gmra.mrb[28].mxu1 %vm5999_vm5, %v12944_v22 }
 0xae1   : > { %12400 = vmatpush3.bf16.msra.mxu1 %v15838_v37  ;;  %12409 = vmatprep.mubr.msk.bf16.mxu1 %vm5999_vm5, %v12943_v28 }
 0xae2   : > { %12401 = vmatprep.subr.bf16.mxu1 %v7608_v9 }
 0xae5   : > { %12402 = vmatpush3.bf16.msra.mxu1 %v7608_v9 }
 0xae6   : > { %12403 = vmatprep.subr.bf16.mxu1 %v7614_v43 }
 0xae9   : > { %12404 = vmatpush3.bf16.msra.mxu1 %v7614_v43 }
 0xaea   : > { %12405 = vmatprep.subr.bf16.mxu1 %v7620_v18 }
 0xaed   : > { %12406 = vmatpush3.bf16.msra.mxu1 %v7620_v18 }
 0xaee   : > { %12832 = vmatprep.subr.msk.bf16.mxu1 %vm543_vm1, %v7626_v56 }
 0xaf1   : > { %12408 = vmatpush3.bf16.msra.mxu1 %v7672_v61 }
 0xaf4   : > { %12410 = vmatmul.mubr.msk.bf16.vlgmr.msra.gmra.mrb[32].mxu1 %vm5999_vm5, %v12944_v22 }
 0xbab   : > { %v7708_v41 = vpop.f32.mrb[24].mxu1 }
 0xbac   : > { %v7812_v11 = vadd.f32 %v15886_v62, %v7708_v41  ;;  %v7710_v23 = vpop.f32.mrb[25].mxu1 }
 0xbad   : > { %v7813_v35 = vadd.f32 %v15886_v62, %v7710_v23  ;;  %v7712_v27 = vpop.f32.mrb[26].mxu1 }
 0xbae   : > { %vm7824_vm0 = vcmp.gt.f32.partialorder %v7812_v11, 0.0  ;;  %v7836_v60 = vmul.f32 0.2, %v7812_v11  ;;  %v7815_v4 = vadd.f32 %v15889_v48, %v7712_v27  ;;  %v7714_v26 = vpop.f32.mrb[27].mxu1 }
 0xbaf   : > { %vm7825_vm15 = vcmp.gt.f32.partialorder %v7813_v35, 0.0  ;;  %v7837_v16 = vmul.f32 0.2, %v7813_v35  ;;  %v7816_v19 = vadd.f32 %v15889_v48, %v7714_v26 }
 0xbb0   : > { %v7848_v17 = vsel %vm7824_vm0, %v7812_v11, %v7836_v60  ;;  %vm7827_vm5 = vcmp.gt.f32.partialorder %v7815_v4, 0.0  ;;  %v7839_v13 = vmul.f32 0.2, %v7815_v4 }
 0xbb1   : > { %v7860_v44 = vsel %vm13500_vm12, %v7848_v17, 0.0  ;;  %v7849_v1 = vsel %vm7825_vm15, %v7813_v35, %v7837_v16  ;;  %vm7828_vm6 = vcmp.gt.f32.partialorder %v7816_v19, 0.0  ;;  %v7840_v2 = vmul.f32 0.2, %v7816_v19 }
 0xbb2   : > { %v7861_v21 = vsel %vm13505_vm14, %v7849_v1, 0.0  ;;  %v7851_v50 = vsel %vm7827_vm5, %v7815_v4, %v7839_v13 }
 0xbb3   : > { %v11757_v32 = vpack.c.bf16 %v7861_v21, %v7860_v44  ;;  %v7863_v59 = vsel %vm13500_vm12, %v7851_v50, 0.0  ;;  %v7852_v0 = vsel %vm7828_vm6, %v7816_v19, %v7840_v2  ;;  %v7718_v37 = vpop.f32.mrb[28].mxu1 }
 0xbb4   : > { %v7864_v7 = vsel %vm13505_vm14, %v7852_v0, 0.0  ;;  %v7818_v34 = vadd.f32 %v7805_v38, %v7718_v37  ;;  %v7720_v9 = vpop.f32.mrb[29].mxu1 }
 0xbb5   : > { %v11759_v25 = vpack.c.bf16 %v7864_v7, %v7863_v59  ;;  %v7819_v57 = vadd.f32 %v7805_v38, %v7720_v9  ;;  %v7722_v6 = vpop.f32.mrb[30].mxu1  ;;  %v7904_v14 = vrot.slane %v11757_v32, 6 }
 0xbb6   : > { %vm7830_vm8 = vcmp.gt.f32.partialorder %v7818_v34, 0.0  ;;  %v7842_v43 = vmul.f32 0.2, %v7818_v34  ;;  %v7821_v63 = vadd.f32 %v7810_v54, %v7722_v6  ;;  %v7724_v39 = vpop.f32.mrb[31].mxu1 }
 0xbb7   : > { %v7907_v33 = vrot.slane %v11759_v25, 6  ;;  %vm7831_vm3 = vcmp.gt.f32.partialorder %v7819_v57, 0.0  ;;  %v7843_v53 = vmul.f32 0.2, %v7819_v57  ;;  %v7822_v42 = vadd.f32 %v7810_v54, %v7724_v39  ;;  %7926 = vrot.lane.b32.xlu1 %v7904_v14, %s13112_s19 }
 0xbb8   : > { %v7854_v45 = vsel %vm7830_vm8, %v7818_v34, %v7842_v43  ;;  %vm7833_vm10 = vcmp.gt.f32.partialorder %v7821_v63, 0.0  ;;  %v7845_v51 = vmul.f32 0.2, %v7821_v63  ;;  %v7906_v5 = vrot.slane %v7904_v14, 4 }
 0xbb9   : > { %v7866_v52 = vsel %vm13500_vm12, %v7854_v45, 0.0  ;;  %v7855_v40 = vsel %vm7831_vm3, %v7819_v57, %v7843_v53  ;;  %vm7834_vm4 = vcmp.gt.f32.partialorder %v7822_v42, 0.0  ;;  %v7846_v29 = vmul.f32 0.2, %v7822_v42  ;;  %v15946_v53 = vld [vmem:[#allocation2 + $0x8] ss:$12 sps:$4 sm:$0xff]  }
 0xbba   : > { %v7867_v18 = vsel %vm13505_vm14, %v7855_v40, 0.0  ;;  %v7857_v24 = vsel %vm7833_vm10, %v7821_v63, %v7845_v51  ;;  %v7908_v8 = vsel %vm13531_vm7, %v7906_v5, %v7907_v33  ;;  %v7912_v28 = vrot.slane %v7907_v33, 4  ;;  %v15942_v33 = vld [vmem:[#allocation2 + $0x4] ss:$12 sps:$4 sm:$0xff]   ;;  %v15958_v45 = vld [vmem:[#allocation2 + $0x20] ss:$12 sps:$4 sm:$0xff]  }
 0xbbb   : > { %v11761_v47 = vpack.c.bf16 %v7867_v18, %v7866_v52  ;;  %v7869_v3 = vsel %vm13500_vm12, %v7857_v24, 0.0  ;;  %v7858_v56 = vsel %vm7834_vm4, %v7822_v42, %v7846_v29  ;;  %7930 = vrot.lane.b32.xlu0 %v7908_v8, %s13112_s19  ;;  %v15954_v42 = vld [vmem:[#allocation2 + $0x1c] ss:$12 sps:$4 sm:$0xff]   ;;  %v15962_v51 = vld [vmem:[#allocation2 + $0x18] ss:$12 sps:$4 sm:$0xff]   ;;  %vm17778_vm8 = vcmask 412674  }
 0xbbc   : > { %v7870_v30 = vsel %vm13505_vm14, %v7858_v56, 0.0  ;;  %v15966_v5 = vld [vmem:[#allocation2 + $0x34] ss:$12 sps:$4 sm:$0xff]   ;;  %v15970_v52 = vld [vmem:[#allocation2 + $0x38] ss:$12 sps:$4 sm:$0xff]   ;;  %vm17780_vm3 = vcmask 412672  }
 0xbbd   : > { %v7913_v20 = vrot.slane %v11761_v47, 6  ;;  %v11763_v36 = vpack.c.bf16 %v7870_v30, %v7869_v3  ;;  %v15974_v40 = vld [vmem:[#allocation2 + $0x30] ss:$12 sps:$4 sm:$0xff]   ;;  %v15978_v29 = vld [vmem:[#allocation2 + $0x4c] ss:$12 sps:$4 sm:$0xff]   ;;  %vm17782_vm4 = vmmov %vm17780_vm3 }
 0xbbe   : > { %v15982_v18 = vld [vmem:[#allocation2 + $0x50] ss:$12 sps:$4 sm:$0xff]   ;;  %v15986_v24 = vld [vmem:[#allocation2 + $0x48] ss:$12 sps:$4 sm:$0xff]   ;;  %v15998_v3 = vld [vmem:[#allocation2 + $0x60] ss:$12 sps:$4 sm:$0xff]  }
 0xbbf   : > { %v7919_v22 = vrot.slane %v11763_v36, 6  ;;  %v7914_v61 = vsel %vm13531_vm7, %v7912_v28, %v7913_v20  ;;  %v7918_v41 = vrot.slane %v7913_v20, 4  ;;  %v15990_v8 = vld [vmem:[#allocation2 + $0x64] ss:$12 sps:$4 sm:$0xff]   ;;  %v15994_v47 = vld [vmem:[#allocation2 + $0x68] ss:$12 sps:$4 sm:$0xff]  }
 0xbc0   : > { %7934 = vrot.lane.b32.xlu1 %v7914_v61, %s13112_s19  ;;  %v16002_v56 = vld [vmem:[#allocation2 + $0x7c] ss:$12 sps:$4 sm:$0xff]   ;;  %v16006_v30 = vld [vmem:[#allocation2 + $0x80] ss:$12 sps:$4 sm:$0xff]   ;;  %v16010_v20 = vld [vmem:[#allocation2 + $0x78] ss:$12 sps:$4 sm:$0xff]  }
 0xbc1   : > { %v7920_v12 = vsel %vm13531_vm7, %v7918_v41, %v7919_v22  ;;  %v7924_v63 = vrot.slane %v7919_v22, 4 }
 0xbc2   : > { %7938 = vrot.lane.b32.xlu0 %v7920_v12, %s13112_s19 }
 0xbc7   : > { %v12411_v11 = vpop.f32.mrb[32].mxu1 }
 0xbc8   : > { %v7820_v23 = vadd.f32 %v12411_v11, %v7805_v38  ;;  %v7761_v35 = vpop.f32.mrb[33].mxu1 }
 0xbc9   : > { %v7814_v15 = vadd.f32 %v15886_v62, %v7761_v35  ;;  %v12412_v27 = vpop.f32.mrb[34].mxu1 }
 0xbca   : > { %vm7832_vm12 = vcmp.gt.f32.partialorder %v7820_v23, 0.0  ;;  %v7844_v60 = vmul.f32 0.2, %v7820_v23  ;;  %v7823_v4 = vadd.f32 %v12412_v27, %v7810_v54  ;;  %v7764_v26 = vpop.f32.mrb[35].mxu1 }
 0xbcb   : > { %vm7826_vm14 = vcmp.gt.f32.partialorder %v7814_v15, 0.0  ;;  %v7838_v16 = vmul.f32 0.2, %v7814_v15  ;;  %v7817_v19 = vadd.f32 %v15889_v48, %v7764_v26 }
 0xbcc   : > { %v7856_v17 = vsel %vm7832_vm12, %v7820_v23, %v7844_v60  ;;  %vm7835_vm0 = vcmp.gt.f32.partialorder %v7823_v4, 0.0  ;;  %v7847_v13 = vmul.f32 0.2, %v7823_v4 }
 0xbcd   : > { %v7868_v44 = vsel %vm13520_vm11, %v7856_v17, 0.0  ;;  %v7850_v1 = vsel %vm7826_vm14, %v7814_v15, %v7838_v16  ;;  %vm7829_vm15 = vcmp.gt.f32.partialorder %v7817_v19, 0.0  ;;  %v7841_v2 = vmul.f32 0.2, %v7817_v19  ;;  %vm17784_vm14 = vmmov %vm17780_vm3 }
 0xbce   : > { %v11762_v21 = vpack.c.bf16 %v7868_v44, %v7868_v44  ;;  %v7862_v62 = vsel %vm13520_vm11, %v7850_v1, 0.0  ;;  %v7859_v50 = vsel %vm7835_vm0, %v7823_v4, %v7847_v13 }
 0xbcf   : > { %v11758_v38 = vpack.c.bf16 %v7862_v62, %v7862_v62  ;;  %v7871_v32 = vsel %vm13520_vm11, %v7859_v50, 0.0  ;;  %v7853_v59 = vsel %vm7829_vm15, %v7817_v19, %v7841_v2 }
 0xbd0   : > { %v7916_v48 = vrot.slane %v11762_v21, 6  ;;  %v11764_v0 = vpack.c.bf16 %v7871_v32, %v7871_v32  ;;  %v7865_v37 = vsel %vm13520_vm11, %v7853_v59, 0.0 }
 0xbd1   : > { %v7905_v7 = vrot.slane %v11758_v38, 6  ;;  %v11760_v34 = vpack.c.bf16 %v7865_v37, %v7865_v37 }
 0xbd2   : > { %v7922_v9 = vrot.slane %v11764_v0, 6  ;;  %v7921_v54 = vrot.slane %v7916_v48, 4 }
 0xbd3   : > { %v7910_v25 = vrot.slane %v11760_v34, 6  ;;  %7928 = vrot.lane.b32.xlu1 %v7905_v7, %s13112_s19  ;;  %v7909_v57 = vrot.slane %v7905_v7, 4 }
 0xbd4   : > { %v7923_v6 = vsel %vm13531_vm7, %v7921_v54, %v7922_v9  ;;  %v7925_v39 = vrot.slane %v7922_v9, 4 }
 0xbd5   : > { %v7911_v14 = vsel %vm13531_vm7, %v7909_v57, %v7910_v25  ;;  %v7915_v43 = vrot.slane %v7910_v25, 4 }
 0xbd6   : > { %7932 = vrot.lane.b32.xlu0 %v7911_v14, %s13112_s19 }
 0xbd7   : > { %v7917_v31 = vsel %vm13531_vm7, %v7915_v43, %v7916_v48  ;;  %vm17773_vm7 = vcmask 154624  }
 0xbd8   : > { %7936 = vrot.lane.b32.xlu1 %v7917_v31, %s13112_s19  ;;  %vm17774_vm11 = vmmov %vm17773_vm7 }
 0xbd9   : > { %vm17775_vm5 = vmmov %vm17773_vm7 }
 0xbda   : > { %7940 = vrot.lane.b32.xlu0 %v7923_v6, %s13112_s19  ;;  %vm17776_vm6 = vmmov %vm17775_vm5 }
 0xbdc   : > { %7942 = vrot.lane.b32.xlu1 %v7924_v63, %s13112_s19 }
 0xbde   : > { %7944 = vrot.lane.b32.xlu0 %v7925_v39, %s13112_s19 }
 0xbe0   : > { %8142 = vrot.lane.b32.xlu1 %v15942_v33, %s13104_s24 }
 0xbe2   : > { %8144 = vrot.lane.b32.xlu0 %v15946_v53, %s13104_s24 }
 0xbe4   : > { %8140 = vrot.lane.b32.xlu1 %v15950_v55, %s13104_s24 }
 0xbe6   : > { %8148 = vrot.lane.b32.xlu0 %v15954_v42, %s13104_s24 }
 0xbe8   : > { %8150 = vrot.lane.b32.xlu1 %v15958_v45, %s13104_s24 }
 0xbea   : > { %8146 = vrot.lane.b32.xlu0 %v15962_v51, %s13104_s24 }
 0xbec   : > { %8154 = vrot.lane.b32.xlu1 %v15966_v5, %s13104_s24 }
 0xbee   : > { %8156 = vrot.lane.b32.xlu0 %v15970_v52, %s13104_s24 }
 0xbf0   : > { %8152 = vrot.lane.b32.xlu1 %v15974_v40, %s13104_s24 }
 0xbf2   : > { %8160 = vrot.lane.b32.xlu0 %v15978_v29, %s13104_s24 }
 0xbf4   : > { %8162 = vrot.lane.b32.xlu1 %v15982_v18, %s13104_s24 }
 0xbf6   : > { %8158 = vrot.lane.b32.xlu0 %v15986_v24, %s13104_s24 }
 0xbf8   : > { %8166 = vrot.lane.b32.xlu1 %v15990_v8, %s13104_s24 }
 0xbfa   : > { %8168 = vrot.lane.b32.xlu0 %v15994_v47, %s13104_s24 }
 0xbfc   : > { %8164 = vrot.lane.b32.xlu1 %v15998_v3, %s13104_s24 }
 0xbfe   : > { %8172 = vrot.lane.b32.xlu0 %v16002_v56, %s13104_s24 }
 0xc00   : > { %8174 = vrot.lane.b32.xlu1 %v16006_v30, %s13104_s24 }
 0xc02   : > { %8170 = vrot.lane.b32.xlu0 %v16010_v20, %s13104_s24 }
 0xc29   : > { %v7927_v36 = vpop.permute.xlu1 %7926 }
 0xc2a   : > { %v7946_v28 = vrot.slane %v7927_v36, 4 }
 0xc2c   : > { %v7951_v22 = vsel %vm17773_vm7, %v7946_v28, %v7927_v36  ;;  %vm17787_vm7 = vcmask 410624   ;;  %v16080_v36 = vld.sshfl [vmem:[%s17466_s5 + $0x4] sm:$0x33 pattern:$0x76325410] }
 0xc2d   : > { %7971 = vst.msk [vmem:[#allocation2 + $0x90] sm:$0xcc] %vm13577_vm9, %v7951_v22  ;;  %v7931_v61 = vpop.permute.xlu0 %7930  ;;  %vm17777_vm9 = vmmov %vm17775_vm5 }
 0xc2e   : > { %v7947_v41 = vrot.slane %v7931_v61, 4 }
 0xc30   : > { %v7953_v12 = vsel %vm17774_vm11, %v7947_v41, %v7931_v61  ;;  %vm17788_vm11 = vcmask 1039360   ;;  %v16086_v61 = vcombine.high %v16080_v36, %v16080_v36 }
 0xc31   : > { %7973 = vst.msk [vmem:[#allocation2 + $0x9c] sm:$0xff] %vm13584_vm2, %v7953_v12 }
 0xc32   : > { %v7935_v11 = vpop.permute.xlu1 %7934 }
 0xc33   : > { %v7948_v23 = vrot.slane %v7935_v11, 4 }
 0xc34   : > { %v7939_v35 = vpop.permute.xlu0 %7938 }
 0xc35   : > { %v7955_v15 = vsel %vm17775_vm5, %v7948_v23, %v7935_v11  ;;  %v7949_v27 = vrot.slane %v7939_v35, 4 }
 0xc36   : > { %7975 = vst.msk [vmem:[#allocation2 + $0xa8] sm:$0xff] %vm13584_vm2, %v7955_v15 }
 0xc37   : > { %v7957_v60 = vsel %vm17776_vm6, %v7949_v27, %v7939_v35 }
 0xc38   : > { %7977 = vst.msk [vmem:[#allocation2 + $0xb4] sm:$0xff] %vm13584_vm2, %v7957_v60  ;;  %v16026_v46 = vld [vmem:[#allocation2 + $0x94] ss:$12 sps:$4 sm:$0xff]   ;;  %v16030_v4 = vld [vmem:[#allocation2 + $0x90] ss:$12 sps:$4 sm:$0xff]   ;;  %vm17779_vm2 = vmmov %vm17775_vm5 }
 0xc39   : > { %8178 = vrot.lane.b32.xlu1 %v16026_v46, %s13104_s24  ;;  %vm17781_vm10 = vmmov %vm17779_vm2 }
 0xc3a   : > { %vm17783_vm12 = vmmov %vm17779_vm2 }
 0xc3b   : > { %vm17785_vm0 = vmmov %vm17779_vm2 }
 0xc3c   : > { %vm17786_vm15 = vmmov %vm17785_vm0 }
 0xc3d   : > { %8176 = vrot.lane.b32.xlu1 %v16030_v4, %s13104_s24  ;;  %v8009_v37 = vld [vmem:[#allocation2 + $0xa8] sm:$0xff]  ;;  %vm17789_vm5 = vmmov %vm17788_vm11 }
 0xc3e   : > { %vm17791_vm6 = vmmov %vm17789_vm5 }
 0xc3f   : > { %v16034_v26 = vld [vmem:[#allocation2 + $0xac] ss:$12 sps:$4 sm:$0xff]  }
 0xc40   : > { %8184 = vrot.lane.b32.xlu0 %v16034_v26, %s13104_s24  ;;  %v8011_v48 = vld [vmem:[#allocation2 + $0xb4] sm:$0xff] }
 0xc41   : > { %v16059_v9 = vcombine.low %v8009_v37, %v8011_v48 }
 0xc45   : > { %v7929_v16 = vpop.permute.xlu1 %7928 }
 0xc46   : > { %v7952_v19 = vsel %vm17777_vm9, %v7946_v28, %v7929_v16  ;;  %vm17792_vm9 = vmmov %vm17789_vm5  ;;  %v12980_v16 = vld [vmem:[#allocation2 + $0x8] ss:$12 sps:$4 sm:$0xff]  }
 0xc47   : > { %7972 = vst.msk [vmem:[#allocation2 + $0x98] sm:$0xc] %vm17778_vm8, %v7952_v19  ;;  %vm17793_vm8 = vcmask 31744  }
 0xc48   : > { %v7933_v49 = vpop.permute.xlu0 %7932  ;;  %11499 = vmatprep.mubr.msk.bf16.mxu0 %vm17793_vm8, %v16086_v61 }
 0xc49   : > { %v7954_v17 = vsel %vm17779_vm2, %v7947_v41, %v7933_v49  ;;  %vm17794_vm2 = vmmov %vm17789_vm5 }
 0xc4a   : > { %7974 = vst.msk [vmem:[#allocation2 + $0xa4] sm:$0xf] %vm17780_vm3, %v7954_v17  ;;  %v7937_v13 = vpop.permute.xlu1 %7936  ;;  %vm17795_vm3 = vmmov %vm17794_vm2 }
 0xc4b   : > { %v7956_v44 = vsel %vm17781_vm10, %v7948_v23, %v7937_v13  ;;  %vm17796_vm10 = vmmov %vm17794_vm2 }
 0xc4c   : > { %7976 = vst.msk [vmem:[#allocation2 + $0xb0] sm:$0xf] %vm17782_vm4, %v7956_v44  ;;  %v7941_v1 = vpop.permute.xlu0 %7940  ;;  %vm17797_vm4 = vmmov %vm17794_vm2 }
 0xc4d   : > { %v7958_v2 = vsel %vm17783_vm12, %v7949_v27, %v7941_v1  ;;  %v12979_v27 = vld [vmem:[#allocation2 + $0x20] ss:$12 sps:$4 sm:$0xff]   ;;  %vm17798_vm12 = vmmov %vm17794_vm2 }
 0xc4e   : > { %7978 = vst.msk [vmem:[#allocation2 + $0xbc] sm:$0xf] %vm17784_vm14, %v7958_v2  ;;  %v7943_v21 = vpop.permute.xlu1 %7942  ;;  %vm17799_vm14 = vmmov %vm17794_vm2 }
 0xc4f   : > { %v7950_v62 = vrot.slane %v7943_v21, 4 }
 0xc50   : > { %v7945_v50 = vpop.permute.xlu0 %7944 }
 0xc51   : > { %v7959_v38 = vsel %vm17785_vm0, %v7950_v62, %v7943_v21  ;;  %v7960_v32 = vsel %vm17786_vm15, %v7950_v62, %v7945_v50  ;;  %v16048_v59 = vld [vmem:[#allocation2 + $0x98] ss:$12 sps:$4 sm:$0xff]   ;;  %vm17800_vm0 = vmmov %vm17794_vm2 }
 0xc52   : > { %7979 = vst.msk [vmem:[#allocation2 + $0xc0] sm:$0x33] %vm13614_vm13, %v7959_v38  ;;  %v8143_v0 = vpop.permute.xlu1 %8142  ;;  %8180 = vrot.lane.b32.xlu0 %v16048_v59, %s13104_s24  ;;  %vm17790_vm13 = vmmov %vm17789_vm5  ;;  %v12981_v38 = vld [vmem:[#allocation2 + $0x50] ss:$12 sps:$4 sm:$0xff]  }
 0xc53   : > { %7980 = vst.msk [vmem:[#allocation2 + $0xc8] sm:$0x3] %vm17787_vm7, %v7960_v32  ;;  %v12982_v32 = vld [vmem:[#allocation2 + $0x38] ss:$12 sps:$4 sm:$0xff]   ;;  %vm17801_vm15 = vmmov %vm17800_vm0 }
 0xc54   : > { %v16055_v7 = vpop.permute.xlu0 %8144  ;;  %vm17802_vm7 = vmmov %vm17800_vm0 }
 0xc55   : > { %v8195_v34 = vsel %vm17788_vm11, %v8143_v0, %v16055_v7  ;;  %v16082_v22 = vld [vmem:[#allocation2 + $0xb0] ss:$12 sps:$4 sm:$0xff]   ;;  %vm17803_vm11 = vmmov %vm17800_vm0 }
 0xc56   : > { %v8141_v54 = vpop.permute.xlu1 %8140  ;;  %8248 = vmatprep.subr.bf16.mxu0 %v8195_v34  ;;  %8182 = vrot.lane.b32.xlu0 %v16059_v9, %s13104_s24  ;;  %v12983_v34 = vld [vmem:[#allocation2 + $0x80] ss:$12 sps:$4 sm:$0xff]  }
 0xc57   : > { %v8194_v25 = vsel %vm17789_vm5, %v8141_v54, %v8143_v0  ;;  %v12984_v54 = vld [vmem:[#allocation2 + $0x68] ss:$12 sps:$4 sm:$0xff]   ;;  %vm17804_vm5 = vmmov %vm17800_vm0 }
 0xc58   : > { %8249 = vmatpush1.bf16.msra.mxu0 %v8194_v25  ;;  %v8149_v10 = vpop.permute.xlu0 %8148 }
 0xc59   : > { %v8013_v57 = vld [vmem:[#allocation2 + $0xc0] sm:$0x33] }
 0xc5a   : > { %v16064_v6 = vpop.permute.xlu1 %8150  ;;  %v16066_v14 = vcombine.low %v8013_v57, %v8013_v57  ;;  %v16068_v43 = vcombine.high %v8013_v57, %v8013_v57  ;;  %v16096_v11 = vld [vmem:[#allocation2 + $0xc8] ss:$0 sps:$4 sm:$0x33]   ;;  %v8488_v25 = vld [vmem:[#allocation2 + $0xc0] sm:$0x33] }
 0xc5b   : > { %v8197_v31 = vsel %vm17790_vm13, %v8149_v10, %v16064_v6  ;;  %v12986_v57 = vld [vmem:[#allocation2 + $0x98] ss:$12 sps:$4 sm:$0xff]   ;;  %vm17805_vm13 = vmmov %vm17800_vm0 }
 0xc5c   : > { %8188 = vrot.lane.b32.xlu1 %v16066_v14, %s13104_s24  ;;  %8190 = vrot.lane.b32.xlu0 %v16068_v43, %s13104_s24  ;;  %v8147_v63 = vpop.permute.xlu0 %8146 }
 0xc5d   : > { %8250 = vmatprep.subr.bf16.mxu0 %v8197_v31  ;;  %v8196_v39 = vsel %vm17791_vm6, %v8147_v63, %v8149_v10  ;;  %v11531_v10 = vcombine.low %v8488_v25, %v8488_v25  ;;  %v12987_v31 = vld [vmem:[#allocation2 + $0xb0] ss:$12 sps:$4 sm:$0xff]   ;;  %v12988_v63 = vld [vmem:[#allocation2 + $0xc8] ss:$0 sps:$4 sm:$0x33]   ;;  %vm17806_vm6 = vmmov %vm17800_vm0 }
 0xc5e   : > { %v8155_v28 = vpop.permute.xlu1 %8154  ;;  %8251 = vmatpush1.bf16.msra.mxu0 %v8196_v39  ;;  %v12989_v39 = vld [vmem:[#allocation2 + $0x8] ss:$12 sps:$4 sm:$0xff]  }
 0xc60   : > { %8616 = vrot.lane.b32.xlu0 %v15942_v33, %s13105_s27  ;;  %8186 = vrot.lane.b32.xlu1 %v16082_v22, %s13104_s24  ;;  %v16092_v41 = vpop.permute.xlu0 %8156 }
 0xc61   : > { %v8199_v12 = vsel %vm17792_vm9, %v8155_v28, %v16092_v41  ;;  %vm17807_vm9 = vmmov %vm17793_vm8 }
 0xc62   : > { %v8153_v23 = vpop.permute.xlu1 %8152  ;;  %8252 = vmatprep.subr.bf16.mxu0 %v8199_v12  ;;  %v12991_v12 = vld [vmem:[#allocation2 + $0x38] ss:$12 sps:$4 sm:$0xff]  }
 0xc63   : > { %v8198_v35 = vsel %vm17794_vm2, %v8153_v23, %v8155_v28  ;;  %v11532_v28 = vcombine.high %v8488_v25, %v8488_v25  ;;  %v12992_v23 = vld [vmem:[#allocation2 + $0x20] ss:$12 sps:$4 sm:$0xff]   ;;  %vm17816_vm2 = vmmov %vm17793_vm8 }
 0xc64   : > { %8614 = vrot.lane.b32.xlu0 %v15950_v55, %s13105_s27  ;;  %8192 = vrot.lane.b32.xlu1 %v16096_v11, %s13104_s24  ;;  %v8161_v15 = vpop.permute.xlu0 %8160 }
 0xc65   : > { %8253 = vmatpush1.bf16.msra.mxu0 %v8198_v35  ;;  %v12993_v35 = vld [vmem:[#allocation2 + $0x68] ss:$12 sps:$4 sm:$0xff]  }
 0xc66   : > { %v16105_v60 = vpop.permute.xlu1 %8162 }
 0xc67   : > { %v8201_v19 = vsel %vm17795_vm3, %v8161_v15, %v16105_v60  ;;  %vm17828_vm3 = vcmask 1031168  }
 0xc68   : > { %8624 = vrot.lane.b32.xlu0 %v12979_v27, %s13105_s27  ;;  %8618 = vrot.lane.b32.xlu1 %v12980_v16, %s13105_s27  ;;  %v8159_v49 = vpop.permute.xlu0 %8158  ;;  %v12995_v27 = vld [vmem:[#allocation2 + $0x98] ss:$12 sps:$4 sm:$0xff]   ;;  %v12996_v16 = vld [vmem:[#allocation2 + $0x80] ss:$12 sps:$4 sm:$0xff]  }
 0xc69   : > { %8254 = vmatprep.subr.bf16.mxu0 %v8201_v19  ;;  %v8200_v17 = vsel %vm17796_vm10, %v8159_v49, %v8161_v15  ;;  %v12994_v15 = vld [vmem:[#allocation2 + $0x50] ss:$12 sps:$4 sm:$0xff]   ;;  %vm17830_vm10 = vmmov %vm17828_vm3 }
 0xc6a   : > { %v8167_v13 = vpop.permute.xlu1 %8166  ;;  %8255 = vmatpush1.bf16.msra.mxu0 %v8200_v17  ;;  %v8838_v17 = vld [vmem:[#allocation2 + $0xc0] sm:$0x33] }
 0xc6c   : > { %8628 = vrot.lane.b32.xlu0 %v15966_v5, %s13105_s27  ;;  %8622 = vrot.lane.b32.xlu1 %v15954_v42, %s13105_s27  ;;  %v16116_v44 = vpop.permute.xlu0 %8168 }
 0xc6d   : > { %v8203_v1 = vsel %vm17797_vm4, %v8167_v13, %v16116_v44  ;;  %vm17831_vm4 = vmmov %vm17828_vm3 }
 0xc6e   : > { %v8165_v2 = vpop.permute.xlu1 %8164  ;;  %8256 = vmatprep.subr.bf16.mxu0 %v8203_v1 }
 0xc6f   : > { %v8202_v21 = vsel %vm17798_vm12, %v8165_v2, %v8167_v13  ;;  %v11564_v2 = vcombine.high %v8838_v17, %v8838_v17  ;;  %vm17832_vm12 = vmmov %vm17816_vm2 }
 0xc70   : > { %8626 = vrot.lane.b32.xlu0 %v15974_v40, %s13105_s27  ;;  %8620 = vrot.lane.b32.xlu1 %v15962_v51, %s13105_s27  ;;  %v8173_v62 = vpop.permute.xlu0 %8172 }
 0xc71   : > { %8257 = vmatpush1.bf16.msra.mxu0 %v8202_v21  ;;  %v11563_v21 = vcombine.low %v8838_v17, %v8838_v17  ;;  %v13004_v17 = vld [vmem:[#allocation2 + $0x38] ss:$12 sps:$4 sm:$0xff]  }
 0xc72   : > { %v16125_v50 = vpop.permute.xlu1 %8174 }
 0xc73   : > { %v8205_v48 = vsel %vm17799_vm14, %v8173_v62, %v16125_v50  ;;  %vm17833_vm14 = vmmov %vm17828_vm3 }
 0xc74   : > { %8636 = vrot.lane.b32.xlu0 %v12981_v38, %s13105_s27  ;;  %8630 = vrot.lane.b32.xlu1 %v12982_v32, %s13105_s27  ;;  %v8171_v0 = vpop.permute.xlu0 %8170 }
 0xc75   : > { %8258 = vmatprep.subr.bf16.mxu0 %v8205_v48  ;;  %v8204_v37 = vsel %vm17800_vm0, %v8171_v0, %v8173_v62  ;;  %v12999_v48 = vld [vmem:[#allocation2 + $0xc8] ss:$0 sps:$4 sm:$0x33]   ;;  %vm17834_vm0 = vmmov %vm17828_vm3 }
 0xc76   : > { %8259 = vmatpush1.bf16.msra.mxu0 %v8204_v37 }
 0xc78   : > { %8640 = vrot.lane.b32.xlu0 %v15990_v8, %s13105_s27  ;;  %8634 = vrot.lane.b32.xlu1 %v15978_v29, %s13105_s27 }
 0xc7c   : > { %8638 = vrot.lane.b32.xlu0 %v15998_v3, %s13105_s27  ;;  %8632 = vrot.lane.b32.xlu1 %v15986_v24, %s13105_s27 }
 0xc80   : > { %8648 = vrot.lane.b32.xlu0 %v12983_v34, %s13105_s27  ;;  %8642 = vrot.lane.b32.xlu1 %v12984_v54, %s13105_s27  ;;  %v13000_v34 = vld [vmem:[#allocation2 + $0x8] ss:$12 sps:$4 sm:$0xff]  }
 0xc84   : > { %8652 = vrot.lane.b32.xlu0 %v16026_v46, %s13105_s27  ;;  %8646 = vrot.lane.b32.xlu1 %v16002_v56, %s13105_s27 }
 0xc88   : > { %8650 = vrot.lane.b32.xlu0 %v16030_v4, %s13105_s27  ;;  %8644 = vrot.lane.b32.xlu1 %v16010_v20, %s13105_s27 }
 0xc8c   : > { %8662 = vrot.lane.b32.xlu0 %v11531_v10, %s13105_s27  ;;  %8654 = vrot.lane.b32.xlu1 %v12986_v57, %s13105_s27  ;;  %v13001_v10 = vld [vmem:[#allocation2 + $0x20] ss:$12 sps:$4 sm:$0xff]  }
 0xc90   : > { %8660 = vrot.lane.b32.xlu0 %v12987_v31, %s13105_s27  ;;  %8658 = vrot.lane.b32.xlu1 %v16034_v26, %s13105_s27 }
 0xc94   : > { %8666 = vrot.lane.b32.xlu0 %v12988_v63, %s13105_s27  ;;  %8656 = vrot.lane.b32.xlu1 %v16059_v9, %s13105_s27 }
 0xc98   : > { %8968 = vrot.lane.b32.xlu0 %v12989_v39, %s13106_s30  ;;  %8664 = vrot.lane.b32.xlu1 %v11532_v28, %s13105_s27 }
 0xc9c   : > { %8972 = vrot.lane.b32.xlu0 %v15954_v42, %s13106_s30  ;;  %8966 = vrot.lane.b32.xlu1 %v15942_v33, %s13106_s30 }
 0xca0   : > { %8970 = vrot.lane.b32.xlu0 %v15962_v51, %s13106_s30  ;;  %8964 = vrot.lane.b32.xlu1 %v15950_v55, %s13106_s30 }
 0xca4   : > { %8980 = vrot.lane.b32.xlu0 %v12991_v12, %s13106_s30  ;;  %8974 = vrot.lane.b32.xlu1 %v12992_v23, %s13106_s30 }
 0xca8   : > { %8984 = vrot.lane.b32.xlu0 %v15978_v29, %s13106_s30  ;;  %8978 = vrot.lane.b32.xlu1 %v15966_v5, %s13106_s30 }
 0xcab   : > { %v8179_v19 = vpop.permute.xlu1 %8178 }
 0xcac   : > { %8982 = vrot.lane.b32.xlu0 %v15986_v24, %s13106_s30  ;;  %8976 = vrot.lane.b32.xlu1 %v15974_v40, %s13106_s30 }
 0xcaf   : > { %v8177_v13 = vpop.permute.xlu1 %8176 }
 0xcb0   : > { %8992 = vrot.lane.b32.xlu0 %v12993_v35, %s13106_s30  ;;  %8986 = vrot.lane.b32.xlu1 %v12994_v15, %s13106_s30  ;;  %v8206_v38 = vsel %vm17802_vm7, %v8177_v13, %v8179_v19  ;;  %vm17836_vm7 = vmmov %vm17834_vm0 }
 0xcb2   : > { %v8185_v49 = vpop.permute.xlu0 %8184 }
 0xcb4   : > { %8996 = vrot.lane.b32.xlu0 %v16002_v56, %s13106_s30  ;;  %8990 = vrot.lane.b32.xlu1 %v15990_v8, %s13106_s30 }
 0xcb8   : > { %8994 = vrot.lane.b32.xlu0 %v16010_v20, %s13106_s30  ;;  %8988 = vrot.lane.b32.xlu1 %v15998_v3, %s13106_s30 }
 0xcbc   : > { %9004 = vrot.lane.b32.xlu0 %v12995_v27, %s13106_s30  ;;  %8998 = vrot.lane.b32.xlu1 %v12996_v16, %s13106_s30  ;;  %v13002_v27 = vld [vmem:[#allocation2 + $0xb0] ss:$12 sps:$4 sm:$0xff]  }
 0xcc0   : > { %9008 = vrot.lane.b32.xlu0 %v16034_v26, %s13106_s30  ;;  %9002 = vrot.lane.b32.xlu1 %v16026_v46, %s13106_s30 }
 0xcc4   : > { %9006 = vrot.lane.b32.xlu0 %v16059_v9, %s13106_s30  ;;  %9000 = vrot.lane.b32.xlu1 %v16030_v4, %s13106_s30  ;;  %v16198_v1 = vpop.permute.xlu0 %8180 }
 0xcc5   : > { %v8207_v62 = vsel %vm17801_vm15, %v8179_v19, %v16198_v1  ;;  %vm17835_vm15 = vmmov %vm17834_vm0 }
 0xcc6   : > { %8260 = vmatprep.subr.bf16.mxu0 %v8207_v62  ;;  %v13005_v62 = vld [vmem:[#allocation2 + $0x80] ss:$12 sps:$4 sm:$0xff]  }
 0xcc7   : > { %8261 = vmatpush1.bf16.msra.mxu0 %v8206_v38 }
 0xcc8   : > { %9014 = vrot.lane.b32.xlu0 %v11564_v2, %s13106_s30  ;;  %9012 = vrot.lane.b32.xlu1 %v11563_v21, %s13106_s30  ;;  %v8183_v32 = vpop.permute.xlu0 %8182 }
 0xcc9   : > { %v8208_v31 = vsel %vm17804_vm5, %v8183_v32, %v8185_v49  ;;  %vm17838_vm5 = vmmov %vm17834_vm0 }
 0xccc   : > { %9316 = vrot.lane.b32.xlu0 %v15942_v33, %s13107_s12  ;;  %9016 = vrot.lane.b32.xlu1 %v12999_v48, %s13106_s30 }
 0xcce   : > { %v8189_v0 = vpop.permute.xlu1 %8188  ;;  %v8191_v37 = vpop.permute.xlu0 %8190 }
 0xccf   : > { %v8210_v63 = vsel %vm17805_vm13, %v8189_v0, %v8191_v37  ;;  %vm17839_vm13 = vmmov %vm17834_vm0 }
 0xcd0   : > { %9314 = vrot.lane.b32.xlu0 %v15950_v55, %s13107_s12  ;;  %9318 = vrot.lane.b32.xlu1 %v13000_v34, %s13107_s12  ;;  %v8240_v23 = vsel %vm543_vm1, %v8210_v63, 0 }
 0xcd2   : > { %v16211_v54 = vpop.permute.xlu1 %8186  ;;  %v16213_v25 = vpop.permute.xlu0 %8616 }
 0xcd3   : > { %v8209_v57 = vsel %vm17803_vm11, %v8185_v49, %v16211_v54  ;;  %v13003_v49 = vld [vmem:[#allocation2 + $0x50] ss:$12 sps:$4 sm:$0xff]   ;;  %vm17837_vm11 = vmmov %vm17834_vm0 }
 0xcd4   : > { %9324 = vrot.lane.b32.xlu0 %v13001_v10, %s13107_s12  ;;  %9322 = vrot.lane.b32.xlu1 %v15954_v42, %s13107_s12 }
 0xcd5   : > { %8262 = vmatprep.subr.bf16.mxu0 %v8209_v57 }
 0xcd6   : > { %8263 = vmatpush1.bf16.msra.mxu0 %v8208_v31  ;;  %v16222_v39 = vpop.permute.xlu1 %8192  ;;  %v16224_v28 = vpop.permute.xlu0 %8614  ;;  %v13009_v31 = vld [vmem:[#allocation2 + $0xc8] ss:$0 sps:$4 sm:$0x33]  }
 0xcd7   : > { %v8211_v12 = vsel %vm17806_vm6, %v8191_v37, %v16222_v39  ;;  %vm17840_vm6 = vmmov %vm17834_vm0 }
 0xcd8   : > { %9328 = vrot.lane.b32.xlu0 %v15966_v5, %s13107_s12  ;;  %9320 = vrot.lane.b32.xlu1 %v15962_v51, %s13107_s12 }
 0xcd9   : > { %11498 = vmatprep.subr.msk.bf16.mxu0 %vm543_vm1, %v8211_v12 }
 0xcda   : > { %8265 = vmatpush1.bf16.msra.mxu0 %v8240_v23  ;;  %v16234_v35 = vpop.permute.xlu1 %8618  ;;  %v16236_v15 = vpop.permute.xlu0 %8624  ;;  %v13010_v23 = vld [vmem:[#allocation2 + $0x8] ss:$12 sps:$4 sm:$0xff]  }
 0xcdb   : > { %8289 = vmatprep.subr.bf16.mxu0 %v15799_v58 }
 0xcdc   : > { %9326 = vrot.lane.b32.xlu0 %v15974_v40, %s13107_s12  ;;  %9010 = vrot.lane.b32.xlu1 %v13002_v27, %s13106_s30 }
 0xcdd   : > { %8281 = vmatmul.mubr.bf16.vlgmr.msra.gmra.mrb[20].mxu0 %v16080_v36 }
 0xcde   : > { %8290 = vmatpush1.bf16.msra.mxu0 %v16055_v7  ;;  %v16244_v16 = vpop.permute.xlu1 %8622  ;;  %v16246_v19 = vpop.permute.xlu0 %8628  ;;  %11500 = vmatprep.mubr.msk.bf16.mxu0 %vm17807_vm9, %v16086_v61  ;;  %vm17841_vm9 = vmmov %vm17834_vm0 }
 0xcdf   : > { %8291 = vmatprep.subr.bf16.mxu0 %v15799_v58 }
 0xce0   : > { %9336 = vrot.lane.b32.xlu0 %v13003_v49, %s13107_s12  ;;  %9330 = vrot.lane.b32.xlu1 %v13004_v17, %s13107_s12 }
 0xce2   : > { %8292 = vmatpush1.bf16.msra.mxu0 %v16064_v6  ;;  %v16254_v13 = vpop.permute.xlu1 %8620  ;;  %v16256_v7 = vpop.permute.xlu0 %8626 }
 0xce3   : > { %8293 = vmatprep.subr.bf16.mxu0 %v15799_v58 }
 0xce4   : > { %9340 = vrot.lane.b32.xlu0 %v15990_v8, %s13107_s12  ;;  %9334 = vrot.lane.b32.xlu1 %v15978_v29, %s13107_s12 }
 0xce6   : > { %8294 = vmatpush1.bf16.msra.mxu0 %v16092_v41  ;;  %v16264_v61 = vpop.permute.xlu1 %8630  ;;  %v16266_v2 = vpop.permute.xlu0 %8636  ;;  %v13006_v41 = vld [vmem:[#allocation2 + $0x68] ss:$12 sps:$4 sm:$0xff]  }
 0xce7   : > { %8295 = vmatprep.subr.bf16.mxu0 %v15799_v58 }
 0xce8   : > { %9338 = vrot.lane.b32.xlu0 %v15998_v3, %s13107_s12  ;;  %9332 = vrot.lane.b32.xlu1 %v15986_v24, %s13107_s12 }
 0xcea   : > { %8296 = vmatpush1.bf16.msra.mxu0 %v16105_v60  ;;  %v16274_v6 = vpop.permute.xlu1 %8634  ;;  %v16276_v21 = vpop.permute.xlu0 %8640 }
 0xceb   : > { %8297 = vmatprep.subr.bf16.mxu0 %v15799_v58 }
 0xcec   : > { %9348 = vrot.lane.b32.xlu0 %v13005_v62, %s13107_s12  ;;  %9342 = vrot.lane.b32.xlu1 %v13006_v41, %s13107_s12  ;;  %v16366_v41 = vld [vmem:[#allocation2] ss:$12 sps:$4 sm:$0xff]  }
 0xcee   : > { %8298 = vmatpush1.bf16.msra.mxu0 %v16116_v44  ;;  %v16282_v38 = vpop.permute.xlu1 %8632  ;;  %v16284_v32 = vpop.permute.xlu0 %8638  ;;  %v9188_v44 = vld [vmem:[#allocation2 + $0xc0] sm:$0x33] }
 0xcef   : > { %8299 = vmatprep.subr.bf16.mxu0 %v15799_v58  ;;  %v11595_v34 = vcombine.low %v9188_v44, %v9188_v44  ;;  %v11596_v17 = vcombine.high %v9188_v44, %v9188_v44  ;;  %v13015_v44 = vld [vmem:[#allocation2 + $0x38] ss:$12 sps:$4 sm:$0xff]  }
 0xcf0   : > { %9346 = vrot.lane.b32.xlu1 %v16002_v56, %s13107_s12  ;;  %9352 = vrot.lane.b32.xlu0 %v16026_v46, %s13107_s12 }
 0xcf2   : > { %8300 = vmatpush1.bf16.msra.mxu0 %v16125_v50  ;;  %v16292_v60 = vpop.permute.xlu1 %8642  ;;  %v16294_v48 = vpop.permute.xlu0 %8648  ;;  %v13007_v50 = vld [vmem:[#allocation2 + $0x98] ss:$12 sps:$4 sm:$0xff]  }
 0xcf3   : > { %8301 = vmatprep.subr.bf16.mxu0 %v15799_v58 }
 0xcf4   : > { %9344 = vrot.lane.b32.xlu1 %v16010_v20, %s13107_s12  ;;  %9350 = vrot.lane.b32.xlu0 %v16030_v4, %s13107_s12 }
 0xcf6   : > { %8302 = vmatpush1.bf16.msra.mxu0 %v16198_v1  ;;  %v16302_v0 = vpop.permute.xlu1 %8646  ;;  %v16304_v37 = vpop.permute.xlu0 %8652  ;;  %v16318_v1 = vld.sshfl [vmem:[%s17466_s5] sm:$0x33 pattern:$0x76325410] }
 0xcf7   : > { %8303 = vmatprep.subr.bf16.mxu0 %v15799_v58  ;;  %v16331_v27 = vcombine.high %v16318_v1, %v16318_v1 }
 0xcf8   : > { %9354 = vrot.lane.b32.xlu1 %v13007_v50, %s13107_s12  ;;  %9362 = vrot.lane.b32.xlu0 %v11595_v34, %s13107_s12  ;;  %v16377_v50 = vld [vmem:[#allocation2 + $0x4c] ss:$12 sps:$4 sm:$0xff]  }
 0xcfa   : > { %8304 = vmatpush1.bf16.msra.mxu0 %v16211_v54  ;;  %v16310_v10 = vpop.permute.xlu1 %8644  ;;  %v16312_v57 = vpop.permute.xlu0 %8650  ;;  %v8246_v54 = vsel %vm543_vm1, %v16222_v39, 0 }
 0xcfb   : > { %8305 = vmatprep.subr.bf16.mxu0 %v15799_v58 }
 0xcfc   : > { %9358 = vrot.lane.b32.xlu1 %v16034_v26, %s13107_s12  ;;  %9366 = vrot.lane.b32.xlu0 %v13009_v31, %s13107_s12  ;;  %v16390_v31 = vld [vmem:[#allocation2 + $0x48] ss:$12 sps:$4 sm:$0xff]  }
 0xcfe   : > { %8306 = vmatpush1.bf16.msra.mxu0 %v8246_v54  ;;  %v16325_v63 = vpop.permute.xlu1 %8654  ;;  %v16327_v12 = vpop.permute.xlu0 %8662  ;;  %v16402_v54 = vld [vmem:[#allocation2 + $0x30] ss:$12 sps:$4 sm:$0xff]  }
 0xcff   : > { %8375 = vmatprep.subr.bf16.mxu0 %v15942_v33 }
 0xd00   : > { %9356 = vrot.lane.b32.xlu1 %v16059_v9, %s13107_s12  ;;  %9668 = vrot.lane.b32.xlu0 %v13010_v23, %s13108_s13  ;;  %v13023_v23 = vld [vmem:[#allocation2 + $0x68] ss:$12 sps:$4 sm:$0xff]  }
 0xd01   : > { %8322 = vmatmul.mubr.bf16.vlgmr.msra.gmra.mrb[24].mxu0 %v16080_v36  ;;  %v16354_v36 = vld [vmem:[#allocation2 + $0x4] ss:$12 sps:$4 sm:$0xff]  }
 0xd02   : > { %8376 = vmatpush1.bf16.msra.mxu0 %v15950_v55  ;;  %v16339_v39 = vpop.permute.xlu1 %8658  ;;  %v16341_v49 = vpop.permute.xlu0 %8660  ;;  %11503 = vmatprep.mubr.msk.bf16.mxu0 %vm17793_vm8, %v16331_v27  ;;  %vm17842_vm8 = vmmov %vm17834_vm0 }
 0xd03   : > { %8377 = vmatprep.subr.bf16.mxu0 %v15954_v42 }
 0xd04   : > { %9364 = vrot.lane.b32.xlu1 %v11596_v17, %s13107_s12  ;;  %9672 = vrot.lane.b32.xlu0 %v15954_v42, %s13108_s13 }
 0xd06   : > { %8378 = vmatpush1.bf16.msra.mxu0 %v15962_v51  ;;  %v16350_v33 = vpop.permute.xlu1 %8656  ;;  %v16352_v55 = vpop.permute.xlu0 %8666 }
 0xd07   : > { %8379 = vmatprep.subr.bf16.mxu0 %v15966_v5 }
 0xd08   : > { %9666 = vrot.lane.b32.xlu1 %v16354_v36, %s13108_s13  ;;  %9670 = vrot.lane.b32.xlu0 %v15962_v51, %s13108_s13 }
 0xd0a   : > { %8380 = vmatpush1.bf16.msra.mxu0 %v15974_v40  ;;  %v16362_v62 = vpop.permute.xlu1 %8664  ;;  %v16364_v42 = vpop.permute.xlu0 %8968  ;;  %v13016_v40 = vld [vmem:[#allocation2 + $0x20] ss:$12 sps:$4 sm:$0xff]  }
 0xd0b   : > { %8381 = vmatprep.subr.bf16.mxu0 %v15978_v29 }
 0xd0c   : > { %9664 = vrot.lane.b32.xlu1 %v16366_v41, %s13108_s13  ;;  %9680 = vrot.lane.b32.xlu0 %v13015_v44, %s13108_s13  ;;  %v16413_v44 = vld [vmem:[#allocation2 + $0x7c] ss:$12 sps:$4 sm:$0xff]  }
 0xd0e   : > { %8382 = vmatpush1.bf16.msra.mxu0 %v15986_v24  ;;  %v16373_v5 = vpop.permute.xlu1 %8966  ;;  %v16375_v51 = vpop.permute.xlu0 %8972  ;;  %v16388_v24 = vld [vmem:[#allocation2 + $0x34] ss:$12 sps:$4 sm:$0xff]  }
 0xd0f   : > { %8383 = vmatprep.subr.bf16.mxu0 %v15990_v8 }
 0xd10   : > { %9674 = vrot.lane.b32.xlu1 %v13016_v40, %s13108_s13  ;;  %9684 = vrot.lane.b32.xlu0 %v16377_v50, %s13108_s13 }
 0xd12   : > { %8384 = vmatpush1.bf16.msra.mxu0 %v15998_v3  ;;  %v16384_v29 = vpop.permute.xlu1 %8964  ;;  %v16386_v34 = vpop.permute.xlu0 %8970 }
 0xd13   : > { %8385 = vmatprep.subr.bf16.mxu0 %v16002_v56 }
 0xd14   : > { %9678 = vrot.lane.b32.xlu1 %v16388_v24, %s13108_s13  ;;  %9682 = vrot.lane.b32.xlu0 %v16390_v31, %s13108_s13 }
 0xd16   : > { %8386 = vmatpush1.bf16.msra.mxu0 %v16010_v20  ;;  %v16398_v8 = vpop.permute.xlu1 %8974  ;;  %v16400_v3 = vpop.permute.xlu0 %8980  ;;  %v13024_v20 = vld [vmem:[#allocation2 + $0x50] ss:$12 sps:$4 sm:$0xff]  }
 0xd17   : > { %8387 = vmatprep.subr.bf16.mxu0 %v16026_v46 }
 0xd18   : > { %9676 = vrot.lane.b32.xlu1 %v16402_v54, %s13108_s13  ;;  %9692 = vrot.lane.b32.xlu0 %v13023_v23, %s13108_s13  ;;  %v13029_v23 = vld [vmem:[#allocation2 + $0xb0] ss:$12 sps:$4 sm:$0xff]  }
 0xd1a   : > { %8388 = vmatpush1.bf16.msra.mxu0 %v16030_v4  ;;  %v16409_v56 = vpop.permute.xlu1 %8978  ;;  %v16411_v17 = vpop.permute.xlu0 %8984  ;;  %v16424_v4 = vld [vmem:[#allocation2 + $0x64] ss:$12 sps:$4 sm:$0xff]  }
 0xd1b   : > { %17808 = vst [vmem:[#allocation3_spill] sm:$0xff] %v16409_v56  ;;  %17809 = vst [vmem:[#allocation4_spill] sm:$0xff] %v16411_v17  ;;  %8389 = vmatprep.subr.bf16.mxu0 %v16034_v26  ;;  %v8367_v26 = vsel %vm543_vm1, %v16066_v14, 0  ;;  %v16439_v17 = vld [vmem:[#allocation2 + $0x78] ss:$12 sps:$4 sm:$0xff]  }
 0xd1c   : > { %9686 = vrot.lane.b32.xlu1 %v13024_v20, %s13108_s13  ;;  %9696 = vrot.lane.b32.xlu0 %v16413_v44, %s13108_s13  ;;  %v13042_v56 = vld [vmem:[#allocation2 + $0xc8] ss:$0 sps:$4 sm:$0x33]  }
 0xd1e   : > { %8390 = vmatpush1.bf16.msra.mxu0 %v16059_v9  ;;  %v16420_v46 = vpop.permute.xlu1 %8976  ;;  %v16422_v40 = vpop.permute.xlu0 %8982 }
 0xd1f   : > { %17810 = vst [vmem:[#allocation5_spill] sm:$0xff] %v16420_v46  ;;  %17811 = vst [vmem:[#allocation6_spill] sm:$0xff] %v16422_v40  ;;  %11502 = vmatprep.subr.msk.bf16.mxu0 %vm543_vm1, %v16068_v43  ;;  %v16437_v40 = vld [vmem:[#allocation2 + $0x60] ss:$12 sps:$4 sm:$0xff]  }
 0xd20   : > { %9690 = vrot.lane.b32.xlu1 %v16424_v4, %s13108_s13  ;;  %9360 = vrot.lane.b32.xlu0 %v13029_v23, %s13107_s12  ;;  %v13032_v23 = vld [vmem:[#allocation2 + $0x80] ss:$12 sps:$4 sm:$0xff]  }
 0xd22   : > { %8392 = vmatpush1.bf16.msra.mxu0 %v8367_v26  ;;  %v16433_v9 = vpop.permute.xlu1 %8986  ;;  %v16435_v20 = vpop.permute.xlu0 %8992  ;;  %v13033_v26 = vld [vmem:[#allocation2 + $0x98] ss:$12 sps:$4 sm:$0xff]  }
 0xd23   : > { %17812 = vst [vmem:[#allocation7_spill] sm:$0xff] %v16433_v9  ;;  %17813 = vst [vmem:[#allocation8_spill] sm:$0xff] %v16435_v20  ;;  %8416 = vmatprep.subr.bf16.mxu0 %v15799_v58 }
 0xd24   : > { %9688 = vrot.lane.b32.xlu1 %v16437_v40, %s13108_s13  ;;  %9694 = vrot.lane.b32.xlu0 %v16439_v17, %s13108_s13 }
 0xd25   : > { %8408 = vmatmul.mubr.bf16.vlgmr.msra.gmra.mrb[28].mxu0 %v16318_v1 }
 0xd26   : > { %8417 = vmatpush1.bf16.msra.mxu0 %v15946_v53  ;;  %v16448_v14 = vpop.permute.xlu1 %8990  ;;  %v16450_v43 = vpop.permute.xlu0 %8996  ;;  %11504 = vmatprep.mubr.msk.bf16.mxu0 %vm17816_vm2, %v16331_v27  ;;  %vm17843_vm2 = vmmov %vm17834_vm0 }
 0xd27   : > { %17814 = vst [vmem:[#allocation9_spill] sm:$0xff] %v16448_v14  ;;  %17815 = vst [vmem:[#allocation10_spill] sm:$0xff] %v16450_v43  ;;  %8418 = vmatprep.subr.bf16.mxu0 %v15799_v58  ;;  %v16462_v14 = vld [vmem:[#allocation2 + $0x94] ss:$12 sps:$4 sm:$0xff]   ;;  %v16464_v43 = vld [vmem:[#allocation2 + $0xac] ss:$12 sps:$4 sm:$0xff]  }
 0xd28   : > { %9698 = vrot.lane.b32.xlu1 %v13032_v23, %s13108_s13  ;;  %9704 = vrot.lane.b32.xlu0 %v13033_v26, %s13108_s13  ;;  %v16476_v23 = vld [vmem:[#allocation2 + $0x90] ss:$12 sps:$4 sm:$0xff]   ;;  %v16478_v26 = vld [vmem:[#allocation2 + $0xa8] ss:$12 sps:$4 sm:$0xff]  }
 0xd2a   : > { %8419 = vmatpush1.bf16.msra.mxu0 %v15958_v45  ;;  %v16458_v20 = vpop.permute.xlu1 %8988  ;;  %v16460_v53 = vpop.permute.xlu0 %8994 }
 0xd2b   : > { %17817 = vst [vmem:[#allocation11_spill] sm:$0xff] %v16458_v20  ;;  %17818 = vst [vmem:[#allocation12_spill] sm:$0xff] %v16460_v53  ;;  %8420 = vmatprep.subr.bf16.mxu0 %v15799_v58  ;;  %v9538_v53 = vld [vmem:[#allocation2 + $0xc0] sm:$0x33] }
 0xd2c   : > { %9702 = vrot.lane.b32.xlu1 %v16462_v14, %s13108_s13  ;;  %9708 = vrot.lane.b32.xlu0 %v16464_v43, %s13108_s13  ;;  %v11628_v20 = vcombine.high %v9538_v53, %v9538_v53 }
 0xd2e   : > { %8421 = vmatpush1.bf16.msra.mxu0 %v15970_v52  ;;  %v16472_v27 = vpop.permute.xlu1 %8998  ;;  %v16474_v45 = vpop.permute.xlu0 %9004 }
 0xd2f   : > { %17819 = vst [vmem:[#allocation13_spill] sm:$0xff] %v16472_v27  ;;  %17820 = vst [vmem:[#allocation14_spill] sm:$0xff] %v16474_v45  ;;  %8422 = vmatprep.subr.bf16.mxu0 %v15799_v58  ;;  %v11627_v45 = vcombine.low %v9538_v53, %v9538_v53 }
 0xd30   : > { %9700 = vrot.lane.b32.xlu1 %v16476_v23, %s13108_s13  ;;  %9706 = vrot.lane.b32.xlu0 %v16478_v26, %s13108_s13 }
 0xd32   : > { %8423 = vmatpush1.bf16.msra.mxu0 %v15982_v18  ;;  %v16486_v52 = vpop.permute.xlu1 %9002  ;;  %v16488_v27 = vpop.permute.xlu0 %9008 }
 0xd33   : > { %8424 = vmatprep.subr.bf16.mxu0 %v15799_v58 }
 0xd34   : > { %9712 = vrot.lane.b32.xlu1 %v11627_v45, %s13108_s13  ;;  %9714 = vrot.lane.b32.xlu0 %v11628_v20, %s13108_s13  ;;  %v13043_v20 = vld [vmem:[#allocation2 + $0x8] ss:$12 sps:$4 sm:$0xff]  }
 0xd35   : > { %v16516_v45 = vld [vmem:[#allocation2 + $0x1c] ss:$12 sps:$4 sm:$0xff]  }
 0xd36   : > { %8425 = vmatpush1.bf16.msra.mxu0 %v15994_v47  ;;  %v16494_v9 = vpop.permute.xlu1 %9000  ;;  %v16496_v46 = vpop.permute.xlu0 %9006 }
 0xd37   : > { %8426 = vmatprep.subr.bf16.mxu0 %v15799_v58 }
 0xd38   : > { %9716 = vrot.lane.b32.xlu1 %v13042_v56, %s13108_s13  ;;  %10016 = vrot.lane.b32.xlu0 %v16354_v36, %s13109_s14 }
 0xd3a   : > { %8427 = vmatpush1.bf16.msra.mxu0 %v16006_v30  ;;  %v16503_v18 = vpop.permute.xlu1 %9012  ;;  %v16505_v53 = vpop.permute.xlu0 %9014  ;;  %v13046_v30 = vld [vmem:[#allocation2 + $0x20] ss:$12 sps:$4 sm:$0xff]  }
 0xd3b   : > { %17821 = vst [vmem:[#allocation15_spill] sm:$0xff] %v16503_v18  ;;  %17822 = vst [vmem:[#allocation16_spill] sm:$0xff] %v16505_v53  ;;  %8428 = vmatprep.subr.bf16.mxu0 %v15799_v58 }
 0xd3c   : > { %10018 = vrot.lane.b32.xlu1 %v13043_v20, %s13109_s14  ;;  %10014 = vrot.lane.b32.xlu0 %v16366_v41, %s13109_s14 }
 0xd3e   : > { %8429 = vmatpush1.bf16.msra.mxu0 %v16048_v59  ;;  %v16512_v47 = vpop.permute.xlu1 %9016  ;;  %v16514_v56 = vpop.permute.xlu0 %9316  ;;  %v16527_v59 = vld [vmem:[#allocation2 + $0x18] ss:$12 sps:$4 sm:$0xff]  }
 0xd3f   : > { %17823 = vst [vmem:[#allocation17_spill] sm:$0xff] %v16512_v47  ;;  %17824 = vst [vmem:[#allocation18_spill] sm:$0xff] %v16514_v56  ;;  %8430 = vmatprep.subr.bf16.mxu0 %v15799_v58  ;;  %v16533_v56 = vld.sshfl [vmem:[%s17466_s5 + $0x8] sm:$0x33 pattern:$0x76325410] }
 0xd40   : > { %10022 = vrot.lane.b32.xlu1 %v16516_v45, %s13109_s14  ;;  %10024 = vrot.lane.b32.xlu0 %v13046_v30, %s13109_s14  ;;  %v13048_v47 = vld [vmem:[#allocation2 + $0x38] ss:$12 sps:$4 sm:$0xff]   ;;  %v16550_v53 = vcombine.high %v16533_v56, %v16533_v56 }
 0xd42   : > { %8431 = vmatpush1.bf16.msra.mxu0 %v16082_v22  ;;  %v16523_v20 = vpop.permute.xlu1 %9318  ;;  %v16525_v18 = vpop.permute.xlu0 %9314  ;;  %v8373_v22 = vsel %vm543_vm1, %v16096_v11, 0  ;;  %v8668_v11 = vsel %vm17830_vm10, %v16224_v28, %v16213_v25  ;;  %vm17846_vm10 = vmmov %vm17834_vm0 }
 0xd43   : > { %17825 = vst [vmem:[#allocation19_spill] sm:$0xff] %v16523_v20  ;;  %17826 = vst [vmem:[#allocation20_spill] sm:$0xff] %v16525_v18  ;;  %8432 = vmatprep.subr.bf16.mxu0 %v15799_v58  ;;  %v8669_v18 = vsel %vm17828_vm3, %v16213_v25, %v16234_v35  ;;  %v8670_v25 = vsel %vm17833_vm14, %v16254_v13, %v16244_v16  ;;  %vm17850_vm14 = vcmask 31744  }
 0xd44   : > { %10020 = vrot.lane.b32.xlu1 %v16527_v59, %s13109_s14  ;;  %10028 = vrot.lane.b32.xlu0 %v16388_v24, %s13109_s14  ;;  %vm17844_vm3 = vmmov %vm17834_vm0 }
 0xd46   : > { %8433 = vmatpush1.bf16.msra.mxu0 %v8373_v22  ;;  %v16541_v30 = vpop.permute.xlu1 %9322  ;;  %v16546_v20 = vpop.permute.xlu0 %9324 }
 0xd47   : > { %17827 = vst [vmem:[#allocation21_spill] sm:$0xff] %v16541_v30  ;;  %17829 = vst [vmem:[#allocation22_spill] sm:$0xff] %v16546_v20  ;;  %8722 = vmatprep.subr.bf16.mxu0 %v8669_v18  ;;  %v8671_v30 = vsel %vm17831_vm4, %v16244_v16, %v16236_v15  ;;  %v13049_v18 = vld [vmem:[#allocation2 + $0x50] ss:$12 sps:$4 sm:$0xff]   ;;  %v8672_v16 = vsel %vm17835_vm15, %v16256_v7, %v16246_v19  ;;  %vm17854_vm15 = vcmask 883712  }
 0xd48   : > { %10030 = vrot.lane.b32.xlu1 %v13048_v47, %s13109_s14  ;;  %10026 = vrot.lane.b32.xlu0 %v16402_v54, %s13109_s14  ;;  %vm17847_vm4 = vmmov %vm17834_vm0 }
 0xd49   : > { %8449 = vmatmul.mubr.bf16.vlgmr.msra.gmra.mrb[32].mxu0 %v16318_v1  ;;  %v8673_v1 = vsel %vm17834_vm0, %v16246_v19, %v16264_v61  ;;  %v8674_v19 = vsel %vm17837_vm11, %v16282_v38, %v16274_v6 }
 0xd4a   : > { %8723 = vmatpush1.bf16.msra.mxu0 %v8668_v11  ;;  %v16559_v22 = vpop.permute.xlu1 %9320  ;;  %v16564_v20 = vpop.permute.xlu0 %9328  ;;  %11535 = vmatprep.mubr.msk.bf16.mxu0 %vm17832_vm12, %v16550_v53  ;;  %vm17848_vm12 = vmmov %vm17834_vm0 }
 0xd4b   : > { %8724 = vmatprep.subr.bf16.mxu0 %v8671_v30  ;;  %v8675_v30 = vsel %vm17836_vm7, %v16274_v6, %v16266_v2  ;;  %v8676_v6 = vsel %vm17839_vm13, %v16284_v32, %v16276_v21  ;;  %vm17852_vm0 = vmmov %vm17850_vm14 }
 0xd4c   : > { %10034 = vrot.lane.b32.xlu1 %v16377_v50, %s13109_s14  ;;  %10036 = vrot.lane.b32.xlu0 %v13049_v18, %s13109_s14  ;;  %v13050_v18 = vld [vmem:[#allocation2 + $0x68] ss:$12 sps:$4 sm:$0xff]   ;;  %vm17856_vm7 = vmmov %vm17854_vm15 }
 0xd4d   : > { %vm17858_vm11 = vmmov %vm17856_vm7 }
 0xd4e   : > { %8725 = vmatpush1.bf16.msra.mxu0 %v8670_v25  ;;  %v16574_v28 = vpop.permute.xlu1 %9010  ;;  %v16579_v47 = vpop.permute.xlu0 %9326  ;;  %v8677_v25 = vsel %vm17838_vm5, %v16276_v21, %v16292_v60  ;;  %v8678_v21 = vsel %vm17841_vm9, %v16310_v10, %v16302_v0  ;;  %vm17859_vm5 = vmmov %vm17856_vm7  ;;  %vm17864_vm9 = vcmask 900096  }
 0xd4f   : > { %8726 = vmatprep.subr.bf16.mxu0 %v8673_v1  ;;  %vm17860_vm13 = vmmov %vm17859_vm5 }
 0xd50   : > { %10032 = vrot.lane.b32.xlu1 %v16390_v31, %s13109_s14  ;;  %10040 = vrot.lane.b32.xlu0 %v16424_v4, %s13109_s14 }
 0xd52   : > { %8727 = vmatpush1.bf16.msra.mxu0 %v8672_v16  ;;  %v16588_v13 = vpop.permute.xlu1 %9330  ;;  %v16593_v11 = vpop.permute.xlu0 %9336  ;;  %v13051_v16 = vld [vmem:[#allocation2 + $0x80] ss:$12 sps:$4 sm:$0xff]  }
 0xd53   : > { %8728 = vmatprep.subr.bf16.mxu0 %v8675_v30  ;;  %v8679_v30 = vsel %vm17840_vm6, %v16302_v0, %v16294_v48  ;;  %v8680_v0 = vsel %vm17843_vm2, %v16312_v57, %v16304_v37  ;;  %v8684_v57 = vsel %vm17847_vm4, %v16327_v12, %v16362_v62  ;;  %vm17862_vm6 = vmmov %vm17859_vm5 }
 0xd54   : > { %10042 = vrot.lane.b32.xlu1 %v13050_v18, %s13109_s14  ;;  %10038 = vrot.lane.b32.xlu0 %v16437_v40, %s13109_s14  ;;  %vm17866_vm2 = vmmov %vm17864_vm9 }
 0xd56   : > { %8729 = vmatpush1.bf16.msra.mxu0 %v8674_v19  ;;  %v16601_v7 = vpop.permute.xlu1 %9334  ;;  %v16606_v1 = vpop.permute.xlu0 %9340  ;;  %v8681_v19 = vsel %vm17842_vm8, %v16304_v37, %v16325_v63  ;;  %v8682_v37 = vsel %vm17846_vm10, %v16350_v33, %v16339_v39  ;;  %v8714_v33 = vsel %vm543_vm1, %v8684_v57, 0  ;;  %vm17865_vm8 = vmmov %vm17859_vm5 }
 0xd57   : > { %8730 = vmatprep.subr.bf16.mxu0 %v8677_v25  ;;  %vm17868_vm10 = vmmov %vm17866_vm2 }
 0xd58   : > { %10046 = vrot.lane.b32.xlu1 %v16413_v44, %s13109_s14  ;;  %10048 = vrot.lane.b32.xlu0 %v13051_v16, %s13109_s14  ;;  %v13052_v16 = vld [vmem:[#allocation2 + $0x98] ss:$12 sps:$4 sm:$0xff]  }
 0xd5a   : > { %8731 = vmatpush1.bf16.msra.mxu0 %v8676_v6  ;;  %v16614_v38 = vpop.permute.xlu1 %9332  ;;  %v16619_v18 = vpop.permute.xlu0 %9338  ;;  %v9888_v6 = vld [vmem:[#allocation2 + $0xc0] sm:$0x33] }
 0xd5b   : > { %8732 = vmatprep.subr.bf16.mxu0 %v8679_v30  ;;  %v8683_v30 = vsel %vm17844_vm3, %v16339_v39, %v16341_v49  ;;  %v16668_v39 = vld.sshfl [vmem:[%s17466_s5 + $0x14] sm:$0x33 pattern:$0x76325410]  ;;  %vm17867_vm3 = vmmov %vm17859_vm5 }
 0xd5c   : > { %10044 = vrot.lane.b32.xlu1 %v16439_v17, %s13109_s14  ;;  %10052 = vrot.lane.b32.xlu0 %v16462_v14, %s13109_s14  ;;  %v16675_v12 = vcombine.high %v16668_v39, %v16668_v39  ;;  %vm17869_vm4 = vmmov %vm17867_vm3 }
 0xd5e   : > { %8733 = vmatpush1.bf16.msra.mxu0 %v8678_v21  ;;  %v16628_v32 = vpop.permute.xlu1 %9342  ;;  %v16633_v25 = vpop.permute.xlu0 %9348  ;;  %17849 = vst [vmem:[#allocation24_spill] sm:$0xff] %v16675_v12  ;;  %11631 = vmatprep.mubr.msk.bf16.mxu1 %vm17850_vm14, %v16675_v12  ;;  %v13059_v12 = vld [vmem:[#allocation2 + $0x20] ss:$12 sps:$4 sm:$0xff]   ;;  %vm17871_vm14 = vmmov %vm17866_vm2 }
 0xd5f   : > { %8734 = vmatprep.subr.bf16.mxu0 %v8681_v19  ;;  %v11659_v19 = vcombine.low %v9888_v6, %v9888_v6 }
 0xd60   : > { %10054 = vrot.lane.b32.xlu1 %v13052_v16, %s13109_s14  ;;  %10050 = vrot.lane.b32.xlu0 %v16476_v23, %s13109_s14 }
 0xd62   : > { %8735 = vmatpush1.bf16.msra.mxu0 %v8680_v0  ;;  %v16641_v10 = vpop.permute.xlu1 %9346  ;;  %v16646_v21 = vpop.permute.xlu0 %9352  ;;  %v8685_v0 = vsel %vm17848_vm12, %v16362_v62, %v16352_v55  ;;  %vm17870_vm12 = vmmov %vm17852_vm0 }
 0xd63   : > { %17845 = vst [vmem:[#allocation23_spill] sm:$0xff] %v16646_v21  ;;  %8736 = vmatprep.subr.bf16.mxu0 %v8683_v30  ;;  %v13054_v21 = vld [vmem:[#allocation2 + $0xc8] ss:$0 sps:$4 sm:$0x33]  }
 0xd64   : > { %10058 = vrot.lane.b32.xlu1 %v16464_v43, %s13109_s14  ;;  %10062 = vrot.lane.b32.xlu0 %v11659_v19, %s13109_s14 }
 0xd66   : > { %8737 = vmatpush1.bf16.msra.mxu0 %v8682_v37  ;;  %v16657_v16 = vpop.permute.xlu1 %9344  ;;  %v16662_v30 = vpop.permute.xlu0 %9350  ;;  %v13055_v37 = vld [vmem:[#allocation2 + $0xb0] ss:$12 sps:$4 sm:$0xff]  }
 0xd67   : > { %11534 = vmatprep.subr.msk.bf16.mxu0 %vm543_vm1, %v8685_v0  ;;  %v13056_v0 = vld [vmem:[#allocation2 + $0x8] ss:$12 sps:$4 sm:$0xff]  }
 0xd68   : > { %10056 = vrot.lane.b32.xlu1 %v16478_v26, %s13109_s14  ;;  %10066 = vrot.lane.b32.xlu0 %v13054_v21, %s13109_s14 }
 0xd6a   : > { %8739 = vmatpush1.bf16.msra.mxu0 %v8714_v33  ;;  %v16678_v62 = vpop.permute.xlu1 %9354  ;;  %v16680_v19 = vpop.permute.xlu0 %9362  ;;  %v11660_v33 = vcombine.high %v9888_v6, %v9888_v6 }
 0xd6b   : > { %8763 = vmatprep.subr.bf16.mxu0 %v15799_v58 }
 0xd6c   : > { %9710 = vrot.lane.b32.xlu1 %v13055_v37, %s13108_s13  ;;  %10368 = vrot.lane.b32.xlu0 %v13056_v0, %s17587_s20  ;;  %v13058_v0 = vld [vmem:[#allocation2 + $0x38] ss:$12 sps:$4 sm:$0xff]  }
 0xd6d   : > { %8755 = vmatmul.mubr.bf16.vlgmr.msra.gmra.mrb[36].mxu0 %v16533_v56 }
 0xd6e   : > { %8764 = vmatpush1.bf16.msra.mxu0 %v16234_v35  ;;  %v16689_v21 = vpop.permute.xlu1 %9358  ;;  %v16691_v57 = vpop.permute.xlu0 %9366  ;;  %11536 = vmatprep.mubr.msk.bf16.mxu0 %vm17852_vm0, %v16550_v53  ;;  %vm17873_vm0 = vmmov %vm17866_vm2 }
 0xd6f   : > { %17851 = vst [vmem:[#allocation25_spill] sm:$0xff] %v16691_v57  ;;  %8765 = vmatprep.subr.bf16.mxu0 %v15799_v58 }
 0xd70   : > { %10064 = vrot.lane.b32.xlu1 %v11660_v33, %s13109_s14  ;;  %10372 = vrot.lane.b32.xlu0 %v16516_v45, %s17587_s20 }
 0xd72   : > { %8766 = vmatpush1.bf16.msra.mxu0 %v16236_v15  ;;  %v16700_v37 = vpop.permute.xlu1 %9356  ;;  %v16702_v35 = vpop.permute.xlu0 %9668 }
 0xd73   : > { %17853 = vst [vmem:[#allocation26_spill] sm:$0xff] %v16702_v35  ;;  %8767 = vmatprep.subr.bf16.mxu0 %v15799_v58 }
 0xd74   : > { %10366 = vrot.lane.b32.xlu1 %v16354_v36, %s17587_s20  ;;  %10370 = vrot.lane.b32.xlu0 %v16527_v59, %s17587_s20 }
 0xd76   : > { %8768 = vmatpush1.bf16.msra.mxu0 %v16264_v61  ;;  %v16710_v53 = vpop.permute.xlu1 %9364  ;;  %v9673_v6 = vpop.permute.xlu0 %9672 }
 0xd77   : > { %8769 = vmatprep.subr.bf16.mxu0 %v15799_v58 }
 0xd78   : > { %10364 = vrot.lane.b32.xlu1 %v16366_v41, %s17587_s20  ;;  %10380 = vrot.lane.b32.xlu0 %v13058_v0, %s17587_s20 }
 0xd7a   : > { %8770 = vmatpush1.bf16.msra.mxu0 %v16266_v2  ;;  %v9667_v15 = vpop.permute.xlu1 %9666  ;;  %v9671_v33 = vpop.permute.xlu0 %9670 }
 0xd7b   : > { %8771 = vmatprep.subr.bf16.mxu0 %v15799_v58  ;;  %v9719_v61 = vsel %vm17854_vm15, %v9667_v15, %v16702_v35  ;;  %vm17874_vm15 = vmmov %vm17867_vm3 }
 0xd7c   : > { %10374 = vrot.lane.b32.xlu1 %v13059_v12, %s17587_s20  ;;  %10384 = vrot.lane.b32.xlu0 %v16377_v50, %s17587_s20 }
 0xd7d   : > { %9772 = vmatprep.subr.bf16.mxu1 %v9719_v61  ;;  %v13061_v61 = vld [vmem:[#allocation2 + $0x50] ss:$12 sps:$4 sm:$0xff]  }
 0xd7e   : > { %8772 = vmatpush1.bf16.msra.mxu0 %v16292_v60  ;;  %v9665_v57 = vpop.permute.xlu1 %9664  ;;  %v16724_v0 = vpop.permute.xlu0 %9680  ;;  %v13060_v60 = vld [vmem:[#allocation2 + $0x68] ss:$12 sps:$4 sm:$0xff]  }
 0xd7f   : > { %17855 = vst [vmem:[#allocation27_spill] sm:$0xff] %v16724_v0  ;;  %v9718_v2 = vsel %vm17856_vm7, %v9665_v57, %v9667_v15  ;;  %8773 = vmatprep.subr.bf16.mxu0 %v15799_v58  ;;  %v9720_v15 = vsel %vm17859_vm5, %v9671_v33, %v9673_v6  ;;  %vm17876_vm7 = vmmov %vm17873_vm0 }
 0xd80   : > { %10378 = vrot.lane.b32.xlu1 %v16388_v24, %s17587_s20  ;;  %10382 = vrot.lane.b32.xlu0 %v16390_v31, %s17587_s20  ;;  %vm17882_vm5 = vmmov %vm17867_vm3 }
 0xd81   : > { %9773 = vmatpush1.bf16.msra.mxu1 %v9718_v2 }
 0xd82   : > { %8774 = vmatpush1.bf16.msra.mxu0 %v16294_v48  ;;  %v16733_v50 = vpop.permute.xlu1 %9674  ;;  %v9685_v12 = vpop.permute.xlu0 %9684 }
 0xd83   : > { %17857 = vst [vmem:[#allocation28_spill] sm:$0xff] %v16733_v50  ;;  %8775 = vmatprep.subr.bf16.mxu0 %v15799_v58  ;;  %v9721_v57 = vsel %vm17858_vm11, %v9673_v6, %v16733_v50  ;;  %vm17880_vm11 = vmmov %vm17873_vm0 }
 0xd84   : > { %10376 = vrot.lane.b32.xlu1 %v16402_v54, %s17587_s20  ;;  %10392 = vrot.lane.b32.xlu0 %v13060_v60, %s17587_s20 }
 0xd85   : > { %9774 = vmatprep.subr.bf16.mxu1 %v9721_v57 }
 0xd86   : > { %8776 = vmatpush1.bf16.msra.mxu0 %v16325_v63  ;;  %9775 = vmatpush1.bf16.msra.mxu1 %v9720_v15  ;;  %v9679_v48 = vpop.permute.xlu1 %9678  ;;  %v9683_v31 = vpop.permute.xlu0 %9682  ;;  %v13062_v63 = vld [vmem:[#allocation2 + $0xb0] ss:$12 sps:$4 sm:$0xff]   ;;  %v9019_v15 = vsel %vm17864_vm9, %v16373_v5, %v16364_v42  ;;  %vm17888_vm9 = vmmov %vm17873_vm0 }
 0xd87   : > { %8777 = vmatprep.subr.bf16.mxu0 %v15799_v58  ;;  %v9723_v2 = vsel %vm17860_vm13, %v9679_v48, %v16724_v0  ;;  %vm17884_vm13 = vmmov %vm17873_vm0  ;;  %v17914_v0 = vld [vmem:[#allocation18_spill] sm:$0xff] }
 0xd88   : > { %10386 = vrot.lane.b32.xlu1 %v13061_v61, %s17587_s20  ;;  %10396 = vrot.lane.b32.xlu0 %v16413_v44, %s17587_s20  ;;  %v16760_v44 = vld.sshfl [vmem:[%s17466_s5 + $0xc] sm:$0x33 pattern:$0x76325410] }
 0xd89   : > { %9776 = vmatprep.subr.bf16.mxu1 %v9723_v2  ;;  %v16773_v2 = vcombine.high %v16760_v44, %v16760_v44 }
 0xd8a   : > { %8778 = vmatpush1.bf16.msra.mxu0 %v16341_v49  ;;  %v9677_v6 = vpop.permute.xlu1 %9676  ;;  %v16750_v33 = vpop.permute.xlu0 %9692  ;;  %v8720_v49 = vsel %vm543_vm1, %v16352_v55, 0  ;;  %v9018_v55 = vsel %vm17866_vm2, %v16384_v29, %v16373_v5  ;;  %v9020_v29 = vsel %vm17871_vm14, %v16386_v34, %v16375_v51  ;;  %vm17891_vm2 = vmmov %vm17873_vm0 }
 0xd8b   : > { %17861 = vst [vmem:[#allocation29_spill] sm:$0xff] %v16750_v33  ;;  %v9722_v60 = vsel %vm17862_vm6, %v9677_v6, %v9679_v48  ;;  %8779 = vmatprep.subr.bf16.mxu0 %v15799_v58  ;;  %v9724_v6 = vsel %vm17867_vm3, %v9683_v31, %v9685_v12  ;;  %vm17885_vm6 = vmmov %vm17867_vm3 }
 0xd8c   : > { %10390 = vrot.lane.b32.xlu1 %v16424_v4, %s17587_s20  ;;  %10060 = vrot.lane.b32.xlu0 %v13062_v63, %s13109_s14  ;;  %s17896_s14 = smov 90   ;;  %vm17901_vm14 = vmmov %vm17873_vm0 }
 0xd8d   : > { %9777 = vmatpush1.bf16.msra.mxu1 %v9722_v60  ;;  %v9021_v60 = vsel %vm17868_vm10, %v16375_v51, %v16398_v8  ;;  %vm17895_vm10 = vmmov %vm17869_vm4 }
 0xd8e   : > { %8780 = vmatpush1.bf16.msra.mxu0 %v8720_v49  ;;  %v16764_v57 = vpop.permute.xlu1 %9686  ;;  %v9697_v48 = vpop.permute.xlu0 %9696 }
 0xd8f   : > { %17863 = vst [vmem:[#allocation30_spill] sm:$0xff] %v16764_v57  ;;  %9072 = vmatprep.subr.bf16.mxu0 %v9019_v15  ;;  %v9725_v61 = vsel %vm17865_vm8, %v9685_v12, %v16764_v57  ;;  %v13063_v15 = vld [vmem:[#allocation2 + $0x80] ss:$12 sps:$4 sm:$0xff]   ;;  %vm17889_vm8 = vmmov %vm17867_vm3 }
 0xd90   : > { %10388 = vrot.lane.b32.xlu1 %v16437_v40, %s17587_s20  ;;  %10394 = vrot.lane.b32.xlu0 %v16439_v17, %s17587_s20  ;;  %v13064_v17 = vld [vmem:[#allocation2 + $0x98] ss:$12 sps:$4 sm:$0xff]   ;;  %v17872_v12 = vld [vmem:[#allocation3_spill] sm:$0xff]  ;;  %vm17894_vm3 = vmmov %vm17873_vm0 }
 0xd91   : > { %8796 = vmatmul.mubr.bf16.vlgmr.msra.gmra.mrb[40].mxu0 %v16533_v56  ;;  %9778 = vmatprep.subr.bf16.mxu1 %v9725_v61  ;;  %v9023_v31 = vsel %vm17873_vm0, %v17872_v12, %v16400_v3  ;;  %v17913_v57 = vld [vmem:[#allocation19_spill] sm:$0xff] }
 0xd92   : > { %9073 = vmatpush1.bf16.msra.mxu0 %v9018_v55  ;;  %9779 = vmatpush1.bf16.msra.mxu1 %v9724_v6  ;;  %v9691_v63 = vpop.permute.xlu1 %9690  ;;  %v16787_v49 = vpop.permute.xlu0 %9360  ;;  %v17875_v6 = vld [vmem:[#allocation5_spill] sm:$0xff] }
 0xd93   : > { %9074 = vmatprep.subr.bf16.mxu0 %v9021_v60  ;;  %v9727_v5 = vsel %vm17869_vm4, %v9691_v63, %v16750_v33  ;;  %11567 = vmatprep.mubr.msk.bf16.mxu0 %vm17870_vm12, %v16773_v2  ;;  %v9022_v51 = vsel %vm17876_vm7, %v17875_v6, %v17872_v12  ;;  %v17878_v60 = vld [vmem:[#allocation7_spill] sm:$0xff]  ;;  %v17887_v6 = vld [vmem:[#allocation9_spill] sm:$0xff]  ;;  %vm17898_vm4 = vmmov %vm17873_vm0 }
 0xd94   : > { %10398 = vrot.lane.b32.xlu1 %v13063_v15, %s17587_s20  ;;  %10404 = vrot.lane.b32.xlu0 %v13064_v17, %s17587_s20  ;;  %v17879_v15 = vld [vmem:[#allocation4_spill] sm:$0xff]  ;;  %vm17900_vm12 = vmmov %vm17873_vm0 }
 0xd95   : > { %9780 = vmatprep.subr.bf16.mxu1 %v9727_v5  ;;  %v9025_v17 = vsel %vm17880_vm11, %v17879_v15, %v17878_v60  ;;  %vm17905_vm7 = vmmov %vm17873_vm0 }
 0xd96   : > { %9075 = vmatpush1.bf16.msra.mxu0 %v9020_v29  ;;  %v9689_v56 = vpop.permute.xlu1 %9688  ;;  %v9695_v61 = vpop.permute.xlu0 %9694  ;;  %v10238_v29 = vld [vmem:[#allocation2 + $0xc0] sm:$0x33]  ;;  %vm17907_vm11 = vmmov %vm17873_vm0 }
 0xd97   : > { %v9726_v55 = vsel %vm17874_vm15, %v9689_v56, %v9691_v63  ;;  %9076 = vmatprep.subr.bf16.mxu0 %v9023_v31  ;;  %v9728_v12 = vsel %vm17885_vm6, %v9695_v61, %v9697_v48  ;;  %v11692_v33 = vcombine.high %v10238_v29, %v10238_v29  ;;  %vm17902_vm15 = vmmov %vm17873_vm0 }
 0xd98   : > { %10402 = vrot.lane.b32.xlu1 %v16462_v14, %s17587_s20  ;;  %10408 = vrot.lane.b32.xlu0 %v16464_v43, %s17587_s20  ;;  %v17883_v43 = vld [vmem:[#allocation6_spill] sm:$0xff] }
 0xd99   : > { %9781 = vmatpush1.bf16.msra.mxu1 %v9726_v55  ;;  %v9024_v56 = vsel %vm17884_vm13, %v17883_v43, %v17879_v15  ;;  %v17886_v55 = vld [vmem:[#allocation8_spill] sm:$0xff]  ;;  %v17893_v43 = vld [vmem:[#allocation10_spill] sm:$0xff]  ;;  %vm17915_vm13 = vcmask 891904  }
 0xd9a   : > { %9077 = vmatpush1.bf16.msra.mxu0 %v9022_v51  ;;  %v16809_v34 = vpop.permute.xlu1 %9698  ;;  %v16814_v63 = vpop.permute.xlu0 %9704  ;;  %v9027_v51 = vsel %vm17888_vm9, %v17887_v6, %v17886_v55  ;;  %v9369_v50 = vsel %vm17915_vm13, %v17914_v0, %v17913_v57  ;;  %vm17918_vm6 = vmmov %vm17915_vm13 }
 0xd9b   : > { %17877 = vst [vmem:[#allocation3_spill] sm:$0xff] %v16809_v34  ;;  %17881 = vst [vmem:[#allocation5_spill] sm:$0xff] %v16814_v63  ;;  %9078 = vmatprep.subr.bf16.mxu0 %v9025_v17  ;;  %v9729_v5 = vsel %vm17882_vm5, %v9697_v48, %v16809_v34  ;;  %v11691_v34 = vcombine.low %v10238_v29, %v10238_v29  ;;  %v17890_v48 = vld [vmem:[#allocation11_spill] sm:$0xff]  ;;  %vm17908_vm5 = vcmask 31744  }
 0xd9c   : > { %10400 = vrot.lane.b32.xlu1 %v16476_v23, %s17587_s20  ;;  %10406 = vrot.lane.b32.xlu0 %v16478_v26, %s17587_s20  ;;  %v9026_v61 = vsel %vm17891_vm2, %v17890_v48, %v17887_v6  ;;  %vm17921_vm9 = vmmov %vm17918_vm6 }
 0xd9d   : > { %9782 = vmatprep.subr.bf16.mxu1 %v9729_v5  ;;  %v17892_v5 = vld [vmem:[#allocation13_spill] sm:$0xff]  ;;  %vm17923_vm2 = vmmov %vm17918_vm6 }
 0xd9e   : > { %9079 = vmatpush1.bf16.msra.mxu0 %v9024_v56  ;;  %9783 = vmatpush1.bf16.msra.mxu1 %v9728_v12  ;;  %v9703_v31 = vpop.permute.xlu1 %9702  ;;  %v16829_v17 = vpop.permute.xlu0 %9708  ;;  %v9029_v56 = vsel %vm17894_vm3, %v17893_v43, %v17892_v5  ;;  %v13067_v12 = vld [vmem:[#allocation2 + $0xc8] ss:$0 sps:$4 sm:$0x33]   ;;  %vm17924_vm3 = vmmov %vm17923_vm2 }
 0xd9f   : > { %9080 = vmatprep.subr.bf16.mxu0 %v9027_v51  ;;  %v9731_v26 = vsel %vm17889_vm8, %v9703_v31, %v16814_v63  ;;  %vm17922_vm8 = vmmov %vm17908_vm5 }
 0xda0   : > { %10412 = vrot.lane.b32.xlu1 %v11691_v34, %s17587_s20  ;;  %10414 = vrot.lane.b32.xlu0 %v11692_v33, %s17587_s20  ;;  %v17897_v33 = vld [vmem:[#allocation12_spill] sm:$0xff] }
 0xda1   : > { %9784 = vmatprep.subr.bf16.mxu1 %v9731_v26  ;;  %v9028_v34 = vsel %vm17898_vm4, %v17897_v33, %v17893_v43  ;;  %v17899_v26 = vld [vmem:[#allocation14_spill] sm:$0xff]  ;;  %v9033_v43 = vsel %vm17873_vm0, %v16488_v27, %v16574_v28  ;;  %vm17925_vm4 = vmmov %vm17895_vm10 }
 0xda2   : > { %9081 = vmatpush1.bf16.msra.mxu0 %v9026_v61  ;;  %v9701_v15 = vpop.permute.xlu1 %9700  ;;  %v16841_v29 = vpop.permute.xlu0 %9706  ;;  %v9031_v48 = vsel %vm17900_vm12, %v16486_v52, %v17899_v26  ;;  %vm17926_vm12 = vmmov %vm17923_vm2 }
 0xda3   : > { %v9730_v51 = vsel %vm17895_vm10, %v9701_v15, %v9703_v31  ;;  %9082 = vmatprep.subr.bf16.mxu0 %v9029_v56  ;;  %v13068_v31 = vld [vmem:[#allocation2 + $0x8] ss:$12 sps:$4 sm:$0xff]   ;;  %vm17928_vm0 = vmmov %vm17925_vm4 }
 0xda4   : > { %10416 = vrot.lane.b32.xlu1 %v13067_v12, %s17587_s20  ;;  %10716 = vrot.lane.b32.xlu0 %v16354_v36, %s17896_s14  ;;  %v9030_v36 = vsel %vm17901_vm14, %v16494_v9, %v16486_v52  ;;  %v13069_v12 = vld [vmem:[#allocation2 + $0x20] ss:$12 sps:$4 sm:$0xff]   ;;  %v17903_v9 = vld [vmem:[#allocation16_spill] sm:$0xff]  ;;  %vm17927_vm14 = vmmov %vm17925_vm4 }
 0xda5   : > { %9785 = vmatpush1.bf16.msra.mxu1 %v9730_v51  ;;  %v17904_v52 = vld [vmem:[#allocation15_spill] sm:$0xff] }
 0xda6   : > { %9083 = vmatpush1.bf16.msra.mxu0 %v9028_v34  ;;  %v16850_v6 = vpop.permute.xlu1 %9712  ;;  %v16855_v61 = vpop.permute.xlu0 %9714  ;;  %v9034_v51 = vsel %vm17905_vm7, %v17904_v52, %v17903_v9  ;;  %v17906_v34 = vld [vmem:[#allocation17_spill] sm:$0xff]  ;;  %v13071_v52 = vld [vmem:[#allocation2 + $0x38] ss:$12 sps:$4 sm:$0xff]   ;;  %vm17930_vm7 = vmmov %vm17923_vm2 }
 0xda7   : > { %9084 = vmatprep.subr.bf16.mxu0 %v9031_v48  ;;  %v9035_v48 = vsel %vm17907_vm11, %v17903_v9, %v17906_v34  ;;  %vm17931_vm11 = vcmask 752640  }
 0xda8   : > { %10718 = vrot.lane.b32.xlu1 %v13068_v31, %s17896_s14  ;;  %10714 = vrot.lane.b32.xlu0 %v16366_v41, %s17896_s14  ;;  %v9032_v41 = vsel %vm17902_vm15, %v16496_v46, %v16488_v27  ;;  %v9064_v27 = vsel %vm543_vm1, %v9034_v51, 0  ;;  %v13072_v51 = vld [vmem:[#allocation2 + $0x50] ss:$12 sps:$4 sm:$0xff]   ;;  %vm17929_vm15 = vmmov %vm17923_vm2 }
 0xda9   : > { %vm17933_vm13 = vmmov %vm17931_vm11 }
 0xdaa   : > { %9085 = vmatpush1.bf16.msra.mxu0 %v9030_v36  ;;  %v16863_v15 = vpop.permute.xlu1 %9716  ;;  %v16868_v56 = vpop.permute.xlu0 %10016 }
 0xdab   : > { %9086 = vmatprep.subr.bf16.mxu0 %v9033_v43 }
 0xdac   : > { %10722 = vrot.lane.b32.xlu1 %v16516_v45, %s17896_s14  ;;  %10724 = vrot.lane.b32.xlu0 %v13069_v12, %s17896_s14  ;;  %v13070_v12 = vld [vmem:[#allocation2 + $0xb0] ss:$12 sps:$4 sm:$0xff]  }
 0xdae   : > { %9087 = vmatpush1.bf16.msra.mxu0 %v9032_v41  ;;  %v16879_v33 = vpop.permute.xlu1 %10018  ;;  %v16884_v31 = vpop.permute.xlu0 %10014 }
 0xdaf   : > { %11566 = vmatprep.subr.msk.bf16.mxu0 %vm543_vm1, %v9035_v48  ;;  %v13073_v48 = vld [vmem:[#allocation2 + $0x4c] ss:$12 sps:$4 sm:$0xff]  }
 0xdb0   : > { %10720 = vrot.lane.b32.xlu1 %v16527_v59, %s17896_s14  ;;  %10728 = vrot.lane.b32.xlu0 %v16388_v24, %s17896_s14  ;;  %v16891_v46 = vpop.f32.mrb[20].mxu0 }
 0xdb1   : > { %v16894_v45 = vpop.f32.mrb[21].mxu0 }
 0xdb2   : > { %9089 = vmatpush1.bf16.msra.mxu0 %v9064_v27  ;;  %v16896_v36 = vpop.permute.xlu1 %10022  ;;  %v16898_v43 = vpop.permute.xlu0 %10024 }
 0xdb3   : > { %9113 = vmatprep.subr.bf16.mxu0 %v15799_v58  ;;  %v8286_v41 = vpop.f32.mrb[22].mxu0 }
 0xdb4   : > { %10410 = vrot.lane.b32.xlu1 %v13070_v12, %s17587_s20  ;;  %10726 = vrot.lane.b32.xlu0 %v16402_v54, %s17896_s14  ;;  %v8287_v24 = vpop.f32.mrb[23].mxu0  ;;  %v13075_v12 = vld [vmem:[#allocation2 + $0x48] ss:$12 sps:$4 sm:$0xff]  }
 0xdb5   : > { %9105 = vmatmul.mubr.bf16.vlgmr.msra.gmra.mrb[44].mxu0 %v16760_v44 }
 0xdb6   : > { %9114 = vmatpush1.bf16.msra.mxu0 %v16364_v42  ;;  %v16906_v59 = vpop.permute.xlu1 %10020  ;;  %v16908_v9 = vpop.permute.xlu0 %10028  ;;  %11568 = vmatprep.mubr.msk.bf16.mxu0 %vm17908_vm5, %v16773_v2  ;;  %vm17932_vm5 = vmmov %vm17923_vm2 }
 0xdb7   : > { %9115 = vmatprep.subr.bf16.mxu0 %v15799_v58 }
 0xdb8   : > { %10730 = vrot.lane.b32.xlu1 %v13071_v52, %s17896_s14  ;;  %10736 = vrot.lane.b32.xlu0 %v13072_v51, %s17896_s14 }
 0xdba   : > { %9116 = vmatpush1.bf16.msra.mxu0 %v16398_v8  ;;  %v16916_v54 = vpop.permute.xlu1 %10030  ;;  %v16918_v42 = vpop.permute.xlu0 %10026 }
 0xdbb   : > { %9117 = vmatprep.subr.bf16.mxu0 %v15799_v58 }
 0xdbc   : > { %10734 = vrot.lane.b32.xlu1 %v13073_v48, %s17896_s14  ;;  %10740 = vrot.lane.b32.xlu0 %v16424_v4, %s17896_s14  ;;  %v13076_v4 = vld [vmem:[#allocation2 + $0x68] ss:$12 sps:$4 sm:$0xff]   ;;  %v13080_v48 = vld [vmem:[#allocation2 + $0x78] ss:$12 sps:$4 sm:$0xff]  }
 0xdbe   : > { %9118 = vmatpush1.bf16.msra.mxu0 %v16400_v3  ;;  %v16925_v2 = vpop.permute.xlu1 %10034  ;;  %v16927_v27 = vpop.permute.xlu0 %10036  ;;  %v13077_v3 = vld [vmem:[#allocation2 + $0x80] ss:$12 sps:$4 sm:$0xff]  }
 0xdbf   : > { %9119 = vmatprep.subr.bf16.mxu0 %v15799_v58 }
 0xdc0   : > { %10732 = vrot.lane.b32.xlu1 %v13075_v12, %s17896_s14  ;;  %10738 = vrot.lane.b32.xlu0 %v16437_v40, %s17896_s14  ;;  %v13078_v40 = vld [vmem:[#allocation2 + $0x7c] ss:$12 sps:$4 sm:$0xff]  }
 0xdc2   : > { %9120 = vmatpush1.bf16.msra.mxu0 %v17878_v60  ;;  %v16934_v8 = vpop.permute.xlu1 %10032  ;;  %v16936_v41 = vpop.permute.xlu0 %10040 }
 0xdc3   : > { %9121 = vmatprep.subr.bf16.mxu0 %v15799_v58 }
 0xdc4   : > { %10742 = vrot.lane.b32.xlu1 %v13076_v4, %s17896_s14  ;;  %10748 = vrot.lane.b32.xlu0 %v13077_v3, %s17896_s14 }
 0xdc6   : > { %9122 = vmatpush1.bf16.msra.mxu0 %v17886_v55  ;;  %v16942_v24 = vpop.permute.xlu1 %10042  ;;  %v16944_v52 = vpop.permute.xlu0 %10038  ;;  %v10588_v55 = vld [vmem:[#allocation2 + $0xc0] sm:$0x33] }
 0xdc7   : > { %9123 = vmatprep.subr.bf16.mxu0 %v15799_v58  ;;  %v11723_v4 = vcombine.low %v10588_v55, %v10588_v55 }
 0xdc8   : > { %10746 = vrot.lane.b32.xlu1 %v13078_v40, %s17896_s14  ;;  %10752 = vrot.lane.b32.xlu0 %v16462_v14, %s17896_s14 }
 0xdca   : > { %9124 = vmatpush1.bf16.msra.mxu0 %v17892_v5  ;;  %v16951_v60 = vpop.permute.xlu1 %10046  ;;  %v16953_v51 = vpop.permute.xlu0 %10048  ;;  %v13081_v5 = vld [vmem:[#allocation2 + $0x98] ss:$12 sps:$4 sm:$0xff]  }
 0xdcb   : > { %9125 = vmatprep.subr.bf16.mxu0 %v15799_v58 }
 0xdcc   : > { %10744 = vrot.lane.b32.xlu1 %v13080_v48, %s17896_s14  ;;  %10750 = vrot.lane.b32.xlu0 %v16476_v23, %s17896_s14  ;;  %v13083_v23 = vld [vmem:[#allocation2 + $0xac] ss:$12 sps:$4 sm:$0xff]   ;;  %v16976_v48 = vld.sshfl [vmem:[%s17466_s5 + $0x10] sm:$0x33 pattern:$0x76325410] }
 0xdce   : > { %9126 = vmatpush1.bf16.msra.mxu0 %v17899_v26  ;;  %v16960_v12 = vpop.permute.xlu1 %10044  ;;  %v16962_v14 = vpop.permute.xlu0 %10052  ;;  %v13085_v26 = vld [vmem:[#allocation2 + $0xb0] ss:$12 sps:$4 sm:$0xff]  }
 0xdcf   : > { %17909 = vst [vmem:[#allocation7_spill] sm:$0xff] %v16962_v14  ;;  %9127 = vmatprep.subr.bf16.mxu0 %v15799_v58  ;;  %v13087_v14 = vld [vmem:[#allocation2 + $0xc8] ss:$0 sps:$4 sm:$0x33]  }
 0xdd0   : > { %10754 = vrot.lane.b32.xlu1 %v13081_v5, %s17896_s14  ;;  %10762 = vrot.lane.b32.xlu0 %v11723_v4, %s17896_s14 }
 0xdd2   : > { %9128 = vmatpush1.bf16.msra.mxu0 %v16574_v28  ;;  %v16968_v3 = vpop.permute.xlu1 %10054  ;;  %v16970_v40 = vpop.permute.xlu0 %10050  ;;  %v9070_v28 = vsel %vm543_vm1, %v17906_v34, 0 }
 0xdd3   : > { %17910 = vst [vmem:[#allocation4_spill] sm:$0xff] %v16970_v40  ;;  %9129 = vmatprep.subr.bf16.mxu0 %v15799_v58  ;;  %v13086_v40 = vld [vmem:[#allocation2 + $0xa8] ss:$12 sps:$4 sm:$0xff]  }
 0xdd4   : > { %10758 = vrot.lane.b32.xlu1 %v13083_v23, %s17896_s14  ;;  %10760 = vrot.lane.b32.xlu0 %v13085_v26, %s17896_s14  ;;  %v16980_v5 = vpop.f32.mrb[24].mxu0  ;;  %v16993_v23 = vcombine.high %v16976_v48, %v16976_v48 }
 0xdd5   : > { %17911 = vst [vmem:[#allocation6_spill] sm:$0xff] %v16980_v5  ;;  %v8325_v4 = vpop.f32.mrb[25].mxu0 }
 0xdd6   : > { %9130 = vmatpush1.bf16.msra.mxu0 %v9070_v28  ;;  %v16984_v63 = vpop.permute.xlu1 %10058  ;;  %v16989_v35 = vpop.permute.xlu0 %10062  ;;  %v17917_v28 = vld [vmem:[#allocation20_spill] sm:$0xff] }
 0xdd7   : > { %17912 = vst [vmem:[#allocation8_spill] sm:$0xff] %v16984_v63  ;;  %17916 = vst [vmem:[#allocation9_spill] sm:$0xff] %v16989_v35  ;;  %9422 = vmatprep.subr.bf16.mxu0 %v9369_v50  ;;  %v8326_v26 = vpop.f32.mrb[26].mxu0  ;;  %v9368_v4 = vsel %vm17918_vm6, %v17917_v28, %v17914_v0  ;;  %v17919_v35 = vld [vmem:[#allocation22_spill] sm:$0xff]  ;;  %v17920_v63 = vld [vmem:[#allocation21_spill] sm:$0xff]  ;;  %v9735_v28 = vsel %vm17928_vm0, %v16855_v61, %v16863_v15 }
 0xdd8   : > { %10756 = vrot.lane.b32.xlu1 %v13086_v40, %s17896_s14  ;;  %10766 = vrot.lane.b32.xlu0 %v13087_v14, %s17896_s14  ;;  %v8327_v34 = vpop.f32.mrb[27].mxu0  ;;  %v9371_v57 = vsel %vm17921_vm9, %v17920_v63, %v17919_v35  ;;  %v11724_v26 = vcombine.high %v10588_v55, %v10588_v55  ;;  %v9370_v0 = vsel %vm17923_vm2, %v16559_v22, %v17920_v63  ;;  %vm17934_vm6 = vmmov %vm17923_vm2 }
 0xdd9   : > { %9146 = vmatmul.mubr.bf16.vlgmr.msra.gmra.mrb[48].mxu0 %v16760_v44  ;;  %v10906_v44 = vld [vmem:[%s17471_s10] sm:$0xf]  ;;  %v9373_v55 = vsel %vm17924_vm3, %v16564_v20, %v16588_v13  ;;  %v9732_v22 = vsel %vm17925_vm4, %v16841_v29, %v16829_v17  ;;  %v9372_v63 = vsel %vm17926_vm12, %v16579_v47, %v16564_v20  ;;  %v9734_v34 = vsel %vm17927_vm14, %v16850_v6, %v16855_v61  ;;  %v17050_v20 = vld.sshfl [vmem:[%s17466_s5 + $0x18] sm:$0x33 pattern:$0x76325410]  ;;  %vm17935_vm9 = vmmov %vm17931_vm11 }
 0xdda   : > { %9423 = vmatpush1.bf16.msra.mxu0 %v9368_v4  ;;  %v17001_v5 = vpop.permute.xlu1 %10056  ;;  %v17006_v50 = vpop.permute.xlu0 %10066  ;;  %11599 = vmatprep.mubr.msk.bf16.mxu0 %vm17922_vm8, %v16993_v23  ;;  %v9764_v47 = vsel %vm543_vm1, %v9734_v34, 0  ;;  %v9374_v6 = vsel %vm17930_vm7, %v16614_v38, %v16601_v7  ;;  %v10069_v61 = vsel %vm17931_vm11, %v16868_v56, %v16879_v33  ;;  %v9376_v38 = vsel %vm17934_vm6, %v16619_v18, %v16606_v1  ;;  %vm17936_vm3 = vmmov %vm17935_vm9  ;;  %v17939_v34 = vld [vmem:[#allocation23_spill] sm:$0xff] }
 0xddb   : > { %9424 = vmatprep.subr.bf16.mxu0 %v9371_v57  ;;  %vm17938_vm4 = vmmov %vm17936_vm3 }
 0xddc   : > { %10764 = vrot.lane.b32.xlu1 %v11724_v26, %s17896_s14  ;;  %v17061_v26 = vcombine.high %v17050_v20, %v17050_v20  ;;  %vm17940_vm12 = vmmov %vm17923_vm2 }
 0xddd   : > { %vm17941_vm14 = vmmov %vm17936_vm3 }
 0xdde   : > { %9425 = vmatpush1.bf16.msra.mxu0 %v9370_v0  ;;  %v17017_v14 = vpop.permute.xlu1 %9710  ;;  %v17022_v40 = vpop.permute.xlu0 %10368  ;;  %vm17942_vm0 = vmmov %vm17923_vm2 }
 0xddf   : > { %9426 = vmatprep.subr.bf16.mxu0 %v9373_v55  ;;  %v9733_v57 = vsel %vm17895_vm10, %v16829_v17, %v17017_v14  ;;  %v9375_v17 = vsel %vm17929_vm15, %v16601_v7, %v16593_v11  ;;  %v10068_v7 = vsel %vm17933_vm13, %v16884_v31, %v16868_v56  ;;  %v9379_v56 = vsel %vm17923_vm2, %v16641_v10, %v16633_v25  ;;  %vm17937_vm10 = vmmov %vm17923_vm2 }
 0xde0   : > { %10909 = vperm.xlu1 %12859, %v10906_v44   ;;  %9786 = vmatprep.subr.bf16.mxu1 %v9733_v57  ;;  %v9377_v44 = vsel %vm17932_vm5, %v16606_v1, %v16628_v32  ;;  %v10071_v57 = vsel %vm17935_vm9, %v16896_v36, %v16898_v43  ;;  %v10070_v1 = vsel %vm17936_vm3, %v16906_v59, %v16896_v36  ;;  %vm17943_vm15 = vmmov %vm17936_vm3 }
 0xde1   : > { %9787 = vmatpush1.bf16.msra.mxu1 %v9732_v22  ;;  %v9378_v18 = vsel %vm17937_vm10, %v16657_v16, %v16641_v10  ;;  %v10073_v31 = vsel %vm17938_vm4, %v16908_v9, %v16916_v54  ;;  %v10072_v10 = vsel %vm17941_vm14, %v16918_v42, %v16908_v9  ;;  %v9380_v16 = vsel %vm17942_vm0, %v16662_v30, %v17939_v34  ;;  %vm17944_vm7 = vmmov %vm17942_vm0 }
 0xde2   : > { %9427 = vmatpush1.bf16.msra.mxu0 %v9372_v63  ;;  %v17039_v4 = vpop.permute.xlu1 %10064  ;;  %11630 = vmatprep.subr.msk.bf16.mxu1 %vm543_vm1, %v9735_v28  ;;  %v17045_v29 = vpop.permute.xlu0 %10372  ;;  %v9381_v28 = vsel %vm17940_vm12, %v17939_v34, %v16678_v62  ;;  %v10075_v36 = vsel %vm17943_vm15, %v16925_v2, %v16927_v27  ;;  %vm17945_vm11 = vmmov %vm17936_vm3  ;;  %v17956_v34 = vld [vmem:[#allocation19_spill] sm:$0xff]  ;;  %vm17957_vm4 = vcmask 31744  }
 0xde3   : > { %9428 = vmatprep.subr.bf16.mxu0 %v9375_v17  ;;  %v10074_v30 = vsel %vm17945_vm11, %v16934_v8, %v16925_v2  ;;  %vm17946_vm5 = vmmov %vm17942_vm0  ;;  %vm17966_vm11 = vcmask 744448  }
 0xde4   : > { %v9382_v9 = vsel %vm17946_vm5, %v16700_v37, %v16689_v21  ;;  %vm17947_vm13 = vmmov %vm17936_vm3 }
 0xde5   : > { %9789 = vmatpush1.bf16.msra.mxu1 %v9764_v47  ;;  %v9383_v47 = vsel %vm17944_vm7, %v16689_v21, %v16787_v49  ;;  %v10077_v42 = vsel %vm17947_vm13, %v16936_v41, %v16942_v24  ;;  %vm17948_vm6 = vmmov %vm17942_vm0 }
 0xde6   : > { %9429 = vmatpush1.bf16.msra.mxu0 %v9374_v6  ;;  %v17063_v0 = vpop.permute.xlu1 %10366  ;;  %10122 = vmatprep.subr.bf16.mxu1 %v10069_v61  ;;  %v17068_v55 = vpop.permute.xlu0 %10370  ;;  %v9384_v61 = vsel %vm17948_vm6, %v16680_v19, %v16710_v53  ;;  %vm17950_vm9 = vmmov %vm17942_vm0 }
 0xde7   : > { %9430 = vmatprep.subr.bf16.mxu0 %v9377_v44  ;;  %vm17952_vm2 = vmmov %vm17936_vm3 }
 0xde8   : > { %9805 = vmatmul.mubr.bf16.vlgmr.msra.gmra.mrb[36].mxu1 %v16668_v39  ;;  %vm17955_vm10 = vmmov %vm17952_vm2 }
 0xde9   : > { %10123 = vmatpush1.bf16.msra.mxu1 %v10068_v7  ;;  %11663 = vmatprep.mubr.msk.bf16.mxu1 %vm17922_vm8, %v17061_v26  ;;  %v17949_v7 = vld [vmem:[#allocation25_spill] sm:$0xff]  ;;  %vm17951_vm8 = vmmov %vm17936_vm3 }
 0xdea   : > { %9431 = vmatpush1.bf16.msra.mxu0 %v9376_v38  ;;  %v17082_v22 = vpop.permute.xlu1 %10364  ;;  %10124 = vmatprep.subr.bf16.mxu1 %v10071_v57  ;;  %v17087_v39 = vpop.permute.xlu0 %10380  ;;  %v9385_v2 = vsel %vm17950_vm9, %v16710_v53, %v17949_v7  ;;  %v10076_v21 = vsel %vm17951_vm8, %v16944_v52, %v16936_v41  ;;  %v9414_v57 = vsel %vm543_vm1, %v9384_v61, 0  ;;  %v10079_v53 = vsel %vm17952_vm2, %v16951_v60, %v16953_v51  ;;  %vm17953_vm3 = vmmov %vm17952_vm2 }
 0xdeb   : > { %9432 = vmatprep.subr.bf16.mxu0 %v9379_v56  ;;  %v10078_v52 = vsel %vm17953_vm3, %v16960_v12, %v16951_v60  ;;  %v17958_v60 = vld [vmem:[#allocation4_spill] sm:$0xff]  ;;  %vm17959_vm12 = vmmov %vm17952_vm2 }
 0xdec   : > { %vm17961_vm14 = vmmov %vm17952_vm2 }
 0xded   : > { %10125 = vmatpush1.bf16.msra.mxu1 %v10070_v1  ;;  %vm17962_vm0 = vmmov %vm17952_vm2 }
 0xdee   : > { %9433 = vmatpush1.bf16.msra.mxu0 %v9378_v18  ;;  %v17098_v63 = vpop.permute.xlu1 %10374  ;;  %10126 = vmatprep.subr.bf16.mxu1 %v10073_v31  ;;  %v17103_v17 = vpop.permute.xlu0 %10384  ;;  %vm17964_vm15 = vmmov %vm17962_vm0 }
 0xdef   : > { %9434 = vmatprep.subr.bf16.mxu0 %v9381_v28  ;;  %vm17965_vm7 = vmmov %vm17962_vm0 }
 0xdf0   : > { %v10085_v61 = vsel %vm17965_vm7, %v17039_v4, %v17006_v50  ;;  %vm17967_vm5 = vmmov %vm17966_vm11 }
 0xdf1   : > { %10127 = vmatpush1.bf16.msra.mxu1 %v10072_v10  ;;  %vm17968_vm13 = vmmov %vm17967_vm5 }
 0xdf2   : > { %9435 = vmatpush1.bf16.msra.mxu0 %v9380_v16  ;;  %v17114_v59 = vpop.permute.xlu1 %10378  ;;  %10128 = vmatprep.subr.bf16.mxu1 %v10075_v36  ;;  %v17119_v6 = vpop.permute.xlu0 %10382  ;;  %v17960_v16 = vld [vmem:[#allocation8_spill] sm:$0xff]  ;;  %vm17969_vm6 = vmmov %vm17957_vm4 }
 0xdf3   : > { %9436 = vmatprep.subr.bf16.mxu0 %v9383_v47  ;;  %vm17970_vm9 = vmmov %vm17967_vm5 }
 0xdf4   : > { %vm17971_vm8 = vmmov %vm17967_vm5 }
 0xdf5   : > { %10129 = vmatpush1.bf16.msra.mxu1 %v10074_v30  ;;  %vm17972_vm2 = vmmov %vm17967_vm5 }
 0xdf6   : > { %9437 = vmatpush1.bf16.msra.mxu0 %v9382_v9  ;;  %v17133_v44 = vpop.permute.xlu1 %10376  ;;  %10130 = vmatprep.subr.bf16.mxu1 %v10077_v42  ;;  %v17138_v8 = vpop.permute.xlu0 %10392  ;;  %v17963_v9 = vld [vmem:[#allocation9_spill] sm:$0xff]  ;;  %vm17973_vm3 = vmmov %vm17972_vm2 }
 0xdf7   : > { %11598 = vmatprep.subr.msk.bf16.mxu0 %vm543_vm1, %v9385_v2  ;;  %v10084_v42 = vsel %vm17964_vm15, %v17963_v9, %v17039_v4  ;;  %v17981_v9 = vld [vmem:[#allocation26_spill] sm:$0xff]  ;;  %vm17983_vm7 = vmmov %vm17969_vm6 }
 0xdf8   : > { %v8409_v37 = vpop.f32.mrb[28].mxu0 }
 0xdf9   : > { %v17145_v38 = vadd.f32 %v8409_v37, %v16891_v46  ;;  %v8411_v19 = vpop.f32.mrb[29].mxu0  ;;  %10131 = vmatpush1.bf16.msra.mxu1 %v10076_v21  ;;  %v10114_v21 = vsel %vm543_vm1, %v10084_v42, 0 }
 0xdfa   : > { %v17152_v56 = vadd.f32 %v8411_v19, %v16894_v45  ;;  %9439 = vmatpush1.bf16.msra.mxu0 %v9414_v57  ;;  %v17154_v1 = vpop.permute.xlu1 %10386  ;;  %10132 = vmatprep.subr.bf16.mxu1 %v10079_v53  ;;  %v17156_v41 = vpop.permute.xlu0 %10396  ;;  %v17954_v45 = vld [vmem:[#allocation7_spill] sm:$0xff]  ;;  %v10418_v57 = vsel %vm17967_vm5, %v17082_v22, %v17063_v0  ;;  %v10421_v53 = vsel %vm17968_vm13, %v17045_v29, %v17098_v63 }
 0xdfb   : > { %9463 = vmatprep.subr.bf16.mxu0 %v15799_v58  ;;  %v8413_v46 = vpop.f32.mrb[30].mxu0  ;;  %v10081_v31 = vsel %vm17955_vm10, %v17954_v45, %v16968_v3  ;;  %v10080_v12 = vsel %vm17959_vm12, %v17958_v60, %v17954_v45  ;;  %v10423_v22 = vsel %vm17971_vm8, %v17114_v59, %v17087_v39  ;;  %vm17974_vm10 = vmmov %vm17972_vm2  ;;  %v17977_v60 = vld [vmem:[#allocation6_spill] sm:$0xff]  ;;  %vm17991_vm8 = vcmask 736256  }
 0xdfc   : > { %v8414_v18 = vpop.f32.mrb[31].mxu0  ;;  %v10424_v45 = vsel %vm17974_vm10, %v17119_v6, %v17103_v17  ;;  %vm17976_vm12 = vmmov %vm17972_vm2 }
 0xdfd   : > { %9455 = vmatmul.mubr.bf16.vlgmr.msra.gmra.mrb[52].mxu0 %v16976_v48  ;;  %10133 = vmatpush1.bf16.msra.mxu1 %v10078_v52  ;;  %vm17995_vm10 = vmmov %vm17983_vm7 }
 0xdfe   : > { %9464 = vmatpush1.bf16.msra.mxu0 %v17956_v34  ;;  %v17167_v28 = vpop.permute.xlu1 %10390  ;;  %10134 = vmatprep.subr.bf16.mxu1 %v10081_v31  ;;  %v17169_v10 = vpop.permute.xlu0 %10060 }
 0xdff   : > { %9465 = vmatprep.subr.bf16.mxu0 %v15799_v58  ;;  %11600 = vmatprep.mubr.msk.bf16.mxu0 %vm17957_vm4, %v16993_v23  ;;  %v10083_v36 = vsel %vm17961_vm14, %v17960_v16, %v17169_v10  ;;  %v10082_v23 = vsel %vm17962_vm0, %v17001_v5, %v17960_v16  ;;  %v17202_v5 = vld.sshfl [vmem:[%s17466_s5 + $0x1c] sm:$0x33 pattern:$0x76325410]  ;;  %vm17975_vm4 = vmmov %vm17972_vm2 }
 0xe00   : > { %v17211_v4 = vcombine.high %v17202_v5, %v17202_v5  ;;  %vm17978_vm14 = vmmov %vm17972_vm2 }
 0xe01   : > { %10135 = vmatpush1.bf16.msra.mxu1 %v10080_v12  ;;  %vm17979_vm0 = vmmov %vm17972_vm2 }
 0xe02   : > { %9466 = vmatpush1.bf16.msra.mxu0 %v17919_v35  ;;  %v10389_v47 = vpop.permute.xlu1 %10388  ;;  %10136 = vmatprep.subr.bf16.mxu1 %v10083_v36  ;;  %v17181_v30 = vpop.permute.xlu0 %10394  ;;  %vm17980_vm15 = vmmov %vm17979_vm0 }
 0xe03   : > { %9467 = vmatprep.subr.bf16.mxu0 %v15799_v58  ;;  %v10426_v31 = vsel %vm17976_vm12, %v10389_v47, %v17167_v28  ;;  %v10428_v47 = vsel %vm17979_vm0, %v17181_v30, %v17156_v41  ;;  %vm17986_vm5 = vmmov %vm17979_vm0 }
 0xe04   : > { %vm17987_vm13 = vmmov %vm17979_vm0 }
 0xe05   : > { %10137 = vmatpush1.bf16.msra.mxu1 %v10082_v23 }
 0xe06   : > { %9468 = vmatpush1.bf16.msra.mxu0 %v16588_v13  ;;  %v17194_v35 = vpop.permute.xlu1 %10398  ;;  %11662 = vmatprep.subr.msk.bf16.mxu1 %vm543_vm1, %v10085_v61  ;;  %v17197_v2 = vpop.permute.xlu0 %10404  ;;  %v10419_v13 = vsel %vm17966_vm11, %v17063_v0, %v17022_v40  ;;  %v10420_v0 = vsel %vm17970_vm9, %v17068_v55, %v17045_v29  ;;  %v10425_v29 = vsel %vm17973_vm3, %v17103_v17, %v17154_v1  ;;  %v9420_v17 = vsel %vm543_vm1, %v17949_v7, 0  ;;  %vm17984_vm11 = vmmov %vm17979_vm0 }
 0xe07   : > { %9469 = vmatprep.subr.bf16.mxu0 %v15799_v58  ;;  %vm17989_vm9 = vmmov %vm17979_vm0 }
 0xe09   : > { %10139 = vmatpush1.bf16.msra.mxu1 %v10114_v21  ;;  %v17982_v21 = vld [vmem:[#allocation24_spill] sm:$0xff] }
 0xe0a   : > { %9470 = vmatpush1.bf16.msra.mxu0 %v16593_v11  ;;  %v17214_v37 = vpop.permute.xlu1 %10402  ;;  %10472 = vmatprep.subr.bf16.mxu1 %v10419_v13  ;;  %v17216_v19 = vpop.permute.xlu0 %10408 }
 0xe0b   : > { %9471 = vmatprep.subr.bf16.mxu0 %v15799_v58  ;;  %v10431_v7 = vsel %vm17980_vm15, %v17214_v37, %v17197_v2 }
 0xe0c   : > { %10155 = vmatmul.mubr.bf16.vlgmr.msra.gmra.mrb[40].mxu1 %v17050_v20 }
 0xe0d   : > { %10473 = vmatpush1.bf16.msra.mxu1 %v10418_v57  ;;  %11695 = vmatprep.mubr.msk.bf16.mxu1 %vm17969_vm6, %v17211_v4  ;;  %vm17988_vm6 = vmmov %vm17979_vm0 }
 0xe0e   : > { %9472 = vmatpush1.bf16.msra.mxu0 %v16628_v32  ;;  %v10401_v11 = vpop.permute.xlu1 %10400  ;;  %10474 = vmatprep.subr.bf16.mxu1 %v10421_v53  ;;  %v10407_v46 = vpop.permute.xlu0 %10406  ;;  %v10422_v32 = vsel %vm17972_vm2, %v17133_v44, %v17114_v59  ;;  %v10427_v59 = vsel %vm17975_vm4, %v17167_v28, %v17138_v8  ;;  %vm17993_vm2 = vmmov %vm17991_vm8 }
 0xe0f   : > { %9473 = vmatprep.subr.bf16.mxu0 %v15799_v58  ;;  %v10432_v53 = vsel %vm17987_vm13, %v10407_v46, %v17216_v19  ;;  %vm17994_vm3 = vmmov %vm17993_vm2 }
 0xe10   : > { %vm17997_vm4 = vmmov %vm17993_vm2 }
 0xe11   : > { %10475 = vmatpush1.bf16.msra.mxu1 %v10420_v0  ;;  %vm17998_vm12 = vmmov %vm17993_vm2 }
 0xe12   : > { %9474 = vmatpush1.bf16.msra.mxu0 %v16633_v25  ;;  %v10413_v52 = vpop.permute.xlu1 %10412  ;;  %10476 = vmatprep.subr.bf16.mxu1 %v10423_v22  ;;  %v10415_v18 = vpop.permute.xlu0 %10414  ;;  %vm18001_vm0 = vmmov %vm17993_vm2 }
 0xe13   : > { %9475 = vmatprep.subr.bf16.mxu0 %v15799_v58  ;;  %v10434_v0 = vsel %vm17988_vm6, %v10413_v52, %v10415_v18  ;;  %vm18003_vm15 = vmmov %vm18001_vm0 }
 0xe14   : > { %vm18007_vm13 = vmmov %vm18001_vm0 }
 0xe15   : > { %10477 = vmatpush1.bf16.msra.mxu1 %v10422_v32  ;;  %vm18008_vm6 = vmmov %vm18001_vm0 }
 0xe16   : > { %9476 = vmatpush1.bf16.msra.mxu0 %v16678_v62  ;;  %v17245_v55 = vpop.permute.xlu1 %10416  ;;  %10478 = vmatprep.subr.bf16.mxu1 %v10425_v29  ;;  %v10717_v25 = vpop.permute.xlu0 %10716  ;;  %v17305_v29 = vld.sshfl [vmem:[%s17466_s5 + $0x20] sm:$0x33 pattern:$0x76325410] }
 0xe17   : > { %9477 = vmatprep.subr.bf16.mxu0 %v15799_v58  ;;  %v17313_v52 = vcombine.high %v17305_v29, %v17305_v29 }
 0xe19   : > { %10479 = vmatpush1.bf16.msra.mxu1 %v10424_v45 }
 0xe1a   : > { %9478 = vmatpush1.bf16.msra.mxu0 %v16787_v49  ;;  %v17255_v44 = vpop.permute.xlu1 %10718  ;;  %10480 = vmatprep.subr.bf16.mxu1 %v10427_v59  ;;  %v10715_v62 = vpop.permute.xlu0 %10714  ;;  %v10429_v49 = vsel %vm17978_vm14, %v17156_v41, %v17194_v35  ;;  %v10430_v41 = vsel %vm17984_vm11, %v10401_v11, %v17214_v37  ;;  %v10435_v37 = vsel %vm17989_vm9, %v10415_v18, %v17245_v55  ;;  %v17990_v11 = vld [vmem:[#allocation27_spill] sm:$0xff]  ;;  %v17992_v18 = vld [vmem:[#allocation30_spill] sm:$0xff]  ;;  %vm18000_vm14 = vmmov %vm17993_vm2 }
 0xe1b   : > { %9479 = vmatprep.subr.bf16.mxu0 %v15799_v58  ;;  %v10769_v46 = vsel %vm17991_vm8, %v10717_v25, %v17255_v44  ;;  %vm18005_vm11 = vmmov %vm18001_vm0 }
 0xe1c   : > { %v8450_v34 = vpop.f32.mrb[32].mxu0  ;;  %vm18009_vm9 = vmmov %vm17995_vm10 }
 0xe1d   : > { %v17261_v12 = vadd.f32 %v8450_v34, %v17977_v60  ;;  %10481 = vmatpush1.bf16.msra.mxu1 %v10426_v31  ;;  %v8452_v6 = vpop.f32.mrb[33].mxu0  ;;  %v10768_v31 = vsel %vm17993_vm2, %v10715_v62, %v10717_v25  ;;  %v10915_v60 = vld [vmem:[%s13237_s23] sm:$0xff]  ;;  %v10916_v62 = vld [vmem:[%s13237_s23 + $0x8] sm:$0xf]  ;;  %vm18010_vm8 = vmmov %vm18001_vm0 }
 0xe1e   : > { %9480 = vmatpush1.bf16.msra.mxu0 %v9420_v17  ;;  %v10723_v16 = vpop.permute.xlu1 %10722  ;;  %10482 = vmatprep.subr.bf16.mxu1 %v10429_v49  ;;  %v17268_v36 = vpop.permute.xlu0 %10724  ;;  %v17996_v17 = vld [vmem:[#allocation29_spill] sm:$0xff]  ;;  %vm18011_vm2 = vmmov %vm18001_vm0 }
 0xe1f   : > { %9813 = vmatprep.subr.bf16.mxu0 %v15799_v58  ;;  %v8453_v28 = vpop.f32.mrb[34].mxu0  ;;  %v10771_v34 = vsel %vm17994_vm3, %v10723_v16, %v17268_v36  ;;  %10923 = vrot.lane.b32.xlu0 %v10915_v60, %s13107_s12  ;;  %vm18012_vm3 = vmmov %vm18001_vm0 }
 0xe20   : > { %v8454_v23 = vpop.f32.mrb[35].mxu0  ;;  %v10922_v28 = vcombine.high %v10915_v60, %v10915_v60 }
 0xe21   : > { %9496 = vmatmul.mubr.bf16.vlgmr.msra.gmra.mrb[56].mxu0 %v16976_v48  ;;  %10483 = vmatpush1.bf16.msra.mxu1 %v10428_v47  ;;  %v17985_v48 = vld [vmem:[#allocation28_spill] sm:$0xff]  ;;  %v17999_v23 = vld [vmem:[#allocation3_spill] sm:$0xff] }
 0xe22   : > { %9814 = vmatpush1.bf16.msra.mxu0 %v17981_v9  ;;  %v10721_v42 = vpop.permute.xlu1 %10720  ;;  %10484 = vmatprep.subr.bf16.mxu1 %v10431_v7  ;;  %v10729_v61 = vpop.permute.xlu0 %10728 }
 0xe23   : > { %9815 = vmatprep.subr.bf16.mxu0 %v15799_v58  ;;  %11632 = vmatprep.mubr.msk.bf16.mxu0 %vm17983_vm7, %v17982_v21  ;;  %v10770_v25 = vsel %vm17997_vm4, %v10721_v42, %v10723_v16  ;;  %v18002_v21 = vld [vmem:[#allocation5_spill] sm:$0xff]  ;;  %vm18004_vm7 = vmmov %vm18001_vm0 }
 0xe24   : > { %10925 = vrot.lane.b32.xlu1 %v10922_v28, %s13107_s12  ;;  %10927 = vrot.lane.b32.xlu0 %v10916_v62, %s13107_s12  ;;  %vm18014_vm4 = vmmov %vm18001_vm0 }
 0xe25   : > { %10485 = vmatpush1.bf16.msra.mxu1 %v10430_v41 }
 0xe26   : > { %9816 = vmatpush1.bf16.msra.mxu0 %v17985_v48  ;;  %v17285_v30 = vpop.permute.xlu1 %10410  ;;  %v10727_v13 = vpop.permute.xlu0 %10726 }
 0xe27   : > { %9817 = vmatprep.subr.bf16.mxu0 %v15799_v58  ;;  %v10433_v57 = vsel %vm17986_vm5, %v17216_v19, %v17285_v30  ;;  %v10464_v19 = vsel %vm543_vm1, %v10434_v0, 0  ;;  %v10772_v16 = vsel %vm18000_vm14, %v10727_v13, %v10729_v61  ;;  %vm18006_vm5 = vmmov %vm18001_vm0 }
 0xe28   : > { %10486 = vmatprep.subr.bf16.mxu1 %v10433_v57  ;;  %vm18016_vm14 = vmmov %vm18009_vm9 }
 0xe29   : > { %10487 = vmatpush1.bf16.msra.mxu1 %v10432_v53 }
 0xe2a   : > { %9818 = vmatpush1.bf16.msra.mxu0 %v17990_v11  ;;  %v17297_v22 = vpop.permute.xlu1 %10730  ;;  %11694 = vmatprep.subr.msk.bf16.mxu1 %vm543_vm1, %v10435_v37  ;;  %v17300_v32 = vpop.permute.xlu0 %10736  ;;  %v9770_v11 = vsel %vm543_vm1, %v16863_v15, 0 }
 0xe2b   : > { %9819 = vmatprep.subr.bf16.mxu0 %v15799_v58  ;;  %v10773_v47 = vsel %vm17998_vm12, %v10729_v61, %v17297_v22  ;;  %vm18015_vm12 = vmmov %vm18009_vm9 }
 0xe2d   : > { %10489 = vmatpush1.bf16.msra.mxu1 %v10464_v19 }
 0xe2e   : > { %9820 = vmatpush1.bf16.msra.mxu0 %v17992_v18  ;;  %v10735_v45 = vpop.permute.xlu1 %10734  ;;  %10822 = vmatprep.subr.bf16.mxu1 %v10769_v46  ;;  %v10741_v59 = vpop.permute.xlu0 %10740 }
 0xe2f   : > { %9821 = vmatprep.subr.bf16.mxu0 %v15799_v58  ;;  %v10775_v42 = vsel %vm18001_vm0, %v10735_v45, %v17300_v32 }
 0xe30   : > { %10505 = vmatmul.mubr.bf16.vlgmr.msra.gmra.mrb[44].mxu1 %v17202_v5 }
 0xe31   : > { %10823 = vmatpush1.bf16.msra.mxu1 %v10768_v31  ;;  %11727 = vmatprep.mubr.msk.bf16.mxu1 %vm17995_vm10, %v17313_v52  ;;  %vm18013_vm10 = vmmov %vm18001_vm0 }
 0xe32   : > { %9822 = vmatpush1.bf16.msra.mxu0 %v17996_v17  ;;  %v10733_v49 = vpop.permute.xlu1 %10732  ;;  %10824 = vmatprep.subr.bf16.mxu1 %v10771_v34  ;;  %v10739_v6 = vpop.permute.xlu0 %10738  ;;  %v13094_v34 = vld.sshfl [vmem:[%s17466_s5 + $0x14] sm:$0x33 pattern:$0x76325410] }
 0xe33   : > { %9823 = vmatprep.subr.bf16.mxu0 %v15799_v58  ;;  %v10774_v57 = vsel %vm18003_vm15, %v10733_v49, %v10735_v45  ;;  %v10776_v0 = vsel %vm18005_vm11, %v10739_v6, %v10741_v59  ;;  %vm10943_vm15 = vcmask 257024  }
 0xe35   : > { %10825 = vmatpush1.bf16.msra.mxu1 %v10770_v25 }
 0xe36   : > { %9824 = vmatpush1.bf16.msra.mxu0 %v17999_v23  ;;  %v17333_v7 = vpop.permute.xlu1 %10742  ;;  %10826 = vmatprep.subr.bf16.mxu1 %v10773_v47  ;;  %v17335_v9 = vpop.permute.xlu0 %10748 }
 0xe37   : > { %9825 = vmatprep.subr.bf16.mxu0 %v15799_v58  ;;  %v10777_v53 = vsel %vm18004_vm7, %v10741_v59, %v17333_v7 }
 0xe39   : > { %10827 = vmatpush1.bf16.msra.mxu1 %v10772_v16 }
 0xe3a   : > { %9826 = vmatpush1.bf16.msra.mxu0 %v18002_v21  ;;  %v10747_v41 = vpop.permute.xlu1 %10746  ;;  %10828 = vmatprep.subr.bf16.mxu1 %v10775_v42  ;;  %v10753_v48 = vpop.permute.xlu0 %10752 }
 0xe3b   : > { %9827 = vmatprep.subr.bf16.mxu0 %v15799_v58  ;;  %v10779_v18 = vsel %vm18006_vm5, %v10747_v41, %v17335_v9 }
 0xe3d   : > { %10829 = vmatpush1.bf16.msra.mxu1 %v10774_v57 }
 0xe3e   : > { %9828 = vmatpush1.bf16.msra.mxu0 %v17017_v14  ;;  %v10745_v61 = vpop.permute.xlu1 %10744  ;;  %10830 = vmatprep.subr.bf16.mxu1 %v10777_v53  ;;  %v10751_v13 = vpop.permute.xlu0 %10750 }
 0xe3f   : > { %9829 = vmatprep.subr.bf16.mxu0 %v15799_v58  ;;  %v10778_v15 = vsel %vm18007_vm13, %v10745_v61, %v10747_v41  ;;  %v10780_v49 = vsel %vm18010_vm8, %v10751_v13, %v10753_v48 }
 0xe40   : > { %v8756_v37 = vpop.f32.mrb[36].mxu0 }
 0xe41   : > { %v17353_v19 = vadd.f32 %v8756_v37, %v17145_v38  ;;  %v8758_v46 = vpop.f32.mrb[37].mxu0  ;;  %10831 = vmatpush1.bf16.msra.mxu1 %v10776_v0 }
 0xe42   : > { %v17358_v14 = vadd.f32 %v8758_v46, %v17152_v56  ;;  %9830 = vmatpush1.bf16.msra.mxu0 %v9770_v11  ;;  %v17360_v45 = vpop.permute.xlu1 %10754  ;;  %10832 = vmatprep.subr.bf16.mxu1 %v10779_v18  ;;  %v10763_v59 = vpop.permute.xlu0 %10762 }
 0xe43   : > { %10163 = vmatprep.subr.bf16.mxu0 %v15799_v58  ;;  %v8760_v31 = vpop.f32.mrb[38].mxu0  ;;  %v10781_v56 = vsel %vm18008_vm6, %v10753_v48, %v17360_v45 }
 0xe44   : > { %v8761_v38 = vpop.f32.mrb[39].mxu0 }
 0xe45   : > { %9846 = vmatmul.mubr.bf16.vlgmr.msra.gmra.mrb[60].mxu0 %v13094_v34  ;;  %10833 = vmatpush1.bf16.msra.mxu1 %v10778_v15 }
 0xe46   : > { %10164 = vmatpush1.bf16.msra.mxu0 %v16879_v33  ;;  %v10759_v60 = vpop.permute.xlu1 %10758  ;;  %10834 = vmatprep.subr.bf16.mxu1 %v10781_v56  ;;  %v17370_v17 = vpop.permute.xlu0 %10760 }
 0xe47   : > { %10165 = vmatprep.subr.bf16.mxu0 %v15799_v58  ;;  %11664 = vmatprep.mubr.msk.bf16.mxu0 %vm18009_vm9, %v17061_v26  ;;  %v10783_v6 = vsel %vm18011_vm2, %v10759_v60, %v17370_v17 }
 0xe49   : > { %10835 = vmatpush1.bf16.msra.mxu1 %v10780_v49 }
 0xe4a   : > { %10166 = vmatpush1.bf16.msra.mxu0 %v16898_v43  ;;  %v10757_v28 = vpop.permute.xlu1 %10756  ;;  %10836 = vmatprep.subr.bf16.mxu1 %v10783_v6  ;;  %v17381_v25 = vpop.permute.xlu0 %10766 }
 0xe4b   : > { %v10782_v33 = vsel %vm18012_vm3, %v10757_v28, %v10759_v60  ;;  %10167 = vmatprep.subr.bf16.mxu0 %v15799_v58 }
 0xe4d   : > { %10837 = vmatpush1.bf16.msra.mxu1 %v10782_v33 }
 0xe4e   : > { %10168 = vmatpush1.bf16.msra.mxu0 %v16916_v54  ;;  %v10765_v26 = vpop.permute.xlu1 %10764 }
 0xe4f   : > { %v10784_v62 = vsel %vm18013_vm10, %v10763_v59, %v10765_v26  ;;  %v10785_v47 = vsel %vm18014_vm4, %v10765_v26, %v17381_v25  ;;  %10169 = vmatprep.subr.bf16.mxu0 %v15799_v58 }
 0xe50   : > { %v10814_v43 = vsel %vm543_vm1, %v10784_v62, 0  ;;  %11726 = vmatprep.subr.msk.bf16.mxu1 %vm543_vm1, %v10785_v47 }
 0xe51   : > { %10839 = vmatpush1.bf16.msra.mxu1 %v10814_v43 }
 0xe52   : > { %10170 = vmatpush1.bf16.msra.mxu0 %v16927_v27  ;;  %v10120_v27 = vsel %vm543_vm1, %v17006_v50, 0  ;;  %v10470_v50 = vsel %vm543_vm1, %v17245_v55, 0 }
 0xe53   : > { %10171 = vmatprep.subr.bf16.mxu0 %v15799_v58 }
 0xe54   : > { %10855 = vmatmul.mubr.bf16.vlgmr.msra.gmra.mrb[48].mxu1 %v17305_v29 }
 0xe56   : > { %10172 = vmatpush1.bf16.msra.mxu0 %v16942_v24 }
 0xe57   : > { %10173 = vmatprep.subr.bf16.mxu0 %v15799_v58 }
 0xe5a   : > { %10174 = vmatpush1.bf16.msra.mxu0 %v16953_v51 }
 0xe5b   : > { %10175 = vmatprep.subr.bf16.mxu0 %v15799_v58 }
 0xe5e   : > { %10176 = vmatpush1.bf16.msra.mxu0 %v16968_v3 }
 0xe5f   : > { %10177 = vmatprep.subr.bf16.mxu0 %v15799_v58 }
 0xe62   : > { %10178 = vmatpush1.bf16.msra.mxu0 %v17169_v10  ;;  %v10820_v10 = vsel %vm543_vm1, %v17381_v25, 0  ;;  %vm18017_vm1 = vcmask 891904  }
 0xe63   : > { %10179 = vmatprep.subr.bf16.mxu0 %v15799_v58  ;;  %vm18018_vm0 = vmmov %vm18017_vm1 }
 0xe64   : > { %v8797_v54 = vpop.f32.mrb[40].mxu0 }
 0xe65   : > { %v8805_v24 = vadd.f32 %v8797_v54, %v17261_v12  ;;  %v8799_v23 = vpop.f32.mrb[41].mxu0 }
 0xe66   : > { %10180 = vmatpush1.bf16.msra.mxu0 %v10120_v27  ;;  %v8800_v16 = vpop.f32.mrb[42].mxu0 }
 0xe67   : > { %10513 = vmatprep.subr.bf16.mxu0 %v15799_v58  ;;  %v8801_v51 = vpop.f32.mrb[43].mxu0 }
 0xe69   : > { %10196 = vmatmul.mubr.bf16.vlgmr.msra.gmra.mrb[64].mxu0 %v17050_v20 }
 0xe6a   : > { %10514 = vmatpush1.bf16.msra.mxu0 %v17022_v40  ;;  %11696 = vmatprep.mubr.msk.bf16.mxu0 %vm18015_vm12, %v17211_v4 }
 0xe6b   : > { %10515 = vmatprep.subr.bf16.mxu0 %v15799_v58 }
 0xe6e   : > { %10516 = vmatpush1.bf16.msra.mxu0 %v17098_v63 }
 0xe6f   : > { %10517 = vmatprep.subr.bf16.mxu0 %v15799_v58 }
 0xe72   : > { %10518 = vmatpush1.bf16.msra.mxu0 %v17087_v39 }
 0xe73   : > { %10519 = vmatprep.subr.bf16.mxu0 %v15799_v58 }
 0xe76   : > { %10520 = vmatpush1.bf16.msra.mxu0 %v17154_v1 }
 0xe77   : > { %10521 = vmatprep.subr.bf16.mxu0 %v15799_v58 }
 0xe7a   : > { %10522 = vmatpush1.bf16.msra.mxu0 %v17138_v8 }
 0xe7b   : > { %10523 = vmatprep.subr.bf16.mxu0 %v15799_v58 }
 0xe7e   : > { %10524 = vmatpush1.bf16.msra.mxu0 %v17194_v35 }
 0xe7f   : > { %10525 = vmatprep.subr.bf16.mxu0 %v15799_v58 }
 0xe82   : > { %10526 = vmatpush1.bf16.msra.mxu0 %v17197_v2 }
 0xe83   : > { %10527 = vmatprep.subr.bf16.mxu0 %v15799_v58 }
 0xe86   : > { %10528 = vmatpush1.bf16.msra.mxu0 %v17285_v30 }
 0xe87   : > { %10529 = vmatprep.subr.bf16.mxu0 %v15799_v58 }
 0xe88   : > { %v9106_v3 = vpop.f32.mrb[44].mxu0 }
 0xe89   : > { %v9153_v40 = vadd.f32 %v9106_v3, %v17353_v19  ;;  %v9108_v20 = vpop.f32.mrb[45].mxu0 }
 0xe8a   : > { %v9154_v39 = vadd.f32 %v9108_v20, %v17358_v14  ;;  %10530 = vmatpush1.bf16.msra.mxu0 %v10470_v50  ;;  %v9110_v63 = vpop.f32.mrb[46].mxu0 }
 0xe8b   : > { %10863 = vmatprep.subr.bf16.mxu0 %v15799_v58  ;;  %v9111_v8 = vpop.f32.mrb[47].mxu0 }
 0xe8d   : > { %10546 = vmatmul.mubr.bf16.vlgmr.msra.gmra.mrb[68].mxu0 %v17202_v5 }
 0xe8e   : > { %10864 = vmatpush1.bf16.msra.mxu0 %v17255_v44  ;;  %11728 = vmatprep.mubr.msk.bf16.mxu0 %vm18016_vm14, %v17313_v52 }
 0xe8f   : > { %10865 = vmatprep.subr.bf16.mxu0 %v15799_v58 }
 0xe91   : > { %v10924_v60 = vpop.permute.xlu0 %10923 }
 0xe92   : > { %10866 = vmatpush1.bf16.msra.mxu0 %v17268_v36 }
 0xe93   : > { %10867 = vmatprep.subr.bf16.mxu0 %v15799_v58 }
 0xe96   : > { %10868 = vmatpush1.bf16.msra.mxu0 %v17297_v22  ;;  %v10928_v26 = vpop.permute.xlu0 %10927 }
 0xe97   : > { %10869 = vmatprep.subr.bf16.mxu0 %v15799_v58 }
 0xe9a   : > { %10870 = vmatpush1.bf16.msra.mxu0 %v17300_v32 }
 0xe9b   : > { %10871 = vmatprep.subr.bf16.mxu0 %v15799_v58 }
 0xe9e   : > { %10872 = vmatpush1.bf16.msra.mxu0 %v17333_v7 }
 0xe9f   : > { %10873 = vmatprep.subr.bf16.mxu0 %v15799_v58 }
 0xea2   : > { %10874 = vmatpush1.bf16.msra.mxu0 %v17335_v9 }
 0xea3   : > { %10875 = vmatprep.subr.bf16.mxu0 %v15799_v58 }
 0xea6   : > { %10876 = vmatpush1.bf16.msra.mxu0 %v17360_v45 }
 0xea7   : > { %10877 = vmatprep.subr.bf16.mxu0 %v15799_v58 }
 0xeaa   : > { %10878 = vmatpush1.bf16.msra.mxu0 %v17370_v17  ;;  %v10910_v17 = vpop.permute.xlu1 %10909 }
 0xeab   : > { %10879 = vmatprep.subr.bf16.mxu0 %v15799_v58 }
 0xeac   : > { %v9147_v1 = vpop.f32.mrb[48].mxu0 }
 0xead   : > { %v9155_v35 = vadd.f32 %v9147_v1, %v8805_v24  ;;  %v9149_v2 = vpop.f32.mrb[49].mxu0 }
 0xeae   : > { %10880 = vmatpush1.bf16.msra.mxu0 %v10820_v10  ;;  %v9150_v5 = vpop.f32.mrb[50].mxu0  ;;  %v10926_v33 = vpop.permute.xlu1 %10925 }
 0xeaf   : > { %v9151_v4 = vpop.f32.mrb[51].mxu0  ;;  %v10930_v27 = vsel %vm18017_vm1, %v10924_v60, %v10926_v33  ;;  %v10931_v23 = vsel %vm18018_vm0, %v10926_v33, %v10928_v26 }
 0xeb1   : > { %10896 = vmatmul.mubr.bf16.vlgmr.msra.gmra.mrb[72].mxu0 %v17305_v29 }
 0xebb   : > { %v9806_v55 = vpop.f32.mrb[36].mxu1 }
 0xebc   : > { %v9808_v44 = vpop.f32.mrb[37].mxu1 }
 0xebd   : > { %v9810_v12 = vpop.f32.mrb[38].mxu1 }
 0xebe   : > { %v9811_v36 = vpop.f32.mrb[39].mxu1 }
 0xed0   : > { %v9456_v30 = vpop.f32.mrb[52].mxu0 }
 0xed1   : > { %v9503_v22 = vadd.f32 %v9456_v30, %v9153_v40  ;;  %v9458_v32 = vpop.f32.mrb[53].mxu0 }
 0xed2   : > { %v9504_v52 = vadd.f32 %v9458_v32, %v9154_v39  ;;  %v9460_v58 = vpop.f32.mrb[54].mxu0 }
 0xed3   : > { %v9853_v7 = vadd.f32 %v9806_v55, %v9503_v22  ;;  %v9461_v9 = vpop.f32.mrb[55].mxu0 }
 0xed4   : > { %v9854_v42 = vadd.f32 %v9808_v44, %v9504_v52 }
 0xedf   : > { %v10156_v21 = vpop.f32.mrb[40].mxu1 }
 0xee0   : > { %v10203_v41 = vadd.f32 %v10156_v21, %v9853_v7  ;;  %v10158_v48 = vpop.f32.mrb[41].mxu1 }
 0xee1   : > { %v10204_v57 = vadd.f32 %v10158_v48, %v9854_v42  ;;  %v10160_v53 = vpop.f32.mrb[42].mxu1 }
 0xee2   : > { %v10161_v61 = vpop.f32.mrb[43].mxu1 }
 0xef4   : > { %v9497_v13 = vpop.f32.mrb[56].mxu0 }
 0xef5   : > { %v9505_v29 = vadd.f32 %v9497_v13, %v9155_v35  ;;  %v9499_v0 = vpop.f32.mrb[57].mxu0 }
 0xef6   : > { %v9500_v37 = vpop.f32.mrb[58].mxu0 }
 0xef7   : > { %v9501_v11 = vpop.f32.mrb[59].mxu0 }
 0xf03   : > { %v10506_v19 = vpop.f32.mrb[44].mxu1 }
 0xf04   : > { %v10553_v46 = vadd.f32 %v10506_v19, %v10203_v41  ;;  %v10508_v18 = vpop.f32.mrb[45].mxu1 }
 0xf05   : > { %v10554_v14 = vadd.f32 %v10508_v18, %v10204_v57  ;;  %v10510_v45 = vpop.f32.mrb[46].mxu1 }
 0xf06   : > { %v10511_v59 = vpop.f32.mrb[47].mxu1 }
 0xf18   : > { %v9847_v31 = vpop.f32.mrb[60].mxu0 }
 0xf19   : > { %v9855_v15 = vadd.f32 %v9847_v31, %v9505_v29  ;;  %v9849_v38 = vpop.f32.mrb[61].mxu0 }
 0xf1a   : > { %v9850_v34 = vpop.f32.mrb[62].mxu0 }
 0xf1b   : > { %v9851_v56 = vpop.f32.mrb[63].mxu0 }
 0xf27   : > { %v10856_v49 = vpop.f32.mrb[48].mxu1 }
 0xf28   : > { %v10903_v6 = vadd.f32 %v10856_v49, %v10553_v46  ;;  %v10858_v28 = vpop.f32.mrb[49].mxu1 }
 0xf29   : > { %v10904_v25 = vadd.f32 %v10858_v28, %v10554_v14  ;;  %v10860_v62 = vpop.f32.mrb[50].mxu1 }
 0xf2a   : > { %v10912_v47 = vadd.f32 %v10910_v17, %v10903_v6  ;;  %v10861_v43 = vpop.f32.mrb[51].mxu1 }
 0xf2b   : > { %v10913_v54 = vadd.f32 %v10910_v17, %v10904_v25 }
 0xf2c   : > { %v10917_v24 = vmul.f32 0.2, %v10912_v47 }
 0xf2d   : > { %v10918_v16 = vmul.f32 0.2, %v10913_v54 }
 0xf2e   : > { %v10935_v51 = vadd.f32 %v10930_v27, %v10917_v24 }
 0xf2f   : > { %v10936_v3 = vadd.f32 %v10931_v23, %v10918_v16 }
 0xf31   : > { %v10940_v50 = vcombine.low %v10935_v51, %v10936_v3 }
 0xf33   : > { %10942 = vst [vmem:[%s386_s16] sm:$0xff] %v10940_v50 }
 0xf3c   : > { %v10197_v40 = vpop.f32.mrb[64].mxu0 }
 0xf3d   : > { %v10205_v20 = vadd.f32 %v10197_v40, %v9855_v15  ;;  %v10199_v39 = vpop.f32.mrb[65].mxu0 }
 0xf3e   : > { %v10200_v63 = vpop.f32.mrb[66].mxu0 }
 0xf3f   : > { %v10201_v8 = vpop.f32.mrb[67].mxu0 }
 0xf60   : > { %v10547_v1 = vpop.f32.mrb[68].mxu0 }
 0xf61   : > { %v10555_v10 = vadd.f32 %v10547_v1, %v10205_v20  ;;  %v10549_v35 = vpop.f32.mrb[69].mxu0 }
 0xf62   : > { %v10550_v2 = vpop.f32.mrb[70].mxu0 }
 0xf63   : > { %v10551_v5 = vpop.f32.mrb[71].mxu0 }
 0xf84   : > { %v10897_v4 = vpop.f32.mrb[72].mxu0 }
 0xf85   : > { %v10905_v55 = vadd.f32 %v10897_v4, %v10555_v10  ;;  %v10899_v44 = vpop.f32.mrb[73].mxu0 }
 0xf86   : > { %v10900_v12 = vpop.f32.mrb[74].mxu0 }
 0xf87   : > { %v10914_v36 = vadd.f32 %v10910_v17, %v10905_v55  ;;  %v10901_v30 = vpop.f32.mrb[75].mxu0 }
 0xf89   : > { %v10919_v22 = vmul.f32 0.2, %v10914_v36 }
 0xf8b   : > { %v10937_v32 = vadd.f32 %v10928_v26, %v10919_v22 }
 0xf8d   : > { %10944 = vst.msk [vmem:[%s386_s16 + $0x8] sm:$0xf] %vm10943_vm15, %v10937_v32 }
 0xf8e PF: > { %s21_s17 = sadd.s32 1, %s13101_s17  }
 0xf8f   : > { %p18_p4 = scmp.ge.s32.totalorder %s21_s17, 4  }
 0xf91   :  { %20 = sbr.rel (!%p18_p4) target bundleno = 1 (0x1), region = 134 }

</bundles_post_ra>
